<compile_context>
chip_gen: v7x
topology: tpu7x:2x2x1
jax: 0.10.0
libtpu: 0.0.40
codegen_flags: <defaults>
</compile_context>

<pallas_src>
import functools

import numpy as np
import jax
import jax.numpy as jnp
from jax.experimental import pallas as pl
from jax.experimental.pallas import tpu as pltpu

NODE_TYPE_SIZE = 9      # common.NodeType.SIZE
EDGE_FEAT_SIZE = 8      # rel_world(3) + |rel_world|(1) + rel_mesh(3) + |rel_mesh|(1)
LATENT = 128
NUM_MP_STEPS = 15
OUTPUT_SIZE = 3         # params['size']

TILE_M = 1024           # row tile: double-buffered 1024-row tiles ~3-4 MB VMEM
MIN_TILES = 2           # keep >=2 grid steps so v7x megacore has work per core


def _round_up(x, m):
    return ((x + m - 1) // m) * m


def _tile_and_pad(rows, max_tile=TILE_M, min_tiles=MIN_TILES):
    """Row tile (multiple of 16 for bf16 sublane packing) + padded row count.

    Guarantees >= min_tiles grid steps whenever rows allow, so the 'parallel'
    grid axis can be sharded across both v7x TensorCores.
    """
    rows = int(rows)
    tile = min(max_tile, _round_up(max(rows, 16), 16))
    if rows > 16 and _round_up(rows, tile) // tile < min_tiles:
        tile = _round_up(-(-rows // min_tiles), 16)
    return tile, _round_up(rows, tile)


# ----------------------------------------------------------------------------
# Pallas kernels
# ----------------------------------------------------------------------------
def _mlp_tail(pre1, b1_ref, w2_ref, b2_ref, w3_ref, b3_ref,
              gamma_ref, beta_ref, use_ln):
    """relu(pre1+b1) -> relu(@W2+b2) -> @W3+b3 -> optional LayerNorm (f32)."""
    h = jnp.maximum(pre1 + b1_ref[...], 0.0)
    h = jnp.dot(h.astype(jnp.bfloat16), w2_ref[...],
                preferred_element_type=jnp.float32)
    h = jnp.maximum(h + b2_ref[...], 0.0)
    y = jnp.dot(h.astype(jnp.bfloat16), w3_ref[...],
                preferred_element_type=jnp.float32) + b3_ref[...]
    if use_ln:
        mean = jnp.mean(y, axis=-1, keepdims=True)
        var = jnp.mean(jnp.square(y - mean), axis=-1, keepdims=True)
        y = (y - mean) * jax.lax.rsqrt(var + 1e-5) * gamma_ref[...] + beta_ref[...]
    return y


def _mlp_kernel(*refs, num_inputs, use_ln, residual_idx, pair_output, fuse_update):
    """Generic split-W1 MLP tile kernel.

    ref layout: x_0..x_{k-1}, w1_0..w1_{k-1}, b1, w2, b2, w3, b3,
                [gamma, beta] if use_ln, [pos, out_mean, out_std] if fuse_update,
                then output ref(s).
    """
    xs = [refs[i][...] for i in range(num_inputs)]
    idx = num_inputs
    w1s = refs[idx:idx + num_inputs]
    idx += num_inputs
    b1, w2, b2, w3, b3 = refs[idx:idx + 5]
    idx += 5
    gamma = beta = None
    if use_ln:
        gamma, beta = refs[idx:idx + 2]
        idx += 2
    if fuse_update:
        pos_ref, omean_ref, ostd_ref = refs[idx:idx + 3]
        idx += 3

    # First layer: accumulate contributions of the split W1 (replaces XLA concat).
    pre = jnp.dot(xs[0].astype(jnp.bfloat16), w1s[0][...],
                  preferred_element_type=jnp.float32)
    for x, w in zip(xs[1:], w1s[1:]):
        pre = pre + jnp.dot(x.astype(jnp.bfloat16), w[...],
                            preferred_element_type=jnp.float32)

    y = _mlp_tail(pre, b1, w2, b2, w3, b3, gamma, beta, use_ln)

    if pair_output:
        # Edge block: pre-residual update (f32, segment-sum input) + residual
        # latents (bf16).
        refs[idx][...] = y.astype(refs[idx].dtype)
        refs[idx + 1][...] = (y + xs[residual_idx].astype(jnp.float32)
                              ).astype(refs[idx + 1].dtype)
    elif fuse_update:
        # Decoder: output_normalizer.inverse(net_out) + world_pos, fused.
        refs[idx][...] = (pos_ref[...] + y * ostd_ref[...] + omean_ref[...]
                          ).astype(refs[idx].dtype)
    elif residual_idx is not None:
        # Node block: fused residual.
        refs[idx][...] = (y + xs[residual_idx].astype(jnp.float32)
                          ).astype(refs[idx].dtype)
    else:
        refs[idx][...] = y.astype(refs[idx].dtype)


def _edge_encoder_kernel(ws_ref, wr_ref, ms_ref, mr_ref, mean_ref, istd_ref,
                         w1a_ref, w1b_ref, w1c_ref, w1d_ref,
                         b1_ref, w2_ref, b2_ref, w3_ref, b3_ref,
                         gamma_ref, beta_ref, o_ref):
    """Fused edge-feature construction + edge normalizer + encoder MLP + LN."""
    rel_w = ws_ref[...] - wr_ref[...]
    nrm_w = jnp.sqrt(jnp.sum(rel_w * rel_w, axis=-1, keepdims=True))
    rel_m = ms_ref[...] - mr_ref[...]
    nrm_m = jnp.sqrt(jnp.sum(rel_m * rel_m, axis=-1, keepdims=True))
    mean = mean_ref[...]
    istd = istd_ref[...]
    rw = (rel_w - mean[:, 0:3]) * istd[:, 0:3]
    nw = (nrm_w - mean[:, 3:4]) * istd[:, 3:4]
    rm = (rel_m - mean[:, 4:7]) * istd[:, 4:7]
    nm = (nrm_m - mean[:, 7:8]) * istd[:, 7:8]
    # First layer of the encoder against the row-split W1 (no (E,8) concat).
    pre = jnp.dot(rw.astype(jnp.bfloat16), w1a_ref[...],
                  preferred_element_type=jnp.float32)
    pre = pre + jnp.dot(rm.astype(jnp.bfloat16), w1c_ref[...],
                        preferred_element_type=jnp.float32)
    pre = pre + nw * w1b_ref[...].astype(jnp.float32)
    pre = pre + nm * w1d_ref[...].astype(jnp.float32)
    y = _mlp_tail(pre, b1_ref, w2_ref, b2_ref, w3_ref, b3_ref,
                  gamma_ref, beta_ref, True)
    o_ref[...] = y.astype(o_ref.dtype)


# ----------------------------------------------------------------------------
# pallas_call wrappers
# ----------------------------------------------------------------------------
def _row_spec(tile, d):
    return pl.BlockSpec((tile, d), lambda i: (i, 0))


def _full_spec(a):
    # Block == full array, constant index -> stays resident across the row grid.
    return pl.BlockSpec(a.shape, lambda i: (0,) * a.ndim)


_PARALLEL = pltpu.CompilerParams(dimension_semantics=("parallel",))


def mlp_call(xs, p, tile_m, *, use_ln, residual_idx=None, pair_output=False,
             update=None, out_dtype=jnp.float32):
    rows = xs[0].shape[0]
    assert rows % tile_m == 0
    assert len(p['w1s']) == len(xs)
    grid = (rows // tile_m,)
    out_dim = p['w3'].shape[1]
    fuse_update = update is not None

    args, in_specs = [], []
    for x in xs:
        args.append(x)
        in_specs.append(_row_spec(tile_m, x.shape[1]))
    for w in p['w1s']:
        args.append(w)
        in_specs.append(_full_spec(w))
    for name in ('b1', 'w2', 'b2', 'w3', 'b3'):
        args.append(p[name])
        in_specs.append(_full_spec(p[name]))
    if use_ln:
        for name in ('gamma', 'beta'):
            args.append(p[name])
            in_specs.append(_full_spec(p[name]))
    if fuse_update:
        pos, omean, ostd = update
        args += [pos, omean, ostd]
        in_specs += [_row_spec(tile_m, pos.shape[1]),
                     _full_spec(omean), _full_spec(ostd)]

    if pair_output:
        # (pre-residual update for aggregation [f32], post-residual latents [bf16])
        out_shape = (jax.ShapeDtypeStruct((rows, out_dim), jnp.float32),
                     jax.ShapeDtypeStruct((rows, out_dim), out_dtype))
        out_specs = (_row_spec(tile_m, out_dim), _row_spec(tile_m, out_dim))
    else:
        out_shape = jax.ShapeDtypeStruct((rows, out_dim), out_dtype)
        out_specs = _row_spec(tile_m, out_dim)

    return pl.pallas_call(
        functools.partial(_mlp_kernel, num_inputs=len(xs), use_ln=use_ln,
                          residual_idx=residual_idx, pair_output=pair_output,
                          fuse_update=fuse_update),
        grid=grid,
        out_shape=out_shape,
        in_specs=in_specs,
        out_specs=out_specs,
        compiler_params=_PARALLEL,
    )(*args)


def edge_encoder_call(ws, wr, ms, mr, mean, istd, p, tile_m,
                      out_dtype=jnp.bfloat16):
    rows = ws.shape[0]
    assert rows % tile_m == 0
    grid = (rows // tile_m,)
    out_dim = p['w3'].shape[1]
    w1a, w1b, w1c, w1d = p['w1s']
    args = [ws, wr, ms, mr, mean, istd, w1a, w1b, w1c, w1d,
            p['b1'], p['w2'], p['b2'], p['w3'], p['b3'], p['gamma'], p['beta']]
    in_specs = ([_row_spec(tile_m, 3)] * 4
                + [_full_spec(mean), _full_spec(istd)]
                + [_full_spec(a) for a in args[6:]])
    return pl.pallas_call(
        _edge_encoder_kernel,
        grid=grid,
        out_shape=jax.ShapeDtypeStruct((rows, out_dim), out_dtype),
        in_specs=in_specs,
        out_specs=_row_spec(tile_m, out_dim),
        compiler_params=_PARALLEL,
    )(*args)


# ----------------------------------------------------------------------------
# Parameter / normalizer-stat init (deterministic, synthetic)
# ----------------------------------------------------------------------------
def _glorot(key, shape):
    fan_in, fan_out = shape
    lim = float(np.sqrt(6.0 / (fan_in + fan_out)))
    return jax.random.uniform(key, shape, jnp.float32, -lim, lim)


def init_mlp(key, in_dims, out_dim, latent=LATENT):
    """MLP with W1 stored as row slices (one per concatenated input chunk)."""
    k1, k2, k3 = jax.random.split(key, 3)
    total_in = int(sum(in_dims))
    w1 = _glorot(k1, (total_in, latent))
    splits = [int(s) for s in np.cumsum(in_dims)[:-1]]
    w1s = [w.astype(jnp.bfloat16) for w in jnp.split(w1, splits, axis=0)]
    return dict(
        w1s=w1s,
        b1=jnp.zeros((1, latent), jnp.float32),
        w2=_glorot(k2, (latent, latent)).astype(jnp.bfloat16),
        b2=jnp.zeros((1, latent), jnp.float32),
        w3=_glorot(k3, (latent, out_dim)).astype(jnp.bfloat16),
        b3=jnp.zeros((1, out_dim), jnp.float32),
        gamma=jnp.ones((1, out_dim), jnp.float32),
        beta=jnp.zeros((1, out_dim), jnp.float32),
    )


def init_params(key):
    keys = jax.random.split(key, 40)
    return {
        'node_encoder': init_mlp(keys[0], [NODE_TYPE_SIZE], LATENT),
        'edge_encoder': init_mlp(keys[1], [3, 1, 3, 1], LATENT),
        'decoder': init_mlp(keys[2], [LATENT], OUTPUT_SIZE),
        'blocks': [dict(edge=init_mlp(keys[3 + 2 * i], [LATENT] * 3, LATENT),
                        node=init_mlp(keys[4 + 2 * i], [LATENT] * 2, LATENT))
                   for i in range(NUM_MP_STEPS)],
        # Normalizer accumulated statistics (synthetic, deterministic).
        'node_norm_mean': jnp.zeros((1, NODE_TYPE_SIZE), jnp.float32),
        'node_norm_istd': jnp.ones((1, NODE_TYPE_SIZE), jnp.float32),
        'edge_norm_mean': 0.05 * jax.random.normal(keys[34], (1, EDGE_FEAT_SIZE)),
        'edge_norm_istd': 1.0 / (1.0 + 0.1 * jnp.abs(
            jax.random.normal(keys[35], (1, EDGE_FEAT_SIZE)))),
        'out_norm_mean': 0.01 * jax.random.normal(keys[36], (1, OUTPUT_SIZE)),
        'out_norm_std': 1.0 + 0.1 * jnp.abs(
            jax.random.normal(keys[37], (1, OUTPUT_SIZE))),
    }


# ----------------------------------------------------------------------------
# Graph construction glue (common.triangles_to_edges) -- host-side numpy.
# ----------------------------------------------------------------------------
def triangles_to_edges(cells):
    # TODO(synk): data-dependent dedup (np.unique) has no clean Pallas
    # equivalent; done host-side like the original preprocessing.
    e = np.concatenate([cells[:, [0, 1]], cells[:, [1, 2]], cells[:, [2, 0]]], axis=0)
    e = np.sort(e, axis=1)
    e = np.unique(e, axis=0)
    senders = np.concatenate([e[:, 0], e[:, 1]]).astype(np.int32)
    receivers = np.concatenate([e[:, 1], e[:, 0]]).astype(np.int32)
    # Sort by receiver so segment_sum can use indices_are_sorted=True
    # (sum aggregation is permutation-invariant, so semantics are unchanged).
    order = np.argsort(receivers, kind='stable')
    return senders[order], receivers[order]


# ----------------------------------------------------------------------------
# Full forward pass (Model.forward; is_training=False -> _update)
# ----------------------------------------------------------------------------
def model_forward(params, world_pos, mesh_pos, node_type, senders, receivers,
                  is_training=False):
    n = world_pos.shape[0]
    e = senders.shape[0]

    # Pad rows once, up-front, to row-tile multiples (tiles are multiples of 16
    # for bf16 sublane packing).  Dummy edges attach to a dummy padded node so
    # real-node aggregation is untouched.
    e_tile, e_pad = _tile_and_pad(e)
    need_dummy = e_pad > e
    n_eff = n + (1 if need_dummy else 0)
    n_tile, n_pad = _tile_and_pad(n_eff)

    wp = jnp.pad(world_pos, ((0, n_pad - n), (0, 0)))
    mp = jnp.pad(mesh_pos, ((0, n_pad - n), (0, 0)))
    nt = jnp.pad(node_type, ((0, n_pad - n), (0, 0)))
    snd = jnp.pad(senders, (0, e_pad - e), constant_values=n)
    rcv = jnp.pad(receivers, (0, e_pad - e), constant_values=n)

    # _build_graph: node features = normalized one-hot node type (tiny; XLA).
    one_hot = jax.nn.one_hot(nt[:, 0].astype(jnp.int32),
                             NODE_TYPE_SIZE, dtype=jnp.float32)
    node_feats = (one_hot - params['node_norm_mean']) * params['node_norm_istd']

    # Endpoint gathers for edge features (XLA gather), then fused
    # feature-construction + normalization + encoder kernel (bf16 latents out).
    ws = jnp.take(wp, snd, axis=0)
    wr = jnp.take(wp, rcv, axis=0)
    ms = jnp.take(mp, snd, axis=0)
    mr = jnp.take(mp, rcv, axis=0)
    edge_latents = edge_encoder_call(ws, wr, ms, mr,
                                     params['edge_norm_mean'],
                                     params['edge_norm_istd'],
                                     params['edge_encoder'], e_tile)
    node_latents = mlp_call([node_feats], params['node_encoder'], n_tile,
                            use_ln=True, out_dtype=jnp.bfloat16)

    # Processor: 15 GraphNetBlocks, aggregator='sum', residual connections.
    for blk in params['blocks']:
        # TODO(synk): sender/receiver row gathers stay in XLA (halved bytes now
        # that latents are bf16); fusing them into the kernel input DMA needs a
        # data-dependent per-row gather (scalar-prefetched indices + per-row DMA).
        x_s = jnp.take(node_latents, snd, axis=0)
        x_r = jnp.take(node_latents, rcv, axis=0)
        # Kernel emits (pre-residual f32 update for aggregation, bf16 latents).
        edge_update, edge_latents = mlp_call(
            [x_s, x_r, edge_latents], blk['edge'], e_tile,
            use_ln=True, residual_idx=2, pair_output=True,
            out_dtype=jnp.bfloat16)
        # TODO(synk): scatter-add aggregation left to XLA (sorted segment_sum,
        # f32 accumulation); a fused Pallas sorted-segment-sum + node MLP would
        # drop one (N,128)+(E,128) round trip per step.
        agg = jax.ops.segment_sum(edge_update, rcv, num_segments=n_pad,
                                  indices_are_sorted=True)
        node_latents = mlp_call([node_latents, agg], blk['node'], n_tile,
                                use_ln=True, residual_idx=0,
                                out_dtype=jnp.bfloat16)

    if is_training:
        net_out = mlp_call([node_latents], params['decoder'], n_tile, use_ln=False)
        return net_out[:n]

    # Decoder with fused _update: pos + output_normalizer.inverse(net_out).
    pos = mlp_call([node_latents], params['decoder'], n_tile, use_ln=False,
                   update=(wp, params['out_norm_mean'], params['out_norm_std']))
    return pos[:n]


# ----------------------------------------------------------------------------
# Example run
# ----------------------------------------------------------------------------
if __name__ == "__main__":
    key = jax.random.PRNGKey(0)
    kp, kw = jax.random.split(key)

    # Small 8x8 cloth grid: 64 nodes, 98 triangles.
    G = 8
    N = G * G
    ii, jj = np.meshgrid(np.arange(G), np.arange(G), indexing='ij')
    idx = lambda a, b: a * G + b
    tri = []
    for i in range(G - 1):
        for j in range(G - 1):
            a, b, c, d = idx(i, j), idx(i, j + 1), idx(i + 1, j), idx(i + 1, j + 1)
            tri.append([a, b, d])
            tri.append([a, d, c])
    cells = np.array(tri, dtype=np.int32)                      # (98, 3)
    senders_np, receivers_np = triangles_to_edges(cells)        # (E,), (E,)

    mesh_xy = np.stack([ii.ravel() / (G - 1), jj.ravel() / (G - 1)],
                       axis=-1).astype(np.float32)
    mesh_pos = jnp.concatenate(
        [jnp.asarray(mesh_xy), jnp.zeros((N, 1), jnp.float32)], axis=-1)   # (N, 3)
    world_pos = mesh_pos + 0.01 * jax.random.normal(kw, (N, 3), jnp.float32)
    node_type_np = np.zeros((N, 1), np.int32)
    node_type_np[0, 0] = 3       # a couple of handle nodes
    node_type_np[G - 1, 0] = 3
    node_type = jnp.asarray(node_type_np)

    params = init_params(kp)

    fwd = jax.jit(model_forward)
    out = fwd(params, world_pos, mesh_pos, node_type,
              jnp.asarray(senders_np), jnp.asarray(receivers_np))
    out = jax.block_until_ready(out)

    assert out.shape == (N, 3), out.shape
    assert np.all(np.isfinite(np.asarray(out)))
    print("KERNEL_OK")
</pallas_src>

<mosaic_0001>
module attributes {stable_mosaic.version = 11 : i64} {
  func.func @_edge_encoder_kernel(%arg0: i32, %arg1: memref<176x3xf32, #tpu.memory_space<vmem>>, %arg2: memref<176x3xf32, #tpu.memory_space<vmem>>, %arg3: memref<176x3xf32, #tpu.memory_space<vmem>>, %arg4: memref<176x3xf32, #tpu.memory_space<vmem>>, %arg5: memref<1x8xf32, #tpu.memory_space<vmem>>, %arg6: memref<1x8xf32, #tpu.memory_space<vmem>>, %arg7: memref<3x128xbf16, #tpu.memory_space<vmem>>, %arg8: memref<1x128xbf16, #tpu.memory_space<vmem>>, %arg9: memref<3x128xbf16, #tpu.memory_space<vmem>>, %arg10: memref<1x128xbf16, #tpu.memory_space<vmem>>, %arg11: memref<1x128xf32, #tpu.memory_space<vmem>>, %arg12: memref<128x128xbf16, #tpu.memory_space<vmem>>, %arg13: memref<1x128xf32, #tpu.memory_space<vmem>>, %arg14: memref<128x128xbf16, #tpu.memory_space<vmem>>, %arg15: memref<1x128xf32, #tpu.memory_space<vmem>>, %arg16: memref<1x128xf32, #tpu.memory_space<vmem>>, %arg17: memref<1x128xf32, #tpu.memory_space<vmem>>, %arg18: memref<176x128xbf16, #tpu.memory_space<vmem>>) attributes {dimension_semantics = [#tpu.dimension_semantics<parallel>], iteration_bounds = array<i64: 2>, scalar_prefetch = 0 : i64, scratch_operands = 0 : i64, tpu.core_type = #tpu.core_type<tc>, window_params = [{transform_indices = @transform_0, window_bounds = array<i64: 176, 3>}, {transform_indices = @transform_1, window_bounds = array<i64: 176, 3>}, {transform_indices = @transform_2, window_bounds = array<i64: 176, 3>}, {transform_indices = @transform_3, window_bounds = array<i64: 176, 3>}, {pipeline_mode = #tpu.pipeline_mode<synchronous>, transform_indices = @transform_4, window_bounds = array<i64: 1, 8>}, {pipeline_mode = #tpu.pipeline_mode<synchronous>, transform_indices = @transform_5, window_bounds = array<i64: 1, 8>}, {pipeline_mode = #tpu.pipeline_mode<synchronous>, transform_indices = @transform_6, window_bounds = array<i64: 3, 128>}, {pipeline_mode = #tpu.pipeline_mode<synchronous>, transform_indices = @transform_7, window_bounds = array<i64: 1, 128>}, {pipeline_mode = #tpu.pipeline_mode<synchronous>, transform_indices = @transform_8, window_bounds = array<i64: 3, 128>}, {pipeline_mode = #tpu.pipeline_mode<synchronous>, transform_indices = @transform_9, window_bounds = array<i64: 1, 128>}, {pipeline_mode = #tpu.pipeline_mode<synchronous>, transform_indices = @transform_10, window_bounds = array<i64: 1, 128>}, {pipeline_mode = #tpu.pipeline_mode<synchronous>, transform_indices = @transform_11, window_bounds = array<i64: 128, 128>}, {pipeline_mode = #tpu.pipeline_mode<synchronous>, transform_indices = @transform_12, window_bounds = array<i64: 1, 128>}, {pipeline_mode = #tpu.pipeline_mode<synchronous>, transform_indices = @transform_13, window_bounds = array<i64: 128, 128>}, {pipeline_mode = #tpu.pipeline_mode<synchronous>, transform_indices = @transform_14, window_bounds = array<i64: 1, 128>}, {pipeline_mode = #tpu.pipeline_mode<synchronous>, transform_indices = @transform_15, window_bounds = array<i64: 1, 128>}, {pipeline_mode = #tpu.pipeline_mode<synchronous>, transform_indices = @transform_16, window_bounds = array<i64: 1, 128>}, {transform_indices = @transform_17, window_bounds = array<i64: 176, 128>}]} {
    %c0 = arith.constant 0 : index
    %c0_0 = arith.constant 0 : index
    %0 = vector.load %arg1[%c0, %c0_0] : memref<176x3xf32, #tpu.memory_space<vmem>>, vector<176x3xf32>
    %c0_1 = arith.constant 0 : index
    %c0_2 = arith.constant 0 : index
    %1 = vector.load %arg2[%c0_1, %c0_2] : memref<176x3xf32, #tpu.memory_space<vmem>>, vector<176x3xf32>
    %2 = arith.subf %0, %1 : vector<176x3xf32>
    %3 = arith.mulf %2, %2 : vector<176x3xf32>
    %cst = arith.constant dense<0.000000e+00> : vector<176xf32>
    %4 = vector.multi_reduction <add>, %3, %cst [1] : vector<176x3xf32> to vector<176xf32>
    %5 = vector.shape_cast %4 : vector<176xf32> to vector<176x1xf32>
    %6 = math.sqrt %5 : vector<176x1xf32>
    %c0_3 = arith.constant 0 : index
    %c0_4 = arith.constant 0 : index
    %7 = vector.load %arg3[%c0_3, %c0_4] : memref<176x3xf32, #tpu.memory_space<vmem>>, vector<176x3xf32>
    %c0_5 = arith.constant 0 : index
    %c0_6 = arith.constant 0 : index
    %8 = vector.load %arg4[%c0_5, %c0_6] : memref<176x3xf32, #tpu.memory_space<vmem>>, vector<176x3xf32>
    %9 = arith.subf %7, %8 : vector<176x3xf32>
    %10 = arith.mulf %9, %9 : vector<176x3xf32>
    %cst_7 = arith.constant dense<0.000000e+00> : vector<176xf32>
    %11 = vector.multi_reduction <add>, %10, %cst_7 [1] : vector<176x3xf32> to vector<176xf32>
    %12 = vector.shape_cast %11 : vector<176xf32> to vector<176x1xf32>
    %13 = math.sqrt %12 : vector<176x1xf32>
    %c0_8 = arith.constant 0 : index
    %c0_9 = arith.constant 0 : index
    %14 = vector.load %arg5[%c0_8, %c0_9] : memref<1x8xf32, #tpu.memory_space<vmem>>, vector<1x8xf32>
    %c0_10 = arith.constant 0 : index
    %c0_11 = arith.constant 0 : index
    %15 = vector.load %arg6[%c0_10, %c0_11] : memref<1x8xf32, #tpu.memory_space<vmem>>, vector<1x8xf32>
    %16 = vector.extract_strided_slice %14 {offsets = [0, 0], sizes = [1, 3], strides = [1, 1]} : vector<1x8xf32> to vector<1x3xf32>
    %17 = vector.broadcast %16 : vector<1x3xf32> to vector<176x3xf32>
    %18 = arith.subf %2, %17 : vector<176x3xf32>
    %19 = vector.extract_strided_slice %15 {offsets = [0, 0], sizes = [1, 3], strides = [1, 1]} : vector<1x8xf32> to vector<1x3xf32>
    %20 = vector.broadcast %19 : vector<1x3xf32> to vector<176x3xf32>
    %21 = arith.mulf %18, %20 : vector<176x3xf32>
    %22 = vector.extract_strided_slice %14 {offsets = [0, 3], sizes = [1, 1], strides = [1, 1]} : vector<1x8xf32> to vector<1x1xf32>
    %23 = vector.broadcast %22 : vector<1x1xf32> to vector<176x1xf32>
    %24 = arith.subf %6, %23 : vector<176x1xf32>
    %25 = vector.extract_strided_slice %15 {offsets = [0, 3], sizes = [1, 1], strides = [1, 1]} : vector<1x8xf32> to vector<1x1xf32>
    %26 = vector.broadcast %25 : vector<1x1xf32> to vector<176x1xf32>
    %27 = arith.mulf %24, %26 : vector<176x1xf32>
    %28 = vector.extract_strided_slice %14 {offsets = [0, 4], sizes = [1, 3], strides = [1, 1]} : vector<1x8xf32> to vector<1x3xf32>
    %29 = vector.broadcast %28 : vector<1x3xf32> to vector<176x3xf32>
    %30 = arith.subf %9, %29 : vector<176x3xf32>
    %31 = vector.extract_strided_slice %15 {offsets = [0, 4], sizes = [1, 3], strides = [1, 1]} : vector<1x8xf32> to vector<1x3xf32>
    %32 = vector.broadcast %31 : vector<1x3xf32> to vector<176x3xf32>
    %33 = arith.mulf %30, %32 : vector<176x3xf32>
    %34 = vector.extract_strided_slice %14 {offsets = [0, 7], sizes = [1, 1], strides = [1, 1]} : vector<1x8xf32> to vector<1x1xf32>
    %35 = vector.broadcast %34 : vector<1x1xf32> to vector<176x1xf32>
    %36 = arith.subf %13, %35 : vector<176x1xf32>
    %37 = vector.extract_strided_slice %15 {offsets = [0, 7], sizes = [1, 1], strides = [1, 1]} : vector<1x8xf32> to vector<1x1xf32>
    %38 = vector.broadcast %37 : vector<1x1xf32> to vector<176x1xf32>
    %39 = arith.mulf %36, %38 : vector<176x1xf32>
    %40 = arith.truncf %21 : vector<176x3xf32> to vector<176x3xbf16>
    %c0_12 = arith.constant 0 : index
    %c0_13 = arith.constant 0 : index
    %41 = vector.load %arg7[%c0_12, %c0_13] : memref<3x128xbf16, #tpu.memory_space<vmem>>, vector<3x128xbf16>
    %cst_14 = arith.constant dense<0.000000e+00> : vector<176x128xf32>
    %42 = tpu.matmul %40, %41, %cst_14 {dimension_numbers = #tpu.dot_dimension_numbers<[1], [0], [0], [1], [0, 0, 1, 1], [], []>} : vector<176x3xbf16>, vector<3x128xbf16>, vector<176x128xf32> -> vector<176x128xf32>
    %43 = arith.truncf %33 : vector<176x3xf32> to vector<176x3xbf16>
    %c0_15 = arith.constant 0 : index
    %c0_16 = arith.constant 0 : index
    %44 = vector.load %arg9[%c0_15, %c0_16] : memref<3x128xbf16, #tpu.memory_space<vmem>>, vector<3x128xbf16>
    %cst_17 = arith.constant dense<0.000000e+00> : vector<176x128xf32>
    %45 = tpu.matmul %43, %44, %cst_17 {dimension_numbers = #tpu.dot_dimension_numbers<[1], [0], [0], [1], [0, 0, 1, 1], [], []>} : vector<176x3xbf16>, vector<3x128xbf16>, vector<176x128xf32> -> vector<176x128xf32>
    %46 = arith.addf %42, %45 : vector<176x128xf32>
    %c0_18 = arith.constant 0 : index
    %c0_19 = arith.constant 0 : index
    %47 = vector.load %arg8[%c0_18, %c0_19] : memref<1x128xbf16, #tpu.memory_space<vmem>>, vector<1x128xbf16>
    %48 = arith.extf %47 : vector<1x128xbf16> to vector<1x128xf32>
    %49 = vector.broadcast %27 : vector<176x1xf32> to vector<176x128xf32>
    %50 = vector.broadcast %48 : vector<1x128xf32> to vector<176x128xf32>
    %51 = arith.mulf %49, %50 : vector<176x128xf32>
    %52 = arith.addf %46, %51 : vector<176x128xf32>
    %c0_20 = arith.constant 0 : index
    %c0_21 = arith.constant 0 : index
    %53 = vector.load %arg10[%c0_20, %c0_21] : memref<1x128xbf16, #tpu.memory_space<vmem>>, vector<1x128xbf16>
    %54 = arith.extf %53 : vector<1x128xbf16> to vector<1x128xf32>
    %55 = vector.broadcast %39 : vector<176x1xf32> to vector<176x128xf32>
    %56 = vector.broadcast %54 : vector<1x128xf32> to vector<176x128xf32>
    %57 = arith.mulf %55, %56 : vector<176x128xf32>
    %58 = arith.addf %52, %57 : vector<176x128xf32>
    %c0_22 = arith.constant 0 : index
    %c0_23 = arith.constant 0 : index
    %59 = vector.load %arg11[%c0_22, %c0_23] : memref<1x128xf32, #tpu.memory_space<vmem>>, vector<1x128xf32>
    %60 = vector.broadcast %59 : vector<1x128xf32> to vector<176x128xf32>
    %61 = arith.addf %58, %60 : vector<176x128xf32>
    %cst_24 = arith.constant 0.000000e+00 : f32
    %62 = vector.broadcast %cst_24 : f32 to vector<176x128xf32>
    %63 = arith.maximumf %61, %62 : vector<176x128xf32>
    %64 = arith.truncf %63 : vector<176x128xf32> to vector<176x128xbf16>
    %c0_25 = arith.constant 0 : index
    %c0_26 = arith.constant 0 : index
    %65 = vector.load %arg12[%c0_25, %c0_26] : memref<128x128xbf16, #tpu.memory_space<vmem>>, vector<128x128xbf16>
    %cst_27 = arith.constant dense<0.000000e+00> : vector<176x128xf32>
    %66 = tpu.matmul %64, %65, %cst_27 {dimension_numbers = #tpu.dot_dimension_numbers<[1], [0], [0], [1], [0, 0, 1, 1], [], []>} : vector<176x128xbf16>, vector<128x128xbf16>, vector<176x128xf32> -> vector<176x128xf32>
    %c0_28 = arith.constant 0 : index
    %c0_29 = arith.constant 0 : index
    %67 = vector.load %arg13[%c0_28, %c0_29] : memref<1x128xf32, #tpu.memory_space<vmem>>, vector<1x128xf32>
    %68 = vector.broadcast %67 : vector<1x128xf32> to vector<176x128xf32>
    %69 = arith.addf %66, %68 : vector<176x128xf32>
    %cst_30 = arith.constant 0.000000e+00 : f32
    %70 = vector.broadcast %cst_30 : f32 to vector<176x128xf32>
    %71 = arith.maximumf %69, %70 : vector<176x128xf32>
    %72 = arith.truncf %71 : vector<176x128xf32> to vector<176x128xbf16>
    %c0_31 = arith.constant 0 : index
    %c0_32 = arith.constant 0 : index
    %73 = vector.load %arg14[%c0_31, %c0_32] : memref<128x128xbf16, #tpu.memory_space<vmem>>, vector<128x128xbf16>
    %cst_33 = arith.constant dense<0.000000e+00> : vector<176x128xf32>
    %74 = tpu.matmul %72, %73, %cst_33 {dimension_numbers = #tpu.dot_dimension_numbers<[1], [0], [0], [1], [0, 0, 1, 1], [], []>} : vector<176x128xbf16>, vector<128x128xbf16>, vector<176x128xf32> -> vector<176x128xf32>
    %c0_34 = arith.constant 0 : index
    %c0_35 = arith.constant 0 : index
    %75 = vector.load %arg15[%c0_34, %c0_35] : memref<1x128xf32, #tpu.memory_space<vmem>>, vector<1x128xf32>
    %76 = vector.broadcast %75 : vector<1x128xf32> to vector<176x128xf32>
    %77 = arith.addf %74, %76 : vector<176x128xf32>
    %cst_36 = arith.constant dense<0.000000e+00> : vector<176xf32>
    %78 = vector.multi_reduction <add>, %77, %cst_36 [1] : vector<176x128xf32> to vector<176xf32>
    %79 = vector.shape_cast %78 : vector<176xf32> to vector<176x1xf32>
    %cst_37 = arith.constant 1.280000e+02 : f32
    %80 = vector.broadcast %cst_37 : f32 to vector<176x1xf32>
    %81 = arith.divf %79, %80 : vector<176x1xf32>
    %82 = vector.broadcast %81 : vector<176x1xf32> to vector<176x128xf32>
    %83 = arith.subf %77, %82 : vector<176x128xf32>
    %84 = arith.mulf %83, %83 : vector<176x128xf32>
    %cst_38 = arith.constant dense<0.000000e+00> : vector<176xf32>
    %85 = vector.multi_reduction <add>, %84, %cst_38 [1] : vector<176x128xf32> to vector<176xf32>
    %86 = vector.shape_cast %85 : vector<176xf32> to vector<176x1xf32>
    %cst_39 = arith.constant 1.280000e+02 : f32
    %87 = vector.broadcast %cst_39 : f32 to vector<176x1xf32>
    %88 = arith.divf %86, %87 : vector<176x1xf32>
    %89 = vector.broadcast %81 : vector<176x1xf32> to vector<176x128xf32>
    %90 = arith.subf %77, %89 : vector<176x128xf32>
    %cst_40 = arith.constant 9.99999974E-6 : f32
    %91 = vector.broadcast %cst_40 : f32 to vector<176x1xf32>
    %92 = arith.addf %88, %91 : vector<176x1xf32>
    %93 = math.rsqrt %92 : vector<176x1xf32>
    %94 = vector.broadcast %93 : vector<176x1xf32> to vector<176x128xf32>
    %95 = arith.mulf %90, %94 : vector<176x128xf32>
    %c0_41 = arith.constant 0 : index
    %c0_42 = arith.constant 0 : index
    %96 = vector.load %arg16[%c0_41, %c0_42] : memref<1x128xf32, #tpu.memory_space<vmem>>, vector<1x128xf32>
    %97 = vector.broadcast %96 : vector<1x128xf32> to vector<176x128xf32>
    %98 = arith.mulf %95, %97 : vector<176x128xf32>
    %c0_43 = arith.constant 0 : index
    %c0_44 = arith.constant 0 : index
    %99 = vector.load %arg17[%c0_43, %c0_44] : memref<1x128xf32, #tpu.memory_space<vmem>>, vector<1x128xf32>
    %100 = vector.broadcast %99 : vector<1x128xf32> to vector<176x128xf32>
    %101 = arith.addf %98, %100 : vector<176x128xf32>
    %102 = arith.truncf %101 : vector<176x128xf32> to vector<176x128xbf16>
    %c0_45 = arith.constant 0 : index
    %c0_46 = arith.constant 0 : index
    %103 = vector.load %arg18[%c0_45, %c0_46] : memref<176x128xbf16, #tpu.memory_space<vmem>>, vector<176x128xbf16>
    tpu.vector_store %arg18[%c0_45, %c0_46], %102 {strides = array<i32>} : memref<176x128xbf16, #tpu.memory_space<vmem>>, vector<176x128xbf16>,
    return
  }
  func.func @transform_0(%arg0: i32) -> (i32, i32) {
    %c0_i32 = arith.constant 0 : i32
    %c0_i32_0 = arith.constant 0 : i32
    return %arg0, %c0_i32 : i32, i32
  }
  func.func @transform_1(%arg0: i32) -> (i32, i32) {
    %c0_i32 = arith.constant 0 : i32
    %c0_i32_0 = arith.constant 0 : i32
    return %arg0, %c0_i32 : i32, i32
  }
  func.func @transform_2(%arg0: i32) -> (i32, i32) {
    %c0_i32 = arith.constant 0 : i32
    %c0_i32_0 = arith.constant 0 : i32
    return %arg0, %c0_i32 : i32, i32
  }
  func.func @transform_3(%arg0: i32) -> (i32, i32) {
    %c0_i32 = arith.constant 0 : i32
    %c0_i32_0 = arith.constant 0 : i32
    return %arg0, %c0_i32 : i32, i32
  }
  func.func @transform_4(%arg0: i32) -> (i32, i32) {
    %c0_i32 = arith.constant 0 : i32
    %c0_i32_0 = arith.constant 0 : i32
    %c0_i32_1 = arith.constant 0 : i32
    return %c0_i32, %c0_i32_0 : i32, i32
  }
  func.func @transform_5(%arg0: i32) -> (i32, i32) {
    %c0_i32 = arith.constant 0 : i32
    %c0_i32_0 = arith.constant 0 : i32
    %c0_i32_1 = arith.constant 0 : i32
    return %c0_i32, %c0_i32_0 : i32, i32
  }
  func.func @transform_6(%arg0: i32) -> (i32, i32) {
    %c0_i32 = arith.constant 0 : i32
    %c0_i32_0 = arith.constant 0 : i32
    %c0_i32_1 = arith.constant 0 : i32
    return %c0_i32, %c0_i32_0 : i32, i32
  }
  func.func @transform_7(%arg0: i32) -> (i32, i32) {
    %c0_i32 = arith.constant 0 : i32
    %c0_i32_0 = arith.constant 0 : i32
    %c0_i32_1 = arith.constant 0 : i32
    return %c0_i32, %c0_i32_0 : i32, i32
  }
  func.func @transform_8(%arg0: i32) -> (i32, i32) {
    %c0_i32 = arith.constant 0 : i32
    %c0_i32_0 = arith.constant 0 : i32
    %c0_i32_1 = arith.constant 0 : i32
    return %c0_i32, %c0_i32_0 : i32, i32
  }
  func.func @transform_9(%arg0: i32) -> (i32, i32) {
    %c0_i32 = arith.constant 0 : i32
    %c0_i32_0 = arith.constant 0 : i32
    %c0_i32_1 = arith.constant 0 : i32
    return %c0_i32, %c0_i32_0 : i32, i32
  }
  func.func @transform_10(%arg0: i32) -> (i32, i32) {
    %c0_i32 = arith.constant 0 : i32
    %c0_i32_0 = arith.constant 0 : i32
    %c0_i32_1 = arith.constant 0 : i32
    return %c0_i32, %c0_i32_0 : i32, i32
  }
  func.func @transform_11(%arg0: i32) -> (i32, i32) {
    %c0_i32 = arith.constant 0 : i32
    %c0_i32_0 = arith.constant 0 : i32
    %c0_i32_1 = arith.constant 0 : i32
    return %c0_i32, %c0_i32_0 : i32, i32
  }
  func.func @transform_12(%arg0: i32) -> (i32, i32) {
    %c0_i32 = arith.constant 0 : i32
    %c0_i32_0 = arith.constant 0 : i32
    %c0_i32_1 = arith.constant 0 : i32
    return %c0_i32, %c0_i32_0 : i32, i32
  }
  func.func @transform_13(%arg0: i32) -> (i32, i32) {
    %c0_i32 = arith.constant 0 : i32
    %c0_i32_0 = arith.constant 0 : i32
    %c0_i32_1 = arith.constant 0 : i32
    return %c0_i32, %c0_i32_0 : i32, i32
  }
  func.func @transform_14(%arg0: i32) -> (i32, i32) {
    %c0_i32 = arith.constant 0 : i32
    %c0_i32_0 = arith.constant 0 : i32
    %c0_i32_1 = arith.constant 0 : i32
    return %c0_i32, %c0_i32_0 : i32, i32
  }
  func.func @transform_15(%arg0: i32) -> (i32, i32) {
    %c0_i32 = arith.constant 0 : i32
    %c0_i32_0 = arith.constant 0 : i32
    %c0_i32_1 = arith.constant 0 : i32
    return %c0_i32, %c0_i32_0 : i32, i32
  }
  func.func @transform_16(%arg0: i32) -> (i32, i32) {
    %c0_i32 = arith.constant 0 : i32
    %c0_i32_0 = arith.constant 0 : i32
    %c0_i32_1 = arith.constant 0 : i32
    return %c0_i32, %c0_i32_0 : i32, i32
  }
  func.func @transform_17(%arg0: i32) -> (i32, i32) {
    %c0_i32 = arith.constant 0 : i32
    %c0_i32_0 = arith.constant 0 : i32
    return %arg0, %c0_i32 : i32, i32
  }
}

module attributes {stable_mosaic.version = 11 : i64} {
  func.func @_mlp_kernel(%arg0: i32, %arg1: memref<48x9xf32, #tpu.memory_space<vmem>>, %arg2: memref<9x128xbf16, #tpu.memory_space<vmem>>, %arg3: memref<1x128xf32, #tpu.memory_space<vmem>>, %arg4: memref<128x128xbf16, #tpu.memory_space<vmem>>, %arg5: memref<1x128xf32, #tpu.memory_space<vmem>>, %arg6: memref<128x128xbf16, #tpu.memory_space<vmem>>, %arg7: memref<1x128xf32, #tpu.memory_space<vmem>>, %arg8: memref<1x128xf32, #tpu.memory_space<vmem>>, %arg9: memref<1x128xf32, #tpu.memory_space<vmem>>, %arg10: memref<48x128xbf16, #tpu.memory_space<vmem>>) attributes {dimension_semantics = [#tpu.dimension_semantics<parallel>], iteration_bounds = array<i64: 2>, scalar_prefetch = 0 : i64, scratch_operands = 0 : i64, tpu.core_type = #tpu.core_type<tc>, window_params = [{transform_indices = @transform_0, window_bounds = array<i64: 48, 9>}, {pipeline_mode = #tpu.pipeline_mode<synchronous>, transform_indices = @transform_1, window_bounds = array<i64: 9, 128>}, {pipeline_mode = #tpu.pipeline_mode<synchronous>, transform_indices = @transform_2, window_bounds = array<i64: 1, 128>}, {pipeline_mode = #tpu.pipeline_mode<synchronous>, transform_indices = @transform_3, window_bounds = array<i64: 128, 128>}, {pipeline_mode = #tpu.pipeline_mode<synchronous>, transform_indices = @transform_4, window_bounds = array<i64: 1, 128>}, {pipeline_mode = #tpu.pipeline_mode<synchronous>, transform_indices = @transform_5, window_bounds = array<i64: 128, 128>}, {pipeline_mode = #tpu.pipeline_mode<synchronous>, transform_indices = @transform_6, window_bounds = array<i64: 1, 128>}, {pipeline_mode = #tpu.pipeline_mode<synchronous>, transform_indices = @transform_7, window_bounds = array<i64: 1, 128>}, {pipeline_mode = #tpu.pipeline_mode<synchronous>, transform_indices = @transform_8, window_bounds = array<i64: 1, 128>}, {transform_indices = @transform_9, window_bounds = array<i64: 48, 128>}]} {
    %c0 = arith.constant 0 : index
    %c0_0 = arith.constant 0 : index
    %0 = vector.load %arg1[%c0, %c0_0] : memref<48x9xf32, #tpu.memory_space<vmem>>, vector<48x9xf32>
    %1 = arith.truncf %0 : vector<48x9xf32> to vector<48x9xbf16>
    %c0_1 = arith.constant 0 : index
    %c0_2 = arith.constant 0 : index
    %2 = vector.load %arg2[%c0_1, %c0_2] : memref<9x128xbf16, #tpu.memory_space<vmem>>, vector<9x128xbf16>
    %cst = arith.constant dense<0.000000e+00> : vector<48x128xf32>
    %3 = tpu.matmul %1, %2, %cst {dimension_numbers = #tpu.dot_dimension_numbers<[1], [0], [0], [1], [0, 0, 1, 1], [], []>} : vector<48x9xbf16>, vector<9x128xbf16>, vector<48x128xf32> -> vector<48x128xf32>
    %c0_3 = arith.constant 0 : index
    %c0_4 = arith.constant 0 : index
    %4 = vector.load %arg3[%c0_3, %c0_4] : memref<1x128xf32, #tpu.memory_space<vmem>>, vector<1x128xf32>
    %5 = vector.broadcast %4 : vector<1x128xf32> to vector<48x128xf32>
    %6 = arith.addf %3, %5 : vector<48x128xf32>
    %cst_5 = arith.constant 0.000000e+00 : f32
    %7 = vector.broadcast %cst_5 : f32 to vector<48x128xf32>
    %8 = arith.maximumf %6, %7 : vector<48x128xf32>
    %9 = arith.truncf %8 : vector<48x128xf32> to vector<48x128xbf16>
    %c0_6 = arith.constant 0 : index
    %c0_7 = arith.constant 0 : index
    %10 = vector.load %arg4[%c0_6, %c0_7] : memref<128x128xbf16, #tpu.memory_space<vmem>>, vector<128x128xbf16>
    %cst_8 = arith.constant dense<0.000000e+00> : vector<48x128xf32>
    %11 = tpu.matmul %9, %10, %cst_8 {dimension_numbers = #tpu.dot_dimension_numbers<[1], [0], [0], [1], [0, 0, 1, 1], [], []>} : vector<48x128xbf16>, vector<128x128xbf16>, vector<48x128xf32> -> vector<48x128xf32>
    %c0_9 = arith.constant 0 : index
    %c0_10 = arith.constant 0 : index
    %12 = vector.load %arg5[%c0_9, %c0_10] : memref<1x128xf32, #tpu.memory_space<vmem>>, vector<1x128xf32>
    %13 = vector.broadcast %12 : vector<1x128xf32> to vector<48x128xf32>
    %14 = arith.addf %11, %13 : vector<48x128xf32>
    %cst_11 = arith.constant 0.000000e+00 : f32
    %15 = vector.broadcast %cst_11 : f32 to vector<48x128xf32>
    %16 = arith.maximumf %14, %15 : vector<48x128xf32>
    %17 = arith.truncf %16 : vector<48x128xf32> to vector<48x128xbf16>
    %c0_12 = arith.constant 0 : index
    %c0_13 = arith.constant 0 : index
    %18 = vector.load %arg6[%c0_12, %c0_13] : memref<128x128xbf16, #tpu.memory_space<vmem>>, vector<128x128xbf16>
    %cst_14 = arith.constant dense<0.000000e+00> : vector<48x128xf32>
    %19 = tpu.matmul %17, %18, %cst_14 {dimension_numbers = #tpu.dot_dimension_numbers<[1], [0], [0], [1], [0, 0, 1, 1], [], []>} : vector<48x128xbf16>, vector<128x128xbf16>, vector<48x128xf32> -> vector<48x128xf32>
    %c0_15 = arith.constant 0 : index
    %c0_16 = arith.constant 0 : index
    %20 = vector.load %arg7[%c0_15, %c0_16] : memref<1x128xf32, #tpu.memory_space<vmem>>, vector<1x128xf32>
    %21 = vector.broadcast %20 : vector<1x128xf32> to vector<48x128xf32>
    %22 = arith.addf %19, %21 : vector<48x128xf32>
    %cst_17 = arith.constant dense<0.000000e+00> : vector<48xf32>
    %23 = vector.multi_reduction <add>, %22, %cst_17 [1] : vector<48x128xf32> to vector<48xf32>
    %24 = vector.shape_cast %23 : vector<48xf32> to vector<48x1xf32>
    %cst_18 = arith.constant 1.280000e+02 : f32
    %25 = vector.broadcast %cst_18 : f32 to vector<48x1xf32>
    %26 = arith.divf %24, %25 : vector<48x1xf32>
    %27 = vector.broadcast %26 : vector<48x1xf32> to vector<48x128xf32>
    %28 = arith.subf %22, %27 : vector<48x128xf32>
    %29 = arith.mulf %28, %28 : vector<48x128xf32>
    %cst_19 = arith.constant dense<0.000000e+00> : vector<48xf32>
    %30 = vector.multi_reduction <add>, %29, %cst_19 [1] : vector<48x128xf32> to vector<48xf32>
    %31 = vector.shape_cast %30 : vector<48xf32> to vector<48x1xf32>
    %cst_20 = arith.constant 1.280000e+02 : f32
    %32 = vector.broadcast %cst_20 : f32 to vector<48x1xf32>
    %33 = arith.divf %31, %32 : vector<48x1xf32>
    %34 = vector.broadcast %26 : vector<48x1xf32> to vector<48x128xf32>
    %35 = arith.subf %22, %34 : vector<48x128xf32>
    %cst_21 = arith.constant 9.99999974E-6 : f32
    %36 = vector.broadcast %cst_21 : f32 to vector<48x1xf32>
    %37 = arith.addf %33, %36 : vector<48x1xf32>
    %38 = math.rsqrt %37 : vector<48x1xf32>
    %39 = vector.broadcast %38 : vector<48x1xf32> to vector<48x128xf32>
    %40 = arith.mulf %35, %39 : vector<48x128xf32>
    %c0_22 = arith.constant 0 : index
    %c0_23 = arith.constant 0 : index
    %41 = vector.load %arg8[%c0_22, %c0_23] : memref<1x128xf32, #tpu.memory_space<vmem>>, vector<1x128xf32>
    %42 = vector.broadcast %41 : vector<1x128xf32> to vector<48x128xf32>
    %43 = arith.mulf %40, %42 : vector<48x128xf32>
    %c0_24 = arith.constant 0 : index
    %c0_25 = arith.constant 0 : index
    %44 = vector.load %arg9[%c0_24, %c0_25] : memref<1x128xf32, #tpu.memory_space<vmem>>, vector<1x128xf32>
    %45 = vector.broadcast %44 : vector<1x128xf32> to vector<48x128xf32>
    %46 = arith.addf %43, %45 : vector<48x128xf32>
    %47 = arith.truncf %46 : vector<48x128xf32> to vector<48x128xbf16>
    %c0_26 = arith.constant 0 : index
    %c0_27 = arith.constant 0 : index
    %48 = vector.load %arg10[%c0_26, %c0_27] : memref<48x128xbf16, #tpu.memory_space<vmem>>, vector<48x128xbf16>
    tpu.vector_store %arg10[%c0_26, %c0_27], %47 {strides = array<i32>} : memref<48x128xbf16, #tpu.memory_space<vmem>>, vector<48x128xbf16>,
    return
  }
  func.func @transform_0(%arg0: i32) -> (i32, i32) {
    %c0_i32 = arith.constant 0 : i32
    %c0_i32_0 = arith.constant 0 : i32
    return %arg0, %c0_i32 : i32, i32
  }
  func.func @transform_1(%arg0: i32) -> (i32, i32) {
    %c0_i32 = arith.constant 0 : i32
    %c0_i32_0 = arith.constant 0 : i32
    %c0_i32_1 = arith.constant 0 : i32
    return %c0_i32, %c0_i32_0 : i32, i32
  }
  func.func @transform_2(%arg0: i32) -> (i32, i32) {
    %c0_i32 = arith.constant 0 : i32
    %c0_i32_0 = arith.constant 0 : i32
    %c0_i32_1 = arith.constant 0 : i32
    return %c0_i32, %c0_i32_0 : i32, i32
  }
  func.func @transform_3(%arg0: i32) -> (i32, i32) {
    %c0_i32 = arith.constant 0 : i32
    %c0_i32_0 = arith.constant 0 : i32
    %c0_i32_1 = arith.constant 0 : i32
    return %c0_i32, %c0_i32_0 : i32, i32
  }
  func.func @transform_4(%arg0: i32) -> (i32, i32) {
    %c0_i32 = arith.constant 0 : i32
    %c0_i32_0 = arith.constant 0 : i32
    %c0_i32_1 = arith.constant 0 : i32
    return %c0_i32, %c0_i32_0 : i32, i32
  }
  func.func @transform_5(%arg0: i32) -> (i32, i32) {
    %c0_i32 = arith.constant 0 : i32
    %c0_i32_0 = arith.constant 0 : i32
    %c0_i32_1 = arith.constant 0 : i32
    return %c0_i32, %c0_i32_0 : i32, i32
  }
  func.func @transform_6(%arg0: i32) -> (i32, i32) {
    %c0_i32 = arith.constant 0 : i32
    %c0_i32_0 = arith.constant 0 : i32
    %c0_i32_1 = arith.constant 0 : i32
    return %c0_i32, %c0_i32_0 : i32, i32
  }
  func.func @transform_7(%arg0: i32) -> (i32, i32) {
    %c0_i32 = arith.constant 0 : i32
    %c0_i32_0 = arith.constant 0 : i32
    %c0_i32_1 = arith.constant 0 : i32
    return %c0_i32, %c0_i32_0 : i32, i32
  }
  func.func @transform_8(%arg0: i32) -> (i32, i32) {
    %c0_i32 = arith.constant 0 : i32
    %c0_i32_0 = arith.constant 0 : i32
    %c0_i32_1 = arith.constant 0 : i32
    return %c0_i32, %c0_i32_0 : i32, i32
  }
  func.func @transform_9(%arg0: i32) -> (i32, i32) {
    %c0_i32 = arith.constant 0 : i32
    %c0_i32_0 = arith.constant 0 : i32
    return %arg0, %c0_i32 : i32, i32
  }
}

module attributes {stable_mosaic.version = 11 : i64} {
  func.func @_mlp_kernel(%arg0: i32, %arg1: memref<176x128xbf16, #tpu.memory_space<vmem>>, %arg2: memref<176x128xbf16, #tpu.memory_space<vmem>>, %arg3: memref<176x128xbf16, #tpu.memory_space<vmem>>, %arg4: memref<128x128xbf16, #tpu.memory_space<vmem>>, %arg5: memref<128x128xbf16, #tpu.memory_space<vmem>>, %arg6: memref<128x128xbf16, #tpu.memory_space<vmem>>, %arg7: memref<1x128xf32, #tpu.memory_space<vmem>>, %arg8: memref<128x128xbf16, #tpu.memory_space<vmem>>, %arg9: memref<1x128xf32, #tpu.memory_space<vmem>>, %arg10: memref<128x128xbf16, #tpu.memory_space<vmem>>, %arg11: memref<1x128xf32, #tpu.memory_space<vmem>>, %arg12: memref<1x128xf32, #tpu.memory_space<vmem>>, %arg13: memref<1x128xf32, #tpu.memory_space<vmem>>, %arg14: memref<176x128xf32, #tpu.memory_space<vmem>>, %arg15: memref<176x128xbf16, #tpu.memory_space<vmem>>) attributes {dimension_semantics = [#tpu.dimension_semantics<parallel>], iteration_bounds = array<i64: 2>, scalar_prefetch = 0 : i64, scratch_operands = 0 : i64, tpu.core_type = #tpu.core_type<tc>, window_params = [{transform_indices = @transform_0, window_bounds = array<i64: 176, 128>}, {transform_indices = @transform_1, window_bounds = array<i64: 176, 128>}, {transform_indices = @transform_2, window_bounds = array<i64: 176, 128>}, {pipeline_mode = #tpu.pipeline_mode<synchronous>, transform_indices = @transform_3, window_bounds = array<i64: 128, 128>}, {pipeline_mode = #tpu.pipeline_mode<synchronous>, transform_indices = @transform_4, window_bounds = array<i64: 128, 128>}, {pipeline_mode = #tpu.pipeline_mode<synchronous>, transform_indices = @transform_5, window_bounds = array<i64: 128, 128>}, {pipeline_mode = #tpu.pipeline_mode<synchronous>, transform_indices = @transform_6, window_bounds = array<i64: 1, 128>}, {pipeline_mode = #tpu.pipeline_mode<synchronous>, transform_indices = @transform_7, window_bounds = array<i64: 128, 128>}, {pipeline_mode = #tpu.pipeline_mode<synchronous>, transform_indices = @transform_8, window_bounds = array<i64: 1, 128>}, {pipeline_mode = #tpu.pipeline_mode<synchronous>, transform_indices = @transform_9, window_bounds = array<i64: 128, 128>}, {pipeline_mode = #tpu.pipeline_mode<synchronous>, transform_indices = @transform_10, window_bounds = array<i64: 1, 128>}, {pipeline_mode = #tpu.pipeline_mode<synchronous>, transform_indices = @transform_11, window_bounds = array<i64: 1, 128>}, {pipeline_mode = #tpu.pipeline_mode<synchronous>, transform_indices = @transform_12, window_bounds = array<i64: 1, 128>}, {transform_indices = @transform_13, window_bounds = array<i64: 176, 128>}, {transform_indices = @transform_14, window_bounds = array<i64: 176, 128>}]} {
    %c0 = arith.constant 0 : index
    %c0_0 = arith.constant 0 : index
    %0 = vector.load %arg1[%c0, %c0_0] : memref<176x128xbf16, #tpu.memory_space<vmem>>, vector<176x128xbf16>
    %c0_1 = arith.constant 0 : index
    %c0_2 = arith.constant 0 : index
    %1 = vector.load %arg2[%c0_1, %c0_2] : memref<176x128xbf16, #tpu.memory_space<vmem>>, vector<176x128xbf16>
    %c0_3 = arith.constant 0 : index
    %c0_4 = arith.constant 0 : index
    %2 = vector.load %arg3[%c0_3, %c0_4] : memref<176x128xbf16, #tpu.memory_space<vmem>>, vector<176x128xbf16>
    %c0_5 = arith.constant 0 : index
    %c0_6 = arith.constant 0 : index
    %3 = vector.load %arg4[%c0_5, %c0_6] : memref<128x128xbf16, #tpu.memory_space<vmem>>, vector<128x128xbf16>
    %cst = arith.constant dense<0.000000e+00> : vector<176x128xf32>
    %4 = tpu.matmul %0, %3, %cst {dimension_numbers = #tpu.dot_dimension_numbers<[1], [0], [0], [1], [0, 0, 1, 1], [], []>} : vector<176x128xbf16>, vector<128x128xbf16>, vector<176x128xf32> -> vector<176x128xf32>
    %c0_7 = arith.constant 0 : index
    %c0_8 = arith.constant 0 : index
    %5 = vector.load %arg5[%c0_7, %c0_8] : memref<128x128xbf16, #tpu.memory_space<vmem>>, vector<128x128xbf16>
    %cst_9 = arith.constant dense<0.000000e+00> : vector<176x128xf32>
    %6 = tpu.matmul %1, %5, %cst_9 {dimension_numbers = #tpu.dot_dimension_numbers<[1], [0], [0], [1], [0, 0, 1, 1], [], []>} : vector<176x128xbf16>, vector<128x128xbf16>, vector<176x128xf32> -> vector<176x128xf32>
    %7 = arith.addf %4, %6 : vector<176x128xf32>
    %c0_10 = arith.constant 0 : index
    %c0_11 = arith.constant 0 : index
    %8 = vector.load %arg6[%c0_10, %c0_11] : memref<128x128xbf16, #tpu.memory_space<vmem>>, vector<128x128xbf16>
    %cst_12 = arith.constant dense<0.000000e+00> : vector<176x128xf32>
    %9 = tpu.matmul %2, %8, %cst_12 {dimension_numbers = #tpu.dot_dimension_numbers<[1], [0], [0], [1], [0, 0, 1, 1], [], []>} : vector<176x128xbf16>, vector<128x128xbf16>, vector<176x128xf32> -> vector<176x128xf32>
    %10 = arith.addf %7, %9 : vector<176x128xf32>
    %c0_13 = arith.constant 0 : index
    %c0_14 = arith.constant 0 : index
    %11 = vector.load %arg7[%c0_13, %c0_14] : memref<1x128xf32, #tpu.memory_space<vmem>>, vector<1x128xf32>
    %12 = vector.broadcast %11 : vector<1x128xf32> to vector<176x128xf32>
    %13 = arith.addf %10, %12 : vector<176x128xf32>
    %cst_15 = arith.constant 0.000000e+00 : f32
    %14 = vector.broadcast %cst_15 : f32 to vector<176x128xf32>
    %15 = arith.maximumf %13, %14 : vector<176x128xf32>
    %16 = arith.truncf %15 : vector<176x128xf32> to vector<176x128xbf16>
    %c0_16 = arith.constant 0 : index
    %c0_17 = arith.constant 0 : index
    %17 = vector.load %arg8[%c0_16, %c0_17] : memref<128x128xbf16, #tpu.memory_space<vmem>>, vector<128x128xbf16>
    %cst_18 = arith.constant dense<0.000000e+00> : vector<176x128xf32>
    %18 = tpu.matmul %16, %17, %cst_18 {dimension_numbers = #tpu.dot_dimension_numbers<[1], [0], [0], [1], [0, 0, 1, 1], [], []>} : vector<176x128xbf16>, vector<128x128xbf16>, vector<176x128xf32> -> vector<176x128xf32>
    %c0_19 = arith.constant 0 : index
    %c0_20 = arith.constant 0 : index
    %19 = vector.load %arg9[%c0_19, %c0_20] : memref<1x128xf32, #tpu.memory_space<vmem>>, vector<1x128xf32>
    %20 = vector.broadcast %19 : vector<1x128xf32> to vector<176x128xf32>
    %21 = arith.addf %18, %20 : vector<176x128xf32>
    %cst_21 = arith.constant 0.000000e+00 : f32
    %22 = vector.broadcast %cst_21 : f32 to vector<176x128xf32>
    %23 = arith.maximumf %21, %22 : vector<176x128xf32>
    %24 = arith.truncf %23 : vector<176x128xf32> to vector<176x128xbf16>
    %c0_22 = arith.constant 0 : index
    %c0_23 = arith.constant 0 : index
    %25 = vector.load %arg10[%c0_22, %c0_23] : memref<128x128xbf16, #tpu.memory_space<vmem>>, vector<128x128xbf16>
    %cst_24 = arith.constant dense<0.000000e+00> : vector<176x128xf32>
    %26 = tpu.matmul %24, %25, %cst_24 {dimension_numbers = #tpu.dot_dimension_numbers<[1], [0], [0], [1], [0, 0, 1, 1], [], []>} : vector<176x128xbf16>, vector<128x128xbf16>, vector<176x128xf32> -> vector<176x128xf32>
    %c0_25 = arith.constant 0 : index
    %c0_26 = arith.constant 0 : index
    %27 = vector.load %arg11[%c0_25, %c0_26] : memref<1x128xf32, #tpu.memory_space<vmem>>, vector<1x128xf32>
    %28 = vector.broadcast %27 : vector<1x128xf32> to vector<176x128xf32>
    %29 = arith.addf %26, %28 : vector<176x128xf32>
    %cst_27 = arith.constant dense<0.000000e+00> : vector<176xf32>
    %30 = vector.multi_reduction <add>, %29, %cst_27 [1] : vector<176x128xf32> to vector<176xf32>
    %31 = vector.shape_cast %30 : vector<176xf32> to vector<176x1xf32>
    %cst_28 = arith.constant 1.280000e+02 : f32
    %32 = vector.broadcast %cst_28 : f32 to vector<176x1xf32>
    %33 = arith.divf %31, %32 : vector<176x1xf32>
    %34 = vector.broadcast %33 : vector<176x1xf32> to vector<176x128xf32>
    %35 = arith.subf %29, %34 : vector<176x128xf32>
    %36 = arith.mulf %35, %35 : vector<176x128xf32>
    %cst_29 = arith.constant dense<0.000000e+00> : vector<176xf32>
    %37 = vector.multi_reduction <add>, %36, %cst_29 [1] : vector<176x128xf32> to vector<176xf32>
    %38 = vector.shape_cast %37 : vector<176xf32> to vector<176x1xf32>
    %cst_30 = arith.constant 1.280000e+02 : f32
    %39 = vector.broadcast %cst_30 : f32 to vector<176x1xf32>
    %40 = arith.divf %38, %39 : vector<176x1xf32>
    %41 = vector.broadcast %33 : vector<176x1xf32> to vector<176x128xf32>
    %42 = arith.subf %29, %41 : vector<176x128xf32>
    %cst_31 = arith.constant 9.99999974E-6 : f32
    %43 = vector.broadcast %cst_31 : f32 to vector<176x1xf32>
    %44 = arith.addf %40, %43 : vector<176x1xf32>
    %45 = math.rsqrt %44 : vector<176x1xf32>
    %46 = vector.broadcast %45 : vector<176x1xf32> to vector<176x128xf32>
    %47 = arith.mulf %42, %46 : vector<176x128xf32>
    %c0_32 = arith.constant 0 : index
    %c0_33 = arith.constant 0 : index
    %48 = vector.load %arg12[%c0_32, %c0_33] : memref<1x128xf32, #tpu.memory_space<vmem>>, vector<1x128xf32>
    %49 = vector.broadcast %48 : vector<1x128xf32> to vector<176x128xf32>
    %50 = arith.mulf %47, %49 : vector<176x128xf32>
    %c0_34 = arith.constant 0 : index
    %c0_35 = arith.constant 0 : index
    %51 = vector.load %arg13[%c0_34, %c0_35] : memref<1x128xf32, #tpu.memory_space<vmem>>, vector<1x128xf32>
    %52 = vector.broadcast %51 : vector<1x128xf32> to vector<176x128xf32>
    %53 = arith.addf %50, %52 : vector<176x128xf32>
    %c0_36 = arith.constant 0 : index
    %c0_37 = arith.constant 0 : index
    %54 = vector.load %arg14[%c0_36, %c0_37] : memref<176x128xf32, #tpu.memory_space<vmem>>, vector<176x128xf32>
    tpu.vector_store %arg14[%c0_36, %c0_37], %53 {strides = array<i32>} : memref<176x128xf32, #tpu.memory_space<vmem>>, vector<176x128xf32>,
    %55 = arith.extf %2 : vector<176x128xbf16> to vector<176x128xf32>
    %56 = arith.addf %53, %55 : vector<176x128xf32>
    %57 = arith.truncf %56 : vector<176x128xf32> to vector<176x128xbf16>
    %c0_38 = arith.constant 0 : index
    %c0_39 = arith.constant 0 : index
    %58 = vector.load %arg15[%c0_38, %c0_39] : memref<176x128xbf16, #tpu.memory_space<vmem>>, vector<176x128xbf16>
    tpu.vector_store %arg15[%c0_38, %c0_39], %57 {strides = array<i32>} : memref<176x128xbf16, #tpu.memory_space<vmem>>, vector<176x128xbf16>,
    return
  }
  func.func @transform_0(%arg0: i32) -> (i32, i32) {
    %c0_i32 = arith.constant 0 : i32
    %c0_i32_0 = arith.constant 0 : i32
    return %arg0, %c0_i32 : i32, i32
  }
  func.func @transform_1(%arg0: i32) -> (i32, i32) {
    %c0_i32 = arith.constant 0 : i32
    %c0_i32_0 = arith.constant 0 : i32
    return %arg0, %c0_i32 : i32, i32
  }
  func.func @transform_2(%arg0: i32) -> (i32, i32) {
    %c0_i32 = arith.constant 0 : i32
    %c0_i32_0 = arith.constant 0 : i32
    return %arg0, %c0_i32 : i32, i32
  }
  func.func @transform_3(%arg0: i32) -> (i32, i32) {
    %c0_i32 = arith.constant 0 : i32
    %c0_i32_0 = arith.constant 0 : i32
    %c0_i32_1 = arith.constant 0 : i32
    return %c0_i32, %c0_i32_0 : i32, i32
  }
  func.func @transform_4(%arg0: i32) -> (i32, i32) {
    %c0_i32 = arith.constant 0 : i32
    %c0_i32_0 = arith.constant 0 : i32
    %c0_i32_1 = arith.constant 0 : i32
    return %c0_i32, %c0_i32_0 : i32, i32
  }
  func.func @transform_5(%arg0: i32) -> (i32, i32) {
    %c0_i32 = arith.constant 0 : i32
    %c0_i32_0 = arith.constant 0 : i32
    %c0_i32_1 = arith.constant 0 : i32
    return %c0_i32, %c0_i32_0 : i32, i32
  }
  func.func @transform_6(%arg0: i32) -> (i32, i32) {
    %c0_i32 = arith.constant 0 : i32
    %c0_i32_0 = arith.constant 0 : i32
    %c0_i32_1 = arith.constant 0 : i32
    return %c0_i32, %c0_i32_0 : i32, i32
  }
  func.func @transform_7(%arg0: i32) -> (i32, i32) {
    %c0_i32 = arith.constant 0 : i32
    %c0_i32_0 = arith.constant 0 : i32
    %c0_i32_1 = arith.constant 0 : i32
    return %c0_i32, %c0_i32_0 : i32, i32
  }
  func.func @transform_8(%arg0: i32) -> (i32, i32) {
    %c0_i32 = arith.constant 0 : i32
    %c0_i32_0 = arith.constant 0 : i32
    %c0_i32_1 = arith.constant 0 : i32
    return %c0_i32, %c0_i32_0 : i32, i32
  }
  func.func @transform_9(%arg0: i32) -> (i32, i32) {
    %c0_i32 = arith.constant 0 : i32
    %c0_i32_0 = arith.constant 0 : i32
    %c0_i32_1 = arith.constant 0 : i32
    return %c0_i32, %c0_i32_0 : i32, i32
  }
  func.func @transform_10(%arg0: i32) -> (i32, i32) {
    %c0_i32 = arith.constant 0 : i32
    %c0_i32_0 = arith.constant 0 : i32
    %c0_i32_1 = arith.constant 0 : i32
    return %c0_i32, %c0_i32_0 : i32, i32
  }
  func.func @transform_11(%arg0: i32) -> (i32, i32) {
    %c0_i32 = arith.constant 0 : i32
    %c0_i32_0 = arith.constant 0 : i32
    %c0_i32_1 = arith.constant 0 : i32
    return %c0_i32, %c0_i32_0 : i32, i32
  }
  func.func @transform_12(%arg0: i32) -> (i32, i32) {
    %c0_i32 = arith.constant 0 : i32
    %c0_i32_0 = arith.constant 0 : i32
    %c0_i32_1 = arith.constant 0 : i32
    return %c0_i32, %c0_i32_0 : i32, i32
  }
  func.func @transform_13(%arg0: i32) -> (i32, i32) {
    %c0_i32 = arith.constant 0 : i32
    %c0_i32_0 = arith.constant 0 : i32
    return %arg0, %c0_i32 : i32, i32
  }
  func.func @transform_14(%arg0: i32) -> (i32, i32) {
    %c0_i32 = arith.constant 0 : i32
    %c0_i32_0 = arith.constant 0 : i32
    return %arg0, %c0_i32 : i32, i32
  }
}

module attributes {stable_mosaic.version = 11 : i64} {
  func.func @_mlp_kernel(%arg0: i32, %arg1: memref<48x128xbf16, #tpu.memory_space<vmem>>, %arg2: memref<48x128xf32, #tpu.memory_space<vmem>>, %arg3: memref<128x128xbf16, #tpu.memory_space<vmem>>, %arg4: memref<128x128xbf16, #tpu.memory_space<vmem>>, %arg5: memref<1x128xf32, #tpu.memory_space<vmem>>, %arg6: memref<128x128xbf16, #tpu.memory_space<vmem>>, %arg7: memref<1x128xf32, #tpu.memory_space<vmem>>, %arg8: memref<128x128xbf16, #tpu.memory_space<vmem>>, %arg9: memref<1x128xf32, #tpu.memory_space<vmem>>, %arg10: memref<1x128xf32, #tpu.memory_space<vmem>>, %arg11: memref<1x128xf32, #tpu.memory_space<vmem>>, %arg12: memref<48x128xbf16, #tpu.memory_space<vmem>>) attributes {dimension_semantics = [#tpu.dimension_semantics<parallel>], iteration_bounds = array<i64: 2>, scalar_prefetch = 0 : i64, scratch_operands = 0 : i64, tpu.core_type = #tpu.core_type<tc>, window_params = [{transform_indices = @transform_0, window_bounds = array<i64: 48, 128>}, {transform_indices = @transform_1, window_bounds = array<i64: 48, 128>}, {pipeline_mode = #tpu.pipeline_mode<synchronous>, transform_indices = @transform_2, window_bounds = array<i64: 128, 128>}, {pipeline_mode = #tpu.pipeline_mode<synchronous>, transform_indices = @transform_3, window_bounds = array<i64: 128, 128>}, {pipeline_mode = #tpu.pipeline_mode<synchronous>, transform_indices = @transform_4, window_bounds = array<i64: 1, 128>}, {pipeline_mode = #tpu.pipeline_mode<synchronous>, transform_indices = @transform_5, window_bounds = array<i64: 128, 128>}, {pipeline_mode = #tpu.pipeline_mode<synchronous>, transform_indices = @transform_6, window_bounds = array<i64: 1, 128>}, {pipeline_mode = #tpu.pipeline_mode<synchronous>, transform_indices = @transform_7, window_bounds = array<i64: 128, 128>}, {pipeline_mode = #tpu.pipeline_mode<synchronous>, transform_indices = @transform_8, window_bounds = array<i64: 1, 128>}, {pipeline_mode = #tpu.pipeline_mode<synchronous>, transform_indices = @transform_9, window_bounds = array<i64: 1, 128>}, {pipeline_mode = #tpu.pipeline_mode<synchronous>, transform_indices = @transform_10, window_bounds = array<i64: 1, 128>}, {transform_indices = @transform_11, window_bounds = array<i64: 48, 128>}]} {
    %c0 = arith.constant 0 : index
    %c0_0 = arith.constant 0 : index
    %0 = vector.load %arg1[%c0, %c0_0] : memref<48x128xbf16, #tpu.memory_space<vmem>>, vector<48x128xbf16>
    %c0_1 = arith.constant 0 : index
    %c0_2 = arith.constant 0 : index
    %1 = vector.load %arg2[%c0_1, %c0_2] : memref<48x128xf32, #tpu.memory_space<vmem>>, vector<48x128xf32>
    %c0_3 = arith.constant 0 : index
    %c0_4 = arith.constant 0 : index
    %2 = vector.load %arg3[%c0_3, %c0_4] : memref<128x128xbf16, #tpu.memory_space<vmem>>, vector<128x128xbf16>
    %cst = arith.constant dense<0.000000e+00> : vector<48x128xf32>
    %3 = tpu.matmul %0, %2, %cst {dimension_numbers = #tpu.dot_dimension_numbers<[1], [0], [0], [1], [0, 0, 1, 1], [], []>} : vector<48x128xbf16>, vector<128x128xbf16>, vector<48x128xf32> -> vector<48x128xf32>
    %4 = arith.truncf %1 : vector<48x128xf32> to vector<48x128xbf16>
    %c0_5 = arith.constant 0 : index
    %c0_6 = arith.constant 0 : index
    %5 = vector.load %arg4[%c0_5, %c0_6] : memref<128x128xbf16, #tpu.memory_space<vmem>>, vector<128x128xbf16>
    %cst_7 = arith.constant dense<0.000000e+00> : vector<48x128xf32>
    %6 = tpu.matmul %4, %5, %cst_7 {dimension_numbers = #tpu.dot_dimension_numbers<[1], [0], [0], [1], [0, 0, 1, 1], [], []>} : vector<48x128xbf16>, vector<128x128xbf16>, vector<48x128xf32> -> vector<48x128xf32>
    %7 = arith.addf %3, %6 : vector<48x128xf32>
    %c0_8 = arith.constant 0 : index
    %c0_9 = arith.constant 0 : index
    %8 = vector.load %arg5[%c0_8, %c0_9] : memref<1x128xf32, #tpu.memory_space<vmem>>, vector<1x128xf32>
    %9 = vector.broadcast %8 : vector<1x128xf32> to vector<48x128xf32>
    %10 = arith.addf %7, %9 : vector<48x128xf32>
    %cst_10 = arith.constant 0.000000e+00 : f32
    %11 = vector.broadcast %cst_10 : f32 to vector<48x128xf32>
    %12 = arith.maximumf %10, %11 : vector<48x128xf32>
    %13 = arith.truncf %12 : vector<48x128xf32> to vector<48x128xbf16>
    %c0_11 = arith.constant 0 : index
    %c0_12 = arith.constant 0 : index
    %14 = vector.load %arg6[%c0_11, %c0_12] : memref<128x128xbf16, #tpu.memory_space<vmem>>, vector<128x128xbf16>
    %cst_13 = arith.constant dense<0.000000e+00> : vector<48x128xf32>
    %15 = tpu.matmul %13, %14, %cst_13 {dimension_numbers = #tpu.dot_dimension_numbers<[1], [0], [0], [1], [0, 0, 1, 1], [], []>} : vector<48x128xbf16>, vector<128x128xbf16>, vector<48x128xf32> -> vector<48x128xf32>
    %c0_14 = arith.constant 0 : index
    %c0_15 = arith.constant 0 : index
    %16 = vector.load %arg7[%c0_14, %c0_15] : memref<1x128xf32, #tpu.memory_space<vmem>>, vector<1x128xf32>
    %17 = vector.broadcast %16 : vector<1x128xf32> to vector<48x128xf32>
    %18 = arith.addf %15, %17 : vector<48x128xf32>
    %cst_16 = arith.constant 0.000000e+00 : f32
    %19 = vector.broadcast %cst_16 : f32 to vector<48x128xf32>
    %20 = arith.maximumf %18, %19 : vector<48x128xf32>
    %21 = arith.truncf %20 : vector<48x128xf32> to vector<48x128xbf16>
    %c0_17 = arith.constant 0 : index
    %c0_18 = arith.constant 0 : index
    %22 = vector.load %arg8[%c0_17, %c0_18] : memref<128x128xbf16, #tpu.memory_space<vmem>>, vector<128x128xbf16>
    %cst_19 = arith.constant dense<0.000000e+00> : vector<48x128xf32>
    %23 = tpu.matmul %21, %22, %cst_19 {dimension_numbers = #tpu.dot_dimension_numbers<[1], [0], [0], [1], [0, 0, 1, 1], [], []>} : vector<48x128xbf16>, vector<128x128xbf16>, vector<48x128xf32> -> vector<48x128xf32>
    %c0_20 = arith.constant 0 : index
    %c0_21 = arith.constant 0 : index
    %24 = vector.load %arg9[%c0_20, %c0_21] : memref<1x128xf32, #tpu.memory_space<vmem>>, vector<1x128xf32>
    %25 = vector.broadcast %24 : vector<1x128xf32> to vector<48x128xf32>
    %26 = arith.addf %23, %25 : vector<48x128xf32>
    %cst_22 = arith.constant dense<0.000000e+00> : vector<48xf32>
    %27 = vector.multi_reduction <add>, %26, %cst_22 [1] : vector<48x128xf32> to vector<48xf32>
    %28 = vector.shape_cast %27 : vector<48xf32> to vector<48x1xf32>
    %cst_23 = arith.constant 1.280000e+02 : f32
    %29 = vector.broadcast %cst_23 : f32 to vector<48x1xf32>
    %30 = arith.divf %28, %29 : vector<48x1xf32>
    %31 = vector.broadcast %30 : vector<48x1xf32> to vector<48x128xf32>
    %32 = arith.subf %26, %31 : vector<48x128xf32>
    %33 = arith.mulf %32, %32 : vector<48x128xf32>
    %cst_24 = arith.constant dense<0.000000e+00> : vector<48xf32>
    %34 = vector.multi_reduction <add>, %33, %cst_24 [1] : vector<48x128xf32> to vector<48xf32>
    %35 = vector.shape_cast %34 : vector<48xf32> to vector<48x1xf32>
    %cst_25 = arith.constant 1.280000e+02 : f32
    %36 = vector.broadcast %cst_25 : f32 to vector<48x1xf32>
    %37 = arith.divf %35, %36 : vector<48x1xf32>
    %38 = vector.broadcast %30 : vector<48x1xf32> to vector<48x128xf32>
    %39 = arith.subf %26, %38 : vector<48x128xf32>
    %cst_26 = arith.constant 9.99999974E-6 : f32
    %40 = vector.broadcast %cst_26 : f32 to vector<48x1xf32>
    %41 = arith.addf %37, %40 : vector<48x1xf32>
    %42 = math.rsqrt %41 : vector<48x1xf32>
    %43 = vector.broadcast %42 : vector<48x1xf32> to vector<48x128xf32>
    %44 = arith.mulf %39, %43 : vector<48x128xf32>
    %c0_27 = arith.constant 0 : index
    %c0_28 = arith.constant 0 : index
    %45 = vector.load %arg10[%c0_27, %c0_28] : memref<1x128xf32, #tpu.memory_space<vmem>>, vector<1x128xf32>
    %46 = vector.broadcast %45 : vector<1x128xf32> to vector<48x128xf32>
    %47 = arith.mulf %44, %46 : vector<48x128xf32>
    %c0_29 = arith.constant 0 : index
    %c0_30 = arith.constant 0 : index
    %48 = vector.load %arg11[%c0_29, %c0_30] : memref<1x128xf32, #tpu.memory_space<vmem>>, vector<1x128xf32>
    %49 = vector.broadcast %48 : vector<1x128xf32> to vector<48x128xf32>
    %50 = arith.addf %47, %49 : vector<48x128xf32>
    %51 = arith.extf %0 : vector<48x128xbf16> to vector<48x128xf32>
    %52 = arith.addf %50, %51 : vector<48x128xf32>
    %53 = arith.truncf %52 : vector<48x128xf32> to vector<48x128xbf16>
    %c0_31 = arith.constant 0 : index
    %c0_32 = arith.constant 0 : index
    %54 = vector.load %arg12[%c0_31, %c0_32] : memref<48x128xbf16, #tpu.memory_space<vmem>>, vector<48x128xbf16>
    tpu.vector_store %arg12[%c0_31, %c0_32], %53 {strides = array<i32>} : memref<48x128xbf16, #tpu.memory_space<vmem>>, vector<48x128xbf16>,
    return
  }
  func.func @transform_0(%arg0: i32) -> (i32, i32) {
    %c0_i32 = arith.constant 0 : i32
    %c0_i32_0 = arith.constant 0 : i32
    return %arg0, %c0_i32 : i32, i32
  }
  func.func @transform_1(%arg0: i32) -> (i32, i32) {
    %c0_i32 = arith.constant 0 : i32
    %c0_i32_0 = arith.constant 0 : i32
    return %arg0, %c0_i32 : i32, i32
  }
  func.func @transform_2(%arg0: i32) -> (i32, i32) {
    %c0_i32 = arith.constant 0 : i32
    %c0_i32_0 = arith.constant 0 : i32
    %c0_i32_1 = arith.constant 0 : i32
    return %c0_i32, %c0_i32_0 : i32, i32
  }
  func.func @transform_3(%arg0: i32) -> (i32, i32) {
    %c0_i32 = arith.constant 0 : i32
    %c0_i32_0 = arith.constant 0 : i32
    %c0_i32_1 = arith.constant 0 : i32
    return %c0_i32, %c0_i32_0 : i32, i32
  }
  func.func @transform_4(%arg0: i32) -> (i32, i32) {
    %c0_i32 = arith.constant 0 : i32
    %c0_i32_0 = arith.constant 0 : i32
    %c0_i32_1 = arith.constant 0 : i32
    return %c0_i32, %c0_i32_0 : i32, i32
  }
  func.func @transform_5(%arg0: i32) -> (i32, i32) {
    %c0_i32 = arith.constant 0 : i32
    %c0_i32_0 = arith.constant 0 : i32
    %c0_i32_1 = arith.constant 0 : i32
    return %c0_i32, %c0_i32_0 : i32, i32
  }
  func.func @transform_6(%arg0: i32) -> (i32, i32) {
    %c0_i32 = arith.constant 0 : i32
    %c0_i32_0 = arith.constant 0 : i32
    %c0_i32_1 = arith.constant 0 : i32
    return %c0_i32, %c0_i32_0 : i32, i32
  }
  func.func @transform_7(%arg0: i32) -> (i32, i32) {
    %c0_i32 = arith.constant 0 : i32
    %c0_i32_0 = arith.constant 0 : i32
    %c0_i32_1 = arith.constant 0 : i32
    return %c0_i32, %c0_i32_0 : i32, i32
  }
  func.func @transform_8(%arg0: i32) -> (i32, i32) {
    %c0_i32 = arith.constant 0 : i32
    %c0_i32_0 = arith.constant 0 : i32
    %c0_i32_1 = arith.constant 0 : i32
    return %c0_i32, %c0_i32_0 : i32, i32
  }
  func.func @transform_9(%arg0: i32) -> (i32, i32) {
    %c0_i32 = arith.constant 0 : i32
    %c0_i32_0 = arith.constant 0 : i32
    %c0_i32_1 = arith.constant 0 : i32
    return %c0_i32, %c0_i32_0 : i32, i32
  }
  func.func @transform_10(%arg0: i32) -> (i32, i32) {
    %c0_i32 = arith.constant 0 : i32
    %c0_i32_0 = arith.constant 0 : i32
    %c0_i32_1 = arith.constant 0 : i32
    return %c0_i32, %c0_i32_0 : i32, i32
  }
  func.func @transform_11(%arg0: i32) -> (i32, i32) {
    %c0_i32 = arith.constant 0 : i32
    %c0_i32_0 = arith.constant 0 : i32
    return %arg0, %c0_i32 : i32, i32
  }
}

module attributes {stable_mosaic.version = 11 : i64} {
  func.func @_mlp_kernel(%arg0: i32, %arg1: memref<176x128xbf16, #tpu.memory_space<vmem>>, %arg2: memref<176x128xbf16, #tpu.memory_space<vmem>>, %arg3: memref<176x128xbf16, #tpu.memory_space<vmem>>, %arg4: memref<128x128xbf16, #tpu.memory_space<vmem>>, %arg5: memref<128x128xbf16, #tpu.memory_space<vmem>>, %arg6: memref<128x128xbf16, #tpu.memory_space<vmem>>, %arg7: memref<1x128xf32, #tpu.memory_space<vmem>>, %arg8: memref<128x128xbf16, #tpu.memory_space<vmem>>, %arg9: memref<1x128xf32, #tpu.memory_space<vmem>>, %arg10: memref<128x128xbf16, #tpu.memory_space<vmem>>, %arg11: memref<1x128xf32, #tpu.memory_space<vmem>>, %arg12: memref<1x128xf32, #tpu.memory_space<vmem>>, %arg13: memref<1x128xf32, #tpu.memory_space<vmem>>, %arg14: memref<176x128xf32, #tpu.memory_space<vmem>>, %arg15: memref<176x128xbf16, #tpu.memory_space<vmem>>) attributes {dimension_semantics = [#tpu.dimension_semantics<parallel>], iteration_bounds = array<i64: 2>, scalar_prefetch = 0 : i64, scratch_operands = 0 : i64, tpu.core_type = #tpu.core_type<tc>, window_params = [{transform_indices = @transform_0, window_bounds = array<i64: 176, 128>}, {transform_indices = @transform_1, window_bounds = array<i64: 176, 128>}, {transform_indices = @transform_2, window_bounds = array<i64: 176, 128>}, {pipeline_mode = #tpu.pipeline_mode<synchronous>, transform_indices = @transform_3, window_bounds = array<i64: 128, 128>}, {pipeline_mode = #tpu.pipeline_mode<synchronous>, transform_indices = @transform_4, window_bounds = array<i64: 128, 128>}, {pipeline_mode = #tpu.pipeline_mode<synchronous>, transform_indices = @transform_5, window_bounds = array<i64: 128, 128>}, {pipeline_mode = #tpu.pipeline_mode<synchronous>, transform_indices = @transform_6, window_bounds = array<i64: 1, 128>}, {pipeline_mode = #tpu.pipeline_mode<synchronous>, transform_indices = @transform_7, window_bounds = array<i64: 128, 128>}, {pipeline_mode = #tpu.pipeline_mode<synchronous>, transform_indices = @transform_8, window_bounds = array<i64: 1, 128>}, {pipeline_mode = #tpu.pipeline_mode<synchronous>, transform_indices = @transform_9, window_bounds = array<i64: 128, 128>}, {pipeline_mode = #tpu.pipeline_mode<synchronous>, transform_indices = @transform_10, window_bounds = array<i64: 1, 128>}, {pipeline_mode = #tpu.pipeline_mode<synchronous>, transform_indices = @transform_11, window_bounds = array<i64: 1, 128>}, {pipeline_mode = #tpu.pipeline_mode<synchronous>, transform_indices = @transform_12, window_bounds = array<i64: 1, 128>}, {transform_indices = @transform_13, window_bounds = array<i64: 176, 128>}, {transform_indices = @transform_14, window_bounds = array<i64: 176, 128>}]} {
    %c0 = arith.constant 0 : index
    %c0_0 = arith.constant 0 : index
    %0 = vector.load %arg1[%c0, %c0_0] : memref<176x128xbf16, #tpu.memory_space<vmem>>, vector<176x128xbf16>
    %c0_1 = arith.constant 0 : index
    %c0_2 = arith.constant 0 : index
    %1 = vector.load %arg2[%c0_1, %c0_2] : memref<176x128xbf16, #tpu.memory_space<vmem>>, vector<176x128xbf16>
    %c0_3 = arith.constant 0 : index
    %c0_4 = arith.constant 0 : index
    %2 = vector.load %arg3[%c0_3, %c0_4] : memref<176x128xbf16, #tpu.memory_space<vmem>>, vector<176x128xbf16>
    %c0_5 = arith.constant 0 : index
    %c0_6 = arith.constant 0 : index
    %3 = vector.load %arg4[%c0_5, %c0_6] : memref<128x128xbf16, #tpu.memory_space<vmem>>, vector<128x128xbf16>
    %cst = arith.constant dense<0.000000e+00> : vector<176x128xf32>
    %4 = tpu.matmul %0, %3, %cst {dimension_numbers = #tpu.dot_dimension_numbers<[1], [0], [0], [1], [0, 0, 1, 1], [], []>} : vector<176x128xbf16>, vector<128x128xbf16>, vector<176x128xf32> -> vector<176x128xf32>
    %c0_7 = arith.constant 0 : index
    %c0_8 = arith.constant 0 : index
    %5 = vector.load %arg5[%c0_7, %c0_8] : memref<128x128xbf16, #tpu.memory_space<vmem>>, vector<128x128xbf16>
    %cst_9 = arith.constant dense<0.000000e+00> : vector<176x128xf32>
    %6 = tpu.matmul %1, %5, %cst_9 {dimension_numbers = #tpu.dot_dimension_numbers<[1], [0], [0], [1], [0, 0, 1, 1], [], []>} : vector<176x128xbf16>, vector<128x128xbf16>, vector<176x128xf32> -> vector<176x128xf32>
    %7 = arith.addf %4, %6 : vector<176x128xf32>
    %c0_10 = arith.constant 0 : index
    %c0_11 = arith.constant 0 : index
    %8 = vector.load %arg6[%c0_10, %c0_11] : memref<128x128xbf16, #tpu.memory_space<vmem>>, vector<128x128xbf16>
    %cst_12 = arith.constant dense<0.000000e+00> : vector<176x128xf32>
    %9 = tpu.matmul %2, %8, %cst_12 {dimension_numbers = #tpu.dot_dimension_numbers<[1], [0], [0], [1], [0, 0, 1, 1], [], []>} : vector<176x128xbf16>, vector<128x128xbf16>, vector<176x128xf32> -> vector<176x128xf32>
    %10 = arith.addf %7, %9 : vector<176x128xf32>
    %c0_13 = arith.constant 0 : index
    %c0_14 = arith.constant 0 : index
    %11 = vector.load %arg7[%c0_13, %c0_14] : memref<1x128xf32, #tpu.memory_space<vmem>>, vector<1x128xf32>
    %12 = vector.broadcast %11 : vector<1x128xf32> to vector<176x128xf32>
    %13 = arith.addf %10, %12 : vector<176x128xf32>
    %cst_15 = arith.constant 0.000000e+00 : f32
    %14 = vector.broadcast %cst_15 : f32 to vector<176x128xf32>
    %15 = arith.maximumf %13, %14 : vector<176x128xf32>
    %16 = arith.truncf %15 : vector<176x128xf32> to vector<176x128xbf16>
    %c0_16 = arith.constant 0 : index
    %c0_17 = arith.constant 0 : index
    %17 = vector.load %arg8[%c0_16, %c0_17] : memref<128x128xbf16, #tpu.memory_space<vmem>>, vector<128x128xbf16>
    %cst_18 = arith.constant dense<0.000000e+00> : vector<176x128xf32>
    %18 = tpu.matmul %16, %17, %cst_18 {dimension_numbers = #tpu.dot_dimension_numbers<[1], [0], [0], [1], [0, 0, 1, 1], [], []>} : vector<176x128xbf16>, vector<128x128xbf16>, vector<176x128xf32> -> vector<176x128xf32>
    %c0_19 = arith.constant 0 : index
    %c0_20 = arith.constant 0 : index
    %19 = vector.load %arg9[%c0_19, %c0_20] : memref<1x128xf32, #tpu.memory_space<vmem>>, vector<1x128xf32>
    %20 = vector.broadcast %19 : vector<1x128xf32> to vector<176x128xf32>
    %21 = arith.addf %18, %20 : vector<176x128xf32>
    %cst_21 = arith.constant 0.000000e+00 : f32
    %22 = vector.broadcast %cst_21 : f32 to vector<176x128xf32>
    %23 = arith.maximumf %21, %22 : vector<176x128xf32>
    %24 = arith.truncf %23 : vector<176x128xf32> to vector<176x128xbf16>
    %c0_22 = arith.constant 0 : index
    %c0_23 = arith.constant 0 : index
    %25 = vector.load %arg10[%c0_22, %c0_23] : memref<128x128xbf16, #tpu.memory_space<vmem>>, vector<128x128xbf16>
    %cst_24 = arith.constant dense<0.000000e+00> : vector<176x128xf32>
    %26 = tpu.matmul %24, %25, %cst_24 {dimension_numbers = #tpu.dot_dimension_numbers<[1], [0], [0], [1], [0, 0, 1, 1], [], []>} : vector<176x128xbf16>, vector<128x128xbf16>, vector<176x128xf32> -> vector<176x128xf32>
    %c0_25 = arith.constant 0 : index
    %c0_26 = arith.constant 0 : index
    %27 = vector.load %arg11[%c0_25, %c0_26] : memref<1x128xf32, #tpu.memory_space<vmem>>, vector<1x128xf32>
    %28 = vector.broadcast %27 : vector<1x128xf32> to vector<176x128xf32>
    %29 = arith.addf %26, %28 : vector<176x128xf32>
    %cst_27 = arith.constant dense<0.000000e+00> : vector<176xf32>
    %30 = vector.multi_reduction <add>, %29, %cst_27 [1] : vector<176x128xf32> to vector<176xf32>
    %31 = vector.shape_cast %30 : vector<176xf32> to vector<176x1xf32>
    %cst_28 = arith.constant 1.280000e+02 : f32
    %32 = vector.broadcast %cst_28 : f32 to vector<176x1xf32>
    %33 = arith.divf %31, %32 : vector<176x1xf32>
    %34 = vector.broadcast %33 : vector<176x1xf32> to vector<176x128xf32>
    %35 = arith.subf %29, %34 : vector<176x128xf32>
    %36 = arith.mulf %35, %35 : vector<176x128xf32>
    %cst_29 = arith.constant dense<0.000000e+00> : vector<176xf32>
    %37 = vector.multi_reduction <add>, %36, %cst_29 [1] : vector<176x128xf32> to vector<176xf32>
    %38 = vector.shape_cast %37 : vector<176xf32> to vector<176x1xf32>
    %cst_30 = arith.constant 1.280000e+02 : f32
    %39 = vector.broadcast %cst_30 : f32 to vector<176x1xf32>
    %40 = arith.divf %38, %39 : vector<176x1xf32>
    %41 = vector.broadcast %33 : vector<176x1xf32> to vector<176x128xf32>
    %42 = arith.subf %29, %41 : vector<176x128xf32>
    %cst_31 = arith.constant 9.99999974E-6 : f32
    %43 = vector.broadcast %cst_31 : f32 to vector<176x1xf32>
    %44 = arith.addf %40, %43 : vector<176x1xf32>
    %45 = math.rsqrt %44 : vector<176x1xf32>
    %46 = vector.broadcast %45 : vector<176x1xf32> to vector<176x128xf32>
    %47 = arith.mulf %42, %46 : vector<176x128xf32>
    %c0_32 = arith.constant 0 : index
    %c0_33 = arith.constant 0 : index
    %48 = vector.load %arg12[%c0_32, %c0_33] : memref<1x128xf32, #tpu.memory_space<vmem>>, vector<1x128xf32>
    %49 = vector.broadcast %48 : vector<1x128xf32> to vector<176x128xf32>
    %50 = arith.mulf %47, %49 : vector<176x128xf32>
    %c0_34 = arith.constant 0 : index
    %c0_35 = arith.constant 0 : index
    %51 = vector.load %arg13[%c0_34, %c0_35] : memref<1x128xf32, #tpu.memory_space<vmem>>, vector<1x128xf32>
    %52 = vector.broadcast %51 : vector<1x128xf32> to vector<176x128xf32>
    %53 = arith.addf %50, %52 : vector<176x128xf32>
    %c0_36 = arith.constant 0 : index
    %c0_37 = arith.constant 0 : index
    %54 = vector.load %arg14[%c0_36, %c0_37] : memref<176x128xf32, #tpu.memory_space<vmem>>, vector<176x128xf32>
    tpu.vector_store %arg14[%c0_36, %c0_37], %53 {strides = array<i32>} : memref<176x128xf32, #tpu.memory_space<vmem>>, vector<176x128xf32>,
    %55 = arith.extf %2 : vector<176x128xbf16> to vector<176x128xf32>
    %56 = arith.addf %53, %55 : vector<176x128xf32>
    %57 = arith.truncf %56 : vector<176x128xf32> to vector<176x128xbf16>
    %c0_38 = arith.constant 0 : index
    %c0_39 = arith.constant 0 : index
    %58 = vector.load %arg15[%c0_38, %c0_39] : memref<176x128xbf16, #tpu.memory_space<vmem>>, vector<176x128xbf16>
    tpu.vector_store %arg15[%c0_38, %c0_39], %57 {strides = array<i32>} : memref<176x128xbf16, #tpu.memory_space<vmem>>, vector<176x128xbf16>,
    return
  }
  func.func @transform_0(%arg0: i32) -> (i32, i32) {
    %c0_i32 = arith.constant 0 : i32
    %c0_i32_0 = arith.constant 0 : i32
    return %arg0, %c0_i32 : i32, i32
  }
  func.func @transform_1(%arg0: i32) -> (i32, i32) {
    %c0_i32 = arith.constant 0 : i32
    %c0_i32_0 = arith.constant 0 : i32
    return %arg0, %c0_i32 : i32, i32
  }
  func.func @transform_2(%arg0: i32) -> (i32, i32) {
    %c0_i32 = arith.constant 0 : i32
    %c0_i32_0 = arith.constant 0 : i32
    return %arg0, %c0_i32 : i32, i32
  }
  func.func @transform_3(%arg0: i32) -> (i32, i32) {
    %c0_i32 = arith.constant 0 : i32
    %c0_i32_0 = arith.constant 0 : i32
    %c0_i32_1 = arith.constant 0 : i32
    return %c0_i32, %c0_i32_0 : i32, i32
  }
  func.func @transform_4(%arg0: i32) -> (i32, i32) {
    %c0_i32 = arith.constant 0 : i32
    %c0_i32_0 = arith.constant 0 : i32
    %c0_i32_1 = arith.constant 0 : i32
    return %c0_i32, %c0_i32_0 : i32, i32
  }
  func.func @transform_5(%arg0: i32) -> (i32, i32) {
    %c0_i32 = arith.constant 0 : i32
    %c0_i32_0 = arith.constant 0 : i32
    %c0_i32_1 = arith.constant 0 : i32
    return %c0_i32, %c0_i32_0 : i32, i32
  }
  func.func @transform_6(%arg0: i32) -> (i32, i32) {
    %c0_i32 = arith.constant 0 : i32
    %c0_i32_0 = arith.constant 0 : i32
    %c0_i32_1 = arith.constant 0 : i32
    return %c0_i32, %c0_i32_0 : i32, i32
  }
  func.func @transform_7(%arg0: i32) -> (i32, i32) {
    %c0_i32 = arith.constant 0 : i32
    %c0_i32_0 = arith.constant 0 : i32
    %c0_i32_1 = arith.constant 0 : i32
    return %c0_i32, %c0_i32_0 : i32, i32
  }
  func.func @transform_8(%arg0: i32) -> (i32, i32) {
    %c0_i32 = arith.constant 0 : i32
    %c0_i32_0 = arith.constant 0 : i32
    %c0_i32_1 = arith.constant 0 : i32
    return %c0_i32, %c0_i32_0 : i32, i32
  }
  func.func @transform_9(%arg0: i32) -> (i32, i32) {
    %c0_i32 = arith.constant 0 : i32
    %c0_i32_0 = arith.constant 0 : i32
    %c0_i32_1 = arith.constant 0 : i32
    return %c0_i32, %c0_i32_0 : i32, i32
  }
  func.func @transform_10(%arg0: i32) -> (i32, i32) {
    %c0_i32 = arith.constant 0 : i32
    %c0_i32_0 = arith.constant 0 : i32
    %c0_i32_1 = arith.constant 0 : i32
    return %c0_i32, %c0_i32_0 : i32, i32
  }
  func.func @transform_11(%arg0: i32) -> (i32, i32) {
    %c0_i32 = arith.constant 0 : i32
    %c0_i32_0 = arith.constant 0 : i32
    %c0_i32_1 = arith.constant 0 : i32
    return %c0_i32, %c0_i32_0 : i32, i32
  }
  func.func @transform_12(%arg0: i32) -> (i32, i32) {
    %c0_i32 = arith.constant 0 : i32
    %c0_i32_0 = arith.constant 0 : i32
    %c0_i32_1 = arith.constant 0 : i32
    return %c0_i32, %c0_i32_0 : i32, i32
  }
  func.func @transform_13(%arg0: i32) -> (i32, i32) {
    %c0_i32 = arith.constant 0 : i32
    %c0_i32_0 = arith.constant 0 : i32
    return %arg0, %c0_i32 : i32, i32
  }
  func.func @transform_14(%arg0: i32) -> (i32, i32) {
    %c0_i32 = arith.constant 0 : i32
    %c0_i32_0 = arith.constant 0 : i32
    return %arg0, %c0_i32 : i32, i32
  }
}

module attributes {stable_mosaic.version = 11 : i64} {
  func.func @_mlp_kernel(%arg0: i32, %arg1: memref<48x128xbf16, #tpu.memory_space<vmem>>, %arg2: memref<128x128xbf16, #tpu.memory_space<vmem>>, %arg3: memref<1x128xf32, #tpu.memory_space<vmem>>, %arg4: memref<128x128xbf16, #tpu.memory_space<vmem>>, %arg5: memref<1x128xf32, #tpu.memory_space<vmem>>, %arg6: memref<128x3xbf16, #tpu.memory_space<vmem>>, %arg7: memref<1x3xf32, #tpu.memory_space<vmem>>, %arg8: memref<48x3xf32, #tpu.memory_space<vmem>>, %arg9: memref<1x3xf32, #tpu.memory_space<vmem>>, %arg10: memref<1x3xf32, #tpu.memory_space<vmem>>, %arg11: memref<48x3xf32, #tpu.memory_space<vmem>>) attributes {dimension_semantics = [#tpu.dimension_semantics<parallel>], iteration_bounds = array<i64: 2>, scalar_prefetch = 0 : i64, scratch_operands = 0 : i64, tpu.core_type = #tpu.core_type<tc>, window_params = [{transform_indices = @transform_0, window_bounds = array<i64: 48, 128>}, {pipeline_mode = #tpu.pipeline_mode<synchronous>, transform_indices = @transform_1, window_bounds = array<i64: 128, 128>}, {pipeline_mode = #tpu.pipeline_mode<synchronous>, transform_indices = @transform_2, window_bounds = array<i64: 1, 128>}, {pipeline_mode = #tpu.pipeline_mode<synchronous>, transform_indices = @transform_3, window_bounds = array<i64: 128, 128>}, {pipeline_mode = #tpu.pipeline_mode<synchronous>, transform_indices = @transform_4, window_bounds = array<i64: 1, 128>}, {pipeline_mode = #tpu.pipeline_mode<synchronous>, transform_indices = @transform_5, window_bounds = array<i64: 128, 3>}, {pipeline_mode = #tpu.pipeline_mode<synchronous>, transform_indices = @transform_6, window_bounds = array<i64: 1, 3>}, {transform_indices = @transform_7, window_bounds = array<i64: 48, 3>}, {pipeline_mode = #tpu.pipeline_mode<synchronous>, transform_indices = @transform_8, window_bounds = array<i64: 1, 3>}, {pipeline_mode = #tpu.pipeline_mode<synchronous>, transform_indices = @transform_9, window_bounds = array<i64: 1, 3>}, {transform_indices = @transform_10, window_bounds = array<i64: 48, 3>}]} {
    %c0 = arith.constant 0 : index
    %c0_0 = arith.constant 0 : index
    %0 = vector.load %arg1[%c0, %c0_0] : memref<48x128xbf16, #tpu.memory_space<vmem>>, vector<48x128xbf16>
    %c0_1 = arith.constant 0 : index
    %c0_2 = arith.constant 0 : index
    %1 = vector.load %arg2[%c0_1, %c0_2] : memref<128x128xbf16, #tpu.memory_space<vmem>>, vector<128x128xbf16>
    %cst = arith.constant dense<0.000000e+00> : vector<48x128xf32>
    %2 = tpu.matmul %0, %1, %cst {dimension_numbers = #tpu.dot_dimension_numbers<[1], [0], [0], [1], [0, 0, 1, 1], [], []>} : vector<48x128xbf16>, vector<128x128xbf16>, vector<48x128xf32> -> vector<48x128xf32>
    %c0_3 = arith.constant 0 : index
    %c0_4 = arith.constant 0 : index
    %3 = vector.load %arg3[%c0_3, %c0_4] : memref<1x128xf32, #tpu.memory_space<vmem>>, vector<1x128xf32>
    %4 = vector.broadcast %3 : vector<1x128xf32> to vector<48x128xf32>
    %5 = arith.addf %2, %4 : vector<48x128xf32>
    %cst_5 = arith.constant 0.000000e+00 : f32
    %6 = vector.broadcast %cst_5 : f32 to vector<48x128xf32>
    %7 = arith.maximumf %5, %6 : vector<48x128xf32>
    %8 = arith.truncf %7 : vector<48x128xf32> to vector<48x128xbf16>
    %c0_6 = arith.constant 0 : index
    %c0_7 = arith.constant 0 : index
    %9 = vector.load %arg4[%c0_6, %c0_7] : memref<128x128xbf16, #tpu.memory_space<vmem>>, vector<128x128xbf16>
    %cst_8 = arith.constant dense<0.000000e+00> : vector<48x128xf32>
    %10 = tpu.matmul %8, %9, %cst_8 {dimension_numbers = #tpu.dot_dimension_numbers<[1], [0], [0], [1], [0, 0, 1, 1], [], []>} : vector<48x128xbf16>, vector<128x128xbf16>, vector<48x128xf32> -> vector<48x128xf32>
    %c0_9 = arith.constant 0 : index
    %c0_10 = arith.constant 0 : index
    %11 = vector.load %arg5[%c0_9, %c0_10] : memref<1x128xf32, #tpu.memory_space<vmem>>, vector<1x128xf32>
    %12 = vector.broadcast %11 : vector<1x128xf32> to vector<48x128xf32>
    %13 = arith.addf %10, %12 : vector<48x128xf32>
    %cst_11 = arith.constant 0.000000e+00 : f32
    %14 = vector.broadcast %cst_11 : f32 to vector<48x128xf32>
    %15 = arith.maximumf %13, %14 : vector<48x128xf32>
    %16 = arith.truncf %15 : vector<48x128xf32> to vector<48x128xbf16>
    %c0_12 = arith.constant 0 : index
    %c0_13 = arith.constant 0 : index
    %17 = vector.load %arg6[%c0_12, %c0_13] : memref<128x3xbf16, #tpu.memory_space<vmem>>, vector<128x3xbf16>
    %cst_14 = arith.constant dense<0.000000e+00> : vector<48x3xf32>
    %18 = tpu.matmul %16, %17, %cst_14 {dimension_numbers = #tpu.dot_dimension_numbers<[1], [0], [0], [1], [0, 0, 1, 1], [], []>} : vector<48x128xbf16>, vector<128x3xbf16>, vector<48x3xf32> -> vector<48x3xf32>
    %c0_15 = arith.constant 0 : index
    %c0_16 = arith.constant 0 : index
    %19 = vector.load %arg7[%c0_15, %c0_16] : memref<1x3xf32, #tpu.memory_space<vmem>>, vector<1x3xf32>
    %20 = vector.broadcast %19 : vector<1x3xf32> to vector<48x3xf32>
    %21 = arith.addf %18, %20 : vector<48x3xf32>
    %c0_17 = arith.constant 0 : index
    %c0_18 = arith.constant 0 : index
    %22 = vector.load %arg8[%c0_17, %c0_18] : memref<48x3xf32, #tpu.memory_space<vmem>>, vector<48x3xf32>
    %c0_19 = arith.constant 0 : index
    %c0_20 = arith.constant 0 : index
    %23 = vector.load %arg10[%c0_19, %c0_20] : memref<1x3xf32, #tpu.memory_space<vmem>>, vector<1x3xf32>
    %24 = vector.broadcast %23 : vector<1x3xf32> to vector<48x3xf32>
    %25 = arith.mulf %21, %24 : vector<48x3xf32>
    %26 = arith.addf %22, %25 : vector<48x3xf32>
    %c0_21 = arith.constant 0 : index
    %c0_22 = arith.constant 0 : index
    %27 = vector.load %arg9[%c0_21, %c0_22] : memref<1x3xf32, #tpu.memory_space<vmem>>, vector<1x3xf32>
    %28 = vector.broadcast %27 : vector<1x3xf32> to vector<48x3xf32>
    %29 = arith.addf %26, %28 : vector<48x3xf32>
    %c0_23 = arith.constant 0 : index
    %c0_24 = arith.constant 0 : index
    %30 = vector.load %arg11[%c0_23, %c0_24] : memref<48x3xf32, #tpu.memory_space<vmem>>, vector<48x3xf32>
    tpu.vector_store %arg11[%c0_23, %c0_24], %29 {strides = array<i32>} : memref<48x3xf32, #tpu.memory_space<vmem>>, vector<48x3xf32>,
    return
  }
  func.func @transform_0(%arg0: i32) -> (i32, i32) {
    %c0_i32 = arith.constant 0 : i32
    %c0_i32_0 = arith.constant 0 : i32
    return %arg0, %c0_i32 : i32, i32
  }
  func.func @transform_1(%arg0: i32) -> (i32, i32) {
    %c0_i32 = arith.constant 0 : i32
    %c0_i32_0 = arith.constant 0 : i32
    %c0_i32_1 = arith.constant 0 : i32
    return %c0_i32, %c0_i32_0 : i32, i32
  }
  func.func @transform_2(%arg0: i32) -> (i32, i32) {
    %c0_i32 = arith.constant 0 : i32
    %c0_i32_0 = arith.constant 0 : i32
    %c0_i32_1 = arith.constant 0 : i32
    return %c0_i32, %c0_i32_0 : i32, i32
  }
  func.func @transform_3(%arg0: i32) -> (i32, i32) {
    %c0_i32 = arith.constant 0 : i32
    %c0_i32_0 = arith.constant 0 : i32
    %c0_i32_1 = arith.constant 0 : i32
    return %c0_i32, %c0_i32_0 : i32, i32
  }
  func.func @transform_4(%arg0: i32) -> (i32, i32) {
    %c0_i32 = arith.constant 0 : i32
    %c0_i32_0 = arith.constant 0 : i32
    %c0_i32_1 = arith.constant 0 : i32
    return %c0_i32, %c0_i32_0 : i32, i32
  }
  func.func @transform_5(%arg0: i32) -> (i32, i32) {
    %c0_i32 = arith.constant 0 : i32
    %c0_i32_0 = arith.constant 0 : i32
    %c0_i32_1 = arith.constant 0 : i32
    return %c0_i32, %c0_i32_0 : i32, i32
  }
  func.func @transform_6(%arg0: i32) -> (i32, i32) {
    %c0_i32 = arith.constant 0 : i32
    %c0_i32_0 = arith.constant 0 : i32
    %c0_i32_1 = arith.constant 0 : i32
    return %c0_i32, %c0_i32_0 : i32, i32
  }
  func.func @transform_7(%arg0: i32) -> (i32, i32) {
    %c0_i32 = arith.constant 0 : i32
    %c0_i32_0 = arith.constant 0 : i32
    return %arg0, %c0_i32 : i32, i32
  }
  func.func @transform_8(%arg0: i32) -> (i32, i32) {
    %c0_i32 = arith.constant 0 : i32
    %c0_i32_0 = arith.constant 0 : i32
    %c0_i32_1 = arith.constant 0 : i32
    return %c0_i32, %c0_i32_0 : i32, i32
  }
  func.func @transform_9(%arg0: i32) -> (i32, i32) {
    %c0_i32 = arith.constant 0 : i32
    %c0_i32_0 = arith.constant 0 : i32
    %c0_i32_1 = arith.constant 0 : i32
    return %c0_i32, %c0_i32_0 : i32, i32
  }
  func.func @transform_10(%arg0: i32) -> (i32, i32) {
    %c0_i32 = arith.constant 0 : i32
    %c0_i32_0 = arith.constant 0 : i32
    return %arg0, %c0_i32 : i32, i32
  }
}

</mosaic_0001>

<bundles_post_ra>
// kernel: model_forward.34
= control target key start
LH: loop header
LB: loop body
LE: loop exit
PB: predicated region body
PF: predicated region fallthrough
CT: control target
= control target key end

     0   :  { %s1147_s30 = smov 0   ;;  %s1272_s0 = inlined_call_operand.vmem [shape: f32[96,9], index: 0, kind: input, shape index: {}]   ;;  %s1273_s1 = inlined_call_operand.vmem [shape: bf16[9,128], index: 1, kind: input, shape index: {}]   ;;  %s1274_s2 = inlined_call_operand.vmem [shape: f32[1,128], index: 2, kind: input, shape index: {}]   ;;  %s1275_s3 = inlined_call_operand.vmem [shape: bf16[128,128], index: 3, kind: input, shape index: {}]   ;;  %s1276_s4 = inlined_call_operand.vmem [shape: f32[1,128], index: 4, kind: input, shape index: {}]   ;;  %s1277_s5 = inlined_call_operand.vmem [shape: bf16[128,128], index: 5, kind: input, shape index: {}]   ;;  %s1278_s6 = inlined_call_operand.vmem [shape: f32[1,128], index: 6, kind: input, shape index: {}]   ;;  %s1279_s7 = inlined_call_operand.vmem [shape: f32[1,128], index: 7, kind: input, shape index: {}]   ;;  %s1280_s8 = inlined_call_operand.vmem [shape: f32[1,128], index: 8, kind: input, shape index: {}]   ;;  %s1281_s9 = inlined_call_operand.vmem [shape: bf16[96,128], index: 9, kind: output, shape index: {}]  }
   0x1 LB: > { %s887_s10 = sadd.s32 4294967295, %s1092_s30   ;;  %p891_p0 = scmp.ge.s32.totalorder %s1092_s30, 1  ;;  %s1092_s30 = sphi %s1147_s30, %s19_s30  }
   0x2   : > { %p288_p1 = scmp.lt.s32.totalorder %s1092_s30, 3 }
   0x4   : > { %p289_p2 = pnand %p891_p0, %p288_p1 }
   0x5   : > { %vm370_vm0 = vcmask (!%p289_p2), 1043456   ;;  %v1094_v0 = vmov (!%p289_p2), 0.0   ;;  %v1057_v1 = vld [vmem:[%s1273_s1] sm:$0x1f] (!%p289_p2)   ;;  %vm371_vm1 = vcmask (!%p289_p2), 1044480   ;;  %s324_s13 = smul.u32 (!%p289_p2), 6, %s887_s10 }
   0x6   : > { %292 = sbr.rel (%p289_p2) target bundleno = 1005 (0x3ed), region = 56  ;;  %976 = vmatprep.subr.bf16.mxu0 (!%p289_p2), %v1094_v0  ;;  %990 = vmatprep.subr.bf16.mxu1 (!%p289_p2), %v1094_v0  ;;  %v1095_v2 = vmov (!%p289_p2), 65535   ;;  %vm1096_vm2 = vmmov (!%p289_p2), 0   ;;  %v1058_v5 = vld [vmem:[%s1275_s3] sm:$0xff] (!%p289_p2)   ;;  %v1059_v7 = vld [vmem:[%s1275_s3 + $0x8] sm:$0xff] (!%p289_p2)   ;;  %vm360_vm3 = vcmask (!%p289_p2), 72704  }
   0x7   : > { %v372_v3 = vsel (!%p289_p2), %vm370_vm0, 4294967295, %v1095_v2  ;;  %978 = vmatprep.mubr.msk.bf16.mxu0 (!%p289_p2), %vm1096_vm2, %v1094_v0  ;;  %1006 = vmatprep.mubr.msk.bf16.mxu1 (!%p289_p2), %vm1096_vm2, %v1094_v0  ;;  %p325_p3 = scmp.lt.s32.totalorder (!%p289_p2), %s324_s13, 11  ;;  %v1060_v10 = vld [vmem:[%s1275_s3 + $0x10] sm:$0xff] (!%p289_p2)   ;;  %v1061_v14 = vld [vmem:[%s1275_s3 + $0x18] sm:$0xff] (!%p289_p2)   ;;  %v1062_v16 = vld [vmem:[%s1275_s3 + $0x20] sm:$0xff] (!%p289_p2)  }
   0x8   : > { %v373_v4 = vsel (!%p289_p2), %vm371_vm1, %v372_v3, 0  ;;  %991 = vmatpush3.bf16.msra.mxu1 (!%p289_p2), %v1058_v5  ;;  %v1063_v19 = vld [vmem:[%s1275_s3 + $0x28] sm:$0xff] (!%p289_p2)   ;;  %v1064_v21 = vld [vmem:[%s1275_s3 + $0x30] sm:$0xff] (!%p289_p2)   ;;  %v1065_v22 = vld [vmem:[%s1275_s3 + $0x38] sm:$0xff] (!%p289_p2)  }
   0x9   : > { %v375_v6 = vand.u32 (!%p289_p2), %v1057_v1, %v373_v4  ;;  %992 = vmatprep.subr.bf16.mxu1 (!%p289_p2), %v1094_v0  ;;  %v1066_v23 = vld [vmem:[%s1277_s5] sm:$0xff] (!%p289_p2)   ;;  %v1067_v24 = vld [vmem:[%s1277_s5 + $0x8] sm:$0xff] (!%p289_p2)   ;;  %v1068_v25 = vld [vmem:[%s1277_s5 + $0x10] sm:$0xff] (!%p289_p2)  }
   0xa   : > { %v1069_v26 = vld [vmem:[%s1277_s5 + $0x18] sm:$0xff] (!%p289_p2)   ;;  %v1070_v27 = vld [vmem:[%s1277_s5 + $0x20] sm:$0xff] (!%p289_p2)   ;;  %v1071_v28 = vld [vmem:[%s1277_s5 + $0x28] sm:$0xff] (!%p289_p2)  }
   0xb   : > { %977 = vmatpush3.bf16.msra.mxu0 (!%p289_p2), %v375_v6  ;;  %v894_v29 = vld [vmem:[%s1274_s2] ss:$0 sm:$0xff] (!%p289_p2)  ;;  %v1072_v57 = vld [vmem:[%s1277_s5 + $0x30] sm:$0xff] (!%p289_p2)   ;;  %v1073_v58 = vld [vmem:[%s1277_s5 + $0x38] sm:$0xff] (!%p289_p2)  }
   0xc   : > { %1018 = vmatprep.subr.bf16.mxu0 (!%p289_p2), %v1094_v0  ;;  %993 = vmatpush3.bf16.msra.mxu1 (!%p289_p2), %v1059_v7  ;;  %v899_v59 = vld [vmem:[%s1276_s4] ss:$0 sm:$0xff] (!%p289_p2) }
   0xd   : > { %s1283_s13 = smov (!%p325_p3, %s324_s13), 11  ;;  %994 = vmatprep.subr.bf16.mxu1 %v1094_v0 }
   0xe   : > { %s892_s18 = sshll.u32 %s1283_s13, 3  ;;  %s893_s22 = sshll.u32 %s1283_s13, 2 }
   0xf   : > { %s328_s21 = scalar_lea.vmem %s1272_s0, %s892_s18  ;;  %s334_s25 = scalar_lea.vmem %s1281_s9, %s893_s22 }
  0x10   : > { %v337_v8 = vld [vmem:[%s328_s21] sm:$0xff]  ;;  %v338_v9 = vld [vmem:[%s328_s21 + $0x8] sm:$0xff]  ;;  %v339_v12 = vld [vmem:[%s328_s21 + $0x10] sm:$0xff]  ;;  %995 = vmatpush3.bf16.msra.mxu1 %v1060_v10 }
  0x11   : > { %v343_v11 = vpack.c.bf16 %v338_v9, %v337_v8  ;;  %v340_v13 = vld [vmem:[%s328_s21 + $0x18] sm:$0xff]  ;;  %996 = vmatprep.subr.bf16.mxu1 %v1094_v0  ;;  %v341_v17 = vld [vmem:[%s328_s21 + $0x20] sm:$0xff]  ;;  %v342_v18 = vld [vmem:[%s328_s21 + $0x28] sm:$0xff] }
  0x12   : > { %v344_v15 = vpack.c.bf16 %v340_v13, %v339_v12  ;;  %v345_v20 = vpack.c.bf16 %v342_v18, %v341_v17 }
  0x13   : > { %979 = vmatmul.mubr.msk.bf16.vlgmr.msra.gmra.mrb[0].mxu0 %vm360_vm3, %v343_v11 }
  0x14   : > { %982 = vmatprep.mubr.msk.bf16.mxu0 %vm1096_vm2, %v1094_v0  ;;  %997 = vmatpush3.bf16.msra.mxu1 %v1061_v14 }
  0x15   : > { %998 = vmatprep.subr.bf16.mxu1 %v1094_v0  ;;  %1019 = vmatpush3.bf16.msra.mxu0 %v1066_v23 }
  0x16   : > { %1020 = vmatprep.subr.bf16.mxu0 %v1094_v0 }
  0x18   : > { %999 = vmatpush3.bf16.msra.mxu1 %v1062_v16 }
  0x19   : > { %1000 = vmatprep.subr.bf16.mxu1 %v1094_v0  ;;  %1021 = vmatpush3.bf16.msra.mxu0 %v1067_v24  ;;  %v908_v24 = vld [vmem:[%s1278_s6] ss:$0 sm:$0xff] }
  0x1a   : > { %1022 = vmatprep.subr.bf16.mxu0 %v1094_v0 }
  0x1b   : > { %983 = vmatmul.mubr.msk.bf16.gmra.mrb[4].mxu0 %vm360_vm3, %v344_v15 }
  0x1c   : > { %986 = vmatprep.mubr.msk.bf16.mxu0 %vm1096_vm2, %v1094_v0  ;;  %1001 = vmatpush3.bf16.msra.mxu1 %v1063_v19 }
  0x1d   : > { %1002 = vmatprep.subr.bf16.mxu1 %v1094_v0  ;;  %1023 = vmatpush3.bf16.msra.mxu0 %v1068_v25 }
  0x1e   : > { %1024 = vmatprep.subr.bf16.mxu0 %v1094_v0 }
  0x20   : > { %1003 = vmatpush3.bf16.msra.mxu1 %v1064_v21 }
  0x21   : > { %1004 = vmatprep.subr.bf16.mxu1 %v1094_v0  ;;  %1025 = vmatpush3.bf16.msra.mxu0 %v1069_v26 }
  0x22   : > { %1026 = vmatprep.subr.bf16.mxu0 %v1094_v0 }
  0x23   : > { %987 = vmatmul.mubr.msk.bf16.gmra.mrb[8].mxu0 %vm360_vm3, %v345_v20 }
  0x24   : > { %1034 = vmatprep.mubr.msk.bf16.mxu0 %vm1096_vm2, %v1094_v0  ;;  %1005 = vmatpush3.bf16.msra.mxu1 %v1065_v22 }
  0x25   : > { %1027 = vmatpush3.bf16.msra.mxu0 %v1070_v27 }
  0x26   : > { %1028 = vmatprep.subr.bf16.mxu0 %v1094_v0 }
  0x29   : > { %1029 = vmatpush3.bf16.msra.mxu0 %v1071_v28 }
  0x2a   : > { %1030 = vmatprep.subr.bf16.mxu0 %v1094_v0 }
  0x2d   : > { %1031 = vmatpush3.bf16.msra.mxu0 %v1072_v57 }
  0x2e   : > { %1032 = vmatprep.subr.bf16.mxu0 %v1094_v0 }
  0x31   : > { %1033 = vmatpush3.bf16.msra.mxu0 %v1073_v58 }
  0xe6   : > { %v411_v30 = vpop.f32.mrb[0].mxu0 }
  0xe7   : > { %v412_v31 = vadd.f32 %v894_v29, %v411_v30  ;;  %v980_v32 = vpop.f32.mrb[1].mxu0 }
  0xe8   : > { %v414_v33 = vpop.f32.mrb[2].mxu0 }
  0xe9   : > { %v415_v34 = vadd.f32 %v894_v29, %v414_v33  ;;  %v981_v35 = vpop.f32.mrb[3].mxu0  ;;  %v434_v36 = vmax.f32 %v412_v31, 0.0 }
  0xeb   : > { %v435_v37 = vmax.f32 %v415_v34, 0.0 }
  0xed   : > { %v440_v38 = vpack.c.bf16 %v435_v37, %v434_v36 }
  0xee   : > { %v419_v39 = vpop.f32.mrb[4].mxu0 }
  0xef   : > { %v420_v40 = vadd.f32 %v894_v29, %v419_v39  ;;  %v984_v41 = vpop.f32.mrb[5].mxu0  ;;  %1007 = vmatmul.mubr.bf16.vlgmr.msra.gmra.mrb[0].mxu1 %v440_v38 }
  0xf0   : > { %v422_v42 = vpop.f32.mrb[6].mxu0  ;;  %1010 = vmatprep.mubr.msk.bf16.mxu1 %vm1096_vm2, %v1094_v0 }
  0xf1   : > { %v423_v43 = vadd.f32 %v894_v29, %v422_v42  ;;  %v985_v44 = vpop.f32.mrb[7].mxu0  ;;  %v436_v45 = vmax.f32 %v420_v40, 0.0 }
  0xf3   : > { %v437_v46 = vmax.f32 %v423_v43, 0.0 }
  0xf5   : > { %v441_v47 = vpack.c.bf16 %v437_v46, %v436_v45 }
  0xf6   : > { %v427_v48 = vpop.f32.mrb[8].mxu0 }
  0xf7   : > { %v428_v49 = vadd.f32 %v894_v29, %v427_v48  ;;  %v988_v50 = vpop.f32.mrb[9].mxu0  ;;  %1011 = vmatmul.mubr.bf16.gmra.mrb[4].mxu1 %v441_v47 }
  0xf8   : > { %v430_v51 = vpop.f32.mrb[10].mxu0  ;;  %1014 = vmatprep.mubr.msk.bf16.mxu1 %vm1096_vm2, %v1094_v0 }
  0xf9   : > { %v431_v52 = vadd.f32 %v894_v29, %v430_v51  ;;  %v989_v53 = vpop.f32.mrb[11].mxu0  ;;  %v438_v54 = vmax.f32 %v428_v49, 0.0 }
  0xfb   : > { %v439_v55 = vmax.f32 %v431_v52, 0.0 }
  0xfd   : > { %v442_v56 = vpack.c.bf16 %v439_v55, %v438_v54 }
  0xff   : > { %1015 = vmatmul.mubr.bf16.gmra.mrb[8].mxu1 %v442_v56 }
 0x1c2   : > { %v548_v60 = vpop.f32.mrb[0].mxu1 }
 0x1c3   : > { %v549_v61 = vadd.f32 %v899_v59, %v548_v60  ;;  %v1008_v62 = vpop.f32.mrb[1].mxu1 }
 0x1c4   : > { %v551_v63 = vpop.f32.mrb[2].mxu1 }
 0x1c5   : > { %v552_v1 = vadd.f32 %v899_v59, %v551_v63  ;;  %v1009_v2 = vpop.f32.mrb[3].mxu1  ;;  %v571_v3 = vmax.f32 %v549_v61, 0.0 }
 0x1c7   : > { %v572_v4 = vmax.f32 %v552_v1, 0.0 }
 0x1c9   : > { %v577_v5 = vpack.c.bf16 %v572_v4, %v571_v3 }
 0x1ca   : > { %v556_v6 = vpop.f32.mrb[4].mxu1 }
 0x1cb   : > { %v557_v7 = vadd.f32 %v899_v59, %v556_v6  ;;  %v1012_v8 = vpop.f32.mrb[5].mxu1  ;;  %1035 = vmatmul.mubr.bf16.vlgmr.msra.gmra.mrb[12].mxu0 %v577_v5 }
 0x1cc   : > { %v559_v9 = vpop.f32.mrb[6].mxu1  ;;  %1038 = vmatprep.mubr.msk.bf16.mxu0 %vm1096_vm2, %v1094_v0 }
 0x1cd   : > { %v560_v10 = vadd.f32 %v899_v59, %v559_v9  ;;  %v1013_v11 = vpop.f32.mrb[7].mxu1  ;;  %v573_v12 = vmax.f32 %v557_v7, 0.0 }
 0x1cf   : > { %v574_v13 = vmax.f32 %v560_v10, 0.0 }
 0x1d1   : > { %v578_v14 = vpack.c.bf16 %v574_v13, %v573_v12 }
 0x1d2   : > { %v564_v15 = vpop.f32.mrb[8].mxu1 }
 0x1d3   : > { %v565_v16 = vadd.f32 %v899_v59, %v564_v15  ;;  %v1016_v17 = vpop.f32.mrb[9].mxu1  ;;  %1039 = vmatmul.mubr.bf16.gmra.mrb[16].mxu0 %v578_v14 }
 0x1d4   : > { %v567_v18 = vpop.f32.mrb[10].mxu1  ;;  %1042 = vmatprep.mubr.msk.bf16.mxu0 %vm1096_vm2, %v1094_v0 }
 0x1d5   : > { %v568_v19 = vadd.f32 %v899_v59, %v567_v18  ;;  %v1017_v20 = vpop.f32.mrb[11].mxu1  ;;  %v575_v21 = vmax.f32 %v565_v16, 0.0  ;;  %v917_v18 = vld [vmem:[%s1279_s7] ss:$0 sm:$0xff] }
 0x1d7   : > { %v576_v22 = vmax.f32 %v568_v19, 0.0 }
 0x1d9   : > { %v579_v23 = vpack.c.bf16 %v576_v22, %v575_v21 }
 0x1db   : > { %1043 = vmatmul.mubr.bf16.gmra.mrb[20].mxu0 %v579_v23 }
 0x29e   : > { %v685_v25 = vpop.f32.mrb[12].mxu0 }
 0x29f   : > { %v686_v26 = vadd.f32 %v908_v24, %v685_v25  ;;  %v1036_v27 = vpop.f32.mrb[13].mxu0 }
 0x2a0   : > { %v688_v28 = vpop.f32.mrb[14].mxu0 }
 0x2a1   : > { %708 = vadd.xlane.f32.xlu0 %v686_v26  ;;  %v1037_v29 = vpop.f32.mrb[15].mxu0  ;;  %v689_v30 = vadd.f32 %v908_v24, %v688_v28 }
 0x2a5   : > { %710 = vadd.xlane.f32.xlu0 %v689_v30 }
 0x2a6   : > { %v693_v31 = vpop.f32.mrb[16].mxu0 }
 0x2a7   : > { %v694_v0 = vadd.f32 %v908_v24, %v693_v31  ;;  %v1040_v32 = vpop.f32.mrb[17].mxu0 }
 0x2a8   : > { %v696_v33 = vpop.f32.mrb[18].mxu0 }
 0x2a9   : > { %712 = vadd.xlane.f32.xlu1 %v694_v0  ;;  %v1041_v34 = vpop.f32.mrb[19].mxu0  ;;  %v697_v35 = vadd.f32 %v908_v24, %v696_v33 }
 0x2ad   : > { %714 = vadd.xlane.f32.xlu1 %v697_v35 }
 0x2ae   : > { %v701_v36 = vpop.f32.mrb[20].mxu0 }
 0x2af   : > { %v702_v37 = vadd.f32 %v908_v24, %v701_v36  ;;  %v1044_v38 = vpop.f32.mrb[21].mxu0 }
 0x2b0   : > { %v704_v39 = vpop.f32.mrb[22].mxu0 }
 0x2b1   : > { %v705_v40 = vadd.f32 %v908_v24, %v704_v39  ;;  %716 = vadd.xlane.f32.xlu0 %v702_v37  ;;  %v1045_v41 = vpop.f32.mrb[23].mxu0 }
 0x2b3   : > { %718 = vadd.xlane.f32.xlu1 %v705_v40 }
 0x32e   : > { %v709_v42 = vpop.xlane.xlu0 %708 }
 0x32f   : > { %v721_v43 = vmul.f32 0.0078125, %v709_v42 }
 0x331   : > { %v727_v44 = vsub.f32 %v686_v26, %v721_v43  ;;  %v918_v26 = vld [vmem:[%s1280_s8] ss:$0 sm:$0xff] }
 0x332   : > { %v711_v45 = vpop.xlane.xlu0 %710 }
 0x333   : > { %v722_v46 = vmul.f32 0.0078125, %v711_v45  ;;  %v733_v47 = vmul.f32 %v727_v44, %v727_v44 }
 0x335   : > { %v728_v48 = vsub.f32 %v689_v30, %v722_v46  ;;  %739 = vadd.xlane.f32.xlu0 %v733_v47 }
 0x336   : > { %v713_v49 = vpop.xlane.xlu1 %712 }
 0x337   : > { %v723_v50 = vmul.f32 0.0078125, %v713_v49  ;;  %v734_v51 = vmul.f32 %v728_v48, %v728_v48 }
 0x339   : > { %v729_v52 = vsub.f32 %v694_v0, %v723_v50  ;;  %741 = vadd.xlane.f32.xlu1 %v734_v51 }
 0x33a   : > { %v715_v53 = vpop.xlane.xlu1 %714 }
 0x33b   : > { %v724_v54 = vmul.f32 0.0078125, %v715_v53  ;;  %v735_v55 = vmul.f32 %v729_v52, %v729_v52 }
 0x33d   : > { %v730_v56 = vsub.f32 %v697_v35, %v724_v54  ;;  %743 = vadd.xlane.f32.xlu0 %v735_v55 }
 0x33e   : > { %v717_v57 = vpop.xlane.xlu0 %716 }
 0x33f   : > { %v725_v58 = vmul.f32 0.0078125, %v717_v57  ;;  %v736_v59 = vmul.f32 %v730_v56, %v730_v56 }
 0x340   : > { %v719_v60 = vpop.xlane.xlu1 %718 }
 0x341   : > { %v731_v61 = vsub.f32 %v702_v37, %v725_v58  ;;  %v726_v62 = vmul.f32 0.0078125, %v719_v60  ;;  %745 = vadd.xlane.f32.xlu1 %v736_v59 }
 0x343   : > { %v732_v63 = vsub.f32 %v705_v40, %v726_v62  ;;  %v737_v1 = vmul.f32 %v731_v61, %v731_v61 }
 0x345   : > { %747 = vadd.xlane.f32.xlu0 %v737_v1  ;;  %v738_v2 = vmul.f32 %v732_v63, %v732_v63 }
 0x347   : > { %749 = vadd.xlane.f32.xlu1 %v738_v2 }
 0x3c2   : > { %v740_v3 = vpop.xlane.xlu0 %739 }
 0x3c3   : > { %v751_v4 = vmul.f32 0.0078125, %v740_v3 }
 0x3c5   : > { %v757_v5 = vadd.f32 1e-05, %v751_v4 }
 0x3c6   : > { %v742_v6 = vpop.xlane.xlu1 %741 }
 0x3c7   : > { %1074 = vrsqrt.f32 %v757_v5  ;;  %v752_v7 = vmul.f32 0.0078125, %v742_v6 }
 0x3c9   : > { %v758_v8 = vadd.f32 1e-05, %v752_v7 }
 0x3ca   : > { %v744_v9 = vpop.xlane.xlu0 %743 }
 0x3cb   : > { %1076 = vrsqrt.f32 %v758_v8  ;;  %v753_v10 = vmul.f32 0.0078125, %v744_v9 }
 0x3cd   : > { %v759_v11 = vadd.f32 1e-05, %v753_v10 }
 0x3ce   : > { %v746_v12 = vpop.xlane.xlu1 %745 }
 0x3cf   : > { %1078 = vrsqrt.f32 %v759_v11  ;;  %v754_v13 = vmul.f32 0.0078125, %v746_v12 }
 0x3d1   : > { %v1075_v14 = vpop.eup %1074  ;;  %v760_v15 = vadd.f32 1e-05, %v754_v13 }
 0x3d2   : > { %v769_v16 = vmul.f32 %v1075_v14, %v727_v44  ;;  %v748_v17 = vpop.xlane.xlu0 %747 }
 0x3d3   : > { %1080 = vrsqrt.f32 %v760_v15  ;;  %v755_v19 = vmul.f32 0.0078125, %v748_v17 }
 0x3d4   : > { %v750_v20 = vpop.xlane.xlu1 %749  ;;  %v782_v24 = vmul.f32 %v917_v18, %v769_v16 }
 0x3d5   : > { %v1077_v21 = vpop.eup %1076  ;;  %v761_v22 = vadd.f32 1e-05, %v755_v19  ;;  %v756_v23 = vmul.f32 0.0078125, %v750_v20 }
 0x3d6   : > { %v770_v25 = vmul.f32 %v1077_v21, %v728_v48  ;;  %v795_v30 = vadd.f32 %v918_v26, %v782_v24 }
 0x3d7   : > { %1082 = vrsqrt.f32 %v761_v22  ;;  %v762_v27 = vadd.f32 1e-05, %v756_v23 }
 0x3d8   : > { %v783_v28 = vmul.f32 %v917_v18, %v770_v25 }
 0x3d9   : > { %v1079_v29 = vpop.eup %1078  ;;  %1084 = vrsqrt.f32 %v762_v27 }
 0x3da   : > { %v796_v31 = vadd.f32 %v918_v26, %v783_v28  ;;  %v771_v0 = vmul.f32 %v1079_v29, %v729_v52 }
 0x3dc   : > { %v936_v32 = vpack.c.bf16 %v796_v31, %v795_v30  ;;  %v784_v34 = vmul.f32 %v917_v18, %v771_v0 }
 0x3dd   : > { %v1081_v33 = vpop.eup %1080 }
 0x3de   : > { %937 = vst [vmem:[%s334_s25] sm:$0xff] %v936_v32   ;;  %v772_v35 = vmul.f32 %v1081_v33, %v730_v56  ;;  %v797_v38 = vadd.f32 %v918_v26, %v784_v34 }
 0x3e0   : > { %v785_v36 = vmul.f32 %v917_v18, %v772_v35 }
 0x3e1   : > { %v1083_v37 = vpop.eup %1082 }
 0x3e2   : > { %v798_v39 = vadd.f32 %v918_v26, %v785_v36  ;;  %v773_v40 = vmul.f32 %v1083_v37, %v731_v61 }
 0x3e3   : > { %v1085_v41 = vpop.eup %1084 }
 0x3e4   : > { %v941_v42 = vpack.c.bf16 %v798_v39, %v797_v38  ;;  %v786_v43 = vmul.f32 %v917_v18, %v773_v40  ;;  %v774_v44 = vmul.f32 %v1085_v41, %v732_v63 }
 0x3e6   : > { %948 = vst [vmem:[%s334_s25 + $0x8] sm:$0xff] %v941_v42   ;;  %v787_v45 = vmul.f32 %v917_v18, %v774_v44  ;;  %v799_v46 = vadd.f32 %v918_v26, %v786_v43 }
 0x3e8   : > { %v800_v47 = vadd.f32 %v918_v26, %v787_v45 }
 0x3ea   : > { %v946_v48 = vpack.c.bf16 %v800_v47, %v799_v46 }
 0x3ec   : > { %949 = vst [vmem:[%s334_s25 + $0x10] sm:$0xff] %v946_v48  }
 0x3ed PF: > { %s19_s30 = sadd.s32 1, %s1092_s30  }
 0x3ee   : > { %p16_p4 = scmp.ge.s32.totalorder %s19_s30, 4  }
 0x3f0   :  { %18 = sbr.rel (!%p16_p4) target bundleno = 1 (0x1), region = 86 }

// kernel: model_forward.33
= control target key start
LH: loop header
LB: loop body
LE: loop exit
PB: predicated region body
PF: predicated region fallthrough
CT: control target
= control target key end

     0   :  { %s3816_s24 = smov 0   ;;  %s5530_s0 = inlined_call_operand.vmem [shape: f32[352,3], index: 0, kind: input, shape index: {}]   ;;  %s5531_s1 = inlined_call_operand.vmem [shape: f32[352,3], index: 1, kind: input, shape index: {}]   ;;  %s5532_s2 = inlined_call_operand.vmem [shape: f32[352,3], index: 2, kind: input, shape index: {}]   ;;  %s5533_s3 = inlined_call_operand.vmem [shape: f32[352,3], index: 3, kind: input, shape index: {}]   ;;  %s5534_s4 = inlined_call_operand.vmem [shape: f32[1,8], index: 4, kind: input, shape index: {}]   ;;  %s5535_s5 = inlined_call_operand.vmem [shape: f32[1,8], index: 5, kind: input, shape index: {}]   ;;  %s5536_s6 = inlined_call_operand.vmem [shape: bf16[3,128], index: 6, kind: input, shape index: {}]   ;;  %s5537_s7 = inlined_call_operand.vmem [shape: bf16[1,128], index: 7, kind: input, shape index: {}]   ;;  %s5538_s8 = inlined_call_operand.vmem [shape: bf16[3,128], index: 8, kind: input, shape index: {}]   ;;  %s5539_s9 = inlined_call_operand.vmem [shape: bf16[1,128], index: 9, kind: input, shape index: {}]   ;;  %s5540_s10 = inlined_call_operand.vmem [shape: f32[1,128], index: 10, kind: input, shape index: {}]   ;;  %s5541_s11 = inlined_call_operand.vmem [shape: bf16[128,128], index: 11, kind: input, shape index: {}]   ;;  %s5542_s12 = inlined_call_operand.vmem [shape: f32[1,128], index: 12, kind: input, shape index: {}]   ;;  %s5543_s13 = inlined_call_operand.vmem [shape: bf16[128,128], index: 13, kind: input, shape index: {}]   ;;  %s5544_s14 = inlined_call_operand.vmem [shape: f32[1,128], index: 14, kind: input, shape index: {}]   ;;  %s5545_s15 = inlined_call_operand.vmem [shape: f32[1,128], index: 15, kind: input, shape index: {}]   ;;  %s5546_s16 = inlined_call_operand.vmem [shape: f32[1,128], index: 16, kind: input, shape index: {}]   ;;  %s5547_s17 = inlined_call_operand.vmem [shape: bf16[352,128], index: 17, kind: output, shape index: {}]  }
   0x1   :  { %5548 = sst [smem:[#allocation2_spill]] %s5530_s0 }
   0x2   :  { %5549 = sst [smem:[#allocation3_spill]] %s5531_s1 }
   0x3 LB: > { %s3076_s25 = sadd.s32 4294967295, %s3718_s24   ;;  %p3080_p0 = scmp.ge.s32.totalorder %s3718_s24, 1  ;;  %s3718_s24 = sphi %s3816_s24, %s27_s24  }
   0x4   : > { %p521_p1 = scmp.lt.s32.totalorder %s3718_s24, 3 }
   0x6   : > { %p522_p2 = pnand %p3080_p0, %p521_p1 }
   0x7   : > { %v3827_v0 = vld [vmem:[%s5534_s4] ss:$0 sm:$0xff] (!%p522_p2)  ;;  %s588_s0 = smul.u32 (!%p522_p2), 22, %s3076_s25  ;;  %s3720_s30 = smov (!%p522_p2), 124   ;;  %vm1489_vm0 = vcmask (!%p522_p2), 1040384   ;;  %vm1490_vm1 = vcmask (!%p522_p2), 1041408  }
   0x8   : > { %525 = sbr.rel (%p522_p2) target bundleno = 1224 (0x4c8), region = 88  ;;  %v3832_v1 = vld [vmem:[%s5535_s5] ss:$0 sm:$0xff] (!%p522_p2)  ;;  %1338 = vrot.lane.b32.xlu0 (!%p522_p2), %v3827_v0, %s3720_s30  ;;  %v3721_v3 = vmov (!%p522_p2), 0.0   ;;  %v3722_v5 = vmov (!%p522_p2), 65535   ;;  %vm3723_vm2 = vmmov (!%p522_p2), 0  }
   0x9   : > { %v1455_v2 = vld [vmem:[%s5538_s8] sm:$0x3] (!%p522_p2)  ;;  %p589_p3 = scmp.lt.s32.totalorder (!%p522_p2), %s588_s0, 43  ;;  %3304 = vmatprep.subr.bf16.mxu0 (!%p522_p2), %v3721_v3  ;;  %3350 = vmatprep.subr.bf16.mxu1 (!%p522_p2), %v3721_v3  ;;  %v1491_v6 = vsel (!%p522_p2), %vm1489_vm0, 4294967295, %v3722_v5  ;;  %s5550_s25 = sld [smem:[#allocation2_spill]] (!%p522_p2)  ;;  %vm707_vm3 = vcmask (!%p522_p2), 23552  }
   0xa   : > { %v1443_v4 = vld [vmem:[%s5536_s6] sm:$0x3] (!%p522_p2)  ;;  %3306 = vmatprep.mubr.msk.bf16.mxu0 (!%p522_p2), %vm3723_vm2, %v3721_v3  ;;  %3352 = vmatprep.mubr.msk.bf16.mxu1 (!%p522_p2), %vm3723_vm2, %v3721_v3  ;;  %v1492_v7 = vsel (!%p522_p2), %vm1490_vm1, %v1491_v6, 0  ;;  %s5551_s29 = sld [smem:[#allocation3_spill]] (!%p522_p2) }
   0xb   : > { %v1494_v8 = vand.u32 (!%p522_p2), %v1492_v7, %v1455_v2  ;;  %v1651_v9 = vand.u32 (!%p522_p2), %v1492_v7, %v1443_v4 }
   0xc   : > { %1363 = vrot.lane.b32.xlu0 (!%p522_p2), %v3832_v1, %s3720_s30 }
   0xd   : > { %3305 = vmatpush3.bf16.msra.mxu0 (!%p522_p2), %v1494_v8  ;;  %3351 = vmatpush3.bf16.msra.mxu1 (!%p522_p2), %v1651_v9 }
   0xe   : > { %3396 = vmatprep.subr.bf16.mxu0 (!%p522_p2), %v3721_v3  ;;  %3456 = vmatprep.subr.bf16.mxu1 (!%p522_p2), %v3721_v3 }
   0xf   : > { %s5553_s0 = smov (!%p589_p3, %s588_s0), 43 }
  0x10   : > { %s3081_s21 = sshll.u32 %s5553_s0, 3 }
  0x11   : > { %s3854_s26 = scalar_lea.vmem %s5550_s25, %s3081_s21  ;;  %s3859_s18 = scalar_lea.vmem %s5551_s29, %s3081_s21 }
  0x12   : > { %v619_v10 = vld [vmem:[%s3854_s26] sm:$0xff]  ;;  %v620_v12 = vld [vmem:[%s3854_s26 + $0x8] sm:$0xff]  ;;  %s3867_s1 = scalar_lea.vmem %s5532_s2, %s3081_s21  ;;  %s3872_s23 = scalar_lea.vmem %s5533_s3, %s3081_s21  ;;  %v621_v21 = vld [vmem:[%s3854_s26 + $0x10] sm:$0xff] }
  0x13   : > { %v641_v11 = vld [vmem:[%s3859_s18] sm:$0xff]  ;;  %v642_v14 = vld [vmem:[%s3859_s18 + $0x8] sm:$0xff]  ;;  %v643_v22 = vld [vmem:[%s3859_s18 + $0x10] sm:$0xff] }
  0x14   : > { %v3876_v13 = vsub.f32 %v619_v10, %v641_v11  ;;  %v929_v15 = vld [vmem:[%s3867_s1 + $0x8] sm:$0xff]  ;;  %v3881_v17 = vsub.f32 %v620_v12, %v642_v14  ;;  %v3895_v26 = vsub.f32 %v621_v21, %v643_v22  ;;  %v622_v27 = vld [vmem:[%s3854_s26 + $0x18] sm:$0xff]  ;;  %v930_v32 = vld [vmem:[%s3867_s1 + $0x10] sm:$0xff] }
  0x15   : > { %v951_v16 = vld [vmem:[%s3872_s23 + $0x8] sm:$0xff]  ;;  %v644_v28 = vld [vmem:[%s3859_s18 + $0x18] sm:$0xff]  ;;  %v952_v33 = vld [vmem:[%s3872_s23 + $0x10] sm:$0xff] }
  0x16   : > { %v685_v18 = vmul.f32 %v3876_v13, %v3876_v13  ;;  %v3885_v19 = vsub.f32 %v929_v15, %v951_v16  ;;  %v686_v20 = vmul.f32 %v3881_v17, %v3881_v17  ;;  %v687_v30 = vmul.f32 %v3895_v26, %v3895_v26  ;;  %v928_v34 = vld [vmem:[%s3867_s1] sm:$0xff]  ;;  %v931_v39 = vld [vmem:[%s3867_s1 + $0x18] sm:$0xff]  ;;  %v933_v42 = vld [vmem:[%s3867_s1 + $0x28] sm:$0xff] }
  0x17   : > { %v3902_v31 = vsub.f32 %v622_v27, %v644_v28  ;;  %v950_v35 = vld [vmem:[%s3872_s23] sm:$0xff]  ;;  %v3911_v38 = vsub.f32 %v930_v32, %v952_v33  ;;  %v953_v40 = vld [vmem:[%s3872_s23 + $0x18] sm:$0xff]  ;;  %v955_v43 = vld [vmem:[%s3872_s23 + $0x28] sm:$0xff]  ;;  %v1244_v28 = vsub.f32 %v3876_v13, %v3827_v0 }
  0x18   : > { %v708_v23 = vsel %vm707_vm3, %v685_v18, 0.0  ;;  %v711_v24 = vsel %vm707_vm3, %v686_v20, 0.0  ;;  %v995_v25 = vmul.f32 %v3885_v19, %v3885_v19  ;;  %v714_v36 = vsel %vm707_vm3, %v687_v30, 0.0  ;;  %v623_v47 = vld [vmem:[%s3854_s26 + $0x20] sm:$0xff]  ;;  %v626_v49 = vld [vmem:[%s3854_s26 + $0x38] sm:$0xff]  ;;  %v624_v53 = vld [vmem:[%s3854_s26 + $0x28] sm:$0xff] }
  0x19   : > { %709 = vadd.xlane.f32.xlu1 %v708_v23  ;;  %v688_v37 = vmul.f32 %v3902_v31, %v3902_v31  ;;  %v3915_v41 = vsub.f32 %v928_v34, %v950_v35  ;;  %v996_v45 = vmul.f32 %v3911_v38, %v3911_v38  ;;  %v3922_v46 = vsub.f32 %v931_v39, %v953_v40  ;;  %v645_v48 = vld [vmem:[%s3859_s18 + $0x20] sm:$0xff]  ;;  %v648_v50 = vld [vmem:[%s3859_s18 + $0x38] sm:$0xff]  ;;  %v646_v59 = vld [vmem:[%s3859_s18 + $0x28] sm:$0xff] }
  0x1a   : > { %v1019_v29 = vsel %vm707_vm3, %v995_v25, 0.0  ;;  %v3930_v52 = vsub.f32 %v933_v42, %v955_v43  ;;  %v631_v54 = vld [vmem:[%s3854_s26 + $0x60] sm:$0xff]  ;;  %v3938_v58 = vsub.f32 %v623_v47, %v645_v48  ;;  %v3941_v60 = vsub.f32 %v626_v49, %v648_v50  ;;  %v633_v61 = vld [vmem:[%s3854_s26 + $0x70] sm:$0xff]  ;;  %v935_v4 = vld [vmem:[%s3867_s1 + $0x38] sm:$0xff] }
  0x1b   : > { %v717_v44 = vsel %vm707_vm3, %v688_v37, 0.0  ;;  %v994_v51 = vmul.f32 %v3915_v41, %v3915_v41  ;;  %v653_v55 = vld [vmem:[%s3859_s18 + $0x60] sm:$0xff]  ;;  %v1022_v56 = vsel %vm707_vm3, %v996_v45, 0.0  ;;  %v997_v57 = vmul.f32 %v3922_v46, %v3922_v46  ;;  %v655_v62 = vld [vmem:[%s3859_s18 + $0x70] sm:$0xff]  ;;  %v957_v5 = vld [vmem:[%s3872_s23 + $0x38] sm:$0xff] }
  0x1c   : > { %v999_v2 = vmul.f32 %v3930_v52, %v3930_v52  ;;  %v3950_v6 = vsub.f32 %v631_v54, %v653_v55  ;;  %v3952_v7 = vsub.f32 %v624_v53, %v646_v59  ;;  %v932_v8 = vld [vmem:[%s3867_s1 + $0x20] sm:$0xff]  ;;  %v3956_v10 = vsub.f32 %v633_v61, %v655_v62  ;;  %v942_v15 = vld [vmem:[%s3867_s1 + $0x70] sm:$0xff]  ;;  %v636_v22 = vld [vmem:[%s3854_s26 + $0x88] sm:$0xff] }
  0x1d   : > { %712 = vadd.xlane.f32.xlu1 %v711_v24  ;;  %v1016_v63 = vsel %vm707_vm3, %v994_v51, 0.0  ;;  %v954_v9 = vld [vmem:[%s3872_s23 + $0x20] sm:$0xff]  ;;  %v1025_v11 = vsel %vm707_vm3, %v997_v57, 0.0  ;;  %v689_v12 = vmul.f32 %v3938_v58, %v3938_v58  ;;  %v692_v14 = vmul.f32 %v3941_v60, %v3941_v60  ;;  %v964_v16 = vld [vmem:[%s3872_s23 + $0x70] sm:$0xff]  ;;  %v658_v23 = vld [vmem:[%s3859_s18 + $0x88] sm:$0xff] }
  0x1e   : > { %v635_v18 = vld [vmem:[%s3854_s26 + $0x80] sm:$0xff]  ;;  %v3966_v20 = vsub.f32 %v935_v4, %v957_v5  ;;  %v1031_v24 = vsel %vm707_vm3, %v999_v2, 0.0  ;;  %v690_v30 = vmul.f32 %v3952_v7, %v3952_v7  ;;  %v625_v32 = vld [vmem:[%s3854_s26 + $0x30] sm:$0xff]  ;;  %v628_v34 = vld [vmem:[%s3854_s26 + $0x48] sm:$0xff]  ;;  %v3985_v13 = vsub.f32 %v932_v8, %v954_v9 }
  0x1f   : > { %v657_v21 = vld [vmem:[%s3859_s18 + $0x80] sm:$0xff]  ;;  %v647_v33 = vld [vmem:[%s3859_s18 + $0x30] sm:$0xff]  ;;  %v650_v35 = vld [vmem:[%s3859_s18 + $0x48] sm:$0xff]  ;;  %v729_v37 = vsel %vm707_vm3, %v692_v14, 0.0  ;;  %v3990_v40 = vsub.f32 %v942_v15, %v964_v16  ;;  %v3998_v47 = vsub.f32 %v636_v22, %v658_v23  ;;  %v1272_v62 = vmul.f32 %v3832_v1, %v1244_v28 }
  0x20   : > { %v944_v25 = vld [vmem:[%s3867_s1 + $0x80] sm:$0xff]  ;;  %v956_v39 = vld [vmem:[%s3872_s23 + $0x30] sm:$0xff]  ;;  %v1001_v42 = vmul.f32 %v3966_v20, %v3966_v20  ;;  %v937_v43 = vld [vmem:[%s3867_s1 + $0x48] sm:$0xff]  ;;  %v3996_v45 = vsub.f32 %v635_v18, %v657_v21  ;;  %v4006_v54 = vsub.f32 %v628_v34, %v650_v35  ;;  %v723_v2 = vsel %vm707_vm3, %v690_v30, 0.0 }
  0x21   : > { %1020 = vadd.xlane.f32.xlu1 %v1019_v29  ;;  %v966_v27 = vld [vmem:[%s3872_s23 + $0x80] sm:$0xff]  ;;  %v1245_v29 = vsub.f32 %v3881_v17, %v3827_v0  ;;  %v934_v17 = vld [vmem:[%s3867_s1 + $0x30] sm:$0xff]  ;;  %v945_v49 = vld [vmem:[%s3867_s1 + $0x88] sm:$0xff]  ;;  %v998_v4 = vmul.f32 %v3985_v13, %v3985_v13  ;;  %v4018_v5 = vsub.f32 %v625_v32, %v647_v33  ;;  %v1246_v9 = vsub.f32 %v3895_v26, %v3827_v0 }
  0x22   : > { %v4000_v48 = vsub.f32 %v944_v25, %v966_v27  ;;  %v967_v50 = vld [vmem:[%s3872_s23 + $0x88] sm:$0xff]  ;;  %v637_v51 = vld [vmem:[%s3854_s26 + $0x90] sm:$0xff]  ;;  %v638_v55 = vld [vmem:[%s3854_s26 + $0x98] sm:$0xff]  ;;  %v4026_v14 = vsub.f32 %v934_v17, %v956_v39  ;;  %v694_v15 = vmul.f32 %v4006_v54, %v4006_v54 }
  0x23   : > { %v659_v53 = vld [vmem:[%s3859_s18 + $0x90] sm:$0xff]  ;;  %v639_v61 = vld [vmem:[%s3854_s26 + $0xa0] sm:$0xff]  ;;  %v4032_v18 = vsub.f32 %v945_v49, %v967_v50  ;;  %v630_v26 = vld [vmem:[%s3854_s26 + $0x58] sm:$0xff]  ;;  %v1028_v27 = vsel %vm707_vm3, %v998_v4, 0.0  ;;  %v691_v28 = vmul.f32 %v4018_v5, %v4018_v5  ;;  %v1274_v32 = vmul.f32 %v3832_v1, %v1246_v9 }
  0x24   : > { %v946_v57 = vld [vmem:[%s3867_s1 + $0x90] sm:$0xff]  ;;  %v661_v8 = vld [vmem:[%s3859_s18 + $0xa0] sm:$0xff]  ;;  %v4034_v21 = vsub.f32 %v637_v51, %v659_v53  ;;  %v939_v34 = vld [vmem:[%s3867_s1 + $0x58] sm:$0xff]  ;;  %v735_v17 = vsel %vm707_vm3, %v694_v15, 0.0  ;;  %v1248_v50 = vsub.f32 %v3938_v58, %v3827_v0  ;;  %v1249_v51 = vsub.f32 %v3952_v7, %v3827_v0 }
  0x25   : > { %715 = vadd.xlane.f32.xlu1 %v714_v36  ;;  %v720_v36 = vsel %vm707_vm3, %v689_v12, 0.0  ;;  %v968_v59 = vld [vmem:[%s3872_s23 + $0x90] sm:$0xff]  ;;  %v1037_v12 = vsel %vm707_vm3, %v1001_v42, 0.0  ;;  %v4042_v25 = vsub.f32 %v639_v61, %v661_v8  ;;  %v649_v30 = vld [vmem:[%s3859_s18 + $0x40] sm:$0xff]  ;;  %v662_v49 = vld [vmem:[%s3859_s18 + $0xa8] sm:$0xff]  ;;  %v1000_v53 = vmul.f32 %v4026_v14, %v4026_v14 }
  0x26   : > { %v4040_v23 = vsub.f32 %v946_v57, %v968_v59  ;;  %v948_v35 = vld [vmem:[%s3867_s1 + $0xa0] sm:$0xff]  ;;  %v971_v57 = vld [vmem:[%s3872_s23 + $0xa8] sm:$0xff]  ;;  %v726_v59 = vsel %vm707_vm3, %v691_v28, 0.0 }
  0x27   : > { %v936_v7 = vld [vmem:[%s3867_s1 + $0x40] sm:$0xff]  ;;  %v1034_v28 = vsel %vm707_vm3, %v1000_v53, 0.0 }
  0x29   : > { %718 = vadd.xlane.f32.xlu1 %v717_v44  ;;  %v959_v44 = vld [vmem:[%s3872_s23 + $0x48] sm:$0xff] }
  0x2a   : > { %v4030_v16 = vsub.f32 %v937_v43, %v959_v44  ;;  %v969_v43 = vld [vmem:[%s3872_s23 + $0x98] sm:$0xff]  ;;  %v640_v44 = vld [vmem:[%s3854_s26 + $0xa8] sm:$0xff] }
  0x2b   : > { %1017 = vadd.xlane.f32.xlu0 %v1016_v63  ;;  %v1273_v63 = vmul.f32 %v3832_v1, %v1245_v29  ;;  %v627_v29 = vld [vmem:[%s3854_s26 + $0x40] sm:$0xff]  ;;  %v4088_v9 = vsub.f32 %v640_v44, %v662_v49  ;;  %v1251_v44 = vsub.f32 %v3941_v60, %v3827_v0  ;;  %v941_v49 = vld [vmem:[%s3867_s1 + $0x68] sm:$0xff]  ;;  %v960_v60 = vld [vmem:[%s3872_s23 + $0x50] sm:$0xff] }
  0x2c   : > { %v1003_v39 = vmul.f32 %v4030_v16, %v4030_v16  ;;  %v4076_v61 = vsub.f32 %v627_v29, %v649_v30 }
  0x2d   : > { %1023 = vadd.xlane.f32.xlu1 %v1022_v56  ;;  %v660_v56 = vld [vmem:[%s3859_s18 + $0x98] sm:$0xff] }
  0x2e   : > { %v4038_v22 = vsub.f32 %v638_v55, %v660_v56  ;;  %v961_v55 = vld [vmem:[%s3872_s23 + $0x58] sm:$0xff]  ;;  %v949_v56 = vld [vmem:[%s3867_s1 + $0xa8] sm:$0xff]  ;;  %v693_v29 = vmul.f32 %v4076_v61, %v4076_v61 }
  0x2f   : > { %1032 = vadd.xlane.f32.xlu0 %v1031_v24  ;;  %v1432_v24 = vpack.c.bf16 %v1273_v63, %v1272_v62  ;;  %v1260_v62 = vsub.f32 %v3996_v45, %v3827_v0  ;;  %v958_v63 = vld [vmem:[%s3872_s23 + $0x40] sm:$0xff]  ;;  %v4093_v15 = vsub.f32 %v939_v34, %v961_v55  ;;  %v651_v34 = vld [vmem:[%s3859_s18 + $0x50] sm:$0xff] }
  0x30   : > { %v4103_v30 = vsub.f32 %v936_v7, %v958_v63  ;;  %v732_v53 = vsel %vm707_vm3, %v693_v29, 0.0 }
  0x31   : > { %1026 = vadd.xlane.f32.xlu1 %v1025_v11  ;;  %v1247_v11 = vsub.f32 %v3902_v31, %v3827_v0  ;;  %v652_v31 = vld [vmem:[%s3859_s18 + $0x58] sm:$0xff]  ;;  %3353 = vmatmul.mubr.msk.bf16.vlgmr.msra.gmra.mrb[0].mxu1 %vm707_vm3, %v1432_v24  ;;  %v632_v24 = vld [vmem:[%s3854_s26 + $0x68] sm:$0xff] }
  0x32   : > { %v4059_v42 = vsub.f32 %v630_v26, %v652_v31  ;;  %3356 = vmatprep.mubr.msk.bf16.mxu1 %vm3723_vm2, %v3721_v3  ;;  %v4095_v26 = vsub.f32 %v949_v56, %v971_v57  ;;  %v1276_v31 = vmul.f32 %v3832_v1, %v1248_v50  ;;  %v963_v50 = vld [vmem:[%s3872_s23 + $0x68] sm:$0xff]  ;;  %v1002_v55 = vmul.f32 %v4103_v30, %v4103_v30  ;;  %v938_v57 = vld [vmem:[%s3867_s1 + $0x50] sm:$0xff] }
  0x33   : > { %730 = vadd.xlane.f32.xlu0 %v729_v37  ;;  %v1275_v33 = vmul.f32 %v3832_v1, %v1247_v11  ;;  %v947_v37 = vld [vmem:[%s3867_s1 + $0x98] sm:$0xff]  ;;  %v1043_v11 = vsel %vm707_vm3, %v1003_v39, 0.0 }
  0x34   : > { %v4086_v8 = vsub.f32 %v947_v37, %v969_v43  ;;  %v3724_v43 = vmov 3  }
  0x35   : > { %721 = vadd.xlane.f32.xlu1 %v720_v36  ;;  %v970_v36 = vld [vmem:[%s3872_s23 + $0xa0] sm:$0xff]  ;;  %v1433_v4 = vpack.c.bf16 %v1275_v33, %v1274_v32  ;;  %v1277_v32 = vmul.f32 %v3832_v1, %v1249_v51  ;;  %v629_v33 = vld [vmem:[%s3854_s26 + $0x50] sm:$0xff]  ;;  %3531 = vset.pattern.permute.xlu0 %v3724_v43  ;;  %v1250_v51 = vsub.f32 %v4018_v5, %v3827_v0 }
  0x36   : > { %v4080_v58 = vsub.f32 %v948_v35, %v970_v36  ;;  %v4109_v35 = vmul.f32 %v3832_v1, %v1260_v62  ;;  %3530 = vset.pattern.permute.xlu1 %v3724_v43  ;;  %v4133_v56 = vsub.f32 %v629_v33, %v651_v34  ;;  %v1263_v62 = vsub.f32 %v4038_v22, %v3827_v0 }
  0x37   : > { %1038 = vadd.xlane.f32.xlu0 %v1037_v12  ;;  %v696_v12 = vmul.f32 %v4059_v42, %v4059_v42  ;;  %v1434_v7 = vpack.c.bf16 %v1277_v32, %v1276_v31  ;;  %v1278_v29 = vmul.f32 %v3832_v1, %v1250_v51  ;;  %v1252_v51 = vsub.f32 %v4076_v61, %v3827_v0 }
  0x38   : > { %v695_v31 = vmul.f32 %v4133_v56, %v4133_v56  ;;  %v4161_v33 = vmul.f32 %v3832_v1, %v1263_v62 }
  0x39   : > { %724 = vadd.xlane.f32.xlu1 %v723_v2  ;;  %v1261_v2 = vsub.f32 %v3998_v47, %v3827_v0  ;;  %3357 = vmatmul.mubr.msk.bf16.gmra.mrb[4].mxu1 %vm707_vm3, %v1433_v4  ;;  %v741_v37 = vsel %vm707_vm3, %v696_v12, 0.0  ;;  %v4146_v4 = vsub.f32 %v941_v49, %v963_v50  ;;  %v656_v12 = vld [vmem:[%s3859_s18 + $0x78] sm:$0xff]  ;;  %v1253_v50 = vsub.f32 %v4006_v54, %v3827_v0 }
  0x3a   : > { %3360 = vmatprep.mubr.msk.bf16.mxu1 %vm3723_vm2, %v3721_v3  ;;  %v965_v49 = vld [vmem:[%s3872_s23 + $0x78] sm:$0xff] }
  0x3b   : > { %736 = vadd.xlane.f32.xlu0 %v735_v17  ;;  %v4112_v36 = vmul.f32 %v3832_v1, %v1261_v2  ;;  %v1005_v17 = vmul.f32 %v4093_v15, %v4093_v15 }
  0x3d   : > { %1029 = vadd.xlane.f32.xlu1 %v1028_v27  ;;  %v654_v27 = vld [vmem:[%s3859_s18 + $0x68] sm:$0xff]  ;;  %v1440_v5 = vpack.c.bf16 %v4112_v36, %v4109_v35  ;;  %v1049_v63 = vsel %vm707_vm3, %v1005_v17, 0.0 }
  0x3e   : > { %v4118_v39 = vsub.f32 %v632_v24, %v654_v27  ;;  %v1279_v24 = vmul.f32 %v3832_v1, %v1251_v44  ;;  %v1040_v27 = vsel %vm707_vm3, %v1002_v55, 0.0  ;;  %v943_v44 = vld [vmem:[%s3867_s1 + $0x78] sm:$0xff] }
  0x3f   : > { %1044 = vadd.xlane.f32.xlu0 %v1043_v11  ;;  %v634_v11 = vld [vmem:[%s3854_s26 + $0x78] sm:$0xff]  ;;  %s3085_s26 = sshll.u32 %s5553_s0, 2 }
  0x40   : > { %v698_v2 = vmul.f32 %v4118_v39, %v4118_v39  ;;  %v4167_v17 = vsub.f32 %v634_v11, %v656_v12  ;;  %v1435_v62 = vpack.c.bf16 %v1279_v24, %v1278_v29  ;;  %v1281_v11 = vmul.f32 %v3832_v1, %v1253_v50  ;;  %s5454_s29 = scalar_lea.vmem %s5547_s17, %s3085_s26 }
  0x41   : > { %727 = vadd.xlane.f32.xlu1 %v726_v59  ;;  %v1262_v59 = vsub.f32 %v4034_v21, %v3827_v0  ;;  %3361 = vmatmul.mubr.msk.bf16.gmra.mrb[8].mxu1 %vm707_vm3, %v1434_v7  ;;  %v1265_v7 = vsub.f32 %v4088_v9, %v3827_v0  ;;  %v697_v24 = vmul.f32 %v3950_v6, %v3950_v6 }
  0x42   : > { %v747_v34 = vsel %vm707_vm3, %v698_v2, 0.0  ;;  %3364 = vmatprep.mubr.msk.bf16.mxu1 %vm3723_vm2, %v3721_v3  ;;  %v4191_v2 = vsub.f32 %v943_v44, %v965_v49 }
  0x43   : > { %742 = vadd.xlane.f32.xlu0 %v741_v37  ;;  %v4158_v32 = vmul.f32 %v3832_v1, %v1262_v59  ;;  %v1007_v37 = vmul.f32 %v4146_v4, %v4146_v4  ;;  %v1264_v59 = vsub.f32 %v4042_v25, %v3827_v0  ;;  %v744_v49 = vsel %vm707_vm3, %v697_v24, 0.0 }
  0x44   : > { %v1009_v44 = vmul.f32 %v4191_v2, %v4191_v2  ;;  %v1257_v24 = vsub.f32 %v4118_v39, %v3827_v0 }
  0x45   : > { %1035 = vadd.xlane.f32.xlu1 %v1034_v28  ;;  %v4154_v28 = vsub.f32 %v938_v57, %v960_v60  ;;  %v940_v57 = vld [vmem:[%s3867_s1 + $0x60] sm:$0xff]  ;;  %v1441_v54 = vpack.c.bf16 %v4161_v33, %v4158_v32  ;;  %v1055_v61 = vsel %vm707_vm3, %v1007_v37, 0.0  ;;  %v4201_v29 = vmul.f32 %v3832_v1, %v1264_v59 }
  0x46   : > { %v962_v60 = vld [vmem:[%s3872_s23 + $0x60] sm:$0xff]  ;;  %v702_v59 = vmul.f32 %v3998_v47, %v3998_v47 }
  0x47   : > { %1050 = vadd.xlane.f32.xlu0 %v1049_v63  ;;  %v1004_v55 = vmul.f32 %v4154_v28, %v4154_v28  ;;  %v700_v63 = vmul.f32 %v4167_v17, %v4167_v17 }
  0x49   : > { %733 = vadd.xlane.f32.xlu1 %v732_v53  ;;  %v738_v53 = vsel %vm707_vm3, %v695_v31, 0.0  ;;  %v1046_v12 = vsel %vm707_vm3, %v1004_v55, 0.0  ;;  %v1280_v31 = vmul.f32 %v3832_v1, %v1252_v51  ;;  %3365 = vmatmul.mubr.msk.bf16.gmra.mrb[12].mxu1 %vm707_vm3, %v1435_v62  ;;  %v753_v37 = vsel %vm707_vm3, %v700_v63, 0.0 }
  0x4a   : > { %3368 = vmatprep.mubr.msk.bf16.mxu1 %vm3723_vm2, %v3721_v3  ;;  %v1255_v51 = vsub.f32 %v4059_v42, %v3827_v0  ;;  %v1011_v63 = vmul.f32 %v4032_v18, %v4032_v18 }
  0x4b   : > { %748 = vadd.xlane.f32.xlu0 %v747_v34  ;;  %v4205_v34 = vmul.f32 %v3832_v1, %v1265_v7  ;;  %v1436_v55 = vpack.c.bf16 %v1281_v11, %v1280_v31  ;;  %v699_v7 = vmul.f32 %v3956_v10, %v3956_v10  ;;  %v1008_v11 = vmul.f32 %v3990_v40, %v3990_v40 }
  0x4c   : > { %v1283_v42 = vmul.f32 %v3832_v1, %v1255_v51 }
  0x4d   : > { %1041 = vadd.xlane.f32.xlu1 %v1040_v27  ;;  %v4197_v27 = vsub.f32 %v940_v57, %v962_v60  ;;  %v1442_v57 = vpack.c.bf16 %v4205_v34, %v4201_v29  ;;  %v1061_v60 = vsel %vm707_vm3, %v1009_v44, 0.0  ;;  %v750_v47 = vsel %vm707_vm3, %v699_v7, 0.0 }
  0x4e   : > { %v704_v44 = vmul.f32 %v4038_v22, %v4038_v22  ;;  %v706_v7 = vmul.f32 %v4088_v9, %v4088_v9 }
  0x4f   : > { %1056 = vadd.xlane.f32.xlu0 %v1055_v61  ;;  %v1006_v50 = vmul.f32 %v4197_v27, %v4197_v27  ;;  %v759_v61 = vsel %vm707_vm3, %v702_v59, 0.0 }
  0x50   : > { %v765_v39 = vsel %vm707_vm3, %v704_v44, 0.0 }
  0x51   : > { %739 = vadd.xlane.f32.xlu1 %v738_v53  ;;  %v1254_v53 = vsub.f32 %v4133_v56, %v3827_v0  ;;  %v1052_v62 = vsel %vm707_vm3, %v1006_v50, 0.0  ;;  %3369 = vmatmul.mubr.msk.bf16.gmra.mrb[16].mxu1 %vm707_vm3, %v1436_v55  ;;  %v701_v50 = vmul.f32 %v3996_v45, %v3996_v45  ;;  %v1010_v45 = vmul.f32 %v4000_v48, %v4000_v48 }
  0x52   : > { %3372 = vmatprep.mubr.msk.bf16.mxu1 %vm3723_vm2, %v3721_v3  ;;  %v1258_v55 = vsub.f32 %v3956_v10, %v3827_v0 }
  0x53   : > { %754 = vadd.xlane.f32.xlu0 %v753_v37  ;;  %v1282_v56 = vmul.f32 %v3832_v1, %v1254_v53  ;;  %v1067_v37 = vsel %vm707_vm3, %v1011_v63, 0.0  ;;  %v1013_v53 = vmul.f32 %v4086_v8, %v4086_v8  ;;  %v756_v22 = vsel %vm707_vm3, %v701_v50, 0.0 }
  0x54   : > { %v1015_v63 = vmul.f32 %v4095_v26, %v4095_v26 }
  0x55   : > { %1047 = vadd.xlane.f32.xlu1 %v1046_v12  ;;  %v1256_v12 = vsub.f32 %v3950_v6, %v3827_v0  ;;  %v1437_v31 = vpack.c.bf16 %v1283_v42, %v1282_v56  ;;  %v1285_v6 = vmul.f32 %v3832_v1, %v1257_v24  ;;  %v1064_v42 = vsel %vm707_vm3, %v1010_v45, 0.0 }
  0x56   : > { %v703_v56 = vmul.f32 %v4034_v21, %v4034_v21  ;;  %v1012_v21 = vmul.f32 %v4040_v23, %v4040_v23  ;;  %v705_v24 = vmul.f32 %v4042_v25, %v4042_v25 }
  0x57   : > { %1062 = vadd.xlane.f32.xlu0 %v1061_v60  ;;  %v1284_v51 = vmul.f32 %v3832_v1, %v1256_v12  ;;  %v1259_v60 = vsub.f32 %v4167_v17, %v3827_v0  ;;  %v771_v17 = vsel %vm707_vm3, %v706_v7, 0.0 }
  0x58   : > { %v762_v9 = vsel %vm707_vm3, %v703_v56, 0.0  ;;  %v1070_v12 = vsel %vm707_vm3, %v1012_v21, 0.0 }
  0x59   : > { %745 = vadd.xlane.f32.xlu1 %v744_v49  ;;  %v1058_v49 = vsel %vm707_vm3, %v1008_v11, 0.0  ;;  %3373 = vmatmul.mubr.msk.bf16.gmra.mrb[20].mxu1 %vm707_vm3, %v1437_v31  ;;  %v1438_v59 = vpack.c.bf16 %v1285_v6, %v1284_v51  ;;  %v1287_v10 = vmul.f32 %v3832_v1, %v1259_v60  ;;  %v1079_v11 = vsel %vm707_vm3, %v1015_v63, 0.0 }
  0x5a   : > { %3376 = vmatprep.mubr.msk.bf16.mxu1 %vm3723_vm2, %v3721_v3  ;;  %v768_v31 = vsel %vm707_vm3, %v705_v24, 0.0 }
  0x5b   : > { %760 = vadd.xlane.f32.xlu0 %v759_v61  ;;  %v1286_v61 = vmul.f32 %v3832_v1, %v1258_v55 }
  0x5d   : > { %1053 = vadd.xlane.f32.xlu1 %v1052_v62  ;;  %v1073_v62 = vsel %vm707_vm3, %v1013_v53, 0.0 }
  0x5f   : > { %1068 = vadd.xlane.f32.xlu0 %v1067_v37  ;;  %v1014_v37 = vmul.f32 %v4080_v58, %v4080_v58 }
  0x61   : > { %751 = vadd.xlane.f32.xlu1 %v750_v47  ;;  %3377 = vmatmul.mubr.msk.bf16.gmra.mrb[24].mxu1 %vm707_vm3, %v1438_v59  ;;  %v1439_v47 = vpack.c.bf16 %v1287_v10, %v1286_v61  ;;  %v1076_v44 = vsel %vm707_vm3, %v1014_v37, 0.0 }
  0x62   : > { %3380 = vmatprep.mubr.msk.bf16.mxu1 %vm3723_vm2, %v3721_v3 }
  0x63   : > { %766 = vadd.xlane.f32.xlu0 %v765_v39 }
  0x65   : > { %1059 = vadd.xlane.f32.xlu1 %v1058_v49 }
  0x67   : > { %1074 = vadd.xlane.f32.xlu0 %v1073_v62 }
  0x69   : > { %757 = vadd.xlane.f32.xlu1 %v756_v22  ;;  %3381 = vmatmul.mubr.msk.bf16.gmra.mrb[28].mxu1 %vm707_vm3, %v1439_v47 }
  0x6a   : > { %3384 = vmatprep.mubr.msk.bf16.mxu1 %vm3723_vm2, %v3721_v3 }
  0x6b   : > { %772 = vadd.xlane.f32.xlu0 %v771_v17 }
  0x6d   : > { %1065 = vadd.xlane.f32.xlu1 %v1064_v42 }
  0x6f   : > { %1080 = vadd.xlane.f32.xlu0 %v1079_v11 }
  0x71   : > { %763 = vadd.xlane.f32.xlu1 %v762_v9  ;;  %3385 = vmatmul.mubr.msk.bf16.gmra.mrb[32].mxu1 %vm707_vm3, %v1440_v5 }
  0x72   : > { %3388 = vmatprep.mubr.msk.bf16.mxu1 %vm3723_vm2, %v3721_v3 }
  0x75   : > { %1071 = vadd.xlane.f32.xlu1 %v1070_v12 }
  0x79   : > { %769 = vadd.xlane.f32.xlu1 %v768_v31  ;;  %3389 = vmatmul.mubr.msk.bf16.gmra.mrb[36].mxu1 %vm707_vm3, %v1441_v54 }
  0x7a   : > { %v4297_v25 = vpop.permute.xlu0 %1338  ;;  %3392 = vmatprep.mubr.msk.bf16.mxu1 %vm3723_vm2, %v3721_v3 }
  0x7b   : > { %v1341_v49 = vsub.f32 %v3915_v41, %v4297_v25  ;;  %v1342_v50 = vsub.f32 %v3885_v19, %v4297_v25  ;;  %v1361_v41 = vsub.f32 %v4080_v58, %v4297_v25  ;;  %v1362_v19 = vsub.f32 %v4095_v26, %v4297_v25 }
  0x7c   : > { %v1343_v32 = vsub.f32 %v3911_v38, %v4297_v25  ;;  %v1344_v33 = vsub.f32 %v3922_v46, %v4297_v25  ;;  %v1345_v46 = vsub.f32 %v3985_v13, %v4297_v25  ;;  %v1346_v53 = vsub.f32 %v3930_v52, %v4297_v25 }
  0x7d   : > { %1077 = vadd.xlane.f32.xlu1 %v1076_v44  ;;  %v1348_v45 = vsub.f32 %v3966_v20, %v4297_v25  ;;  %v1349_v60 = vsub.f32 %v4103_v30, %v4297_v25  ;;  %v1350_v59 = vsub.f32 %v4030_v16, %v4297_v25  ;;  %v1351_v42 = vsub.f32 %v4154_v28, %v4297_v25 }
  0x7e   : > { %v4303_v51 = vpop.permute.xlu0 %1363  ;;  %v1352_v30 = vsub.f32 %v4093_v15, %v4297_v25  ;;  %v1353_v28 = vsub.f32 %v4197_v27, %v4297_v25  ;;  %v1354_v15 = vsub.f32 %v4146_v4, %v4297_v25  ;;  %v3560_v27 = vld [vmem:[%s5541_s11] sm:$0xff]  }
  0x7f   : > { %v1366_v6 = vmul.f32 %v4303_v51, %v1341_v49  ;;  %v1367_v35 = vmul.f32 %v4303_v51, %v1342_v50  ;;  %v4319_v5 = vmul.f32 %v4303_v51, %v1361_v41  ;;  %v4326_v54 = vmul.f32 %v4303_v51, %v1362_v19 }
  0x80   : > { %v1368_v58 = vmul.f32 %v4303_v51, %v1343_v32  ;;  %v1369_v26 = vmul.f32 %v4303_v51, %v1344_v33  ;;  %v1370_v22 = vmul.f32 %v4303_v51, %v1345_v46  ;;  %v1371_v29 = vmul.f32 %v4303_v51, %v1346_v53 }
  0x81   : > { %v1444_v36 = vpack.c.bf16 %v1367_v35, %v1366_v6  ;;  %v1454_v39 = vpack.c.bf16 %v4326_v54, %v4319_v5  ;;  %3393 = vmatmul.mubr.msk.bf16.gmra.mrb[40].mxu1 %vm707_vm3, %v1442_v57  ;;  %v1347_v57 = vsub.f32 %v4026_v14, %v4297_v25  ;;  %v1373_v13 = vmul.f32 %v4303_v51, %v1348_v45 }
  0x82   : > { %3472 = vmatprep.mubr.msk.bf16.mxu1 %vm3723_vm2, %v3721_v3  ;;  %v1445_v38 = vpack.c.bf16 %v1369_v26, %v1368_v58  ;;  %v1446_v34 = vpack.c.bf16 %v1371_v29, %v1370_v22  ;;  %v1374_v20 = vmul.f32 %v4303_v51, %v1349_v60  ;;  %v1375_v14 = vmul.f32 %v4303_v51, %v1350_v59 }
  0x83   : > { %3307 = vmatmul.mubr.msk.bf16.vlgmr.msra.gmra.mrb[0].mxu0 %vm707_vm3, %v1444_v36  ;;  %v1372_v52 = vmul.f32 %v4303_v51, %v1347_v57  ;;  %v1376_v16 = vmul.f32 %v4303_v51, %v1351_v42  ;;  %v1377_v56 = vmul.f32 %v4303_v51, %v1352_v30  ;;  %v1378_v9 = vmul.f32 %v4303_v51, %v1353_v28  ;;  %v3562_v28 = vld [vmem:[%s5541_s11 + $0x10] sm:$0xff]  }
  0x84   : > { %3310 = vmatprep.mubr.msk.bf16.mxu0 %vm3723_vm2, %v3721_v3  ;;  %v1448_v62 = vpack.c.bf16 %v1375_v14, %v1374_v20  ;;  %v1379_v21 = vmul.f32 %v4303_v51, %v1354_v15  ;;  %3397 = vmatpush3.bf16.msra.mxu0 %v3560_v27  ;;  %v1355_v35 = vsub.f32 %v3990_v40, %v4297_v25  ;;  %v3725_v22 = vmov 7  }
  0x85   : > { %v1447_v55 = vpack.c.bf16 %v1373_v13, %v1372_v52  ;;  %v1449_v10 = vpack.c.bf16 %v1377_v56, %v1376_v16  ;;  %3398 = vmatprep.subr.bf16.mxu0 %v3721_v3  ;;  %v1356_v36 = vsub.f32 %v4191_v2, %v4297_v25  ;;  %v1358_v29 = vsub.f32 %v4032_v18, %v4297_v25 }
  0x86   : > { %v1450_v31 = vpack.c.bf16 %v1379_v21, %v1378_v9  ;;  %v1380_v32 = vmul.f32 %v4303_v51, %v1355_v35  ;;  %v1360_v20 = vsub.f32 %v4086_v8, %v4297_v25  ;;  %v4468_v9 = vld [vmem:[%s5534_s4] ss:$0 sm:$0xff] }
  0x87   : > { %v1381_v33 = vmul.f32 %v4303_v51, %v1356_v36  ;;  %v1383_v18 = vmul.f32 %v4303_v51, %v1358_v29 }
  0x89   : > { %v1451_v46 = vpack.c.bf16 %v1381_v33, %v1380_v32 }
  0x8b   : > { %3311 = vmatmul.mubr.msk.bf16.gmra.mrb[4].mxu0 %vm707_vm3, %v1445_v38 }
  0x8c   : > { %3314 = vmatprep.mubr.msk.bf16.mxu0 %vm3723_vm2, %v3721_v3 }
  0x93   : > { %3315 = vmatmul.mubr.msk.bf16.gmra.mrb[8].mxu0 %vm707_vm3, %v1446_v34  ;;  %v3561_v34 = vld [vmem:[%s5541_s11 + $0x8] sm:$0xff]  }
  0x94   : > { %3318 = vmatprep.mubr.msk.bf16.mxu0 %vm3723_vm2, %v3721_v3  ;;  %3399 = vmatpush3.bf16.msra.mxu0 %v3561_v34 }
  0x95   : > { %3400 = vmatprep.subr.bf16.mxu0 %v3721_v3 }
  0x98   : > { %3401 = vmatpush3.bf16.msra.mxu0 %v3562_v28 }
  0x99   : > { %3402 = vmatprep.subr.bf16.mxu0 %v3721_v3 }
  0x9b   : > { %3319 = vmatmul.mubr.msk.bf16.gmra.mrb[12].mxu0 %vm707_vm3, %v1447_v55  ;;  %v1359_v55 = vsub.f32 %v4040_v23, %v4297_v25  ;;  %v1385_v23 = vmul.f32 %v4303_v51, %v1360_v20 }
  0x9c   : > { %3322 = vmatprep.mubr.msk.bf16.mxu0 %vm3723_vm2, %v3721_v3 }
  0xa3   : > { %3323 = vmatmul.mubr.msk.bf16.gmra.mrb[16].mxu0 %vm707_vm3, %v1448_v62 }
  0xa4   : > { %3326 = vmatprep.mubr.msk.bf16.mxu0 %vm3723_vm2, %v3721_v3 }
  0xa6   : > { %v710_v7 = vpop.xlane.xlu1 %709 }
  0xa7   : > { %3576 = vrsqrt.f32 %v710_v7  ;;  %vm776_vm4 = vcmp.eq.f32.partialorder %v710_v7, inf  ;;  %v779_v47 = vand.u32 2147483648, %v710_v7  ;;  %vm778_vm5 = vcmp.eq.f32.partialorder %v710_v7, 0.0 }
  0xaa   : > { %v713_v61 = vpop.xlane.xlu1 %712 }
  0xab   : > { %3578 = vrsqrt.f32 %v713_v61  ;;  %3327 = vmatmul.mubr.msk.bf16.gmra.mrb[20].mxu0 %vm707_vm3, %v1449_v10  ;;  %vm783_vm6 = vcmp.eq.f32.partialorder %v713_v61, inf  ;;  %v786_v44 = vand.u32 2147483648, %v713_v61  ;;  %vm785_vm7 = vcmp.eq.f32.partialorder %v713_v61, 0.0 }
  0xac   : > { %3330 = vmatprep.mubr.msk.bf16.mxu0 %vm3723_vm2, %v3721_v3 }
  0xae   : > { %v4376_v17 = vpop.xlane.xlu1 %1020 }
  0xaf   : > { %3580 = vrsqrt.f32 %v4376_v17  ;;  %vm1091_vm8 = vcmp.eq.f32.partialorder %v4376_v17, inf  ;;  %v1094_v42 = vand.u32 2147483648, %v4376_v17  ;;  %vm1093_vm9 = vcmp.eq.f32.partialorder %v4376_v17, 0.0 }
  0xb1   : > { %v3577_v63 = vpop.eup %3576 }
  0xb2   : > { %v4387_v11 = vpop.xlane.xlu1 %715  ;;  %v775_v12 = vmul.f32 %v3577_v63, %v710_v7 }
  0xb3   : > { %3331 = vmatmul.mubr.msk.bf16.gmra.mrb[24].mxu0 %vm707_vm3, %v1450_v31  ;;  %3582 = vrsqrt.f32 %v4387_v11  ;;  %vm790_vm12 = vcmp.eq.f32.partialorder %v4387_v11, inf  ;;  %vm792_vm13 = vcmp.eq.f32.partialorder %v4387_v11, 0.0  ;;  %v4482_v31 = vld [vmem:[%s5535_s5] ss:$0 sm:$0xff] }
  0xb4   : > { %v777_v24 = vsel %vm776_vm4, %v710_v7, %v775_v12  ;;  %3334 = vmatprep.mubr.msk.bf16.mxu0 %vm3723_vm2, %v3721_v3  ;;  %v1384_v7 = vmul.f32 %v4303_v51, %v1359_v55 }
  0xb5   : > { %v3579_v4 = vpop.eup %3578  ;;  %v780_v37 = vsel %vm778_vm5, %v779_v47, %v777_v24  ;;  %v793_v47 = vand.u32 2147483648, %v4387_v11 }
  0xb6   : > { %v4393_v49 = vpop.xlane.xlu1 %718  ;;  %v1294_v50 = vsub.f32 %v780_v37, %v3827_v0  ;;  %v782_v6 = vmul.f32 %v3579_v4, %v713_v61  ;;  %v1453_v63 = vpack.c.bf16 %v1385_v23, %v1384_v7 }
  0xb7   : > { %vm797_vm14 = vcmp.eq.f32.partialorder %v4393_v49, inf  ;;  %vm799_vm15 = vcmp.eq.f32.partialorder %v4393_v49, 0.0  ;;  %v800_v35 = vand.u32 2147483648, %v4393_v49 }
  0xb8   : > { %v1316_v41 = vmul.f32 %v3832_v1, %v1294_v50  ;;  %v784_v19 = vsel %vm783_vm6, %v713_v61, %v782_v6  ;;  %v1018_v40 = vpop.xlane.xlu0 %1017 }
  0xb9   : > { %v787_v58 = vsel %vm785_vm7, %v786_v44, %v784_v19  ;;  %3584 = vrsqrt.f32 %v1018_v40  ;;  %v3581_v57 = vpop.eup %3580  ;;  %vm1084_vm10 = vcmp.eq.f32.partialorder %v1018_v40, inf  ;;  %vm1086_vm11 = vcmp.eq.f32.partialorder %v1018_v40, 0.0 }
  0xba   : > { %1778 = vperm.xlu1 %3530, %v1316_v41   ;;  %v4407_v26 = vpop.xlane.xlu1 %1023  ;;  %v1295_v38 = vsub.f32 %v787_v58, %v3827_v0  ;;  %v1357_v0 = vsub.f32 %v4000_v48, %v4297_v25  ;;  %3586 = vrsqrt.f32 %v4393_v49  ;;  %v1090_v13 = vmul.f32 %v3581_v57, %v4376_v17  ;;  %v3563_v57 = vld [vmem:[%s5541_s11 + $0x18] sm:$0xff]  }
  0xbb   : > { %3335 = vmatmul.mubr.msk.bf16.gmra.mrb[28].mxu0 %vm707_vm3, %v1451_v46  ;;  %3588 = vrsqrt.f32 %v4407_v26  ;;  %v1087_v25 = vand.u32 2147483648, %v1018_v40  ;;  %vm1098_vm0 = vcmp.eq.f32.partialorder %v4407_v26, inf  ;;  %vm1100_vm4 = vcmp.eq.f32.partialorder %v4407_v26, 0.0 }
  0xbc   : > { %v1317_v2 = vmul.f32 %v3832_v1, %v1295_v38  ;;  %3338 = vmatprep.mubr.msk.bf16.mxu0 %vm3723_vm2, %v3721_v3  ;;  %v4423_v1 = vpop.xlane.xlu0 %1032  ;;  %v1382_v45 = vmul.f32 %v4303_v51, %v1357_v0  ;;  %v1092_v16 = vsel %vm1091_vm8, %v4376_v17, %v1090_v13  ;;  %3403 = vmatpush3.bf16.msra.mxu0 %v3563_v57 }
  0xbd   : > { %v3583_v59 = vpop.eup %3582  ;;  %v1095_v15 = vsel %vm1093_vm9, %v1094_v42, %v1092_v16  ;;  %3404 = vmatprep.subr.bf16.mxu0 %v3721_v3 }
  0xbe   : > { %1783 = vperm.xlu0 %3531, %v1317_v2   ;;  %v4412_v53 = vpop.xlane.xlu1 %1026  ;;  %3532 = vset.pattern.permute.xlu1 %v3725_v22  ;;  %v1452_v60 = vpack.c.bf16 %v1383_v18, %v1382_v45  ;;  %v789_v56 = vmul.f32 %v3583_v59, %v4387_v11  ;;  %v1389_v44 = vsub.f32 %v1095_v15, %v4468_v9  ;;  %v1101_v2 = vand.u32 2147483648, %v4407_v26 }
  0xbf   : > { %vm1105_vm8 = vcmp.eq.f32.partialorder %v4412_v53, inf  ;;  %v1108_v42 = vand.u32 2147483648, %v4412_v53 }
  0xc0   : > { %v4435_v48 = vpop.xlane.xlu0 %730  ;;  %v791_v24 = vsel %vm790_vm12, %v4387_v11, %v789_v56  ;;  %v1411_v33 = vmul.f32 %v4482_v31, %v1389_v44 }
  0xc1   : > { %3590 = vrsqrt.f32 %v4435_v48  ;;  %v794_v11 = vsel %vm792_vm13, %v793_v47, %v791_v24  ;;  %vm825_vm1 = vcmp.eq.f32.partialorder %v4435_v48, inf  ;;  %vm827_vm5 = vcmp.eq.f32.partialorder %v4435_v48, 0.0 }
  0xc2   : > { %v4430_v52 = vpop.xlane.xlu1 %721  ;;  %3536 = vset.pattern.permute.xlu0 %v3725_v22  ;;  %3592 = vrsqrt.f32 %v4412_v53  ;;  %v828_v34 = vand.u32 2147483648, %v4435_v48 }
  0xc3   : > { %v3585_v62 = vpop.eup %3584  ;;  %3339 = vmatmul.mubr.msk.bf16.gmra.mrb[32].mxu0 %vm707_vm3, %v1452_v60  ;;  %vm804_vm9 = vcmp.eq.f32.partialorder %v4430_v52, inf  ;;  %v807_v15 = vand.u32 2147483648, %v4430_v52 }
  0xc4   : > { %3342 = vmatprep.mubr.msk.bf16.mxu0 %vm3723_vm2, %v3721_v3  ;;  %v1083_v30 = vmul.f32 %v3585_v62, %v1018_v40  ;;  %v4454_v8 = vpop.xlane.xlu0 %1038  ;;  %v3587_v61 = vpop.eup %3586 }
  0xc5   : > { %v3589_v27 = vpop.eup %3588  ;;  %v796_v4 = vmul.f32 %v3587_v61, %v4393_v49 }
  0xc6   : > { %v4444_v14 = vpop.xlane.xlu1 %724  ;;  %v1085_v10 = vsel %vm1084_vm10, %v1018_v40, %v1083_v30  ;;  %v1097_v41 = vmul.f32 %v3589_v27, %v4407_v26  ;;  %v1296_v40 = vsub.f32 %v794_v11, %v4468_v9  ;;  %vm806_vm10 = vcmp.eq.f32.partialorder %v4430_v52, 0.0 }
  0xc7   : > { %v1088_v17 = vsel %vm1086_vm11, %v1087_v25, %v1085_v10  ;;  %v798_v19 = vsel %vm797_vm14, %v4393_v49, %v796_v4  ;;  %vm811_vm11 = vcmp.eq.f32.partialorder %v4444_v14, inf  ;;  %vm813_vm12 = vcmp.eq.f32.partialorder %v4444_v14, 0.0 }
  0xc8   : > { %v1388_v21 = vsub.f32 %v1088_v17, %v4468_v9  ;;  %v4472_v12 = vpop.xlane.xlu0 %736  ;;  %v801_v46 = vsel %vm799_vm15, %v800_v35, %v798_v19  ;;  %v1099_v29 = vsel %vm1098_vm0, %v4407_v26, %v1097_v41  ;;  %v1318_v20 = vmul.f32 %v4482_v31, %v1296_v40 }
  0xc9   : > { %v1297_v62 = vsub.f32 %v801_v46, %v4468_v9  ;;  %v1102_v7 = vsel %vm1100_vm4, %v1101_v2, %v1099_v29  ;;  %v814_v19 = vand.u32 2147483648, %v4444_v14  ;;  %v3564_v2 = vld [vmem:[%s5541_s11 + $0x20] sm:$0xff]  }
  0xca   : > { %v4458_v51 = vpop.xlane.xlu1 %1029  ;;  %v1410_v37 = vmul.f32 %v4482_v31, %v1388_v21  ;;  %v1390_v61 = vsub.f32 %v1102_v7, %v4468_v9  ;;  %3405 = vmatpush3.bf16.msra.mxu0 %v3564_v2 }
  0xcb   : > { %3594 = vrsqrt.f32 %v4458_v51  ;;  %v3591_v6 = vpop.eup %3590  ;;  %3343 = vmatmul.mubr.msk.bf16.gmra.mrb[36].mxu0 %vm707_vm3, %v1453_v63  ;;  %vm1112_vm6 = vcmp.eq.f32.partialorder %v4458_v51, inf  ;;  %v1115_v49 = vand.u32 2147483648, %v4458_v51  ;;  %vm1114_vm7 = vcmp.eq.f32.partialorder %v4458_v51, 0.0  ;;  %3406 = vmatprep.subr.bf16.mxu0 %v3721_v3 }
  0xcc   : > { %3596 = vrsqrt.f32 %v4430_v52  ;;  %1938 = vperm.xlu1 %3532, %v1410_v37   ;;  %3346 = vmatprep.mubr.msk.bf16.mxu0 %vm3723_vm2, %v3721_v3  ;;  %v4494_v36 = vpop.xlane.xlu0 %1044  ;;  %v824_v32 = vmul.f32 %v3591_v6, %v4435_v48  ;;  %v3593_v38 = vpop.eup %3592  ;;  %v1319_v56 = vmul.f32 %v4482_v31, %v1297_v62  ;;  %v1412_v27 = vmul.f32 %v4482_v31, %v1390_v61 }
  0xcd   : > { %3598 = vrsqrt.f32 %v4444_v14  ;;  %v1104_v55 = vmul.f32 %v3593_v38, %v4412_v53 }
  0xce   : > { %v4486_v50 = vpop.xlane.xlu1 %727  ;;  %v826_v18 = vsel %vm825_vm1, %v4435_v48, %v824_v32  ;;  %vm1119_vm1 = vcmp.eq.f32.partialorder %v4423_v1, inf }
  0xcf   : > { %v829_v54 = vsel %vm827_vm5, %v828_v34, %v826_v18  ;;  %v1106_v30 = vsel %vm1105_vm8, %v4412_v53, %v1104_v55  ;;  %vm820_vm8 = vcmp.eq.f32.partialorder %v4486_v50, 0.0 }
  0xd0   : > { %1943 = vperm.xlu1 %3532, %v1411_v33   ;;  %v4511_v0 = vpop.xlane.xlu0 %742  ;;  %v1301_v10 = vsub.f32 %v829_v54, %v4468_v9 }
  0xd1   : > { %3600 = vrsqrt.f32 %v4511_v0  ;;  %vm853_vm13 = vcmp.eq.f32.partialorder %v4511_v0, inf  ;;  %v856_v4 = vand.u32 2147483648, %v4511_v0  ;;  %vm855_vm14 = vcmp.eq.f32.partialorder %v4511_v0, 0.0 }
  0xd2   : > { %v4502_v58 = vpop.xlane.xlu1 %1035  ;;  %3602 = vrsqrt.f32 %v4423_v1  ;;  %v1323_v24 = vmul.f32 %v4482_v31, %v1301_v10 }
  0xd3   : > { %3347 = vmatmul.mubr.msk.bf16.gmra.mrb[40].mxu0 %vm707_vm3, %v1454_v39  ;;  %vm1107_vm3 = vcmp.eq.f32.partialorder %v4412_v53, 0.0 }
  0xd4   : > { %3533 = vset.pattern.permute.xlu1 %v3724_v43  ;;  %v4547_v39 = vpop.xlane.xlu0 %1050  ;;  %3412 = vmatprep.mubr.msk.bf16.mxu0 %vm3723_vm2, %v3721_v3  ;;  %v1109_v17 = vsel %vm1107_vm3, %v1108_v42, %v1106_v30  ;;  %vm1126_vm3 = vcmp.eq.f32.partialorder %v4502_v58, inf }
  0xd5   : > { %v3595_v45 = vpop.eup %3594  ;;  %1788 = vperm.xlu1 %3533, %v1318_v20   ;;  %v1391_v6 = vsub.f32 %v1109_v17, %v4468_v9 }
  0xd6   : > { %v4525_v13 = vpop.xlane.xlu1 %733  ;;  %v1111_v60 = vmul.f32 %v3595_v45, %v4458_v51  ;;  %v3597_v59 = vpop.eup %3596 }
  0xd7   : > { %3604 = vrsqrt.f32 %v4525_v13  ;;  %v803_v16 = vmul.f32 %v3597_v59, %v4430_v52  ;;  %v3599_v25 = vpop.eup %3598  ;;  %vm832_vm15 = vcmp.eq.f32.partialorder %v4525_v13, inf  ;;  %v835_v32 = vand.u32 2147483648, %v4525_v13 }
  0xd8   : > { %v1113_v5 = vsel %vm1112_vm6, %v4458_v51, %v1111_v60  ;;  %v4567_v28 = vpop.xlane.xlu0 %748  ;;  %v810_v47 = vmul.f32 %v3599_v25, %v4444_v14  ;;  %vm834_vm0 = vcmp.eq.f32.partialorder %v4525_v13, 0.0  ;;  %v1413_v29 = vmul.f32 %v4482_v31, %v1391_v6 }
  0xd9   : > { %v1116_v26 = vsel %vm1114_vm7, %v1115_v49, %v1113_v5  ;;  %1793 = vperm.xlu1 %3533, %v1319_v56   ;;  %v805_v21 = vsel %vm804_vm9, %v4430_v52, %v803_v16  ;;  %vm1121_vm6 = vcmp.eq.f32.partialorder %v4423_v1, 0.0  ;;  %v1122_v5 = vand.u32 2147483648, %v4423_v1  ;;  %v3566_v16 = vld [vmem:[%s5541_s11 + $0x30] sm:$0xff]  }
  0xda   : > { %v4555_v23 = vpop.xlane.xlu1 %1041  ;;  %v1392_v48 = vsub.f32 %v1116_v26, %v4468_v9  ;;  %v808_v41 = vsel %vm806_vm10, %v807_v15, %v805_v21  ;;  %v812_v38 = vsel %vm811_vm11, %v4444_v14, %v810_v47  ;;  %v3565_v14 = vld [vmem:[%s5541_s11 + $0x28] sm:$0xff]   ;;  %vm818_vm7 = vcmp.eq.f32.partialorder %v4486_v50, inf }
  0xdb   : > { %3606 = vrsqrt.f32 %v4555_v23  ;;  %v3601_v53 = vpop.eup %3600  ;;  %v1298_v34 = vsub.f32 %v808_v41, %v4468_v9  ;;  %v815_v55 = vsel %vm813_vm12, %v814_v19, %v812_v38  ;;  %vm1140_vm4 = vcmp.eq.f32.partialorder %v4555_v23, inf  ;;  %3407 = vmatpush3.bf16.msra.mxu0 %v3565_v14 }
  0xdc   : > { %3608 = vrsqrt.f32 %v4486_v50  ;;  %v1414_v51 = vmul.f32 %v4482_v31, %v1392_v48  ;;  %v3603_v37 = vpop.eup %3602  ;;  %v852_v44 = vmul.f32 %v3601_v53, %v4511_v0  ;;  %v4590_v11 = vpop.xlane.xlu0 %1056  ;;  %vm1142_vm5 = vcmp.eq.f32.partialorder %v4555_v23, 0.0  ;;  %3408 = vmatprep.subr.bf16.mxu0 %v3721_v3 }
  0xdd   : > { %3610 = vrsqrt.f32 %v4454_v8  ;;  %3534 = vset.pattern.permute.xlu1 %v3725_v22  ;;  %v1118_v57 = vmul.f32 %v3603_v37, %v4423_v1  ;;  %v1320_v25 = vmul.f32 %v4482_v31, %v1298_v34  ;;  %v1299_v56 = vsub.f32 %v815_v55, %v4468_v9 }
  0xde   : > { %v4575_v63 = vpop.xlane.xlu1 %739  ;;  %1958 = vperm.xlu0 %3536, %v1414_v51   ;;  %3612 = vrsqrt.f32 %v4502_v58  ;;  %1948 = vperm.xlu1 %3534, %v1412_v27   ;;  %v854_v52 = vsel %vm853_vm13, %v4511_v0, %v852_v44  ;;  %v1143_v0 = vand.u32 2147483648, %v4555_v23  ;;  %v821_v47 = vand.u32 2147483648, %v4486_v50  ;;  %v3567_v44 = vld [vmem:[%s5541_s11 + $0x38] sm:$0xff]  }
  0xdf   : > { %3614 = vrsqrt.f32 %v4472_v12  ;;  %v857_v46 = vsel %vm855_vm14, %v856_v4, %v854_v52  ;;  %v1120_v42 = vsel %vm1119_vm1, %v4423_v1, %v1118_v57  ;;  %3409 = vmatpush3.bf16.msra.mxu0 %v3566_v16  ;;  %vm1133_vm9 = vcmp.eq.f32.partialorder %v4454_v8, inf }
  0xe0   : > { %v4622_v49 = vpop.xlane.xlu0 %754  ;;  %v1305_v62 = vsub.f32 %v857_v46, %v4468_v9  ;;  %v1123_v21 = vsel %vm1121_vm6, %v1122_v5, %v1120_v42  ;;  %3410 = vmatprep.subr.bf16.mxu0 %v3721_v3  ;;  %vm1135_vm10 = vcmp.eq.f32.partialorder %v4454_v8, 0.0  ;;  %v1136_v38 = vand.u32 2147483648, %v4454_v8 }
  0xe1   : > { %v3605_v35 = vpop.eup %3604  ;;  %v1393_v6 = vsub.f32 %v1123_v21, %v4468_v9  ;;  %vm1128_vm11 = vcmp.eq.f32.partialorder %v4502_v58, 0.0  ;;  %vm839_vm12 = vcmp.eq.f32.partialorder %v4472_v12, inf  ;;  %vm841_vm13 = vcmp.eq.f32.partialorder %v4472_v12, 0.0 }
  0xe2   : > { %v4598_v33 = vpop.xlane.xlu1 %1047  ;;  %3539 = vset.pattern.permute.xlu0 %v3724_v43  ;;  %v831_v40 = vmul.f32 %v3605_v35, %v4525_v13  ;;  %1953 = vperm.xlu1 %3534, %v1413_v29   ;;  %v1327_v15 = vmul.f32 %v4482_v31, %v1305_v62  ;;  %v842_v55 = vand.u32 2147483648, %v4472_v12  ;;  %vm1147_vm6 = vcmp.eq.f32.partialorder %v4494_v36, inf }
  0xe3   : > { %1813 = vperm.xlu0 %3539, %v1323_v24   ;;  %v1321_v24 = vmul.f32 %v4482_v31, %v1299_v56  ;;  %3411 = vmatpush3.bf16.msra.mxu0 %v3567_v44  ;;  %v1415_v29 = vmul.f32 %v4482_v31, %v1393_v6  ;;  %v884_v56 = vand.u32 2147483648, %v4622_v49 }
  0xe4   : > { %v833_v45 = vsel %vm832_vm15, %v4525_v13, %v831_v40  ;;  %v4649_v48 = vpop.xlane.xlu0 %1062 }
  0xe5   : > { %v3607_v18 = vpop.eup %3606  ;;  %v836_v60 = vsel %vm834_vm0, %v835_v32, %v833_v45  ;;  %v1129_v32 = vand.u32 2147483648, %v4502_v58 }
  0xe6   : > { %v3609_v59 = vpop.eup %3608  ;;  %v4629_v20 = vpop.xlane.xlu1 %745  ;;  %v1302_v13 = vsub.f32 %v836_v60, %v4468_v9  ;;  %v1139_v7 = vmul.f32 %v3607_v18, %v4555_v23  ;;  %3535 = vset.pattern.permute.xlu1 %v3724_v43 }
  0xe7   : > { %3616 = vrsqrt.f32 %v4629_v20  ;;  %v3611_v54 = vpop.eup %3610  ;;  %v817_v61 = vmul.f32 %v3609_v59, %v4486_v50  ;;  %1798 = vperm.xlu1 %3535, %v1320_v25   ;;  %vm860_vm14 = vcmp.eq.f32.partialorder %v4629_v20, inf  ;;  %vm862_vm15 = vcmp.eq.f32.partialorder %v4629_v20, 0.0 }
  0xe8   : > { %v1324_v26 = vmul.f32 %v4482_v31, %v1302_v13  ;;  %v1141_v30 = vsel %vm1140_vm4, %v4555_v23, %v1139_v7  ;;  %3618 = vrsqrt.f32 %v4622_v49  ;;  %v3613_v51 = vpop.eup %3612  ;;  %v4672_v53 = vpop.xlane.xlu0 %760  ;;  %v1132_v1 = vmul.f32 %v3611_v54, %v4454_v8 }
  0xe9   : > { %v1144_v10 = vsel %vm1142_vm5, %v1143_v0, %v1141_v30  ;;  %v3615_v27 = vpop.eup %3614  ;;  %v819_v4 = vsel %vm818_vm7, %v4486_v50, %v817_v61  ;;  %v1125_v37 = vmul.f32 %v3613_v51, %v4502_v58  ;;  %v863_v59 = vand.u32 2147483648, %v4629_v20 }
  0xea   : > { %v4661_v17 = vpop.xlane.xlu1 %1053  ;;  %1818 = vperm.xlu0 %3539, %v1324_v26   ;;  %v1396_v23 = vsub.f32 %v1144_v10, %v4468_v9  ;;  %v822_v19 = vsel %vm820_vm8, %v821_v47, %v819_v4  ;;  %v1134_v46 = vsel %vm1133_vm9, %v4454_v8, %v1132_v1  ;;  %v838_v18 = vmul.f32 %v3615_v27, %v4472_v12 }
  0xeb   : > { %3620 = vrsqrt.f32 %v4661_v17  ;;  %1803 = vperm.xlu1 %3535, %v1321_v24   ;;  %v1127_v2 = vsel %vm1126_vm3, %v4502_v58, %v1125_v37  ;;  %v1300_v45 = vsub.f32 %v822_v19, %v4468_v9  ;;  %v1137_v0 = vsel %vm1135_vm10, %v1136_v38, %v1134_v46 }
  0xec   : > { %3622 = vrsqrt.f32 %v4494_v36  ;;  %v1418_v41 = vmul.f32 %v4482_v31, %v1396_v23  ;;  %v4693_v40 = vpop.xlane.xlu0 %1068  ;;  %v1130_v60 = vsel %vm1128_vm11, %v1129_v32, %v1127_v2  ;;  %vm1168_vm0 = vcmp.eq.f32.partialorder %v4661_v17, inf }
  0xed   : > { %3624 = vrsqrt.f32 %v4575_v63  ;;  %v1171_v14 = vand.u32 2147483648, %v4661_v17  ;;  %vm1170_vm1 = vcmp.eq.f32.partialorder %v4661_v17, 0.0  ;;  %vm881_vm4 = vcmp.eq.f32.partialorder %v4622_v49, inf }
  0xee   : > { %1833 = vperm.xlu0 %3539, %v1327_v15   ;;  %v4683_v35 = vpop.xlane.xlu1 %751  ;;  %v1322_v42 = vmul.f32 %v4482_v31, %v1300_v45  ;;  %v1394_v26 = vsub.f32 %v1130_v60, %v4468_v9  ;;  %v840_v30 = vsel %vm839_vm12, %v4472_v12, %v838_v18  ;;  %vm883_vm5 = vcmp.eq.f32.partialorder %v4622_v49, 0.0 }
  0xef   : > { %3537 = vset.pattern.permute.xlu1 %v3725_v22  ;;  %v1150_v27 = vand.u32 2147483648, %v4494_v36  ;;  %vm1149_vm7 = vcmp.eq.f32.partialorder %v4494_v36, 0.0  ;;  %vm846_vm8 = vcmp.eq.f32.partialorder %v4575_v63, inf  ;;  %vm848_vm10 = vcmp.eq.f32.partialorder %v4575_v63, 0.0 }
  0xf0   : > { %1963 = vperm.xlu1 %3537, %v1415_v29   ;;  %v4717_v13 = vpop.xlane.xlu0 %766  ;;  %v1416_v47 = vmul.f32 %v4482_v31, %v1394_v26 }
  0xf1   : > { %v3617_v52 = vpop.eup %3616  ;;  %3626 = vrsqrt.f32 %v4717_v13  ;;  %vm909_vm11 = vcmp.eq.f32.partialorder %v4717_v13, inf }
  0xf2   : > { %v3619_v50 = vpop.eup %3618  ;;  %3544 = vset.pattern.permute.xlu0 %v3725_v22  ;;  %v4701_v34 = vpop.xlane.xlu1 %1059  ;;  %v859_v57 = vmul.f32 %v3617_v52, %v4629_v20 }
  0xf3   : > { %1978 = vperm.xlu0 %3544, %v1418_v41   ;;  %v880_v7 = vmul.f32 %v3619_v50, %v4622_v49 }
  0xf4   : > { %v861_v58 = vsel %vm860_vm14, %v4629_v20, %v859_v57  ;;  %3538 = vset.pattern.permute.xlu1 %v3724_v43  ;;  %v1395_v20 = vsub.f32 %v1137_v0, %v4468_v9  ;;  %v849_v0 = vand.u32 2147483648, %v4575_v63  ;;  %vm1154_vm14 = vcmp.eq.f32.partialorder %v4598_v33, inf }
  0xf5   : > { %v3621_v62 = vpop.eup %3620  ;;  %v864_v25 = vsel %vm862_vm15, %v863_v59, %v861_v58  ;;  %1808 = vperm.xlu1 %3538, %v1322_v42   ;;  %v882_v51 = vsel %vm881_vm4, %v4622_v49, %v880_v7  ;;  %vm911_vm15 = vcmp.eq.f32.partialorder %v4717_v13, 0.0  ;;  %vm1163_vm4 = vcmp.eq.f32.partialorder %v4547_v39, 0.0 }
  0xf6   : > { %v3623_v5 = vpop.eup %3622  ;;  %v4725_v8 = vpop.xlane.xlu1 %757  ;;  %v1167_v54 = vmul.f32 %v3621_v62, %v4661_v17  ;;  %v1306_v23 = vsub.f32 %v864_v25, %v4468_v9  ;;  %v885_v24 = vsel %vm883_vm5, %v884_v56, %v882_v51  ;;  %v1417_v19 = vmul.f32 %v4482_v31, %v1395_v20 }
  0xf7   : > { %3628 = vrsqrt.f32 %v4725_v8  ;;  %v1146_v61 = vmul.f32 %v3623_v5, %v4494_v36  ;;  %v3625_v4 = vpop.eup %3624  ;;  %v1309_v6 = vsub.f32 %v885_v24, %v4468_v9  ;;  %vm888_vm3 = vcmp.eq.f32.partialorder %v4725_v8, inf }
  0xf8   : > { %3630 = vrsqrt.f32 %v4598_v33  ;;  %v1169_v16 = vsel %vm1168_vm0, %v4661_v17, %v1167_v54  ;;  %v843_v17 = vsel %vm841_vm13, %v842_v55, %v840_v30  ;;  %v1328_v44 = vmul.f32 %v4482_v31, %v1306_v23 }
  0xf9   : > { %v1172_v10 = vsel %vm1170_vm1, %v1171_v14, %v1169_v16  ;;  %3632 = vrsqrt.f32 %v4547_v39  ;;  %3540 = vset.pattern.permute.xlu1 %v3725_v22  ;;  %v1148_v37 = vsel %vm1147_vm6, %v4494_v36, %v1146_v61  ;;  %v1303_v12 = vsub.f32 %v843_v17, %v4468_v9 }
  0xfa   : > { %v1400_v15 = vsub.f32 %v1172_v10, %v4468_v9  ;;  %v4748_v21 = vpop.xlane.xlu1 %1065  ;;  %1968 = vperm.xlu1 %3540, %v1416_v47   ;;  %v1151_v32 = vsel %vm1149_vm7, %v1150_v27, %v1148_v37  ;;  %v845_v38 = vmul.f32 %v3625_v4, %v4575_v63  ;;  %v891_v36 = vand.u32 2147483648, %v4725_v8 }
  0xfb   : > { %3634 = vrsqrt.f32 %v4748_v21  ;;  %v3627_v41 = vpop.eup %3626  ;;  %v1325_v46 = vmul.f32 %v4482_v31, %v1303_v12  ;;  %vm890_vm9 = vcmp.eq.f32.partialorder %v4725_v8, 0.0  ;;  %v1397_v57 = vsub.f32 %v1151_v32, %v4468_v9 }
  0xfc   : > { %v1422_v49 = vmul.f32 %v4482_v31, %v1400_v15  ;;  %3636 = vrsqrt.f32 %v4567_v28  ;;  %v908_v45 = vmul.f32 %v3627_v41, %v4717_v13  ;;  %v1331_v18 = vmul.f32 %v4482_v31, %v1309_v6 }
  0xfd   : > { %3638 = vrsqrt.f32 %v4590_v11  ;;  %v847_v60 = vsel %vm846_vm8, %v4575_v63, %v845_v38  ;;  %vm1196_vm12 = vcmp.eq.f32.partialorder %v4748_v21, inf  ;;  %v1199_v58 = vand.u32 2147483648, %v4748_v21 }
  0xfe   : > { %1998 = vperm.xlu0 %3544, %v1422_v49   ;;  %v4763_v1 = vpop.xlane.xlu1 %763  ;;  %1973 = vperm.xlu1 %3540, %v1417_v19   ;;  %vm1198_vm13 = vcmp.eq.f32.partialorder %v4748_v21, 0.0  ;;  %v910_v26 = vsel %vm909_vm11, %v4717_v13, %v908_v45  ;;  %v850_v16 = vsel %vm848_vm10, %v849_v0, %v847_v60  ;;  %v1419_v61 = vmul.f32 %v4482_v31, %v1397_v57 }
  0xff   : > { %vm1156_vm0 = vcmp.eq.f32.partialorder %v4598_v33, 0.0  ;;  %v1157_v10 = vand.u32 2147483648, %v4598_v33  ;;  %vm1161_vm1 = vcmp.eq.f32.partialorder %v4547_v39, inf  ;;  %v1164_v47 = vand.u32 2147483648, %v4547_v39 }
 0x100   : > { %vm867_vm5 = vcmp.eq.f32.partialorder %v4567_v28, inf  ;;  %vm869_vm8 = vcmp.eq.f32.partialorder %v4567_v28, 0.0  ;;  %vm1177_vm11 = vcmp.eq.f32.partialorder %v4590_v11, 0.0 }
 0x101   : > { %v3629_v52 = vpop.eup %3628 }
 0x102   : > { %v3631_v2 = vpop.eup %3630  ;;  %3547 = vset.pattern.permute.xlu0 %v3724_v43  ;;  %v4776_v50 = vpop.xlane.xlu1 %1071  ;;  %v887_v29 = vmul.f32 %v3629_v52, %v4725_v8  ;;  %3541 = vset.pattern.permute.xlu1 %v3724_v43 }
 0x103   : > { %1838 = vperm.xlu0 %3547, %v1328_v44   ;;  %v3633_v55 = vpop.eup %3632  ;;  %v1153_v7 = vmul.f32 %v3631_v2, %v4598_v33  ;;  %1823 = vperm.xlu1 %3541, %v1325_v46  }
 0x104   : > { %v889_v59 = vsel %vm888_vm3, %v4725_v8, %v887_v29  ;;  %v912_v8 = vand.u32 2147483648, %v4717_v13  ;;  %v1160_v30 = vmul.f32 %v3633_v55, %v4547_v39  ;;  %v4834_v37 = vpop.f32.mrb[0].mxu1  ;;  %vm1175_vm3 = vcmp.eq.f32.partialorder %v4590_v11, inf }
 0x105   : > { %v3635_v62 = vpop.eup %3634  ;;  %v892_v14 = vsel %vm890_vm9, %v891_v36, %v889_v59  ;;  %v1155_v13 = vsel %vm1154_vm14, %v4598_v33, %v1153_v7  ;;  %v3354_v6 = vpop.f32.mrb[1].mxu1  ;;  %v870_v36 = vand.u32 2147483648, %v4567_v28  ;;  %vm1182_vm14 = vcmp.eq.f32.partialorder %v4701_v34, inf }
 0x106   : > { %v4796_v5 = vpop.xlane.xlu1 %769  ;;  %v1310_v54 = vsub.f32 %v892_v14, %v4468_v9  ;;  %v1195_v42 = vmul.f32 %v3635_v62, %v4748_v21  ;;  %v913_v20 = vsel %vm911_vm15, %v912_v8, %v910_v26  ;;  %v3637_v17 = vpop.eup %3636  ;;  %v1158_v27 = vsel %vm1156_vm0, %v1157_v10, %v1155_v13 }
 0x107   : > { %1853 = vperm.xlu0 %3547, %v1331_v18   ;;  %3640 = vrsqrt.f32 %v4796_v5  ;;  %3542 = vset.pattern.permute.xlu1 %v3725_v22  ;;  %v3639_v23 = vpop.eup %3638  ;;  %v1162_v24 = vsel %vm1161_vm1, %v4547_v39, %v1160_v30  ;;  %v1313_v4 = vsub.f32 %v913_v20, %v4468_v9  ;;  %v866_v12 = vmul.f32 %v3637_v17, %v4567_v28  ;;  %v4842_v39 = vpop.f32.mrb[2].mxu1 }
 0x108   : > { %v1332_v25 = vmul.f32 %v4482_v31, %v1310_v54  ;;  %v1197_v56 = vsel %vm1196_vm12, %v4748_v21, %v1195_v42  ;;  %v1304_v21 = vsub.f32 %v850_v16, %v4468_v9  ;;  %1983 = vperm.xlu1 %3542, %v1419_v61   ;;  %v1398_v33 = vsub.f32 %v1158_v27, %v4468_v9  ;;  %v3355_v52 = vpop.f32.mrb[3].mxu1 }
 0x109   : > { %v1200_v51 = vsel %vm1198_vm13, %v1199_v58, %v1197_v56  ;;  %v1165_v41 = vsel %vm1163_vm4, %v1164_v47, %v1162_v24  ;;  %v1335_v32 = vmul.f32 %v4482_v31, %v1313_v4  ;;  %vm916_vm6 = vcmp.eq.f32.partialorder %v4796_v5, inf }
 0x10a   : > { %v4819_v15 = vpop.xlane.xlu1 %1077  ;;  %v1404_v63 = vsub.f32 %v1200_v51, %v4468_v9  ;;  %v1326_v44 = vmul.f32 %v4482_v31, %v1304_v21  ;;  %v919_v38 = vand.u32 2147483648, %v4796_v5  ;;  %vm918_vm7 = vcmp.eq.f32.partialorder %v4796_v5, 0.0 }
 0x10b   : > { %1858 = vperm.xlu0 %3547, %v1332_v25   ;;  %3642 = vrsqrt.f32 %v4819_v15  ;;  %v1399_v46 = vsub.f32 %v1165_v41, %v4468_v9  ;;  %v868_v29 = vsel %vm867_vm5, %v4567_v28, %v866_v12  ;;  %v1174_v57 = vmul.f32 %v3639_v23, %v4590_v11 }
 0x10c   : > { %3644 = vrsqrt.f32 %v4683_v35  ;;  %v1426_v49 = vmul.f32 %v4482_v31, %v1404_v63  ;;  %3543 = vset.pattern.permute.xlu1 %v3724_v43  ;;  %v1420_v45 = vmul.f32 %v4482_v31, %v1398_v33  ;;  %vm1224_vm9 = vcmp.eq.f32.partialorder %v4819_v15, inf  ;;  %v4866_v14 = vpop.f32.mrb[4].mxu1 }
 0x10d   : > { %3646 = vrsqrt.f32 %v4701_v34  ;;  %1828 = vperm.xlu1 %3543, %v1326_v44   ;;  %v1227_v28 = vand.u32 2147483648, %v4819_v15  ;;  %v871_v59 = vsel %vm869_vm8, %v870_v36, %v868_v29  ;;  %vm1226_vm10 = vcmp.eq.f32.partialorder %v4819_v15, 0.0  ;;  %v3358_v54 = vpop.f32.mrb[5].mxu1 }
 0x10e   : > { %3648 = vrsqrt.f32 %v4649_v48  ;;  %v1421_v58 = vmul.f32 %v4482_v31, %v1399_v46  ;;  %v1176_v42 = vsel %vm1175_vm3, %v4590_v11, %v1174_v57  ;;  %v4874_v30 = vpop.f32.mrb[6].mxu1  ;;  %v1307_v16 = vsub.f32 %v871_v59, %v4468_v9  ;;  %v4914_v46 = vpop.xlane.xlu0 %1074 }
 0x10f   : > { %3552 = vset.pattern.permute.xlu0 %v3725_v22  ;;  %v3359_v61 = vpop.f32.mrb[7].mxu1  ;;  %3650 = vrsqrt.f32 %v4672_v53  ;;  %vm874_vm12 = vcmp.eq.f32.partialorder %v4683_v35, inf  ;;  %v877_v13 = vand.u32 2147483648, %v4683_v35  ;;  %vm876_vm13 = vcmp.eq.f32.partialorder %v4683_v35, 0.0 }
 0x110   : > { %2018 = vperm.xlu0 %3552, %v1426_v49   ;;  %v1329_v63 = vmul.f32 %v4482_v31, %v1307_v16  ;;  %3652 = vrsqrt.f32 %v4693_v40  ;;  %v1185_v24 = vand.u32 2147483648, %v4701_v34  ;;  %vm1184_vm15 = vcmp.eq.f32.partialorder %v4701_v34, 0.0 }
 0x111   : > { %v3641_v19 = vpop.eup %3640  ;;  %3545 = vset.pattern.permute.xlu1 %v3725_v22  ;;  %vm1189_vm0 = vcmp.eq.f32.partialorder %v4649_v48, inf  ;;  %3654 = vrsqrt.f32 %v4763_v1  ;;  %vm1191_vm1 = vcmp.eq.f32.partialorder %v4649_v48, 0.0  ;;  %vm895_vm4 = vcmp.eq.f32.partialorder %v4672_v53, inf }
 0x112   : > { %v915_v2 = vmul.f32 %v3641_v19, %v4796_v5  ;;  %1988 = vperm.xlu1 %3545, %v1420_v45   ;;  %3656 = vrsqrt.f32 %v4776_v50  ;;  %vm897_vm5 = vcmp.eq.f32.partialorder %v4672_v53, 0.0  ;;  %vm902_vm8 = vcmp.eq.f32.partialorder %v4763_v1, inf }
 0x113   : > { %3658 = vrsqrt.f32 %v4914_v46  ;;  %vm904_vm3 = vcmp.eq.f32.partialorder %v4763_v1, 0.0 }
 0x114   : > { %3555 = vset.pattern.permute.xlu0 %v3724_v43  ;;  %v917_v18 = vsel %vm916_vm6, %v4796_v5, %v915_v2  ;;  %v1178_v5 = vand.u32 2147483648, %v4590_v11  ;;  %v4890_v47 = vpop.f32.mrb[8].mxu1  ;;  %vm1203_vm6 = vcmp.eq.f32.partialorder %v4693_v40, inf }
 0x115   : > { %v3643_v55 = vpop.eup %3642  ;;  %1873 = vperm.xlu0 %3555, %v1335_v32   ;;  %v920_v60 = vsel %vm918_vm7, %v919_v38, %v917_v18  ;;  %v3362_v49 = vpop.f32.mrb[9].mxu1  ;;  %v1192_v32 = vand.u32 2147483648, %v4649_v48  ;;  %vm1205_vm7 = vcmp.eq.f32.partialorder %v4693_v40, 0.0 }
 0x116   : > { %v3645_v0 = vpop.eup %3644  ;;  %v1314_v62 = vsub.f32 %v920_v60, %v4468_v9  ;;  %v1223_v7 = vmul.f32 %v3643_v55, %v4819_v15  ;;  %1993 = vperm.xlu1 %3545, %v1421_v58   ;;  %v1179_v51 = vsel %vm1177_vm11, %v1178_v5, %v1176_v42  ;;  %v898_v55 = vand.u32 2147483648, %v4672_v53 }
 0x117   : > { %v873_v25 = vmul.f32 %v3645_v0, %v4683_v35  ;;  %v3647_v10 = vpop.eup %3646  ;;  %v1401_v21 = vsub.f32 %v1179_v51, %v4468_v9  ;;  %vm1217_vm11 = vcmp.eq.f32.partialorder %v4914_v46, inf }
 0x118   : > { %v1336_v8 = vmul.f32 %v4482_v31, %v1314_v62  ;;  %v1225_v26 = vsel %vm1224_vm9, %v4819_v15, %v1223_v7  ;;  %v3649_v17 = vpop.eup %3648  ;;  %v1181_v23 = vmul.f32 %v3647_v10, %v4701_v34  ;;  %v4929_v7 = vpop.xlane.xlu0 %772  ;;  %vm1210_vm9 = vcmp.eq.f32.partialorder %v4776_v50, inf }
 0x119   : > { %v1228_v56 = vsel %vm1226_vm10, %v1227_v28, %v1225_v26  ;;  %v875_v20 = vsel %vm874_vm12, %v4683_v35, %v873_v25  ;;  %v4894_v35 = vpop.f32.mrb[10].mxu1  ;;  %v1188_v12 = vmul.f32 %v3649_v17, %v4649_v48  ;;  %v1423_v44 = vmul.f32 %v4482_v31, %v1401_v21  ;;  %v3651_v41 = vpop.eup %3650 }
 0x11a   : > { %1878 = vperm.xlu0 %3555, %v1336_v8   ;;  %v1408_v11 = vsub.f32 %v1228_v56, %v4468_v9  ;;  %3546 = vset.pattern.permute.xlu1 %v3724_v43  ;;  %v878_v27 = vsel %vm876_vm13, %v877_v13, %v875_v20  ;;  %v3363_v4 = vpop.f32.mrb[11].mxu1  ;;  %v1183_v6 = vsel %vm1182_vm14, %v4701_v34, %v1181_v23  ;;  %v3653_v45 = vpop.eup %3652  ;;  %3660 = vrsqrt.f32 %v4929_v7 }
 0x11b   : > { %1843 = vperm.xlu1 %3546, %v1329_v63   ;;  %v1308_v33 = vsub.f32 %v878_v27, %v4468_v9  ;;  %v1186_v19 = vsel %vm1184_vm15, %v1185_v24, %v1183_v6  ;;  %v1190_v38 = vsel %vm1189_vm0, %v4649_v48, %v1188_v12  ;;  %v894_v34 = vmul.f32 %v3651_v41, %v4672_v53  ;;  %v3655_v62 = vpop.eup %3654 }
 0x11c   : > { %v1430_v15 = vmul.f32 %v4482_v31, %v1408_v11  ;;  %v4908_v52 = vpop.f32.mrb[12].mxu1  ;;  %v1402_v29 = vsub.f32 %v1186_v19, %v4468_v9  ;;  %v1193_v48 = vsel %vm1191_vm1, %v1192_v32, %v1190_v38  ;;  %v1202_v28 = vmul.f32 %v3653_v45, %v4693_v40  ;;  %v3657_v61 = vpop.eup %3656 }
 0x11d   : > { %v1330_v36 = vmul.f32 %v4482_v31, %v1308_v33  ;;  %v3366_v2 = vpop.f32.mrb[13].mxu1  ;;  %v896_v60 = vsel %vm895_vm4, %v4672_v53, %v894_v34  ;;  %v1403_v59 = vsub.f32 %v1193_v48, %v4468_v9  ;;  %v1206_v53 = vand.u32 2147483648, %v4693_v40  ;;  %v4943_v10 = vpop.xlane.xlu0 %1080 }
 0x11e   : > { %3558 = vset.pattern.permute.xlu0 %v3725_v22  ;;  %v4917_v57 = vpop.f32.mrb[14].mxu1  ;;  %v1424_v0 = vmul.f32 %v4482_v31, %v1402_v29  ;;  %v899_v58 = vsel %vm897_vm5, %v898_v55, %v896_v60  ;;  %v1204_v42 = vsel %vm1203_vm6, %v4693_v40, %v1202_v28  ;;  %v901_v16 = vmul.f32 %v3655_v62, %v4763_v1  ;;  %v3659_v17 = vpop.eup %3658 }
 0x11f   : > { %2038 = vperm.xlu0 %3558, %v1430_v15   ;;  %3548 = vset.pattern.permute.xlu1 %v3725_v22  ;;  %v3367_v18 = vpop.f32.mrb[15].mxu1  ;;  %v1425_v8 = vmul.f32 %v4482_v31, %v1403_v59  ;;  %v1311_v25 = vsub.f32 %v899_v58, %v4468_v9  ;;  %v1207_v11 = vsel %vm1205_vm7, %v1206_v53, %v1204_v42  ;;  %v905_v40 = vand.u32 2147483648, %v4763_v1 }
 0x120   : > { %2003 = vperm.xlu1 %3548, %v1423_v44   ;;  %v903_v13 = vsel %vm902_vm8, %v4763_v1, %v901_v16  ;;  %v1209_v15 = vmul.f32 %v3657_v61, %v4776_v50  ;;  %v1405_v63 = vsub.f32 %v1207_v11, %v4468_v9  ;;  %3662 = vrsqrt.f32 %v4943_v10 }
 0x121   : > { %v1333_v51 = vmul.f32 %v4482_v31, %v1311_v25  ;;  %v906_v23 = vsel %vm904_vm3, %v905_v40, %v903_v13  ;;  %v1213_v1 = vand.u32 2147483648, %v4776_v50  ;;  %v1216_v24 = vmul.f32 %v3659_v17, %v4914_v46 }
 0x122   : > { %v1427_v4 = vmul.f32 %v4482_v31, %v1405_v63  ;;  %v1211_v12 = vsel %vm1210_vm9, %v4776_v50, %v1209_v15  ;;  %vm1212_vm10 = vcmp.eq.f32.partialorder %v4776_v50, 0.0  ;;  %v1312_v44 = vsub.f32 %v906_v23, %v4468_v9  ;;  %v1774_v15 = vld [vmem:[%s5537_s7] sm:$0x1] }
 0x123   : > { %v1220_v33 = vand.u32 2147483648, %v4914_v46  ;;  %v1214_v41 = vsel %vm1212_vm10, %v1213_v1, %v1211_v12  ;;  %v1218_v19 = vsel %vm1217_vm11, %v4914_v46, %v1216_v24  ;;  %vm1219_vm12 = vcmp.eq.f32.partialorder %v4914_v46, 0.0 }
 0x124   : > { %3549 = vset.pattern.permute.xlu1 %v3724_v43  ;;  %v4931_v5 = vpop.f32.mrb[16].mxu1  ;;  %v3661_v6 = vpop.eup %3660  ;;  %v1334_v50 = vmul.f32 %v4482_v31, %v1312_v44  ;;  %vm923_vm13 = vcmp.eq.f32.partialorder %v4929_v7, inf  ;;  %v926_v46 = vand.u32 2147483648, %v4929_v7  ;;  %vm925_vm14 = vcmp.eq.f32.partialorder %v4929_v7, 0.0 }
 0x125   : > { %1848 = vperm.xlu1 %3549, %v1330_v36   ;;  %v3370_v54 = vpop.f32.mrb[17].mxu1  ;;  %v922_v38 = vmul.f32 %v3661_v6, %v4929_v7  ;;  %v1406_v36 = vsub.f32 %v1214_v41, %v4468_v9  ;;  %v1221_v45 = vsel %vm1219_vm12, %v1220_v33, %v1218_v19  ;;  %v3710_v9 = vld [vmem:[%s5534_s4] ss:$0 sm:$0xff]  ;;  %vm1231_vm15 = vcmp.eq.f32.partialorder %v4943_v10, inf }
 0x126   : > { %v4937_v26 = vpop.f32.mrb[18].mxu1  ;;  %v1407_v28 = vsub.f32 %v1221_v45, %v3710_v9  ;;  %v1234_v62 = vand.u32 2147483648, %v4943_v10  ;;  %vm1233_vm0 = vcmp.eq.f32.partialorder %v4943_v10, 0.0  ;;  %v1886_v16 = vlaneseq }
 0x127   : > { %v3371_v56 = vpop.f32.mrb[19].mxu1  ;;  %v924_v18 = vsel %vm923_vm13, %v4929_v7, %v922_v38  ;;  %v1428_v60 = vmul.f32 %v4482_v31, %v1406_v36  ;;  %v3711_v31 = vld [vmem:[%s5535_s5] ss:$0 sm:$0xff] }
 0x128   : > { %v1429_v53 = vmul.f32 %v3711_v31, %v1407_v28 }
 0x129   : > { %3550 = vset.pattern.permute.xlu1 %v3725_v22 }
 0x12a   : > { %2008 = vperm.xlu1 %3550, %v1424_v0   ;;  %v3663_v29 = vpop.eup %3662  ;;  %v927_v0 = vsel %vm925_vm14, %v926_v46, %v924_v18 }
 0x12b   : > { %v1230_v55 = vmul.f32 %v3663_v29, %v4943_v10  ;;  %v1315_v42 = vsub.f32 %v927_v0, %v3710_v9 }
 0x12c   : > { %v4952_v20 = vpop.f32.mrb[20].mxu1 }
 0x12d   : > { %v3374_v21 = vpop.f32.mrb[21].mxu1  ;;  %v1232_v58 = vsel %vm1231_vm15, %v4943_v10, %v1230_v55  ;;  %v1337_v61 = vmul.f32 %v3711_v31, %v1315_v42  ;;  %v1887_v10 = vshrl.u32 %v1886_v16, 7 }
 0x12e   : > { %2013 = vperm.xlu1 %3550, %v1425_v8   ;;  %v4956_v49 = vpop.f32.mrb[22].mxu1  ;;  %v1235_v56 = vsel %vm1233_vm0, %v1234_v62, %v1232_v58  ;;  %v1934_v21 = vld [vmem:[%s5539_s9] sm:$0x1] }
 0x12f   : > { %v3375_v27 = vpop.f32.mrb[23].mxu1  ;;  %v1409_v11 = vsub.f32 %v1235_v56, %v3710_v9  ;;  %v1888_v1 = vsub.s32 0, %v1887_v10  ;;  %v1935_v24 = vunpack.c.l.bf16 %v1934_v21  ;;  %v5026_v9 = vld [vmem:[%s5540_s10] ss:$0 sm:$0xff] }
 0x131   : > { %v1431_v23 = vmul.f32 %v3711_v31, %v1409_v11  ;;  %v5016_v41 = vrot.slane %v1935_v24, %v1888_v1 }
 0x132   : > { %3551 = vset.pattern.permute.xlu1 %v3724_v43 }
 0x133   : > { %1863 = vperm.xlu1 %3551, %v1333_v51  }
 0x134   : > { %v4969_v32 = vpop.f32.mrb[24].mxu1 }
 0x135   : > { %v3378_v34 = vpop.f32.mrb[25].mxu1 }
 0x136   : > { %v4976_v2 = vpop.f32.mrb[26].mxu1 }
 0x137   : > { %3553 = vset.pattern.permute.xlu1 %v3725_v22  ;;  %v3379_v48 = vpop.f32.mrb[27].mxu1 }
 0x138   : > { %2023 = vperm.xlu1 %3553, %v1427_v4  }
 0x139   : > { %v1779_v25 = vpop.permute.xlu1 %1778 }
 0x13c   : > { %3554 = vset.pattern.permute.xlu1 %v3724_v43  ;;  %v4988_v59 = vpop.f32.mrb[28].mxu1 }
 0x13d   : > { %1868 = vperm.xlu1 %3554, %v1334_v50   ;;  %v3382_v7 = vpop.f32.mrb[29].mxu1  ;;  %v1784_v38 = vpop.permute.xlu0 %1783 }
 0x13e   : > { %v4996_v54 = vpop.f32.mrb[30].mxu1 }
 0x13f   : > { %v3383_v8 = vpop.f32.mrb[31].mxu1 }
 0x141   : > { %3556 = vset.pattern.permute.xlu1 %v3725_v22 }
 0x142   : > { %2028 = vperm.xlu1 %3556, %v1428_v60  }
 0x144   : > { %v4999_v40 = vpop.f32.mrb[32].mxu1 }
 0x145   : > { %v3386_v13 = vpop.f32.mrb[33].mxu1 }
 0x146   : > { %2033 = vperm.xlu1 %3556, %v1429_v53   ;;  %v5004_v63 = vpop.f32.mrb[34].mxu1 }
 0x147   : > { %v3387_v17 = vpop.f32.mrb[35].mxu1 }
 0x148   : > { %v3570_v17 = vld [vmem:[%s5543_s13 + $0x10] sm:$0xff]  }
 0x14a   : > { %3557 = vset.pattern.permute.xlu1 %v3724_v43  ;;  %v1775_v43 = vunpack.c.l.bf16 %v1774_v15 }
 0x14b   : > { %1883 = vperm.xlu1 %3557, %v1337_v61   ;;  %v1939_v51 = vpop.permute.xlu1 %1938 }
 0x14c   : > { %v5010_v4 = vpop.f32.mrb[36].mxu1  ;;  %v5012_v12 = vrot.slane %v1775_v43, %v1888_v1  ;;  %v2050_v46 = vmul.f32 %v5016_v41, %v1939_v51 }
 0x14d   : > { %v3390_v44 = vpop.f32.mrb[37].mxu1 }
 0x14e   : > { %v5014_v33 = vpop.f32.mrb[38].mxu1  ;;  %v1890_v34 = vmul.f32 %v5012_v12, %v1779_v25  ;;  %v1891_v48 = vmul.f32 %v5012_v12, %v1784_v38  ;;  %v3571_v38 = vld [vmem:[%s5543_s13 + $0x18] sm:$0xff]  }
 0x14f   : > { %3559 = vset.pattern.permute.xlu1 %v3725_v22  ;;  %v1944_v27 = vpop.permute.xlu1 %1943  ;;  %v3391_v19 = vpop.f32.mrb[39].mxu1 }
 0x150   : > { %2043 = vperm.xlu1 %3559, %v1431_v23   ;;  %v2051_v0 = vmul.f32 %v5016_v41, %v1944_v27 }
 0x154   : > { %v1789_v6 = vpop.permute.xlu1 %1788  ;;  %v5028_v28 = vpop.f32.mrb[40].mxu1 }
 0x155   : > { %v3394_v58 = vpop.f32.mrb[41].mxu1  ;;  %v1892_v56 = vmul.f32 %v5012_v12, %v1789_v6 }
 0x156   : > { %v1530_v50 = vpop.f32.mrb[0].mxu0  ;;  %v5034_v31 = vpop.f32.mrb[42].mxu1 }
 0x157   : > { %v1688_v22 = vadd.f32 %v4834_v37, %v1530_v50  ;;  %v3308_v36 = vpop.f32.mrb[1].mxu0  ;;  %v3568_v37 = vld [vmem:[%s5543_s13] sm:$0xff]   ;;  %v3395_v16 = vpop.f32.mrb[43].mxu1 }
 0x158   : > { %v1533_v29 = vpop.f32.mrb[2].mxu0  ;;  %v1794_v45 = vpop.permute.xlu1 %1793  ;;  %3457 = vmatpush3.bf16.msra.mxu1 %v3568_v37 }
 0x159   : > { %v1912_v18 = vadd.f32 %v1890_v34, %v1688_v22  ;;  %v1691_v55 = vadd.f32 %v4842_v39, %v1533_v29  ;;  %v3309_v60 = vpop.f32.mrb[3].mxu0  ;;  %v3569_v39 = vld [vmem:[%s5543_s13 + $0x8] sm:$0xff]   ;;  %3458 = vmatprep.subr.bf16.mxu1 %v3721_v3  ;;  %v1893_v51 = vmul.f32 %v5012_v12, %v1794_v45 }
 0x15b   : > { %v2072_v62 = vadd.f32 %v2050_v46, %v1912_v18  ;;  %v1913_v7 = vadd.f32 %v1891_v48, %v1691_v55  ;;  %v3572_v55 = vld [vmem:[%s5543_s13 + $0x20] sm:$0xff]  }
 0x15c   : > { %3459 = vmatpush3.bf16.msra.mxu1 %v3569_v39 }
 0x15d   : > { %v2101_v53 = vadd.f32 %v5026_v9, %v2072_v62  ;;  %v2073_v42 = vadd.f32 %v2051_v0, %v1913_v7  ;;  %v1949_v8 = vpop.permute.xlu1 %1948  ;;  %3460 = vmatprep.subr.bf16.mxu1 %v3721_v3  ;;  %v1959_v46 = vpop.permute.xlu0 %1958 }
 0x15e   : > { %v1538_v25 = vpop.f32.mrb[4].mxu0  ;;  %v2052_v13 = vmul.f32 %v5016_v41, %v1949_v8  ;;  %v2054_v39 = vmul.f32 %v5016_v41, %v1959_v46  ;;  %v3573_v8 = vld [vmem:[%s5543_s13 + $0x28] sm:$0xff]  }
 0x15f   : > { %v2102_v61 = vadd.f32 %v5026_v9, %v2073_v42  ;;  %v1696_v11 = vadd.f32 %v4866_v14, %v1538_v25  ;;  %v3312_v10 = vpop.f32.mrb[5].mxu0  ;;  %v2123_v21 = vmax.f32 %v2101_v53, 0.0 }
 0x160   : > { %v1541_v15 = vpop.f32.mrb[6].mxu0  ;;  %3461 = vmatpush3.bf16.msra.mxu1 %v3570_v17 }
 0x161   : > { %v2124_v23 = vmax.f32 %v2102_v61, 0.0  ;;  %v1914_v43 = vadd.f32 %v1892_v56, %v1696_v11  ;;  %v1699_v1 = vadd.f32 %v4874_v30, %v1541_v15  ;;  %v3313_v27 = vpop.f32.mrb[7].mxu0  ;;  %v1954_v24 = vpop.permute.xlu1 %1953  ;;  %3462 = vmatprep.subr.bf16.mxu1 %v3721_v3 }
 0x162   : > { %v2053_v14 = vmul.f32 %v5016_v41, %v1954_v24  ;;  %v1814_v42 = vpop.permute.xlu0 %1813 }
 0x163   : > { %v2145_v44 = vpack.c.bf16 %v2124_v23, %v2123_v21  ;;  %v2074_v6 = vadd.f32 %v2052_v13, %v1914_v43  ;;  %v1915_v19 = vadd.f32 %v1893_v51, %v1699_v1 }
 0x164   : > { %3463 = vmatpush3.bf16.msra.mxu1 %v3571_v38 }
 0x165   : > { %v2075_v50 = vadd.f32 %v2053_v14, %v1915_v19  ;;  %3413 = vmatmul.mubr.bf16.vlgmr.msra.gmra.mrb[44].mxu0 %v2145_v44  ;;  %v2103_v34 = vadd.f32 %v5026_v9, %v2074_v6  ;;  %3464 = vmatprep.subr.bf16.mxu1 %v3721_v3 }
 0x166   : > { %v1546_v30 = vpop.f32.mrb[8].mxu0  ;;  %v1799_v22 = vpop.permute.xlu1 %1798  ;;  %3416 = vmatprep.mubr.msk.bf16.mxu0 %vm3723_vm2, %v3721_v3 }
 0x167   : > { %v2104_v36 = vadd.f32 %v5026_v9, %v2075_v50  ;;  %v1704_v29 = vadd.f32 %v4890_v47, %v1546_v30  ;;  %v1894_v45 = vmul.f32 %v5012_v12, %v1799_v22  ;;  %v3316_v48 = vpop.f32.mrb[9].mxu0  ;;  %v2125_v62 = vmax.f32 %v2103_v34, 0.0 }
 0x168   : > { %v1549_v18 = vpop.f32.mrb[10].mxu0  ;;  %3465 = vmatpush3.bf16.msra.mxu1 %v3572_v55 }
 0x169   : > { %v2126_v60 = vmax.f32 %v2104_v36, 0.0  ;;  %v1707_v37 = vadd.f32 %v4894_v35, %v1549_v18  ;;  %v3317_v0 = vpop.f32.mrb[11].mxu0  ;;  %v1916_v7 = vadd.f32 %v1894_v45, %v1704_v29  ;;  %3466 = vmatprep.subr.bf16.mxu1 %v3721_v3  ;;  %v1819_v21 = vpop.permute.xlu0 %1818  ;;  %v1897_v29 = vmul.f32 %v5012_v12, %v1814_v42 }
 0x16a   : > { %v1804_v58 = vpop.permute.xlu1 %1803  ;;  %v1898_v46 = vmul.f32 %v5012_v12, %v1819_v21 }
 0x16b   : > { %v2146_v47 = vpack.c.bf16 %v2126_v60, %v2125_v62  ;;  %v1895_v53 = vmul.f32 %v5012_v12, %v1804_v58  ;;  %v2076_v35 = vadd.f32 %v2054_v39, %v1916_v7 }
 0x16c   : > { %3467 = vmatpush3.bf16.msra.mxu1 %v3573_v8 }
 0x16d   : > { %3417 = vmatmul.mubr.bf16.gmra.mrb[48].mxu0 %v2146_v47  ;;  %v1917_v11 = vadd.f32 %v1895_v53, %v1707_v37  ;;  %3468 = vmatprep.subr.bf16.mxu1 %v3721_v3  ;;  %v2105_v23 = vadd.f32 %v5026_v9, %v2076_v35  ;;  %v1834_v19 = vpop.permute.xlu0 %1833 }
 0x16e   : > { %v1554_v16 = vpop.f32.mrb[12].mxu0  ;;  %3420 = vmatprep.mubr.msk.bf16.mxu0 %vm3723_vm2, %v3721_v3 }
 0x16f   : > { %v1712_v25 = vadd.f32 %v4908_v52, %v1554_v16  ;;  %v3320_v56 = vpop.f32.mrb[13].mxu0  ;;  %v1964_v61 = vpop.permute.xlu1 %1963  ;;  %v2127_v14 = vmax.f32 %v2105_v23, 0.0 }
 0x170   : > { %v2055_v10 = vmul.f32 %v5016_v41, %v1964_v61  ;;  %v1557_v51 = vpop.f32.mrb[14].mxu0 }
 0x171   : > { %v1715_v13 = vadd.f32 %v4917_v57, %v1557_v51  ;;  %v3321_v15 = vpop.f32.mrb[15].mxu0 }
 0x172   : > { %v2077_v17 = vadd.f32 %v2055_v10, %v1917_v11 }
 0x174   : > { %v2106_v43 = vadd.f32 %v5026_v9, %v2077_v17  ;;  %v1809_v1 = vpop.permute.xlu1 %1808 }
 0x175   : > { %v1896_v27 = vmul.f32 %v5012_v12, %v1809_v1 }
 0x176   : > { %v2128_v52 = vmax.f32 %v2106_v43, 0.0  ;;  %v1562_v24 = vpop.f32.mrb[16].mxu0 }
 0x177   : > { %v1720_v44 = vadd.f32 %v4931_v5, %v1562_v24  ;;  %v3324_v6 = vpop.f32.mrb[17].mxu0  ;;  %v1918_v22 = vadd.f32 %v1896_v27, %v1712_v25  ;;  %v1919_v5 = vadd.f32 %v1897_v29, %v1715_v13 }
 0x178   : > { %v1565_v57 = vpop.f32.mrb[18].mxu0  ;;  %v2147_v38 = vpack.c.bf16 %v2128_v52, %v2127_v14 }
 0x179   : > { %v1723_v50 = vadd.f32 %v4937_v26, %v1565_v57  ;;  %v3325_v34 = vpop.f32.mrb[19].mxu0  ;;  %v1969_v30 = vpop.permute.xlu1 %1968  ;;  %v1920_v39 = vadd.f32 %v1898_v46, %v1720_v44 }
 0x17a   : > { %v2056_v36 = vmul.f32 %v5016_v41, %v1969_v30  ;;  %3421 = vmatmul.mubr.bf16.gmra.mrb[52].mxu0 %v2147_v38  ;;  %v1979_v26 = vpop.permute.xlu0 %1978 }
 0x17b   : > { %3424 = vmatprep.mubr.msk.bf16.mxu0 %vm3723_vm2, %v3721_v3  ;;  %v2058_v53 = vmul.f32 %v5016_v41, %v1979_v26 }
 0x17c   : > { %v2078_v45 = vadd.f32 %v2056_v36, %v1918_v22  ;;  %v1901_v22 = vmul.f32 %v5012_v12, %v1834_v19 }
 0x17d   : > { %v1974_v48 = vpop.permute.xlu1 %1973  ;;  %v2080_v56 = vadd.f32 %v2058_v53, %v1920_v39 }
 0x17e   : > { %v2057_v18 = vmul.f32 %v5016_v41, %v1974_v48  ;;  %v1570_v55 = vpop.f32.mrb[20].mxu0  ;;  %v2107_v0 = vadd.f32 %v5026_v9, %v2078_v45 }
 0x17f   : > { %v1728_v60 = vadd.f32 %v4952_v20, %v1570_v55  ;;  %v3328_v37 = vpop.f32.mrb[21].mxu0  ;;  %v2109_v23 = vadd.f32 %v5026_v9, %v2080_v56 }
 0x180   : > { %v2079_v62 = vadd.f32 %v2057_v18, %v1919_v5  ;;  %v1573_v7 = vpop.f32.mrb[22].mxu0  ;;  %v2129_v35 = vmax.f32 %v2107_v0, 0.0 }
 0x181   : > { %v1731_v58 = vadd.f32 %v4956_v49, %v1573_v7  ;;  %v3329_v47 = vpop.f32.mrb[23].mxu0  ;;  %v2131_v27 = vmax.f32 %v2109_v23, 0.0 }
 0x182   : > { %v2108_v42 = vadd.f32 %v5026_v9, %v2079_v62  ;;  %v1824_v8 = vpop.permute.xlu1 %1823 }
 0x183   : > { %v1899_v25 = vmul.f32 %v5012_v12, %v1824_v8  ;;  %v1923_v5 = vadd.f32 %v1901_v22, %v1731_v58 }
 0x184   : > { %v2130_v16 = vmax.f32 %v2108_v42, 0.0 }
 0x185   : > { %v1921_v13 = vadd.f32 %v1899_v25, %v1723_v50 }
 0x186   : > { %v1578_v20 = vpop.f32.mrb[24].mxu0  ;;  %v2148_v61 = vpack.c.bf16 %v2130_v16, %v2129_v35 }
 0x187   : > { %v1736_v11 = vadd.f32 %v4969_v32, %v1578_v20  ;;  %v3332_v10 = vpop.f32.mrb[25].mxu0  ;;  %v1984_v51 = vpop.permute.xlu1 %1983 }
 0x188   : > { %v2059_v49 = vmul.f32 %v5016_v41, %v1984_v51  ;;  %v1581_v15 = vpop.f32.mrb[26].mxu0  ;;  %3425 = vmatmul.mubr.bf16.gmra.mrb[56].mxu0 %v2148_v61  ;;  %v1999_v32 = vpop.permute.xlu0 %1998 }
 0x189   : > { %v1739_v17 = vadd.f32 %v4976_v2, %v1581_v15  ;;  %v3333_v21 = vpop.f32.mrb[27].mxu0  ;;  %3428 = vmatprep.mubr.msk.bf16.mxu0 %vm3723_vm2, %v3721_v3  ;;  %v2062_v7 = vmul.f32 %v5016_v41, %v1999_v32 }
 0x18a   : > { %v2081_v43 = vadd.f32 %v2059_v49, %v1921_v13 }
 0x18c   : > { %v2110_v1 = vadd.f32 %v5026_v9, %v2081_v43  ;;  %v1829_v52 = vpop.permute.xlu1 %1828  ;;  %v1839_v45 = vpop.permute.xlu0 %1838 }
 0x18d   : > { %v1900_v14 = vmul.f32 %v5012_v12, %v1829_v52  ;;  %v1902_v46 = vmul.f32 %v5012_v12, %v1839_v45 }
 0x18e   : > { %v2132_v24 = vmax.f32 %v2110_v1, 0.0  ;;  %v1586_v44 = vpop.f32.mrb[28].mxu0 }
 0x18f   : > { %v5105_v6 = vadd.f32 %v4988_v59, %v1586_v44  ;;  %v3336_v2 = vpop.f32.mrb[29].mxu0  ;;  %v1922_v36 = vadd.f32 %v1900_v14, %v1728_v60  ;;  %v1924_v47 = vadd.f32 %v1902_v46, %v1736_v11 }
 0x190   : > { %v1589_v57 = vpop.f32.mrb[30].mxu0  ;;  %v2149_v38 = vpack.c.bf16 %v2132_v24, %v2131_v27  ;;  %v1854_v13 = vpop.permute.xlu0 %1853 }
 0x191   : > { %v5108_v50 = vadd.f32 %v4996_v54, %v1589_v57  ;;  %v3337_v34 = vpop.f32.mrb[31].mxu0  ;;  %v1989_v30 = vpop.permute.xlu1 %1988  ;;  %v2084_v35 = vadd.f32 %v2062_v7, %v1924_v47  ;;  %v1905_v57 = vmul.f32 %v5012_v12, %v1854_v13 }
 0x192   : > { %v2060_v29 = vmul.f32 %v5016_v41, %v1989_v30  ;;  %3429 = vmatmul.mubr.bf16.gmra.mrb[60].mxu0 %v2149_v38 }
 0x193   : > { %3432 = vmatprep.mubr.msk.bf16.mxu0 %vm3723_vm2, %v3721_v3  ;;  %v2113_v15 = vadd.f32 %v5026_v9, %v2084_v35  ;;  %v1927_v22 = vadd.f32 %v1905_v57, %v5108_v50 }
 0x194   : > { %v2082_v59 = vadd.f32 %v2060_v29, %v1922_v36  ;;  %v1859_v32 = vpop.permute.xlu0 %1858 }
 0x195   : > { %v1994_v48 = vpop.permute.xlu1 %1993  ;;  %v2135_v1 = vmax.f32 %v2113_v15, 0.0  ;;  %v1906_v36 = vmul.f32 %v5012_v12, %v1859_v32 }
 0x196   : > { %v2061_v54 = vmul.f32 %v5016_v41, %v1994_v48  ;;  %v1594_v18 = vpop.f32.mrb[32].mxu0  ;;  %v2111_v19 = vadd.f32 %v5026_v9, %v2082_v59 }
 0x197   : > { %v1752_v55 = vadd.f32 %v4999_v40, %v1594_v18  ;;  %v3340_v26 = vpop.f32.mrb[33].mxu0 }
 0x198   : > { %v2083_v60 = vadd.f32 %v2061_v54, %v1923_v5  ;;  %v1597_v37 = vpop.f32.mrb[34].mxu0  ;;  %v2133_v53 = vmax.f32 %v2111_v19, 0.0  ;;  %v2019_v29 = vpop.permute.xlu0 %2018 }
 0x199   : > { %v1755_v0 = vadd.f32 %v5004_v63, %v1597_v37  ;;  %v3341_v62 = vpop.f32.mrb[35].mxu0  ;;  %v1928_v48 = vadd.f32 %v1906_v36, %v1752_v55 }
 0x19a   : > { %v2112_v58 = vadd.f32 %v5026_v9, %v2083_v60  ;;  %v1844_v39 = vpop.permute.xlu1 %1843 }
 0x19b   : > { %v1903_v8 = vmul.f32 %v5012_v12, %v1844_v39 }
 0x19c   : > { %v2134_v42 = vmax.f32 %v2112_v58, 0.0  ;;  %v1874_v47 = vpop.permute.xlu0 %1873 }
 0x19d   : > { %v1925_v63 = vadd.f32 %v1903_v8, %v1739_v17 }
 0x19e   : > { %v1602_v40 = vpop.f32.mrb[36].mxu0  ;;  %v2150_v16 = vpack.c.bf16 %v2134_v42, %v2133_v53 }
 0x19f   : > { %v5123_v25 = vadd.f32 %v5010_v4, %v1602_v40  ;;  %v3344_v56 = vpop.f32.mrb[37].mxu0  ;;  %v2004_v20 = vpop.permute.xlu1 %2003 }
 0x1a0   : > { %v2063_v61 = vmul.f32 %v5016_v41, %v2004_v20  ;;  %v1605_v10 = vpop.f32.mrb[38].mxu0  ;;  %3433 = vmatmul.mubr.bf16.gmra.mrb[64].mxu0 %v2150_v16  ;;  %v1879_v40 = vpop.permute.xlu0 %1878  ;;  %v3575_v56 = vld [vmem:[%s5543_s13 + $0x38] sm:$0xff]   ;;  %v1909_v20 = vmul.f32 %v5012_v12, %v1874_v47 }
 0x1a1   : > { %v5127_v11 = vadd.f32 %v5014_v33, %v1605_v10  ;;  %v3345_v51 = vpop.f32.mrb[39].mxu0  ;;  %3436 = vmatprep.mubr.msk.bf16.mxu0 %vm3723_vm2, %v3721_v3 }
 0x1a2   : > { %v2085_v49 = vadd.f32 %v2063_v61, %v1925_v63 }
 0x1a3   : > { %v1931_v13 = vadd.f32 %v1909_v20, %v5127_v11 }
 0x1a4   : > { %v2114_v4 = vadd.f32 %v5026_v9, %v2085_v49  ;;  %v1849_v21 = vpop.permute.xlu1 %1848  ;;  %v1910_v49 = vmul.f32 %v5012_v12, %v1879_v40 }
 0x1a5   : > { %v1904_v17 = vmul.f32 %v5012_v12, %v1849_v21 }
 0x1a6   : > { %v2136_v23 = vmax.f32 %v2114_v4, 0.0  ;;  %v1610_v43 = vpop.f32.mrb[40].mxu0  ;;  %v2039_v4 = vpop.permute.xlu0 %2038 }
 0x1a7   : > { %v5135_v52 = vadd.f32 %v5028_v28, %v1610_v43  ;;  %v3348_v33 = vpop.f32.mrb[41].mxu0  ;;  %v1926_v38 = vadd.f32 %v1904_v17, %v5105_v6  ;;  %v2066_v6 = vmul.f32 %v5016_v41, %v2019_v29  ;;  %v2070_v17 = vmul.f32 %v5016_v41, %v2039_v4 }
 0x1a8   : > { %v1613_v27 = vpop.f32.mrb[42].mxu0  ;;  %v2151_v24 = vpack.c.bf16 %v2136_v23, %v2135_v1 }
 0x1a9   : > { %v5138_v14 = vadd.f32 %v5034_v31, %v1613_v27  ;;  %v3349_v44 = vpop.f32.mrb[43].mxu0  ;;  %v2009_v2 = vpop.permute.xlu1 %2008  ;;  %v2088_v19 = vadd.f32 %v2066_v6, %v1928_v48  ;;  %v1932_v23 = vadd.f32 %v1910_v49, %v5135_v52 }
 0x1aa   : > { %v2064_v34 = vmul.f32 %v5016_v41, %v2009_v2  ;;  %3437 = vmatmul.mubr.bf16.gmra.mrb[68].mxu0 %v2151_v24 }
 0x1ab   : > { %3440 = vmatprep.mubr.msk.bf16.mxu0 %vm3723_vm2, %v3721_v3  ;;  %v2117_v55 = vadd.f32 %v5026_v9, %v2088_v19  ;;  %v2092_v11 = vadd.f32 %v2070_v17, %v1932_v23 }
 0x1ac   : > { %v2086_v28 = vadd.f32 %v2064_v34, %v1926_v38 }
 0x1ad   : > { %v2014_v30 = vpop.permute.xlu1 %2013  ;;  %v2139_v53 = vmax.f32 %v2117_v55, 0.0  ;;  %v2121_v52 = vadd.f32 %v5026_v9, %v2092_v11 }
 0x1ae   : > { %v2065_v31 = vmul.f32 %v5016_v41, %v2014_v30  ;;  %v2115_v45 = vadd.f32 %v5026_v9, %v2086_v28 }
 0x1af   : > { %v2143_v28 = vmax.f32 %v2121_v52, 0.0 }
 0x1b0   : > { %v2087_v59 = vadd.f32 %v2065_v31, %v1927_v22  ;;  %v2137_v54 = vmax.f32 %v2115_v45, 0.0 }
 0x1b2   : > { %v2116_v5 = vadd.f32 %v5026_v9, %v2087_v59  ;;  %v1864_v46 = vpop.permute.xlu1 %1863 }
 0x1b3   : > { %v1907_v26 = vmul.f32 %v5012_v12, %v1864_v46 }
 0x1b4   : > { %v2138_v18 = vmax.f32 %v2116_v5, 0.0 }
 0x1b5   : > { %v1929_v37 = vadd.f32 %v1907_v26, %v1755_v0  ;;  %v3574_v0 = vld [vmem:[%s5543_s13 + $0x30] sm:$0xff]  }
 0x1b6   : > { %v2152_v50 = vpack.c.bf16 %v2138_v18, %v2137_v54  ;;  %3469 = vmatpush3.bf16.msra.mxu1 %v3574_v0 }
 0x1b7   : > { %v2024_v60 = vpop.permute.xlu1 %2023  ;;  %3470 = vmatprep.subr.bf16.mxu1 %v3721_v3 }
 0x1b8   : > { %v2067_v62 = vmul.f32 %v5016_v41, %v2024_v60  ;;  %3441 = vmatmul.mubr.bf16.gmra.mrb[72].mxu0 %v2152_v50 }
 0x1b9   : > { %3444 = vmatprep.mubr.msk.bf16.mxu0 %vm3723_vm2, %v3721_v3 }
 0x1ba   : > { %v2089_v7 = vadd.f32 %v2067_v62, %v1929_v37  ;;  %3471 = vmatpush3.bf16.msra.mxu1 %v3575_v56 }
 0x1bc   : > { %v2118_v58 = vadd.f32 %v5026_v9, %v2089_v7  ;;  %v1869_v39 = vpop.permute.xlu1 %1868 }
 0x1bd   : > { %v1908_v8 = vmul.f32 %v5012_v12, %v1869_v39 }
 0x1be   : > { %v2140_v42 = vmax.f32 %v2118_v58, 0.0 }
 0x1bf   : > { %v1930_v63 = vadd.f32 %v1908_v8, %v5123_v25 }
 0x1c0   : > { %v2153_v35 = vpack.c.bf16 %v2140_v42, %v2139_v53 }
 0x1c1   : > { %v2029_v16 = vpop.permute.xlu1 %2028 }
 0x1c2   : > { %v2068_v61 = vmul.f32 %v5016_v41, %v2029_v16  ;;  %3445 = vmatmul.mubr.bf16.gmra.mrb[76].mxu0 %v2153_v35 }
 0x1c3   : > { %3448 = vmatprep.mubr.msk.bf16.mxu0 %vm3723_vm2, %v3721_v3 }
 0x1c4   : > { %v2090_v10 = vadd.f32 %v2068_v61, %v1930_v63 }
 0x1c5   : > { %v2034_v51 = vpop.permute.xlu1 %2033 }
 0x1c6   : > { %v2069_v15 = vmul.f32 %v5016_v41, %v2034_v51  ;;  %v2119_v25 = vadd.f32 %v5026_v9, %v2090_v10 }
 0x1c8   : > { %v2091_v21 = vadd.f32 %v2069_v15, %v1931_v13  ;;  %v2141_v33 = vmax.f32 %v2119_v25, 0.0 }
 0x1ca   : > { %v2120_v43 = vadd.f32 %v5026_v9, %v2091_v21  ;;  %v1884_v1 = vpop.permute.xlu1 %1883 }
 0x1cb   : > { %v1911_v27 = vmul.f32 %v5012_v12, %v1884_v1  ;;  %v5187_v12 = vld [vmem:[%s5542_s12] ss:$0 sm:$0xff] }
 0x1cc   : > { %v2142_v32 = vmax.f32 %v2120_v43, 0.0 }
 0x1cd   : > { %v1933_v2 = vadd.f32 %v1911_v27, %v5138_v14 }
 0x1ce   : > { %v2154_v24 = vpack.c.bf16 %v2142_v32, %v2141_v33 }
 0x1cf   : > { %v2044_v44 = vpop.permute.xlu1 %2043 }
 0x1d0   : > { %v2071_v57 = vmul.f32 %v5016_v41, %v2044_v44  ;;  %3449 = vmatmul.mubr.bf16.gmra.mrb[80].mxu0 %v2154_v24 }
 0x1d1   : > { %3452 = vmatprep.mubr.msk.bf16.mxu0 %vm3723_vm2, %v3721_v3 }
 0x1d2   : > { %v2093_v38 = vadd.f32 %v2071_v57, %v1933_v2 }
 0x1d4   : > { %v2122_v34 = vadd.f32 %v5026_v9, %v2093_v38 }
 0x1d6   : > { %v2144_v30 = vmax.f32 %v2122_v34, 0.0 }
 0x1d8   : > { %v2155_v22 = vpack.c.bf16 %v2144_v30, %v2143_v28 }
 0x1da   : > { %3453 = vmatmul.mubr.bf16.gmra.mrb[84].mxu0 %v2155_v22 }
 0x238   : > { %v2261_v14 = vpop.f32.mrb[44].mxu0 }
 0x239   : > { %v2262_v41 = vadd.f32 %v5187_v12, %v2261_v14  ;;  %v3414_v36 = vpop.f32.mrb[45].mxu0 }
 0x23a   : > { %v2264_v31 = vpop.f32.mrb[46].mxu0 }
 0x23b   : > { %v2265_v29 = vadd.f32 %v5187_v12, %v2264_v31  ;;  %v3415_v45 = vpop.f32.mrb[47].mxu0  ;;  %v2348_v59 = vmax.f32 %v2262_v41, 0.0 }
 0x23d   : > { %v2349_v48 = vmax.f32 %v2265_v29, 0.0 }
 0x23f   : > { %v2370_v9 = vpack.c.bf16 %v2349_v48, %v2348_v59 }
 0x240   : > { %v2269_v6 = vpop.f32.mrb[48].mxu0 }
 0x241   : > { %v2270_v5 = vadd.f32 %v5187_v12, %v2269_v6  ;;  %v3418_v46 = vpop.f32.mrb[49].mxu0  ;;  %3473 = vmatmul.mubr.bf16.vlgmr.msra.gmra.mrb[44].mxu1 %v2370_v9 }
 0x242   : > { %v2272_v54 = vpop.f32.mrb[50].mxu0  ;;  %3476 = vmatprep.mubr.msk.bf16.mxu1 %vm3723_vm2, %v3721_v3 }
 0x243   : > { %v2273_v18 = vadd.f32 %v5187_v12, %v2272_v54  ;;  %v3419_v26 = vpop.f32.mrb[51].mxu0  ;;  %v2350_v19 = vmax.f32 %v2270_v5, 0.0 }
 0x245   : > { %v2351_v50 = vmax.f32 %v2273_v18, 0.0 }
 0x247   : > { %v2371_v60 = vpack.c.bf16 %v2351_v50, %v2350_v19 }
 0x249   : > { %3477 = vmatmul.mubr.bf16.gmra.mrb[48].mxu1 %v2371_v60 }
 0x24a   : > { %3480 = vmatprep.mubr.msk.bf16.mxu1 %vm3723_vm2, %v3721_v3 }
 0x24d   : > { %v2277_v37 = vpop.f32.mrb[52].mxu0 }
 0x24e   : > { %v2278_v62 = vadd.f32 %v5187_v12, %v2277_v37  ;;  %v3422_v55 = vpop.f32.mrb[53].mxu0 }
 0x24f   : > { %v2280_v7 = vpop.f32.mrb[54].mxu0 }
 0x250   : > { %v2281_v47 = vadd.f32 %v5187_v12, %v2280_v7  ;;  %v3423_v58 = vpop.f32.mrb[55].mxu0  ;;  %v2352_v39 = vmax.f32 %v2278_v62, 0.0 }
 0x252   : > { %v2353_v53 = vmax.f32 %v2281_v47, 0.0 }
 0x254   : > { %v2372_v42 = vpack.c.bf16 %v2353_v53, %v2352_v39 }
 0x256   : > { %3481 = vmatmul.mubr.bf16.gmra.mrb[52].mxu1 %v2372_v42 }
 0x257   : > { %3484 = vmatprep.mubr.msk.bf16.mxu1 %vm3723_vm2, %v3721_v3 }
 0x25b   : > { %v2285_v8 = vpop.f32.mrb[56].mxu0 }
 0x25c   : > { %v2286_v0 = vadd.f32 %v5187_v12, %v2285_v8  ;;  %v3426_v35 = vpop.f32.mrb[57].mxu0 }
 0x25d   : > { %v2288_v40 = vpop.f32.mrb[58].mxu0 }
 0x25e   : > { %v2289_v16 = vadd.f32 %v5187_v12, %v2288_v40  ;;  %v3427_v56 = vpop.f32.mrb[59].mxu0  ;;  %v2354_v20 = vmax.f32 %v2286_v0, 0.0 }
 0x260   : > { %v2355_v63 = vmax.f32 %v2289_v16, 0.0 }
 0x262   : > { %v2373_v61 = vpack.c.bf16 %v2355_v63, %v2354_v20 }
 0x264   : > { %3485 = vmatmul.mubr.bf16.gmra.mrb[56].mxu1 %v2373_v61 }
 0x265   : > { %v2293_v10 = vpop.f32.mrb[60].mxu0  ;;  %3488 = vmatprep.mubr.msk.bf16.mxu1 %vm3723_vm2, %v3721_v3 }
 0x266   : > { %v2294_v51 = vadd.f32 %v5187_v12, %v2293_v10  ;;  %v3430_v13 = vpop.f32.mrb[61].mxu0 }
 0x267   : > { %v2296_v49 = vpop.f32.mrb[62].mxu0 }
 0x268   : > { %v2297_v15 = vadd.f32 %v5187_v12, %v2296_v49  ;;  %v3431_v4 = vpop.f32.mrb[63].mxu0  ;;  %v2356_v25 = vmax.f32 %v2294_v51, 0.0  ;;  %v5234_v51 = vld [vmem:[%s5544_s14] ss:$0 sm:$0xff] }
 0x26a   : > { %v2357_v21 = vmax.f32 %v2297_v15, 0.0 }
 0x26c   : > { %v2374_v23 = vpack.c.bf16 %v2357_v21, %v2356_v25 }
 0x26e   : > { %3489 = vmatmul.mubr.bf16.gmra.mrb[60].mxu1 %v2374_v23 }
 0x26f   : > { %3492 = vmatprep.mubr.msk.bf16.mxu1 %vm3723_vm2, %v3721_v3 }
 0x273   : > { %v2301_v17 = vpop.f32.mrb[64].mxu0 }
 0x274   : > { %v2302_v43 = vadd.f32 %v5187_v12, %v2301_v17  ;;  %v3434_v1 = vpop.f32.mrb[65].mxu0 }
 0x275   : > { %v2304_v33 = vpop.f32.mrb[66].mxu0 }
 0x276   : > { %v2305_v32 = vadd.f32 %v5187_v12, %v2304_v33  ;;  %v3435_v27 = vpop.f32.mrb[67].mxu0  ;;  %v2358_v11 = vmax.f32 %v2302_v43, 0.0 }
 0x278   : > { %v2359_v24 = vmax.f32 %v2305_v32, 0.0 }
 0x27a   : > { %v2375_v44 = vpack.c.bf16 %v2359_v24, %v2358_v11 }
 0x27c   : > { %3493 = vmatmul.mubr.bf16.gmra.mrb[64].mxu1 %v2375_v44 }
 0x27d   : > { %v2309_v2 = vpop.f32.mrb[68].mxu0  ;;  %3496 = vmatprep.mubr.msk.bf16.mxu1 %vm3723_vm2, %v3721_v3 }
 0x27e   : > { %v2310_v57 = vadd.f32 %v5187_v12, %v2309_v2  ;;  %v3438_v52 = vpop.f32.mrb[69].mxu0 }
 0x27f   : > { %v2312_v38 = vpop.f32.mrb[70].mxu0 }
 0x280   : > { %v2313_v34 = vadd.f32 %v5187_v12, %v2312_v38  ;;  %v3439_v28 = vpop.f32.mrb[71].mxu0  ;;  %v2360_v30 = vmax.f32 %v2310_v57, 0.0 }
 0x282   : > { %v2361_v22 = vmax.f32 %v2313_v34, 0.0 }
 0x284   : > { %v2376_v14 = vpack.c.bf16 %v2361_v22, %v2360_v30 }
 0x286   : > { %3497 = vmatmul.mubr.bf16.gmra.mrb[68].mxu1 %v2376_v14 }
 0x287   : > { %3500 = vmatprep.mubr.msk.bf16.mxu1 %vm3723_vm2, %v3721_v3 }
 0x28b   : > { %v2317_v41 = vpop.f32.mrb[72].mxu0 }
 0x28c   : > { %v2318_v36 = vadd.f32 %v5187_v12, %v2317_v41  ;;  %v3442_v31 = vpop.f32.mrb[73].mxu0 }
 0x28d   : > { %v2320_v29 = vpop.f32.mrb[74].mxu0 }
 0x28e   : > { %v2321_v45 = vadd.f32 %v5187_v12, %v2320_v29  ;;  %v3443_v59 = vpop.f32.mrb[75].mxu0  ;;  %v2362_v48 = vmax.f32 %v2318_v36, 0.0 }
 0x290   : > { %v2363_v9 = vmax.f32 %v2321_v45, 0.0 }
 0x292   : > { %v2377_v6 = vpack.c.bf16 %v2363_v9, %v2362_v48 }
 0x294   : > { %3501 = vmatmul.mubr.bf16.gmra.mrb[72].mxu1 %v2377_v6 }
 0x295   : > { %v2325_v5 = vpop.f32.mrb[76].mxu0  ;;  %3504 = vmatprep.mubr.msk.bf16.mxu1 %vm3723_vm2, %v3721_v3 }
 0x296   : > { %v2326_v46 = vadd.f32 %v5187_v12, %v2325_v5  ;;  %v3446_v54 = vpop.f32.mrb[77].mxu0 }
 0x297   : > { %v2328_v18 = vpop.f32.mrb[78].mxu0 }
 0x298   : > { %v2329_v26 = vadd.f32 %v5187_v12, %v2328_v18  ;;  %v3447_v19 = vpop.f32.mrb[79].mxu0  ;;  %v2364_v50 = vmax.f32 %v2326_v46, 0.0 }
 0x29a   : > { %v2365_v60 = vmax.f32 %v2329_v26, 0.0 }
 0x29c   : > { %v2378_v37 = vpack.c.bf16 %v2365_v60, %v2364_v50 }
 0x29e   : > { %3505 = vmatmul.mubr.bf16.gmra.mrb[76].mxu1 %v2378_v37 }
 0x29f   : > { %3508 = vmatprep.mubr.msk.bf16.mxu1 %vm3723_vm2, %v3721_v3 }
 0x2a3   : > { %v2333_v62 = vpop.f32.mrb[80].mxu0 }
 0x2a4   : > { %v2334_v55 = vadd.f32 %v5187_v12, %v2333_v62  ;;  %v3450_v7 = vpop.f32.mrb[81].mxu0 }
 0x2a5   : > { %v2336_v47 = vpop.f32.mrb[82].mxu0 }
 0x2a6   : > { %v2337_v58 = vadd.f32 %v5187_v12, %v2336_v47  ;;  %v3451_v39 = vpop.f32.mrb[83].mxu0  ;;  %v2366_v53 = vmax.f32 %v2334_v55, 0.0 }
 0x2a8   : > { %v2367_v42 = vmax.f32 %v2337_v58, 0.0 }
 0x2aa   : > { %v2379_v8 = vpack.c.bf16 %v2367_v42, %v2366_v53 }
 0x2ac   : > { %3509 = vmatmul.mubr.bf16.gmra.mrb[80].mxu1 %v2379_v8 }
 0x2ad   : > { %v2341_v0 = vpop.f32.mrb[84].mxu0  ;;  %3512 = vmatprep.mubr.msk.bf16.mxu1 %vm3723_vm2, %v3721_v3 }
 0x2ae   : > { %v2342_v35 = vadd.f32 %v5187_v12, %v2341_v0  ;;  %v3454_v40 = vpop.f32.mrb[85].mxu0 }
 0x2af   : > { %v2344_v16 = vpop.f32.mrb[86].mxu0 }
 0x2b0   : > { %v2345_v56 = vadd.f32 %v5187_v12, %v2344_v16  ;;  %v3455_v20 = vpop.f32.mrb[87].mxu0  ;;  %v2368_v63 = vmax.f32 %v2342_v35, 0.0 }
 0x2b2   : > { %v2369_v61 = vmax.f32 %v2345_v56, 0.0 }
 0x2b4   : > { %v2380_v10 = vpack.c.bf16 %v2369_v61, %v2368_v63 }
 0x2b6   : > { %3513 = vmatmul.mubr.bf16.gmra.mrb[84].mxu1 %v2380_v10 }
 0x314   : > { %v2486_v13 = vpop.f32.mrb[44].mxu1 }
 0x315   : > { %v5237_v49 = vadd.f32 %v5234_v51, %v2486_v13  ;;  %v3474_v3 = vpop.f32.mrb[45].mxu1 }
 0x316   : > { %v2489_v15 = vpop.f32.mrb[46].mxu1 }
 0x317   : > { %v5240_v4 = vadd.f32 %v5234_v51, %v2489_v15  ;;  %2573 = vadd.xlane.f32.xlu1 %v5237_v49  ;;  %v3475_v12 = vpop.f32.mrb[47].mxu1 }
 0x319   : > { %2575 = vadd.xlane.f32.xlu0 %v5240_v4 }
 0x31c   : > { %v2494_v25 = vpop.f32.mrb[48].mxu1 }
 0x31d   : > { %v5245_v21 = vadd.f32 %v5234_v51, %v2494_v25  ;;  %v3478_v23 = vpop.f32.mrb[49].mxu1 }
 0x31e   : > { %v2497_v17 = vpop.f32.mrb[50].mxu1 }
 0x31f   : > { %v5248_v43 = vadd.f32 %v5234_v51, %v2497_v17  ;;  %2577 = vadd.xlane.f32.xlu0 %v5245_v21  ;;  %v3479_v1 = vpop.f32.mrb[51].mxu1 }
 0x321   : > { %2579 = vadd.xlane.f32.xlu1 %v5248_v43 }
 0x329   : > { %v2502_v33 = vpop.f32.mrb[52].mxu1 }
 0x32a   : > { %v5253_v32 = vadd.f32 %v5234_v51, %v2502_v33  ;;  %v3482_v27 = vpop.f32.mrb[53].mxu1 }
 0x32b   : > { %v2505_v11 = vpop.f32.mrb[54].mxu1 }
 0x32c   : > { %v5256_v24 = vadd.f32 %v5234_v51, %v2505_v11  ;;  %2581 = vadd.xlane.f32.xlu0 %v5253_v32  ;;  %v3483_v44 = vpop.f32.mrb[55].mxu1 }
 0x32e   : > { %2583 = vadd.xlane.f32.xlu1 %v5256_v24 }
 0x337   : > { %v2510_v2 = vpop.f32.mrb[56].mxu1 }
 0x338   : > { %v5261_v57 = vadd.f32 %v5234_v51, %v2510_v2  ;;  %v3486_v52 = vpop.f32.mrb[57].mxu1 }
 0x339   : > { %v2513_v38 = vpop.f32.mrb[58].mxu1 }
 0x33a   : > { %v5264_v34 = vadd.f32 %v5234_v51, %v2513_v38  ;;  %2585 = vadd.xlane.f32.xlu0 %v5261_v57  ;;  %v3487_v28 = vpop.f32.mrb[59].mxu1 }
 0x33c   : > { %2587 = vadd.xlane.f32.xlu1 %v5264_v34 }
 0x341   : > { %v2518_v30 = vpop.f32.mrb[60].mxu1 }
 0x342   : > { %v5269_v22 = vadd.f32 %v5234_v51, %v2518_v30  ;;  %v3490_v14 = vpop.f32.mrb[61].mxu1 }
 0x343   : > { %v2521_v41 = vpop.f32.mrb[62].mxu1 }
 0x344   : > { %v5272_v36 = vadd.f32 %v5234_v51, %v2521_v41  ;;  %2589 = vadd.xlane.f32.xlu0 %v5269_v22  ;;  %v3491_v31 = vpop.f32.mrb[63].mxu1 }
 0x346   : > { %2591 = vadd.xlane.f32.xlu1 %v5272_v36 }
 0x34f   : > { %v2526_v29 = vpop.f32.mrb[64].mxu1 }
 0x350   : > { %v5277_v45 = vadd.f32 %v5234_v51, %v2526_v29  ;;  %v3494_v59 = vpop.f32.mrb[65].mxu1 }
 0x351   : > { %v2529_v48 = vpop.f32.mrb[66].mxu1 }
 0x352   : > { %v5280_v9 = vadd.f32 %v5234_v51, %v2529_v48  ;;  %2593 = vadd.xlane.f32.xlu0 %v5277_v45  ;;  %v3495_v6 = vpop.f32.mrb[67].mxu1 }
 0x354   : > { %2595 = vadd.xlane.f32.xlu1 %v5280_v9 }
 0x359   : > { %v2534_v5 = vpop.f32.mrb[68].mxu1 }
 0x35a   : > { %v5285_v46 = vadd.f32 %v5234_v51, %v2534_v5  ;;  %v3498_v54 = vpop.f32.mrb[69].mxu1 }
 0x35b   : > { %v2537_v18 = vpop.f32.mrb[70].mxu1 }
 0x35c   : > { %v5288_v26 = vadd.f32 %v5234_v51, %v2537_v18  ;;  %2597 = vadd.xlane.f32.xlu0 %v5285_v46  ;;  %v3499_v19 = vpop.f32.mrb[71].mxu1 }
 0x35e   : > { %2599 = vadd.xlane.f32.xlu1 %v5288_v26 }
 0x367   : > { %v2542_v50 = vpop.f32.mrb[72].mxu1 }
 0x368   : > { %v5293_v60 = vadd.f32 %v5234_v51, %v2542_v50  ;;  %v3502_v37 = vpop.f32.mrb[73].mxu1 }
 0x369   : > { %v2545_v62 = vpop.f32.mrb[74].mxu1 }
 0x36a   : > { %v5296_v55 = vadd.f32 %v5234_v51, %v2545_v62  ;;  %2601 = vadd.xlane.f32.xlu0 %v5293_v60  ;;  %v3503_v7 = vpop.f32.mrb[75].mxu1 }
 0x36c   : > { %2603 = vadd.xlane.f32.xlu1 %v5296_v55 }
 0x371   : > { %v2550_v47 = vpop.f32.mrb[76].mxu1 }
 0x372   : > { %v5301_v58 = vadd.f32 %v5234_v51, %v2550_v47  ;;  %v3506_v39 = vpop.f32.mrb[77].mxu1 }
 0x373   : > { %v2553_v53 = vpop.f32.mrb[78].mxu1 }
 0x374   : > { %v5304_v42 = vadd.f32 %v5234_v51, %v2553_v53  ;;  %2605 = vadd.xlane.f32.xlu0 %v5301_v58  ;;  %v3507_v8 = vpop.f32.mrb[79].mxu1 }
 0x376   : > { %2607 = vadd.xlane.f32.xlu1 %v5304_v42 }
 0x37f   : > { %v2558_v0 = vpop.f32.mrb[80].mxu1 }
 0x380   : > { %v5309_v35 = vadd.f32 %v5234_v51, %v2558_v0  ;;  %v3510_v40 = vpop.f32.mrb[81].mxu1 }
 0x381   : > { %v2561_v16 = vpop.f32.mrb[82].mxu1 }
 0x382   : > { %v5312_v56 = vadd.f32 %v5234_v51, %v2561_v16  ;;  %2609 = vadd.xlane.f32.xlu0 %v5309_v35  ;;  %v3511_v20 = vpop.f32.mrb[83].mxu1 }
 0x384   : > { %2611 = vadd.xlane.f32.xlu1 %v5312_v56 }
 0x389   : > { %v2566_v63 = vpop.f32.mrb[84].mxu1 }
 0x38a   : > { %v5317_v61 = vadd.f32 %v5234_v51, %v2566_v63  ;;  %v3514_v10 = vpop.f32.mrb[85].mxu1 }
 0x38b   : > { %v2569_v13 = vpop.f32.mrb[86].mxu1 }
 0x38c   : > { %v5320_v3 = vadd.f32 %v5234_v51, %v2569_v13  ;;  %2613 = vadd.xlane.f32.xlu0 %v5317_v61  ;;  %v3515_v15 = vpop.f32.mrb[87].mxu1 }
 0x38e   : > { %2615 = vadd.xlane.f32.xlu1 %v5320_v3 }
 0x3a4   : > { %v2574_v12 = vpop.xlane.xlu1 %2573 }
 0x3a5   : > { %v2618_v25 = vmul.f32 0.0078125, %v2574_v12 }
 0x3a6   : > { %v2576_v23 = vpop.xlane.xlu0 %2575 }
 0x3a7   : > { %v5325_v17 = vsub.f32 %v5237_v49, %v2618_v25  ;;  %v2619_v1 = vmul.f32 0.0078125, %v2576_v23 }
 0x3a9   : > { %v5328_v33 = vsub.f32 %v5240_v4, %v2619_v1  ;;  %v2662_v27 = vmul.f32 %v5325_v17, %v5325_v17 }
 0x3ab   : > { %2684 = vadd.xlane.f32.xlu0 %v2662_v27  ;;  %v2663_v51 = vmul.f32 %v5328_v33, %v5328_v33 }
 0x3ac   : > { %v2578_v11 = vpop.xlane.xlu0 %2577 }
 0x3ad   : > { %v2620_v44 = vmul.f32 0.0078125, %v2578_v11  ;;  %2686 = vadd.xlane.f32.xlu1 %v2663_v51 }
 0x3ae   : > { %v2580_v2 = vpop.xlane.xlu1 %2579 }
 0x3af   : > { %v5335_v52 = vsub.f32 %v5245_v21, %v2620_v44  ;;  %v2621_v49 = vmul.f32 0.0078125, %v2580_v2 }
 0x3b1   : > { %v5338_v38 = vsub.f32 %v5248_v43, %v2621_v49  ;;  %v2664_v4 = vmul.f32 %v5335_v52, %v5335_v52 }
 0x3b3   : > { %2688 = vadd.xlane.f32.xlu0 %v2664_v4  ;;  %v2665_v28 = vmul.f32 %v5338_v38, %v5338_v38 }
 0x3b5   : > { %2690 = vadd.xlane.f32.xlu1 %v2665_v28 }
 0x3b9   : > { %v2582_v30 = vpop.xlane.xlu0 %2581 }
 0x3ba   : > { %v2622_v14 = vmul.f32 0.0078125, %v2582_v30 }
 0x3bb   : > { %v2584_v41 = vpop.xlane.xlu1 %2583 }
 0x3bc   : > { %v5345_v31 = vsub.f32 %v5253_v32, %v2622_v14  ;;  %v2623_v21 = vmul.f32 0.0078125, %v2584_v41 }
 0x3be   : > { %v5348_v29 = vsub.f32 %v5256_v24, %v2623_v21  ;;  %v2666_v43 = vmul.f32 %v5345_v31, %v5345_v31 }
 0x3c0   : > { %2692 = vadd.xlane.f32.xlu0 %v2666_v43  ;;  %v2667_v59 = vmul.f32 %v5348_v29, %v5348_v29 }
 0x3c2   : > { %2694 = vadd.xlane.f32.xlu1 %v2667_v59 }
 0x3c7   : > { %v2586_v48 = vpop.xlane.xlu0 %2585 }
 0x3c8   : > { %v2624_v6 = vmul.f32 0.0078125, %v2586_v48 }
 0x3c9   : > { %v2588_v5 = vpop.xlane.xlu1 %2587 }
 0x3ca   : > { %v5355_v54 = vsub.f32 %v5261_v57, %v2624_v6  ;;  %v2625_v32 = vmul.f32 0.0078125, %v2588_v5 }
 0x3cc   : > { %v5358_v18 = vsub.f32 %v5264_v34, %v2625_v32  ;;  %v2668_v24 = vmul.f32 %v5355_v54, %v5355_v54 }
 0x3ce   : > { %2696 = vadd.xlane.f32.xlu0 %v2668_v24  ;;  %v2669_v19 = vmul.f32 %v5358_v18, %v5358_v18 }
 0x3d0   : > { %2698 = vadd.xlane.f32.xlu1 %v2669_v19 }
 0x3d1   : > { %v2590_v50 = vpop.xlane.xlu0 %2589 }
 0x3d2   : > { %v2626_v37 = vmul.f32 0.0078125, %v2590_v50 }
 0x3d3   : > { %v2592_v62 = vpop.xlane.xlu1 %2591 }
 0x3d4   : > { %v5365_v7 = vsub.f32 %v5269_v22, %v2626_v37  ;;  %v2627_v57 = vmul.f32 0.0078125, %v2592_v62 }
 0x3d6   : > { %v5368_v47 = vsub.f32 %v5272_v36, %v2627_v57  ;;  %v2670_v34 = vmul.f32 %v5365_v7, %v5365_v7 }
 0x3d8   : > { %2700 = vadd.xlane.f32.xlu0 %v2670_v34  ;;  %v2671_v39 = vmul.f32 %v5368_v47, %v5368_v47 }
 0x3da   : > { %2702 = vadd.xlane.f32.xlu1 %v2671_v39 }
 0x3df   : > { %v2594_v53 = vpop.xlane.xlu0 %2593 }
 0x3e0   : > { %v2628_v8 = vmul.f32 0.0078125, %v2594_v53 }
 0x3e1   : > { %v2596_v0 = vpop.xlane.xlu1 %2595 }
 0x3e2   : > { %v5375_v40 = vsub.f32 %v5277_v45, %v2628_v8  ;;  %v2629_v22 = vmul.f32 0.0078125, %v2596_v0 }
 0x3e4   : > { %v5378_v16 = vsub.f32 %v5280_v9, %v2629_v22  ;;  %v2672_v36 = vmul.f32 %v5375_v40, %v5375_v40 }
 0x3e6   : > { %2704 = vadd.xlane.f32.xlu0 %v2672_v36  ;;  %v2673_v20 = vmul.f32 %v5378_v16, %v5378_v16 }
 0x3e8   : > { %2706 = vadd.xlane.f32.xlu1 %v2673_v20 }
 0x3e9   : > { %v2598_v63 = vpop.xlane.xlu0 %2597 }
 0x3ea   : > { %v2630_v10 = vmul.f32 0.0078125, %v2598_v63 }
 0x3eb   : > { %v2600_v13 = vpop.xlane.xlu1 %2599 }
 0x3ec   : > { %v5385_v15 = vsub.f32 %v5285_v46, %v2630_v10  ;;  %v2631_v45 = vmul.f32 0.0078125, %v2600_v13  ;;  %v5437_v10 = vld [vmem:[%s5545_s15] ss:$0 sm:$0xff] }
 0x3ee   : > { %v5388_v12 = vsub.f32 %v5288_v26, %v2631_v45  ;;  %v2674_v9 = vmul.f32 %v5385_v15, %v5385_v15 }
 0x3f0   : > { %2708 = vadd.xlane.f32.xlu0 %v2674_v9  ;;  %v2675_v25 = vmul.f32 %v5388_v12, %v5388_v12 }
 0x3f2   : > { %2710 = vadd.xlane.f32.xlu1 %v2675_v25 }
 0x3f7   : > { %v2602_v23 = vpop.xlane.xlu0 %2601 }
 0x3f8   : > { %v2632_v1 = vmul.f32 0.0078125, %v2602_v23  ;;  %v5445_v23 = vld [vmem:[%s5546_s16] ss:$0 sm:$0xff] }
 0x3f9   : > { %v2604_v27 = vpop.xlane.xlu1 %2603 }
 0x3fa   : > { %v5395_v51 = vsub.f32 %v5293_v60, %v2632_v1  ;;  %v2633_v46 = vmul.f32 0.0078125, %v2604_v27 }
 0x3fc   : > { %v5398_v11 = vsub.f32 %v5296_v55, %v2633_v46  ;;  %v2676_v26 = vmul.f32 %v5395_v51, %v5395_v51 }
 0x3fe   : > { %2712 = vadd.xlane.f32.xlu0 %v2676_v26  ;;  %v2677_v44 = vmul.f32 %v5398_v11, %v5398_v11 }
 0x400   : > { %2714 = vadd.xlane.f32.xlu1 %v2677_v44 }
 0x401   : > { %v2606_v2 = vpop.xlane.xlu0 %2605 }
 0x402   : > { %v2634_v49 = vmul.f32 0.0078125, %v2606_v2 }
 0x403   : > { %v2608_v4 = vpop.xlane.xlu1 %2607 }
 0x404   : > { %v5405_v28 = vsub.f32 %v5301_v58, %v2634_v49  ;;  %v2635_v60 = vmul.f32 0.0078125, %v2608_v4 }
 0x406   : > { %v5408_v30 = vsub.f32 %v5304_v42, %v2635_v60  ;;  %v2678_v55 = vmul.f32 %v5405_v28, %v5405_v28 }
 0x408   : > { %2716 = vadd.xlane.f32.xlu0 %v2678_v55  ;;  %v2679_v14 = vmul.f32 %v5408_v30, %v5408_v30 }
 0x40a   : > { %2718 = vadd.xlane.f32.xlu1 %v2679_v14 }
 0x40f   : > { %v2610_v41 = vpop.xlane.xlu0 %2609 }
 0x410   : > { %v2636_v21 = vmul.f32 0.0078125, %v2610_v41 }
 0x411   : > { %v2612_v43 = vpop.xlane.xlu1 %2611 }
 0x412   : > { %v5415_v59 = vsub.f32 %v5309_v35, %v2636_v21  ;;  %v2637_v58 = vmul.f32 0.0078125, %v2612_v43 }
 0x414   : > { %v5418_v48 = vsub.f32 %v5312_v56, %v2637_v58  ;;  %v2680_v42 = vmul.f32 %v5415_v59, %v5415_v59 }
 0x416   : > { %2720 = vadd.xlane.f32.xlu0 %v2680_v42  ;;  %v2681_v6 = vmul.f32 %v5418_v48, %v5418_v48 }
 0x418   : > { %2722 = vadd.xlane.f32.xlu1 %v2681_v6 }
 0x419   : > { %v2614_v5 = vpop.xlane.xlu0 %2613 }
 0x41a   : > { %v2638_v32 = vmul.f32 0.0078125, %v2614_v5 }
 0x41b   : > { %v2616_v24 = vpop.xlane.xlu1 %2615 }
 0x41c   : > { %v5425_v19 = vsub.f32 %v5317_v61, %v2638_v32  ;;  %v2639_v35 = vmul.f32 0.0078125, %v2616_v24 }
 0x41e   : > { %v5428_v50 = vsub.f32 %v5320_v3, %v2639_v35  ;;  %v2682_v56 = vmul.f32 %v5425_v19, %v5425_v19 }
 0x420   : > { %2724 = vadd.xlane.f32.xlu0 %v2682_v56  ;;  %v2683_v37 = vmul.f32 %v5428_v50, %v5428_v50 }
 0x422   : > { %2726 = vadd.xlane.f32.xlu1 %v2683_v37 }
 0x438   : > { %v2685_v62 = vpop.xlane.xlu0 %2684 }
 0x439   : > { %v2728_v57 = vmul.f32 0.0078125, %v2685_v62 }
 0x43a   : > { %v2687_v34 = vpop.xlane.xlu1 %2686 }
 0x43b   : > { %v2750_v39 = vadd.f32 1e-05, %v2728_v57  ;;  %v2729_v53 = vmul.f32 0.0078125, %v2687_v34 }
 0x43d   : > { %3664 = vrsqrt.f32 %v2750_v39  ;;  %v2751_v61 = vadd.f32 1e-05, %v2729_v53 }
 0x43f   : > { %3666 = vrsqrt.f32 %v2751_v61 }
 0x440   : > { %v2689_v8 = vpop.xlane.xlu0 %2688 }
 0x441   : > { %v2730_v3 = vmul.f32 0.0078125, %v2689_v8 }
 0x442   : > { %v2691_v0 = vpop.xlane.xlu1 %2690 }
 0x443   : > { %v2752_v22 = vadd.f32 1e-05, %v2730_v3  ;;  %v2731_v36 = vmul.f32 0.0078125, %v2691_v0 }
 0x445   : > { %3668 = vrsqrt.f32 %v2752_v22  ;;  %v2753_v20 = vadd.f32 1e-05, %v2731_v36 }
 0x447   : > { %v3665_v63 = vpop.eup %3664  ;;  %3670 = vrsqrt.f32 %v2753_v20 }
 0x448   : > { %v2794_v13 = vmul.f32 %v3665_v63, %v5325_v17 }
 0x449   : > { %v3667_v45 = vpop.eup %3666 }
 0x44a   : > { %v2823_v9 = vmul.f32 %v5437_v10, %v2794_v13  ;;  %v2795_v25 = vmul.f32 %v3667_v45, %v5328_v33 }
 0x44c   : > { %v2824_v1 = vmul.f32 %v5437_v10, %v2795_v25  ;;  %v2852_v46 = vadd.f32 %v5445_v23, %v2823_v9 }
 0x44d   : > { %v2693_v27 = vpop.xlane.xlu0 %2692 }
 0x44e   : > { %v2853_v26 = vadd.f32 %v5445_v23, %v2824_v1  ;;  %v2732_v44 = vmul.f32 0.0078125, %v2693_v27 }
 0x44f   : > { %v3669_v17 = vpop.eup %3668  ;;  %v2695_v33 = vpop.xlane.xlu1 %2694 }
 0x450   : > { %v3180_v2 = vpack.c.bf16 %v2853_v26, %v2852_v46  ;;  %v2796_v49 = vmul.f32 %v3669_v17, %v5335_v52  ;;  %v2754_v4 = vadd.f32 1e-05, %v2732_v44  ;;  %v2733_v60 = vmul.f32 0.0078125, %v2695_v33 }
 0x451   : > { %v3671_v55 = vpop.eup %3670 }
 0x452   : > { %3181 = vst [vmem:[%s5454_s29] sm:$0xff] %v3180_v2   ;;  %v2825_v14 = vmul.f32 %v5437_v10, %v2796_v49  ;;  %v2797_v41 = vmul.f32 %v3671_v55, %v5338_v38  ;;  %3672 = vrsqrt.f32 %v2754_v4  ;;  %v2755_v21 = vadd.f32 1e-05, %v2733_v60 }
 0x454   : > { %v2826_v43 = vmul.f32 %v5437_v10, %v2797_v41  ;;  %3674 = vrsqrt.f32 %v2755_v21  ;;  %v2854_v58 = vadd.f32 %v5445_v23, %v2825_v14 }
 0x456   : > { %v2855_v42 = vadd.f32 %v5445_v23, %v2826_v43 }
 0x458   : > { %v3185_v6 = vpack.c.bf16 %v2855_v42, %v2854_v58 }
 0x45a   : > { %3232 = vst [vmem:[%s5454_s29 + $0x8] sm:$0xff] %v3185_v6  }
 0x45b   : > { %v2697_v52 = vpop.xlane.xlu0 %2696 }
 0x45c   : > { %v3673_v5 = vpop.eup %3672  ;;  %v2734_v32 = vmul.f32 0.0078125, %v2697_v52 }
 0x45d   : > { %v2798_v24 = vmul.f32 %v3673_v5, %v5345_v31  ;;  %v2699_v35 = vpop.xlane.xlu1 %2698 }
 0x45e   : > { %v3675_v56 = vpop.eup %3674  ;;  %v2756_v38 = vadd.f32 1e-05, %v2734_v32  ;;  %v2735_v37 = vmul.f32 0.0078125, %v2699_v35 }
 0x45f   : > { %v2827_v62 = vmul.f32 %v5437_v10, %v2798_v24  ;;  %v2799_v57 = vmul.f32 %v3675_v56, %v5348_v29 }
 0x460   : > { %3676 = vrsqrt.f32 %v2756_v38  ;;  %v2757_v34 = vadd.f32 1e-05, %v2735_v37 }
 0x461   : > { %v2828_v39 = vmul.f32 %v5437_v10, %v2799_v57  ;;  %v2856_v53 = vadd.f32 %v5445_v23, %v2827_v62 }
 0x462   : > { %3678 = vrsqrt.f32 %v2757_v34 }
 0x463   : > { %v2857_v61 = vadd.f32 %v5445_v23, %v2828_v39 }
 0x465   : > { %v3190_v8 = vpack.c.bf16 %v2857_v61, %v2856_v53  ;;  %v2701_v31 = vpop.xlane.xlu0 %2700 }
 0x466   : > { %v2736_v3 = vmul.f32 0.0078125, %v2701_v31 }
 0x467   : > { %3233 = vst [vmem:[%s5454_s29 + $0x10] sm:$0xff] %v3190_v8   ;;  %v2703_v0 = vpop.xlane.xlu1 %2702 }
 0x468   : > { %v2758_v22 = vadd.f32 1e-05, %v2736_v3  ;;  %v2737_v36 = vmul.f32 0.0078125, %v2703_v0 }
 0x46a   : > { %v3677_v20 = vpop.eup %3676  ;;  %3680 = vrsqrt.f32 %v2758_v22  ;;  %v2759_v29 = vadd.f32 1e-05, %v2737_v36 }
 0x46b   : > { %v2800_v63 = vmul.f32 %v3677_v20, %v5355_v54 }
 0x46c   : > { %v3679_v13 = vpop.eup %3678  ;;  %3682 = vrsqrt.f32 %v2759_v29 }
 0x46d   : > { %v2829_v45 = vmul.f32 %v5437_v10, %v2800_v63  ;;  %v2801_v9 = vmul.f32 %v3679_v13, %v5358_v18 }
 0x46f   : > { %v2830_v25 = vmul.f32 %v5437_v10, %v2801_v9  ;;  %v2858_v1 = vadd.f32 %v5445_v23, %v2829_v45 }
 0x471   : > { %v2859_v27 = vadd.f32 %v5445_v23, %v2830_v25 }
 0x473   : > { %v3195_v46 = vpack.c.bf16 %v2859_v27, %v2858_v1  ;;  %v2705_v26 = vpop.xlane.xlu0 %2704 }
 0x474   : > { %v3681_v44 = vpop.eup %3680  ;;  %v2738_v17 = vmul.f32 0.0078125, %v2705_v26 }
 0x475   : > { %3234 = vst [vmem:[%s5454_s29 + $0x18] sm:$0xff] %v3195_v46   ;;  %v2802_v33 = vmul.f32 %v3681_v44, %v5365_v7  ;;  %v2707_v54 = vpop.xlane.xlu1 %2706 }
 0x476   : > { %v3683_v2 = vpop.eup %3682  ;;  %v2760_v49 = vadd.f32 1e-05, %v2738_v17  ;;  %v2739_v4 = vmul.f32 0.0078125, %v2707_v54 }
 0x477   : > { %v2831_v18 = vmul.f32 %v5437_v10, %v2802_v33  ;;  %v2803_v60 = vmul.f32 %v3683_v2, %v5368_v47 }
 0x478   : > { %3684 = vrsqrt.f32 %v2760_v49  ;;  %v2761_v55 = vadd.f32 1e-05, %v2739_v4 }
 0x479   : > { %v2832_v14 = vmul.f32 %v5437_v10, %v2803_v60  ;;  %v2860_v41 = vadd.f32 %v5445_v23, %v2831_v18 }
 0x47a   : > { %3686 = vrsqrt.f32 %v2761_v55 }
 0x47b   : > { %v2861_v21 = vadd.f32 %v5445_v23, %v2832_v14 }
 0x47d   : > { %v3200_v43 = vpack.c.bf16 %v2861_v21, %v2860_v41  ;;  %v2709_v7 = vpop.xlane.xlu0 %2708 }
 0x47e   : > { %v2740_v58 = vmul.f32 0.0078125, %v2709_v7 }
 0x47f   : > { %3235 = vst [vmem:[%s5454_s29 + $0x20] sm:$0xff] %v3200_v43   ;;  %v2711_v42 = vpop.xlane.xlu1 %2710 }
 0x480   : > { %v2762_v6 = vadd.f32 1e-05, %v2740_v58  ;;  %v2741_v52 = vmul.f32 0.0078125, %v2711_v42 }
 0x482   : > { %v3685_v5 = vpop.eup %3684  ;;  %3688 = vrsqrt.f32 %v2762_v6  ;;  %v2763_v47 = vadd.f32 1e-05, %v2741_v52 }
 0x483   : > { %v2804_v32 = vmul.f32 %v3685_v5, %v5375_v40 }
 0x484   : > { %v3687_v24 = vpop.eup %3686  ;;  %3690 = vrsqrt.f32 %v2763_v47 }
 0x485   : > { %v2833_v35 = vmul.f32 %v5437_v10, %v2804_v32  ;;  %v2805_v56 = vmul.f32 %v3687_v24, %v5378_v16 }
 0x487   : > { %v2834_v38 = vmul.f32 %v5437_v10, %v2805_v56  ;;  %v2862_v37 = vadd.f32 %v5445_v23, %v2833_v35 }
 0x489   : > { %v2863_v62 = vadd.f32 %v5445_v23, %v2834_v38 }
 0x48b   : > { %v3205_v57 = vpack.c.bf16 %v2863_v62, %v2862_v37  ;;  %v2713_v34 = vpop.xlane.xlu0 %2712 }
 0x48c   : > { %v3689_v39 = vpop.eup %3688  ;;  %v2742_v53 = vmul.f32 0.0078125, %v2713_v34 }
 0x48d   : > { %3236 = vst [vmem:[%s5454_s29 + $0x28] sm:$0xff] %v3205_v57   ;;  %v2806_v61 = vmul.f32 %v3689_v39, %v5385_v15  ;;  %v2715_v40 = vpop.xlane.xlu1 %2714 }
 0x48e   : > { %v3691_v8 = vpop.eup %3690  ;;  %v2764_v31 = vadd.f32 1e-05, %v2742_v53  ;;  %v2743_v3 = vmul.f32 0.0078125, %v2715_v40 }
 0x48f   : > { %v2835_v16 = vmul.f32 %v5437_v10, %v2806_v61  ;;  %v2807_v0 = vmul.f32 %v3691_v8, %v5388_v12 }
 0x490   : > { %3692 = vrsqrt.f32 %v2764_v31  ;;  %v2765_v22 = vadd.f32 1e-05, %v2743_v3 }
 0x491   : > { %v2836_v36 = vmul.f32 %v5437_v10, %v2807_v0  ;;  %v2864_v20 = vadd.f32 %v5445_v23, %v2835_v16 }
 0x492   : > { %3694 = vrsqrt.f32 %v2765_v22 }
 0x493   : > { %v2865_v29 = vadd.f32 %v5445_v23, %v2836_v36 }
 0x495   : > { %v3210_v63 = vpack.c.bf16 %v2865_v29, %v2864_v20  ;;  %v2717_v15 = vpop.xlane.xlu0 %2716 }
 0x496   : > { %v2744_v13 = vmul.f32 0.0078125, %v2717_v15 }
 0x497   : > { %3237 = vst [vmem:[%s5454_s29 + $0x30] sm:$0xff] %v3210_v63   ;;  %v2719_v45 = vpop.xlane.xlu1 %2718 }
 0x498   : > { %v2766_v9 = vadd.f32 1e-05, %v2744_v13  ;;  %v2745_v25 = vmul.f32 0.0078125, %v2719_v45 }
 0x49a   : > { %v3693_v1 = vpop.eup %3692  ;;  %3696 = vrsqrt.f32 %v2766_v9  ;;  %v2767_v12 = vadd.f32 1e-05, %v2745_v25 }
 0x49b   : > { %v2808_v27 = vmul.f32 %v3693_v1, %v5395_v51 }
 0x49c   : > { %v3695_v46 = vpop.eup %3694  ;;  %3698 = vrsqrt.f32 %v2767_v12 }
 0x49d   : > { %v2837_v26 = vmul.f32 %v5437_v10, %v2808_v27  ;;  %v2809_v44 = vmul.f32 %v3695_v46, %v5398_v11 }
 0x49f   : > { %v2838_v17 = vmul.f32 %v5437_v10, %v2809_v44  ;;  %v2866_v33 = vadd.f32 %v5445_v23, %v2837_v26 }
 0x4a1   : > { %v2867_v54 = vadd.f32 %v5445_v23, %v2838_v17 }
 0x4a3   : > { %v3215_v2 = vpack.c.bf16 %v2867_v54, %v2866_v33  ;;  %v2721_v49 = vpop.xlane.xlu0 %2720 }
 0x4a4   : > { %v3697_v4 = vpop.eup %3696  ;;  %v2746_v18 = vmul.f32 0.0078125, %v2721_v49 }
 0x4a5   : > { %3238 = vst [vmem:[%s5454_s29 + $0x38] sm:$0xff] %v3215_v2   ;;  %v2810_v60 = vmul.f32 %v3697_v4, %v5405_v28  ;;  %v2723_v51 = vpop.xlane.xlu1 %2722 }
 0x4a6   : > { %v3699_v55 = vpop.eup %3698  ;;  %v2768_v14 = vadd.f32 1e-05, %v2746_v18  ;;  %v2747_v41 = vmul.f32 0.0078125, %v2723_v51 }
 0x4a7   : > { %v2839_v11 = vmul.f32 %v5437_v10, %v2810_v60  ;;  %v2811_v21 = vmul.f32 %v3699_v55, %v5408_v30 }
 0x4a8   : > { %3700 = vrsqrt.f32 %v2768_v14  ;;  %v2769_v43 = vadd.f32 1e-05, %v2747_v41 }
 0x4a9   : > { %v2840_v7 = vmul.f32 %v5437_v10, %v2811_v21  ;;  %v2868_v58 = vadd.f32 %v5445_v23, %v2839_v11 }
 0x4aa   : > { %3702 = vrsqrt.f32 %v2769_v43 }
 0x4ab   : > { %v2869_v42 = vadd.f32 %v5445_v23, %v2840_v7 }
 0x4ad   : > { %v3220_v6 = vpack.c.bf16 %v2869_v42, %v2868_v58  ;;  %v2725_v28 = vpop.xlane.xlu0 %2724 }
 0x4ae   : > { %v2748_v52 = vmul.f32 0.0078125, %v2725_v28 }
 0x4af   : > { %3239 = vst [vmem:[%s5454_s29 + $0x40] sm:$0xff] %v3220_v6   ;;  %v2727_v5 = vpop.xlane.xlu1 %2726 }
 0x4b0   : > { %v2770_v47 = vadd.f32 1e-05, %v2748_v52  ;;  %v2749_v32 = vmul.f32 0.0078125, %v2727_v5 }
 0x4b2   : > { %v3701_v24 = vpop.eup %3700  ;;  %3704 = vrsqrt.f32 %v2770_v47  ;;  %v2771_v30 = vadd.f32 1e-05, %v2749_v32 }
 0x4b3   : > { %v2812_v35 = vmul.f32 %v3701_v24, %v5415_v59 }
 0x4b4   : > { %v3703_v56 = vpop.eup %3702  ;;  %3706 = vrsqrt.f32 %v2771_v30 }
 0x4b5   : > { %v2841_v38 = vmul.f32 %v5437_v10, %v2812_v35  ;;  %v2813_v37 = vmul.f32 %v3703_v56, %v5418_v48 }
 0x4b7   : > { %v2842_v62 = vmul.f32 %v5437_v10, %v2813_v37  ;;  %v2870_v57 = vadd.f32 %v5445_v23, %v2841_v38 }
 0x4b9   : > { %v2871_v34 = vadd.f32 %v5445_v23, %v2842_v62 }
 0x4bb   : > { %v3225_v39 = vpack.c.bf16 %v2871_v34, %v2870_v57 }
 0x4bc   : > { %v3705_v53 = vpop.eup %3704 }
 0x4bd   : > { %3240 = vst [vmem:[%s5454_s29 + $0x48] sm:$0xff] %v3225_v39   ;;  %v2814_v61 = vmul.f32 %v3705_v53, %v5425_v19 }
 0x4be   : > { %v3707_v40 = vpop.eup %3706 }
 0x4bf   : > { %v2843_v59 = vmul.f32 %v5437_v10, %v2814_v61  ;;  %v2815_v8 = vmul.f32 %v3707_v40, %v5428_v50 }
 0x4c1   : > { %v2844_v31 = vmul.f32 %v5437_v10, %v2815_v8  ;;  %v2872_v48 = vadd.f32 %v5445_v23, %v2843_v59 }
 0x4c3   : > { %v2873_v3 = vadd.f32 %v5445_v23, %v2844_v31 }
 0x4c5   : > { %v3230_v16 = vpack.c.bf16 %v2873_v3, %v2872_v48 }
 0x4c7   : > { %3241 = vst [vmem:[%s5454_s29 + $0x50] sm:$0xff] %v3230_v16  }
 0x4c8 PF: > { %s27_s24 = sadd.s32 1, %s3718_s24  }
 0x4c9   : > { %p24_p4 = scmp.ge.s32.totalorder %s27_s24, 4  }
 0x4cb   :  { %26 = sbr.rel (!%p24_p4) target bundleno = 3 (0x3), region = 127 }

// kernel: model_forward.35
= control target key start
LH: loop header
LB: loop body
LE: loop exit
PB: predicated region body
PF: predicated region fallthrough
CT: control target
= control target key end

     0   :  { %s3285_s29 = smov 0   ;;  %s4085_s0 = inlined_call_operand.vmem [shape: bf16[352,128], index: 0, kind: input, shape index: {}]   ;;  %s4086_s1 = inlined_call_operand.vmem [shape: bf16[352,128], index: 1, kind: input, shape index: {}]   ;;  %s4087_s2 = inlined_call_operand.vmem [shape: bf16[352,128], index: 2, kind: input, shape index: {}]   ;;  %s4088_s3 = inlined_call_operand.vmem [shape: bf16[128,128], index: 3, kind: input, shape index: {}]   ;;  %s4089_s4 = inlined_call_operand.vmem [shape: bf16[128,128], index: 4, kind: input, shape index: {}]   ;;  %s4090_s5 = inlined_call_operand.vmem [shape: bf16[128,128], index: 5, kind: input, shape index: {}]   ;;  %s4091_s6 = inlined_call_operand.vmem [shape: f32[1,128], index: 6, kind: input, shape index: {}]   ;;  %s4092_s7 = inlined_call_operand.vmem [shape: bf16[128,128], index: 7, kind: input, shape index: {}]   ;;  %s4093_s8 = inlined_call_operand.vmem [shape: f32[1,128], index: 8, kind: input, shape index: {}]   ;;  %s4094_s9 = inlined_call_operand.vmem [shape: bf16[128,128], index: 9, kind: input, shape index: {}]   ;;  %s4095_s10 = inlined_call_operand.vmem [shape: f32[1,128], index: 10, kind: input, shape index: {}]   ;;  %s4096_s11 = inlined_call_operand.vmem [shape: f32[1,128], index: 11, kind: input, shape index: {}]   ;;  %s4097_s12 = inlined_call_operand.vmem [shape: f32[1,128], index: 12, kind: input, shape index: {}]   ;;  %s4098_s13 = inlined_call_operand.vmem [shape: f32[352,128], index: 13, kind: output, shape index: {0}]   ;;  %s4099_s14 = inlined_call_operand.vmem [shape: bf16[352,128], index: 14, kind: output, shape index: {1}]  }
   0x1 LB: > { %s2441_s30 = sadd.s32 4294967295, %s3206_s29   ;;  %p2445_p0 = scmp.ge.s32.totalorder %s3206_s29, 1  ;;  %s3206_s29 = sphi %s3285_s29, %s25_s29  }
   0x2   : > { %p438_p1 = scmp.lt.s32.totalorder %s3206_s29, 3 }
   0x4   : > { %p439_p2 = pnand %p2445_p0, %p438_p1 }
   0x5   : > { %v3061_v0 = vld [vmem:[%s4089_s4] sm:$0xff] (!%p439_p2)   ;;  %v3208_v1 = vmov (!%p439_p2), 0.0   ;;  %v3062_v2 = vld [vmem:[%s4089_s4 + $0x8] sm:$0xff] (!%p439_p2)   ;;  %s499_s19 = smul.u32 (!%p439_p2), 22, %s2441_s30  ;;  %vm3209_vm0 = vmmov (!%p439_p2), 0   ;;  %v3063_v3 = vld [vmem:[%s4089_s4 + $0x10] sm:$0xff] (!%p439_p2)  }
   0x6   : > { %442 = sbr.rel (%p439_p2) target bundleno = 1140 (0x474), region = 72  ;;  %2735 = vmatprep.subr.bf16.mxu0 (!%p439_p2), %v3208_v1  ;;  %3035 = vmatprep.subr.bf16.mxu1 (!%p439_p2), %v3208_v1  ;;  %v3064_v4 = vld [vmem:[%s4089_s4 + $0x18] sm:$0xff] (!%p439_p2)   ;;  %v3065_v5 = vld [vmem:[%s4089_s4 + $0x20] sm:$0xff] (!%p439_p2)   ;;  %v3066_v6 = vld [vmem:[%s4089_s4 + $0x28] sm:$0xff] (!%p439_p2)  }
   0x7   : > { %2736 = vmatpush3.bf16.msra.mxu0 (!%p439_p2), %v3061_v0  ;;  %3043 = vmatpush3.bf16.msra.mxu1 (!%p439_p2), %v3061_v0  ;;  %p500_p3 = scmp.lt.s32.totalorder (!%p439_p2), %s499_s19, 43  ;;  %v3067_v7 = vld [vmem:[%s4089_s4 + $0x30] sm:$0xff] (!%p439_p2)   ;;  %v3068_v8 = vld [vmem:[%s4089_s4 + $0x38] sm:$0xff] (!%p439_p2)   ;;  %v3071_v11 = vld [vmem:[%s4090_s5] sm:$0xff] (!%p439_p2)  }
   0x8   : > { %2737 = vmatprep.subr.bf16.mxu0 (!%p439_p2), %v3208_v1  ;;  %3036 = vmatprep.subr.bf16.mxu1 (!%p439_p2), %v3208_v1  ;;  %v3072_v12 = vld [vmem:[%s4088_s3] sm:$0xff] (!%p439_p2)   ;;  %v3073_v13 = vld [vmem:[%s4090_s5 + $0x8] sm:$0xff] (!%p439_p2)   ;;  %v3077_v17 = vld [vmem:[%s4090_s5 + $0x10] sm:$0xff] (!%p439_p2)  }
   0x9   : > { %2751 = vmatprep.mubr.msk.bf16.mxu0 (!%p439_p2), %vm3209_vm0, %v3208_v1  ;;  %2775 = vmatprep.mubr.msk.bf16.mxu1 (!%p439_p2), %vm3209_vm0, %v3208_v1  ;;  %v3076_v14 = vld [vmem:[%s4088_s3 + $0x8] sm:$0xff] (!%p439_p2)   ;;  %v3080_v18 = vld [vmem:[%s4088_s3 + $0x10] sm:$0xff] (!%p439_p2)   ;;  %v3081_v19 = vld [vmem:[%s4090_s5 + $0x18] sm:$0xff] (!%p439_p2)  }
   0xa   : > { %v3082_v20 = vld [vmem:[%s4088_s3 + $0x18] sm:$0xff] (!%p439_p2)   ;;  %v3086_v23 = vld [vmem:[%s4090_s5 + $0x20] sm:$0xff] (!%p439_p2)   ;;  %v3088_v27 = vld [vmem:[%s4090_s5 + $0x28] sm:$0xff] (!%p439_p2)  }
   0xb   : > { %2738 = vmatpush3.bf16.msra.mxu0 (!%p439_p2), %v3062_v2  ;;  %3044 = vmatpush3.bf16.msra.mxu1 (!%p439_p2), %v3062_v2  ;;  %v3085_v24 = vld [vmem:[%s4088_s3 + $0x20] sm:$0xff] (!%p439_p2)   ;;  %v3087_v28 = vld [vmem:[%s4088_s3 + $0x28] sm:$0xff] (!%p439_p2)   ;;  %v3093_v29 = vld [vmem:[%s4090_s5 + $0x30] sm:$0xff] (!%p439_p2)  }
   0xc   : > { %2739 = vmatprep.subr.bf16.mxu0 (!%p439_p2), %v3208_v1  ;;  %3037 = vmatprep.subr.bf16.mxu1 (!%p439_p2), %v3208_v1  ;;  %v3091_v30 = vld [vmem:[%s4088_s3 + $0x30] sm:$0xff] (!%p439_p2)   ;;  %v3096_v31 = vld [vmem:[%s4090_s5 + $0x38] sm:$0xff] (!%p439_p2)   ;;  %v3118_v37 = vld [vmem:[%s4092_s7] sm:$0xff] (!%p439_p2)  }
   0xd   : > { %s4101_s19 = smov (!%p500_p3, %s499_s19), 43  ;;  %v3092_v32 = vld [vmem:[%s4088_s3 + $0x38] sm:$0xff]   ;;  %v3119_v39 = vld [vmem:[%s4092_s7 + $0x8] sm:$0xff]   ;;  %v3120_v41 = vld [vmem:[%s4092_s7 + $0x10] sm:$0xff]  }
   0xe   : > { %s3315_s22 = sshll.u32 %s4101_s19, 2  ;;  %v3121_v52 = vld [vmem:[%s4092_s7 + $0x18] sm:$0xff]   ;;  %v3122_v56 = vld [vmem:[%s4092_s7 + $0x20] sm:$0xff]   ;;  %v3123_v60 = vld [vmem:[%s4092_s7 + $0x28] sm:$0xff]   ;;  %s2449_s17 = sshll.u32 %s4101_s19, 3 }
   0xf   : > { %s3321_s25 = scalar_lea.vmem %s4086_s1, %s3315_s22  ;;  %2740 = vmatpush3.bf16.msra.mxu0 %v3063_v3  ;;  %3045 = vmatpush3.bf16.msra.mxu1 %v3063_v3  ;;  %s3362_s15 = scalar_lea.vmem %s4085_s0, %s3315_s22  ;;  %v3124_v63 = vld [vmem:[%s4092_s7 + $0x30] sm:$0xff]   ;;  %v3125_v2 = vld [vmem:[%s4092_s7 + $0x38] sm:$0xff]  }
  0x10   : > { %2741 = vmatprep.subr.bf16.mxu0 %v3208_v1  ;;  %3038 = vmatprep.subr.bf16.mxu1 %v3208_v1  ;;  %v3069_v9 = vld [vmem:[%s3321_s25] sm:$0xff]   ;;  %v3070_v10 = vld [vmem:[%s3321_s25 + $0x30] sm:$0xff]   ;;  %v3074_v15 = vld [vmem:[%s3321_s25 + $0x8] sm:$0xff]   ;;  %s3456_s27 = scalar_lea.vmem %s4087_s2, %s3315_s22  ;;  %s3966_s24 = scalar_lea.vmem %s4098_s13, %s2449_s17 }
  0x11   : > { %v3075_v16 = vld [vmem:[%s3321_s25 + $0x38] sm:$0xff]   ;;  %v3078_v21 = vld [vmem:[%s3321_s25 + $0x10] sm:$0xff]   ;;  %v3079_v22 = vld [vmem:[%s3321_s25 + $0x40] sm:$0xff]   ;;  %s3981_s28 = scalar_lea.vmem %s4099_s14, %s3315_s22 }
  0x12   : > { %v3083_v25 = vld [vmem:[%s3321_s25 + $0x18] sm:$0xff]   ;;  %v3084_v26 = vld [vmem:[%s3321_s25 + $0x48] sm:$0xff]   ;;  %v3089_v33 = vld [vmem:[%s3321_s25 + $0x20] sm:$0xff]  }
  0x13   : > { %2742 = vmatpush3.bf16.msra.mxu0 %v3064_v4  ;;  %3046 = vmatpush3.bf16.msra.mxu1 %v3064_v4  ;;  %v3090_v34 = vld [vmem:[%s3321_s25 + $0x50] sm:$0xff]   ;;  %v3094_v35 = vld [vmem:[%s3321_s25 + $0x28] sm:$0xff]   ;;  %v3095_v36 = vld [vmem:[%s3362_s15] sm:$0xff]  }
  0x14   : > { %2743 = vmatprep.subr.bf16.mxu0 %v3208_v1  ;;  %3039 = vmatprep.subr.bf16.mxu1 %v3208_v1  ;;  %v574_v38 = vld [vmem:[%s3456_s27] sm:$0xff]   ;;  %v3097_v40 = vld [vmem:[%s3362_s15 + $0x8] sm:$0xff]   ;;  %v3099_v43 = vld [vmem:[%s3362_s15 + $0x10] sm:$0xff]  }
  0x15   : > { %v576_v42 = vld [vmem:[%s3456_s27 + $0x8] sm:$0xff]   ;;  %v578_v44 = vld [vmem:[%s3456_s27 + $0x10] sm:$0xff]   ;;  %v3101_v45 = vld [vmem:[%s3362_s15 + $0x18] sm:$0xff]  }
  0x16   : > { %v580_v46 = vld [vmem:[%s3456_s27 + $0x18] sm:$0xff]   ;;  %v3103_v47 = vld [vmem:[%s3362_s15 + $0x20] sm:$0xff]   ;;  %v3105_v49 = vld [vmem:[%s3362_s15 + $0x28] sm:$0xff]  }
  0x17   : > { %2744 = vmatpush3.bf16.msra.mxu0 %v3065_v5  ;;  %3047 = vmatpush3.bf16.msra.mxu1 %v3065_v5  ;;  %v582_v48 = vld [vmem:[%s3456_s27 + $0x20] sm:$0xff]   ;;  %v584_v50 = vld [vmem:[%s3456_s27 + $0x28] sm:$0xff]   ;;  %v3107_v51 = vld [vmem:[%s3362_s15 + $0x30] sm:$0xff]  }
  0x18   : > { %2745 = vmatprep.subr.bf16.mxu0 %v3208_v1  ;;  %3040 = vmatprep.subr.bf16.mxu1 %v3208_v1  ;;  %v586_v53 = vld [vmem:[%s3456_s27 + $0x30] sm:$0xff]   ;;  %v3109_v54 = vld [vmem:[%s3362_s15 + $0x38] sm:$0xff]   ;;  %v3111_v57 = vld [vmem:[%s3362_s15 + $0x40] sm:$0xff]  }
  0x19   : > { %v588_v55 = vld [vmem:[%s3456_s27 + $0x38] sm:$0xff]   ;;  %v590_v58 = vld [vmem:[%s3456_s27 + $0x40] sm:$0xff]   ;;  %v3113_v59 = vld [vmem:[%s3362_s15 + $0x48] sm:$0xff]  }
  0x1a   : > { %v592_v61 = vld [vmem:[%s3456_s27 + $0x48] sm:$0xff]   ;;  %v3115_v62 = vld [vmem:[%s3362_s15 + $0x50] sm:$0xff]  }
  0x1b   : > { %2746 = vmatpush3.bf16.msra.mxu0 %v3066_v6  ;;  %3048 = vmatpush3.bf16.msra.mxu1 %v3066_v6  ;;  %v594_v0 = vld [vmem:[%s3456_s27 + $0x50] sm:$0xff]  }
  0x1c   : > { %2747 = vmatprep.subr.bf16.mxu0 %v3208_v1  ;;  %3041 = vmatprep.subr.bf16.mxu1 %v3208_v1 }
  0x1f   : > { %2748 = vmatpush3.bf16.msra.mxu0 %v3067_v7  ;;  %3049 = vmatpush3.bf16.msra.mxu1 %v3067_v7 }
  0x20   : > { %2749 = vmatprep.subr.bf16.mxu0 %v3208_v1  ;;  %3042 = vmatprep.subr.bf16.mxu1 %v3208_v1 }
  0x23   : > { %2750 = vmatpush3.bf16.msra.mxu0 %v3068_v8  ;;  %3050 = vmatpush3.bf16.msra.mxu1 %v3068_v8 }
  0x24   : > { %2855 = vmatprep.subr.bf16.mxu0 %v3208_v1  ;;  %2795 = vmatprep.subr.bf16.mxu1 %v3208_v1 }
  0x26   : > { %2752 = vmatmul.mubr.bf16.vlgmr.msra.gmra.mrb[0].mxu0 %v3069_v9  ;;  %2776 = vmatmul.mubr.bf16.vlgmr.msra.gmra.mrb[0].mxu1 %v3070_v10 }
  0x27   : > { %2856 = vmatpush3.bf16.msra.mxu0 %v3071_v11  ;;  %2755 = vmatprep.mubr.msk.bf16.mxu0 %vm3209_vm0, %v3208_v1 }
  0x28   : > { %2857 = vmatprep.subr.bf16.mxu0 %v3208_v1  ;;  %2779 = vmatprep.mubr.msk.bf16.mxu1 %vm3209_vm0, %v3208_v1 }
  0x29   : > { %2796 = vmatpush3.bf16.msra.mxu1 %v3072_v12 }
  0x2a   : > { %2797 = vmatprep.subr.bf16.mxu1 %v3208_v1 }
  0x2b   : > { %2858 = vmatpush3.bf16.msra.mxu0 %v3073_v13 }
  0x2c   : > { %2859 = vmatprep.subr.bf16.mxu0 %v3208_v1 }
  0x2d   : > { %2798 = vmatpush3.bf16.msra.mxu1 %v3076_v14 }
  0x2e   : > { %2756 = vmatmul.mubr.bf16.gmra.mrb[4].mxu0 %v3074_v15  ;;  %2780 = vmatmul.mubr.bf16.gmra.mrb[4].mxu1 %v3075_v16 }
  0x2f   : > { %2860 = vmatpush3.bf16.msra.mxu0 %v3077_v17  ;;  %2759 = vmatprep.mubr.msk.bf16.mxu0 %vm3209_vm0, %v3208_v1 }
  0x30   : > { %2783 = vmatprep.mubr.msk.bf16.mxu1 %vm3209_vm0, %v3208_v1  ;;  %2799 = vmatprep.subr.bf16.mxu1 %v3208_v1 }
  0x31   : > { %2800 = vmatpush3.bf16.msra.mxu1 %v3080_v18  ;;  %2861 = vmatprep.subr.bf16.mxu0 %v3208_v1 }
  0x32   : > { %2801 = vmatprep.subr.bf16.mxu1 %v3208_v1 }
  0x33   : > { %2862 = vmatpush3.bf16.msra.mxu0 %v3081_v19  ;;  %v3126_v19 = vld [vmem:[%s4094_s9] sm:$0xff]  }
  0x34   : > { %2863 = vmatprep.subr.bf16.mxu0 %v3208_v1 }
  0x35   : > { %2802 = vmatpush3.bf16.msra.mxu1 %v3082_v20  ;;  %v3127_v20 = vld [vmem:[%s4094_s9 + $0x8] sm:$0xff]  }
  0x36   : > { %2760 = vmatmul.mubr.bf16.gmra.mrb[8].mxu0 %v3078_v21  ;;  %2784 = vmatmul.mubr.bf16.gmra.mrb[8].mxu1 %v3079_v22 }
  0x37   : > { %2763 = vmatprep.mubr.msk.bf16.mxu0 %vm3209_vm0, %v3208_v1  ;;  %2787 = vmatprep.mubr.msk.bf16.mxu1 %vm3209_vm0, %v3208_v1 }
  0x38   : > { %2803 = vmatprep.subr.bf16.mxu1 %v3208_v1  ;;  %2864 = vmatpush3.bf16.msra.mxu0 %v3086_v23 }
  0x39   : > { %2804 = vmatpush3.bf16.msra.mxu1 %v3085_v24  ;;  %2865 = vmatprep.subr.bf16.mxu0 %v3208_v1 }
  0x3a   : > { %2805 = vmatprep.subr.bf16.mxu1 %v3208_v1 }
  0x3c   : > { %2866 = vmatpush3.bf16.msra.mxu0 %v3088_v27 }
  0x3d   : > { %2806 = vmatpush3.bf16.msra.mxu1 %v3087_v28  ;;  %2867 = vmatprep.subr.bf16.mxu0 %v3208_v1 }
  0x3e   : > { %2764 = vmatmul.mubr.bf16.gmra.mrb[12].mxu0 %v3083_v25  ;;  %2788 = vmatmul.mubr.bf16.gmra.mrb[12].mxu1 %v3084_v26  ;;  %v3128_v25 = vld [vmem:[%s4094_s9 + $0x10] sm:$0xff]  }
  0x3f   : > { %2767 = vmatprep.mubr.msk.bf16.mxu0 %vm3209_vm0, %v3208_v1  ;;  %2791 = vmatprep.mubr.msk.bf16.mxu1 %vm3209_vm0, %v3208_v1 }
  0x40   : > { %2807 = vmatprep.subr.bf16.mxu1 %v3208_v1  ;;  %2868 = vmatpush3.bf16.msra.mxu0 %v3093_v29 }
  0x41   : > { %2808 = vmatpush3.bf16.msra.mxu1 %v3091_v30  ;;  %2869 = vmatprep.subr.bf16.mxu0 %v3208_v1  ;;  %v3129_v30 = vld [vmem:[%s4094_s9 + $0x18] sm:$0xff]  }
  0x42   : > { %2809 = vmatprep.subr.bf16.mxu1 %v3208_v1 }
  0x44   : > { %2870 = vmatpush3.bf16.msra.mxu0 %v3096_v31 }
  0x45   : > { %2810 = vmatpush3.bf16.msra.mxu1 %v3092_v32  ;;  %2975 = vmatprep.subr.bf16.mxu0 %v3208_v1 }
  0x46   : > { %2768 = vmatmul.mubr.bf16.gmra.mrb[16].mxu0 %v3089_v33  ;;  %2792 = vmatmul.mubr.bf16.gmra.mrb[16].mxu1 %v3090_v34 }
  0x47   : > { %2771 = vmatprep.mubr.msk.bf16.mxu0 %vm3209_vm0, %v3208_v1  ;;  %2811 = vmatprep.mubr.msk.bf16.mxu1 %vm3209_vm0, %v3208_v1 }
  0x48   : > { %2915 = vmatprep.subr.bf16.mxu1 %v3208_v1 }
  0x4e   : > { %2772 = vmatmul.mubr.bf16.gmra.mrb[20].mxu0 %v3094_v35  ;;  %2812 = vmatmul.mubr.bf16.vlgmr.msra.gmra.mrb[20].mxu1 %v3095_v36  ;;  %v3130_v35 = vld [vmem:[%s4094_s9 + $0x20] sm:$0xff]  }
  0x4f   : > { %2815 = vmatprep.mubr.msk.bf16.mxu1 %vm3209_vm0, %v3208_v1  ;;  %2871 = vmatprep.mubr.msk.bf16.mxu0 %vm3209_vm0, %v3208_v1 }
  0x50   : > { %2916 = vmatpush3.bf16.msra.mxu1 %v3118_v37 }
  0x51   : > { %2917 = vmatprep.subr.bf16.mxu1 %v3208_v1 }
  0x54   : > { %2918 = vmatpush3.bf16.msra.mxu1 %v3119_v39 }
  0x55   : > { %2919 = vmatprep.subr.bf16.mxu1 %v3208_v1 }
  0x56   : > { %2816 = vmatmul.mubr.bf16.gmra.mrb[24].mxu1 %v3097_v40  ;;  %2872 = vmatmul.mubr.bf16.vlgmr.msra.gmra.mrb[24].mxu0 %v574_v38  ;;  %v3131_v40 = vld [vmem:[%s4094_s9 + $0x28] sm:$0xff]  }
  0x57   : > { %2819 = vmatprep.mubr.msk.bf16.mxu1 %vm3209_vm0, %v3208_v1  ;;  %2875 = vmatprep.mubr.msk.bf16.mxu0 %vm3209_vm0, %v3208_v1 }
  0x58   : > { %2920 = vmatpush3.bf16.msra.mxu1 %v3120_v41  ;;  %2976 = vmatpush3.bf16.msra.mxu0 %v3126_v19 }
  0x59   : > { %2921 = vmatprep.subr.bf16.mxu1 %v3208_v1  ;;  %2977 = vmatprep.subr.bf16.mxu0 %v3208_v1 }
  0x5c   : > { %2922 = vmatpush3.bf16.msra.mxu1 %v3121_v52  ;;  %2978 = vmatpush3.bf16.msra.mxu0 %v3127_v20 }
  0x5d   : > { %2923 = vmatprep.subr.bf16.mxu1 %v3208_v1  ;;  %2979 = vmatprep.subr.bf16.mxu0 %v3208_v1 }
  0x5e   : > { %2820 = vmatmul.mubr.bf16.gmra.mrb[28].mxu1 %v3099_v43  ;;  %2876 = vmatmul.mubr.bf16.gmra.mrb[28].mxu0 %v576_v42 }
  0x5f   : > { %2823 = vmatprep.mubr.msk.bf16.mxu1 %vm3209_vm0, %v3208_v1  ;;  %2879 = vmatprep.mubr.msk.bf16.mxu0 %vm3209_vm0, %v3208_v1 }
  0x60   : > { %2924 = vmatpush3.bf16.msra.mxu1 %v3122_v56  ;;  %2980 = vmatpush3.bf16.msra.mxu0 %v3128_v25 }
  0x61   : > { %2925 = vmatprep.subr.bf16.mxu1 %v3208_v1  ;;  %2981 = vmatprep.subr.bf16.mxu0 %v3208_v1 }
  0x64   : > { %2926 = vmatpush3.bf16.msra.mxu1 %v3123_v60  ;;  %2982 = vmatpush3.bf16.msra.mxu0 %v3129_v30 }
  0x65   : > { %2927 = vmatprep.subr.bf16.mxu1 %v3208_v1  ;;  %2983 = vmatprep.subr.bf16.mxu0 %v3208_v1 }
  0x66   : > { %2824 = vmatmul.mubr.bf16.gmra.mrb[32].mxu1 %v3101_v45  ;;  %2880 = vmatmul.mubr.bf16.gmra.mrb[32].mxu0 %v578_v44  ;;  %v3132_v45 = vld [vmem:[%s4094_s9 + $0x30] sm:$0xff]  }
  0x67   : > { %2827 = vmatprep.mubr.msk.bf16.mxu1 %vm3209_vm0, %v3208_v1  ;;  %2883 = vmatprep.mubr.msk.bf16.mxu0 %vm3209_vm0, %v3208_v1 }
  0x68   : > { %2928 = vmatpush3.bf16.msra.mxu1 %v3124_v63  ;;  %2984 = vmatpush3.bf16.msra.mxu0 %v3130_v35  ;;  %v3636_v63 = vld [vmem:[%s4091_s6] ss:$0 sm:$0xff] }
  0x69   : > { %2929 = vmatprep.subr.bf16.mxu1 %v3208_v1  ;;  %2985 = vmatprep.subr.bf16.mxu0 %v3208_v1 }
  0x6c   : > { %2930 = vmatpush3.bf16.msra.mxu1 %v3125_v2  ;;  %2986 = vmatpush3.bf16.msra.mxu0 %v3131_v40 }
  0x6d   : > { %2987 = vmatprep.subr.bf16.mxu0 %v3208_v1 }
  0x6e   : > { %2828 = vmatmul.mubr.bf16.gmra.mrb[36].mxu1 %v3103_v47  ;;  %2884 = vmatmul.mubr.bf16.gmra.mrb[36].mxu0 %v580_v46 }
  0x6f   : > { %2831 = vmatprep.mubr.msk.bf16.mxu1 %vm3209_vm0, %v3208_v1  ;;  %2887 = vmatprep.mubr.msk.bf16.mxu0 %vm3209_vm0, %v3208_v1 }
  0x70   : > { %2988 = vmatpush3.bf16.msra.mxu0 %v3132_v45 }
  0x71   : > { %2989 = vmatprep.subr.bf16.mxu0 %v3208_v1 }
  0x76   : > { %2832 = vmatmul.mubr.bf16.gmra.mrb[40].mxu1 %v3105_v49  ;;  %2888 = vmatmul.mubr.bf16.gmra.mrb[40].mxu0 %v582_v48 }
  0x77   : > { %2835 = vmatprep.mubr.msk.bf16.mxu1 %vm3209_vm0, %v3208_v1  ;;  %2891 = vmatprep.mubr.msk.bf16.mxu0 %vm3209_vm0, %v3208_v1 }
  0x7e   : > { %2836 = vmatmul.mubr.bf16.gmra.mrb[44].mxu1 %v3107_v51  ;;  %2892 = vmatmul.mubr.bf16.gmra.mrb[44].mxu0 %v584_v50  ;;  %v3133_v50 = vld [vmem:[%s4094_s9 + $0x38] sm:$0xff]  }
  0x7f   : > { %2839 = vmatprep.mubr.msk.bf16.mxu1 %vm3209_vm0, %v3208_v1  ;;  %2895 = vmatprep.mubr.msk.bf16.mxu0 %vm3209_vm0, %v3208_v1 }
  0x80   : > { %2990 = vmatpush3.bf16.msra.mxu0 %v3133_v50 }
  0x86   : > { %2840 = vmatmul.mubr.bf16.gmra.mrb[48].mxu1 %v3109_v54  ;;  %2896 = vmatmul.mubr.bf16.gmra.mrb[48].mxu0 %v586_v53 }
  0x87   : > { %2843 = vmatprep.mubr.msk.bf16.mxu1 %vm3209_vm0, %v3208_v1  ;;  %2899 = vmatprep.mubr.msk.bf16.mxu0 %vm3209_vm0, %v3208_v1 }
  0x8e   : > { %2844 = vmatmul.mubr.bf16.gmra.mrb[52].mxu1 %v3111_v57  ;;  %2900 = vmatmul.mubr.bf16.gmra.mrb[52].mxu0 %v588_v55 }
  0x8f   : > { %2847 = vmatprep.mubr.msk.bf16.mxu1 %vm3209_vm0, %v3208_v1  ;;  %2903 = vmatprep.mubr.msk.bf16.mxu0 %vm3209_vm0, %v3208_v1 }
  0x96   : > { %2848 = vmatmul.mubr.bf16.gmra.mrb[56].mxu1 %v3113_v59  ;;  %2904 = vmatmul.mubr.bf16.gmra.mrb[56].mxu0 %v590_v58 }
  0x97   : > { %2851 = vmatprep.mubr.msk.bf16.mxu1 %vm3209_vm0, %v3208_v1  ;;  %2907 = vmatprep.mubr.msk.bf16.mxu0 %vm3209_vm0, %v3208_v1 }
  0x9e   : > { %2852 = vmatmul.mubr.bf16.gmra.mrb[60].mxu1 %v3115_v62  ;;  %2908 = vmatmul.mubr.bf16.gmra.mrb[60].mxu0 %v592_v61 }
  0x9f   : > { %2911 = vmatprep.mubr.msk.bf16.mxu0 %vm3209_vm0, %v3208_v1  ;;  %2931 = vmatprep.mubr.msk.bf16.mxu1 %vm3209_vm0, %v3208_v1 }
  0xa6   : > { %2912 = vmatmul.mubr.bf16.gmra.mrb[64].mxu0 %v594_v0 }
  0xa7   : > { %2991 = vmatprep.mubr.msk.bf16.mxu0 %vm3209_vm0, %v3208_v1 }
  0xf9   : > { %v3556_v3 = vpop.f32.mrb[0].mxu0  ;;  %v3558_v4 = vpop.f32.mrb[0].mxu1 }
  0xfa   : > { %v2753_v5 = vpop.f32.mrb[1].mxu0  ;;  %v2777_v6 = vpop.f32.mrb[1].mxu1 }
  0xfb   : > { %v3560_v7 = vpop.f32.mrb[2].mxu0  ;;  %v3562_v8 = vpop.f32.mrb[2].mxu1 }
  0xfc   : > { %v2754_v9 = vpop.f32.mrb[3].mxu0  ;;  %v2778_v10 = vpop.f32.mrb[3].mxu1 }
 0x101   : > { %v3564_v11 = vpop.f32.mrb[4].mxu0  ;;  %v3566_v12 = vpop.f32.mrb[4].mxu1 }
 0x102   : > { %v2757_v13 = vpop.f32.mrb[5].mxu0  ;;  %v2781_v14 = vpop.f32.mrb[5].mxu1 }
 0x103   : > { %v3568_v15 = vpop.f32.mrb[6].mxu0  ;;  %v3570_v16 = vpop.f32.mrb[6].mxu1 }
 0x104   : > { %v2758_v17 = vpop.f32.mrb[7].mxu0  ;;  %v2782_v18 = vpop.f32.mrb[7].mxu1 }
 0x109   : > { %v3579_v21 = vpop.f32.mrb[8].mxu0  ;;  %v3581_v22 = vpop.f32.mrb[8].mxu1 }
 0x10a   : > { %v2761_v23 = vpop.f32.mrb[9].mxu0  ;;  %v2785_v24 = vpop.f32.mrb[9].mxu1 }
 0x10b   : > { %v3586_v26 = vpop.f32.mrb[10].mxu0  ;;  %v3588_v27 = vpop.f32.mrb[10].mxu1 }
 0x10c   : > { %v2762_v28 = vpop.f32.mrb[11].mxu0  ;;  %v2786_v29 = vpop.f32.mrb[11].mxu1 }
 0x111   : > { %v3595_v31 = vpop.f32.mrb[12].mxu0  ;;  %v3597_v32 = vpop.f32.mrb[12].mxu1 }
 0x112   : > { %v2765_v33 = vpop.f32.mrb[13].mxu0  ;;  %v2789_v34 = vpop.f32.mrb[13].mxu1 }
 0x113   : > { %v3602_v36 = vpop.f32.mrb[14].mxu0  ;;  %v3604_v37 = vpop.f32.mrb[14].mxu1 }
 0x114   : > { %v2766_v38 = vpop.f32.mrb[15].mxu0  ;;  %v2790_v39 = vpop.f32.mrb[15].mxu1 }
 0x119   : > { %v3611_v41 = vpop.f32.mrb[16].mxu0  ;;  %v3613_v42 = vpop.f32.mrb[16].mxu1 }
 0x11a   : > { %v2769_v43 = vpop.f32.mrb[17].mxu0  ;;  %v2793_v44 = vpop.f32.mrb[17].mxu1 }
 0x11b   : > { %v3618_v46 = vpop.f32.mrb[18].mxu0  ;;  %v3620_v47 = vpop.f32.mrb[18].mxu1 }
 0x11c   : > { %v2770_v48 = vpop.f32.mrb[19].mxu0  ;;  %v2794_v49 = vpop.f32.mrb[19].mxu1 }
 0x121   : > { %v3627_v51 = vpop.f32.mrb[20].mxu0  ;;  %v1011_v52 = vpop.f32.mrb[20].mxu1 }
 0x122   : > { %v1012_v53 = vadd.f32 %v1011_v52, %v3556_v3  ;;  %v2773_v54 = vpop.f32.mrb[21].mxu0  ;;  %v2813_v55 = vpop.f32.mrb[21].mxu1 }
 0x123   : > { %v3630_v56 = vpop.f32.mrb[22].mxu0  ;;  %v1014_v57 = vpop.f32.mrb[22].mxu1 }
 0x124   : > { %v1015_v58 = vadd.f32 %v1014_v57, %v3560_v7  ;;  %v2774_v59 = vpop.f32.mrb[23].mxu0  ;;  %v2814_v60 = vpop.f32.mrb[23].mxu1 }
 0x129   : > { %v1019_v61 = vpop.f32.mrb[24].mxu1  ;;  %v1262_v62 = vpop.f32.mrb[24].mxu0 }
 0x12a   : > { %v1020_v0 = vadd.f32 %v1019_v61, %v3564_v11  ;;  %v1349_v2 = vadd.f32 %v1262_v62, %v1012_v53  ;;  %v2817_v3 = vpop.f32.mrb[25].mxu1  ;;  %v2873_v5 = vpop.f32.mrb[25].mxu0 }
 0x12b   : > { %v1022_v6 = vpop.f32.mrb[26].mxu1  ;;  %v1265_v9 = vpop.f32.mrb[26].mxu0 }
 0x12c   : > { %v1378_v10 = vadd.f32 %v3636_v63, %v1349_v2  ;;  %v1023_v7 = vadd.f32 %v1022_v6, %v3568_v15  ;;  %v1350_v13 = vadd.f32 %v1265_v9, %v1015_v58  ;;  %v2874_v14 = vpop.f32.mrb[27].mxu0  ;;  %v2818_v17 = vpop.f32.mrb[27].mxu1 }
 0x12e   : > { %v1379_v18 = vadd.f32 %v3636_v63, %v1350_v13  ;;  %v1400_v19 = vmax.f32 %v1378_v10, 0.0 }
 0x130   : > { %v1401_v20 = vmax.f32 %v1379_v18, 0.0 }
 0x131   : > { %v1027_v23 = vpop.f32.mrb[28].mxu1  ;;  %v1270_v24 = vpop.f32.mrb[28].mxu0 }
 0x132   : > { %v1422_v25 = vpack.c.bf16 %v1401_v20, %v1400_v19  ;;  %v1028_v11 = vadd.f32 %v1027_v23, %v3579_v21  ;;  %v1351_v28 = vadd.f32 %v1270_v24, %v1020_v0  ;;  %v2821_v29 = vpop.f32.mrb[29].mxu1  ;;  %v2877_v30 = vpop.f32.mrb[29].mxu0 }
 0x133   : > { %v1030_v33 = vpop.f32.mrb[30].mxu1  ;;  %v1273_v34 = vpop.f32.mrb[30].mxu0 }
 0x134   : > { %v1380_v35 = vadd.f32 %v3636_v63, %v1351_v28  ;;  %v1031_v15 = vadd.f32 %v1030_v33, %v3586_v26  ;;  %v1352_v38 = vadd.f32 %v1273_v34, %v1023_v7  ;;  %v2878_v39 = vpop.f32.mrb[31].mxu0  ;;  %2932 = vmatmul.mubr.bf16.vlgmr.msra.gmra.mrb[64].mxu1 %v1422_v25  ;;  %v2822_v40 = vpop.f32.mrb[31].mxu1 }
 0x135   : > { %2935 = vmatprep.mubr.msk.bf16.mxu1 %vm3209_vm0, %v3208_v1 }
 0x136   : > { %v1381_v43 = vadd.f32 %v3636_v63, %v1352_v38  ;;  %v1402_v44 = vmax.f32 %v1380_v35, 0.0 }
 0x138   : > { %v1403_v21 = vmax.f32 %v1381_v43, 0.0 }
 0x139   : > { %v1035_v45 = vpop.f32.mrb[32].mxu1  ;;  %v1278_v48 = vpop.f32.mrb[32].mxu0 }
 0x13a   : > { %v1036_v49 = vadd.f32 %v1035_v45, %v3595_v31  ;;  %v1353_v50 = vadd.f32 %v1278_v48, %v1028_v11  ;;  %v2825_v52 = vpop.f32.mrb[33].mxu1  ;;  %v2881_v53 = vpop.f32.mrb[33].mxu0  ;;  %v1423_v54 = vpack.c.bf16 %v1403_v21, %v1402_v44 }
 0x13b   : > { %v1038_v26 = vpop.f32.mrb[34].mxu1  ;;  %v1281_v55 = vpop.f32.mrb[34].mxu0 }
 0x13c   : > { %v1382_v57 = vadd.f32 %v3636_v63, %v1353_v50  ;;  %v1039_v58 = vadd.f32 %v1038_v26, %v3602_v36  ;;  %v1354_v59 = vadd.f32 %v1281_v55, %v1031_v15  ;;  %v2882_v60 = vpop.f32.mrb[35].mxu0  ;;  %2936 = vmatmul.mubr.bf16.gmra.mrb[68].mxu1 %v1423_v54  ;;  %v2826_v61 = vpop.f32.mrb[35].mxu1 }
 0x13d   : > { %2939 = vmatprep.mubr.msk.bf16.mxu1 %vm3209_vm0, %v3208_v1 }
 0x13e   : > { %v1383_v62 = vadd.f32 %v3636_v63, %v1354_v59  ;;  %v1404_v31 = vmax.f32 %v1382_v57, 0.0 }
 0x140   : > { %v1405_v0 = vmax.f32 %v1383_v62, 0.0 }
 0x141   : > { %v1043_v2 = vpop.f32.mrb[36].mxu1  ;;  %v1286_v3 = vpop.f32.mrb[36].mxu0 }
 0x142   : > { %v1044_v5 = vadd.f32 %v1043_v2, %v3611_v41  ;;  %v1355_v6 = vadd.f32 %v1286_v3, %v1036_v49  ;;  %v2829_v9 = vpop.f32.mrb[37].mxu1  ;;  %v2885_v10 = vpop.f32.mrb[37].mxu0  ;;  %v1424_v7 = vpack.c.bf16 %v1405_v0, %v1404_v31 }
 0x143   : > { %v1046_v36 = vpop.f32.mrb[38].mxu1  ;;  %v1289_v13 = vpop.f32.mrb[38].mxu0 }
 0x144   : > { %v1384_v14 = vadd.f32 %v3636_v63, %v1355_v6  ;;  %v1047_v17 = vadd.f32 %v1046_v36, %v3618_v46  ;;  %v1356_v18 = vadd.f32 %v1289_v13, %v1039_v58  ;;  %v2886_v19 = vpop.f32.mrb[39].mxu0  ;;  %2940 = vmatmul.mubr.bf16.gmra.mrb[72].mxu1 %v1424_v7  ;;  %v2830_v20 = vpop.f32.mrb[39].mxu1 }
 0x145   : > { %2943 = vmatprep.mubr.msk.bf16.mxu1 %vm3209_vm0, %v3208_v1 }
 0x146   : > { %v1385_v23 = vadd.f32 %v3636_v63, %v1356_v18  ;;  %v1406_v41 = vmax.f32 %v1384_v14, 0.0 }
 0x148   : > { %v1407_v24 = vmax.f32 %v1385_v23, 0.0 }
 0x149   : > { %v1051_v25 = vpop.f32.mrb[40].mxu1  ;;  %v1294_v11 = vpop.f32.mrb[40].mxu0 }
 0x14a   : > { %v1052_v28 = vadd.f32 %v1051_v25, %v3627_v51  ;;  %v1357_v29 = vadd.f32 %v1294_v11, %v1044_v5  ;;  %v2833_v30 = vpop.f32.mrb[41].mxu1  ;;  %v2889_v33 = vpop.f32.mrb[41].mxu0  ;;  %v1425_v34 = vpack.c.bf16 %v1407_v24, %v1406_v41 }
 0x14b   : > { %v1054_v46 = vpop.f32.mrb[42].mxu1  ;;  %v1297_v35 = vpop.f32.mrb[42].mxu0 }
 0x14c   : > { %v1386_v15 = vadd.f32 %v3636_v63, %v1357_v29  ;;  %v1055_v38 = vadd.f32 %v1054_v46, %v3630_v56  ;;  %v1358_v39 = vadd.f32 %v1297_v35, %v1047_v17  ;;  %v2890_v40 = vpop.f32.mrb[43].mxu0  ;;  %2944 = vmatmul.mubr.bf16.gmra.mrb[76].mxu1 %v1425_v34  ;;  %v2834_v43 = vpop.f32.mrb[43].mxu1 }
 0x14d   : > { %2947 = vmatprep.mubr.msk.bf16.mxu1 %vm3209_vm0, %v3208_v1 }
 0x14e   : > { %v1387_v44 = vadd.f32 %v3636_v63, %v1358_v39  ;;  %v1408_v51 = vmax.f32 %v1386_v15, 0.0 }
 0x150   : > { %v1409_v21 = vmax.f32 %v1387_v44, 0.0 }
 0x151   : > { %v1059_v45 = vpop.f32.mrb[44].mxu1  ;;  %v1302_v48 = vpop.f32.mrb[44].mxu0 }
 0x152   : > { %v1060_v49 = vadd.f32 %v1059_v45, %v3558_v4  ;;  %v1359_v50 = vadd.f32 %v1302_v48, %v1052_v28  ;;  %v2837_v52 = vpop.f32.mrb[45].mxu1  ;;  %v2893_v53 = vpop.f32.mrb[45].mxu0  ;;  %v1426_v54 = vpack.c.bf16 %v1409_v21, %v1408_v51 }
 0x153   : > { %v1062_v56 = vpop.f32.mrb[46].mxu1  ;;  %v1305_v26 = vpop.f32.mrb[46].mxu0 }
 0x154   : > { %v1388_v55 = vadd.f32 %v3636_v63, %v1359_v50  ;;  %v1063_v57 = vadd.f32 %v1062_v56, %v3562_v8  ;;  %v1360_v58 = vadd.f32 %v1305_v26, %v1055_v38  ;;  %v2894_v59 = vpop.f32.mrb[47].mxu0  ;;  %2948 = vmatmul.mubr.bf16.gmra.mrb[80].mxu1 %v1426_v54  ;;  %v2838_v60 = vpop.f32.mrb[47].mxu1 }
 0x155   : > { %2951 = vmatprep.mubr.msk.bf16.mxu1 %vm3209_vm0, %v3208_v1 }
 0x156   : > { %v1389_v61 = vadd.f32 %v3636_v63, %v1360_v58  ;;  %v1410_v4 = vmax.f32 %v1388_v55, 0.0 }
 0x158   : > { %v1411_v62 = vmax.f32 %v1389_v61, 0.0 }
 0x159   : > { %v1067_v31 = vpop.f32.mrb[48].mxu1  ;;  %v1310_v0 = vpop.f32.mrb[48].mxu0 }
 0x15a   : > { %v1068_v2 = vadd.f32 %v1067_v31, %v3566_v12  ;;  %v1361_v3 = vadd.f32 %v1310_v0, %v1060_v49  ;;  %v2841_v5 = vpop.f32.mrb[49].mxu1  ;;  %v2897_v6 = vpop.f32.mrb[49].mxu0  ;;  %v1427_v9 = vpack.c.bf16 %v1411_v62, %v1410_v4 }
 0x15b   : > { %v1070_v8 = vpop.f32.mrb[50].mxu1  ;;  %v1313_v10 = vpop.f32.mrb[50].mxu0 }
 0x15c   : > { %v1390_v7 = vadd.f32 %v3636_v63, %v1361_v3  ;;  %v1071_v36 = vadd.f32 %v1070_v8, %v3570_v16  ;;  %v1362_v13 = vadd.f32 %v1313_v10, %v1063_v57  ;;  %v2898_v14 = vpop.f32.mrb[51].mxu0  ;;  %2952 = vmatmul.mubr.bf16.gmra.mrb[84].mxu1 %v1427_v9  ;;  %v2842_v17 = vpop.f32.mrb[51].mxu1 }
 0x15d   : > { %2955 = vmatprep.mubr.msk.bf16.mxu1 %vm3209_vm0, %v3208_v1 }
 0x15e   : > { %v1391_v18 = vadd.f32 %v3636_v63, %v1362_v13  ;;  %v1412_v12 = vmax.f32 %v1390_v7, 0.0 }
 0x160   : > { %v1413_v19 = vmax.f32 %v1391_v18, 0.0 }
 0x161   : > { %v1075_v20 = vpop.f32.mrb[52].mxu1  ;;  %v1318_v23 = vpop.f32.mrb[52].mxu0 }
 0x162   : > { %v1076_v41 = vadd.f32 %v1075_v20, %v3581_v22  ;;  %v1363_v24 = vadd.f32 %v1318_v23, %v1068_v2  ;;  %v2845_v25 = vpop.f32.mrb[53].mxu1  ;;  %v2901_v11 = vpop.f32.mrb[53].mxu0  ;;  %v1428_v28 = vpack.c.bf16 %v1413_v19, %v1412_v12  ;;  %v3703_v23 = vld [vmem:[%s4093_s8] ss:$0 sm:$0xff] }
 0x163   : > { %v1078_v16 = vpop.f32.mrb[54].mxu1  ;;  %v1321_v29 = vpop.f32.mrb[54].mxu0 }
 0x164   : > { %v1392_v30 = vadd.f32 %v3636_v63, %v1363_v24  ;;  %v1079_v33 = vadd.f32 %v1078_v16, %v3588_v27  ;;  %v1364_v34 = vadd.f32 %v1321_v29, %v1071_v36  ;;  %v2902_v46 = vpop.f32.mrb[55].mxu0  ;;  %2956 = vmatmul.mubr.bf16.gmra.mrb[88].mxu1 %v1428_v28  ;;  %v2846_v35 = vpop.f32.mrb[55].mxu1 }
 0x165   : > { %2959 = vmatprep.mubr.msk.bf16.mxu1 %vm3209_vm0, %v3208_v1 }
 0x166   : > { %v1393_v15 = vadd.f32 %v3636_v63, %v1364_v34  ;;  %v1414_v22 = vmax.f32 %v1392_v30, 0.0 }
 0x168   : > { %v1415_v38 = vmax.f32 %v1393_v15, 0.0 }
 0x169   : > { %v1083_v39 = vpop.f32.mrb[56].mxu1  ;;  %v1326_v40 = vpop.f32.mrb[56].mxu0 }
 0x16a   : > { %v1084_v43 = vadd.f32 %v1083_v39, %v3597_v32  ;;  %v1365_v44 = vadd.f32 %v1326_v40, %v1076_v41  ;;  %v2849_v51 = vpop.f32.mrb[57].mxu1  ;;  %v2905_v21 = vpop.f32.mrb[57].mxu0  ;;  %v1429_v45 = vpack.c.bf16 %v1415_v38, %v1414_v22 }
 0x16b   : > { %v1086_v27 = vpop.f32.mrb[58].mxu1  ;;  %v1329_v48 = vpop.f32.mrb[58].mxu0 }
 0x16c   : > { %v1394_v49 = vadd.f32 %v3636_v63, %v1365_v44  ;;  %v1087_v50 = vadd.f32 %v1086_v27, %v3604_v37  ;;  %v1366_v52 = vadd.f32 %v1329_v48, %v1079_v33  ;;  %v2906_v53 = vpop.f32.mrb[59].mxu0  ;;  %2960 = vmatmul.mubr.bf16.gmra.mrb[92].mxu1 %v1429_v45  ;;  %v2850_v54 = vpop.f32.mrb[59].mxu1 }
 0x16d   : > { %2963 = vmatprep.mubr.msk.bf16.mxu1 %vm3209_vm0, %v3208_v1 }
 0x16e   : > { %v1395_v56 = vadd.f32 %v3636_v63, %v1366_v52  ;;  %v1416_v32 = vmax.f32 %v1394_v49, 0.0 }
 0x170   : > { %v1417_v26 = vmax.f32 %v1395_v56, 0.0 }
 0x171   : > { %v1091_v55 = vpop.f32.mrb[60].mxu1  ;;  %v1334_v57 = vpop.f32.mrb[60].mxu0 }
 0x172   : > { %v1092_v58 = vadd.f32 %v1091_v55, %v3613_v42  ;;  %v1367_v59 = vadd.f32 %v1334_v57, %v1084_v43  ;;  %v2853_v60 = vpop.f32.mrb[61].mxu1  ;;  %v2909_v61 = vpop.f32.mrb[61].mxu0  ;;  %v1430_v4 = vpack.c.bf16 %v1417_v26, %v1416_v32 }
 0x173   : > { %v1094_v37 = vpop.f32.mrb[62].mxu1  ;;  %v1337_v62 = vpop.f32.mrb[62].mxu0 }
 0x174   : > { %v1396_v31 = vadd.f32 %v3636_v63, %v1367_v59  ;;  %v1095_v0 = vadd.f32 %v1094_v37, %v3620_v47  ;;  %v1368_v2 = vadd.f32 %v1337_v62, %v1087_v50  ;;  %v2910_v3 = vpop.f32.mrb[63].mxu0  ;;  %2964 = vmatmul.mubr.bf16.gmra.mrb[96].mxu1 %v1430_v4  ;;  %v2854_v5 = vpop.f32.mrb[63].mxu1 }
 0x175   : > { %2967 = vmatprep.mubr.msk.bf16.mxu1 %vm3209_vm0, %v3208_v1 }
 0x176   : > { %v1397_v6 = vadd.f32 %v3636_v63, %v1368_v2  ;;  %v1418_v42 = vmax.f32 %v1396_v31, 0.0 }
 0x178   : > { %v1419_v9 = vmax.f32 %v1397_v6, 0.0 }
 0x179   : > { %v1342_v8 = vpop.f32.mrb[64].mxu0 }
 0x17a   : > { %v1369_v10 = vadd.f32 %v1342_v8, %v1092_v58  ;;  %v2913_v7 = vpop.f32.mrb[65].mxu0  ;;  %v1431_v36 = vpack.c.bf16 %v1419_v9, %v1418_v42 }
 0x17b   : > { %v1345_v13 = vpop.f32.mrb[66].mxu0 }
 0x17c   : > { %v1398_v14 = vadd.f32 %v3636_v63, %v1369_v10  ;;  %v1370_v17 = vadd.f32 %v1345_v13, %v1095_v0  ;;  %v2914_v47 = vpop.f32.mrb[67].mxu0  ;;  %2968 = vmatmul.mubr.bf16.gmra.mrb[100].mxu1 %v1431_v36 }
 0x17d   : > { %2971 = vmatprep.mubr.msk.bf16.mxu1 %vm3209_vm0, %v3208_v1 }
 0x17e   : > { %v1399_v18 = vadd.f32 %v3636_v63, %v1370_v17  ;;  %v1420_v12 = vmax.f32 %v1398_v14, 0.0 }
 0x180   : > { %v1421_v19 = vmax.f32 %v1399_v18, 0.0 }
 0x182   : > { %v1432_v20 = vpack.c.bf16 %v1421_v19, %v1420_v12 }
 0x184   : > { %2972 = vmatmul.mubr.bf16.gmra.mrb[104].mxu1 %v1432_v20 }
 0x207   : > { %v1538_v41 = vpop.f32.mrb[64].mxu1 }
 0x208   : > { %v1539_v24 = vadd.f32 %v3703_v23, %v1538_v41  ;;  %v2933_v25 = vpop.f32.mrb[65].mxu1 }
 0x209   : > { %v1541_v11 = vpop.f32.mrb[66].mxu1 }
 0x20a   : > { %v1542_v28 = vadd.f32 %v3703_v23, %v1541_v11  ;;  %v2934_v16 = vpop.f32.mrb[67].mxu1  ;;  %v1625_v29 = vmax.f32 %v1539_v24, 0.0 }
 0x20c   : > { %v1626_v30 = vmax.f32 %v1542_v28, 0.0 }
 0x20e   : > { %v1647_v63 = vpack.c.bf16 %v1626_v30, %v1625_v29 }
 0x20f   : > { %v1546_v33 = vpop.f32.mrb[68].mxu1 }
 0x210   : > { %v1547_v34 = vadd.f32 %v3703_v23, %v1546_v33  ;;  %v2937_v46 = vpop.f32.mrb[69].mxu1  ;;  %2992 = vmatmul.mubr.bf16.vlgmr.msra.gmra.mrb[68].mxu0 %v1647_v63 }
 0x211   : > { %v1549_v35 = vpop.f32.mrb[70].mxu1  ;;  %2995 = vmatprep.mubr.msk.bf16.mxu0 %vm3209_vm0, %v3208_v1 }
 0x212   : > { %v1550_v15 = vadd.f32 %v3703_v23, %v1549_v35  ;;  %v2938_v22 = vpop.f32.mrb[71].mxu1  ;;  %v1627_v38 = vmax.f32 %v1547_v34, 0.0 }
 0x214   : > { %v1628_v39 = vmax.f32 %v1550_v15, 0.0 }
 0x216   : > { %v1648_v40 = vpack.c.bf16 %v1628_v39, %v1627_v38 }
 0x217   : > { %v1554_v43 = vpop.f32.mrb[72].mxu1 }
 0x218   : > { %v1555_v44 = vadd.f32 %v3703_v23, %v1554_v43  ;;  %v2941_v51 = vpop.f32.mrb[73].mxu1  ;;  %2996 = vmatmul.mubr.bf16.gmra.mrb[72].mxu0 %v1648_v40 }
 0x219   : > { %v1557_v21 = vpop.f32.mrb[74].mxu1  ;;  %2999 = vmatprep.mubr.msk.bf16.mxu0 %vm3209_vm0, %v3208_v1 }
 0x21a   : > { %v1558_v45 = vadd.f32 %v3703_v23, %v1557_v21  ;;  %v2942_v27 = vpop.f32.mrb[75].mxu1  ;;  %v1629_v48 = vmax.f32 %v1555_v44, 0.0 }
 0x21c   : > { %v1630_v49 = vmax.f32 %v1558_v45, 0.0 }
 0x21e   : > { %v1649_v50 = vpack.c.bf16 %v1630_v49, %v1629_v48 }
 0x21f   : > { %v1562_v52 = vpop.f32.mrb[76].mxu1 }
 0x220   : > { %v1563_v53 = vadd.f32 %v3703_v23, %v1562_v52  ;;  %v2945_v54 = vpop.f32.mrb[77].mxu1  ;;  %3000 = vmatmul.mubr.bf16.gmra.mrb[76].mxu0 %v1649_v50 }
 0x221   : > { %v1565_v56 = vpop.f32.mrb[78].mxu1  ;;  %3003 = vmatprep.mubr.msk.bf16.mxu0 %vm3209_vm0, %v3208_v1 }
 0x222   : > { %v1566_v32 = vadd.f32 %v3703_v23, %v1565_v56  ;;  %v2946_v26 = vpop.f32.mrb[79].mxu1  ;;  %v1631_v55 = vmax.f32 %v1563_v53, 0.0 }
 0x224   : > { %v1632_v57 = vmax.f32 %v1566_v32, 0.0 }
 0x226   : > { %v1650_v58 = vpack.c.bf16 %v1632_v57, %v1631_v55 }
 0x227   : > { %v1570_v59 = vpop.f32.mrb[80].mxu1 }
 0x228   : > { %v1571_v60 = vadd.f32 %v3703_v23, %v1570_v59  ;;  %v2949_v61 = vpop.f32.mrb[81].mxu1  ;;  %3004 = vmatmul.mubr.bf16.gmra.mrb[80].mxu0 %v1650_v58 }
 0x229   : > { %v1573_v4 = vpop.f32.mrb[82].mxu1  ;;  %3007 = vmatprep.mubr.msk.bf16.mxu0 %vm3209_vm0, %v3208_v1 }
 0x22a   : > { %v1574_v37 = vadd.f32 %v3703_v23, %v1573_v4  ;;  %v2950_v62 = vpop.f32.mrb[83].mxu1  ;;  %v1633_v31 = vmax.f32 %v1571_v60, 0.0  ;;  %v3750_v60 = vld [vmem:[%s4095_s10] ss:$0 sm:$0xff] }
 0x22c   : > { %v1634_v0 = vmax.f32 %v1574_v37, 0.0 }
 0x22e   : > { %v1651_v2 = vpack.c.bf16 %v1634_v0, %v1633_v31 }
 0x22f   : > { %v1578_v3 = vpop.f32.mrb[84].mxu1 }
 0x230   : > { %v1579_v5 = vadd.f32 %v3703_v23, %v1578_v3  ;;  %v2953_v6 = vpop.f32.mrb[85].mxu1  ;;  %3008 = vmatmul.mubr.bf16.gmra.mrb[84].mxu0 %v1651_v2 }
 0x231   : > { %v1581_v42 = vpop.f32.mrb[86].mxu1  ;;  %3011 = vmatprep.mubr.msk.bf16.mxu0 %vm3209_vm0, %v3208_v1 }
 0x232   : > { %v1582_v9 = vadd.f32 %v3703_v23, %v1581_v42  ;;  %v2954_v8 = vpop.f32.mrb[87].mxu1  ;;  %v1635_v10 = vmax.f32 %v1579_v5, 0.0 }
 0x234   : > { %v1636_v7 = vmax.f32 %v1582_v9, 0.0 }
 0x236   : > { %v1652_v36 = vpack.c.bf16 %v1636_v7, %v1635_v10 }
 0x237   : > { %v1586_v13 = vpop.f32.mrb[88].mxu1 }
 0x238   : > { %v1587_v14 = vadd.f32 %v3703_v23, %v1586_v13  ;;  %v2957_v17 = vpop.f32.mrb[89].mxu1  ;;  %3012 = vmatmul.mubr.bf16.gmra.mrb[88].mxu0 %v1652_v36 }
 0x239   : > { %v1589_v47 = vpop.f32.mrb[90].mxu1  ;;  %3015 = vmatprep.mubr.msk.bf16.mxu0 %vm3209_vm0, %v3208_v1 }
 0x23a   : > { %v1590_v18 = vadd.f32 %v3703_v23, %v1589_v47  ;;  %v2958_v12 = vpop.f32.mrb[91].mxu1  ;;  %v1637_v19 = vmax.f32 %v1587_v14, 0.0 }
 0x23c   : > { %v1638_v20 = vmax.f32 %v1590_v18, 0.0 }
 0x23e   : > { %v1653_v41 = vpack.c.bf16 %v1638_v20, %v1637_v19 }
 0x23f   : > { %v1594_v24 = vpop.f32.mrb[92].mxu1 }
 0x240   : > { %v1595_v25 = vadd.f32 %v3703_v23, %v1594_v24  ;;  %v2961_v11 = vpop.f32.mrb[93].mxu1  ;;  %3016 = vmatmul.mubr.bf16.gmra.mrb[92].mxu0 %v1653_v41 }
 0x241   : > { %v1597_v28 = vpop.f32.mrb[94].mxu1  ;;  %3019 = vmatprep.mubr.msk.bf16.mxu0 %vm3209_vm0, %v3208_v1 }
 0x242   : > { %v1598_v16 = vadd.f32 %v3703_v23, %v1597_v28  ;;  %v2962_v29 = vpop.f32.mrb[95].mxu1  ;;  %v1639_v30 = vmax.f32 %v1595_v25, 0.0 }
 0x244   : > { %v1640_v63 = vmax.f32 %v1598_v16, 0.0 }
 0x246   : > { %v1654_v33 = vpack.c.bf16 %v1640_v63, %v1639_v30 }
 0x247   : > { %v1602_v34 = vpop.f32.mrb[96].mxu1 }
 0x248   : > { %v1603_v46 = vadd.f32 %v3703_v23, %v1602_v34  ;;  %v2965_v35 = vpop.f32.mrb[97].mxu1  ;;  %3020 = vmatmul.mubr.bf16.gmra.mrb[96].mxu0 %v1654_v33 }
 0x249   : > { %v1605_v15 = vpop.f32.mrb[98].mxu1  ;;  %3023 = vmatprep.mubr.msk.bf16.mxu0 %vm3209_vm0, %v3208_v1 }
 0x24a   : > { %v1606_v22 = vadd.f32 %v3703_v23, %v1605_v15  ;;  %v2966_v38 = vpop.f32.mrb[99].mxu1  ;;  %v1641_v39 = vmax.f32 %v1603_v46, 0.0 }
 0x24c   : > { %v1642_v40 = vmax.f32 %v1606_v22, 0.0 }
 0x24e   : > { %v1655_v43 = vpack.c.bf16 %v1642_v40, %v1641_v39 }
 0x24f   : > { %v1610_v44 = vpop.f32.mrb[100].mxu1 }
 0x250   : > { %v1611_v51 = vadd.f32 %v3703_v23, %v1610_v44  ;;  %v2969_v21 = vpop.f32.mrb[101].mxu1  ;;  %3024 = vmatmul.mubr.bf16.gmra.mrb[100].mxu0 %v1655_v43 }
 0x251   : > { %v1613_v45 = vpop.f32.mrb[102].mxu1  ;;  %3027 = vmatprep.mubr.msk.bf16.mxu0 %vm3209_vm0, %v3208_v1 }
 0x252   : > { %v1614_v27 = vadd.f32 %v3703_v23, %v1613_v45  ;;  %v2970_v48 = vpop.f32.mrb[103].mxu1  ;;  %v1643_v49 = vmax.f32 %v1611_v51, 0.0 }
 0x254   : > { %v1644_v50 = vmax.f32 %v1614_v27, 0.0 }
 0x256   : > { %v1656_v52 = vpack.c.bf16 %v1644_v50, %v1643_v49 }
 0x257   : > { %v1618_v53 = vpop.f32.mrb[104].mxu1 }
 0x258   : > { %v1619_v54 = vadd.f32 %v3703_v23, %v1618_v53  ;;  %v2973_v56 = vpop.f32.mrb[105].mxu1  ;;  %3028 = vmatmul.mubr.bf16.gmra.mrb[104].mxu0 %v1656_v52 }
 0x259   : > { %v1621_v32 = vpop.f32.mrb[106].mxu1  ;;  %3031 = vmatprep.mubr.msk.bf16.mxu0 %vm3209_vm0, %v3208_v1 }
 0x25a   : > { %v1622_v26 = vadd.f32 %v3703_v23, %v1621_v32  ;;  %v2974_v55 = vpop.f32.mrb[107].mxu1  ;;  %v1645_v57 = vmax.f32 %v1619_v54, 0.0 }
 0x25c   : > { %v1646_v58 = vmax.f32 %v1622_v26, 0.0 }
 0x25e   : > { %v1657_v59 = vpack.c.bf16 %v1646_v58, %v1645_v57 }
 0x260   : > { %3032 = vmatmul.mubr.bf16.gmra.mrb[108].mxu0 %v1657_v59 }
 0x2e3   : > { %v1763_v61 = vpop.f32.mrb[68].mxu0 }
 0x2e4   : > { %v3753_v4 = vadd.f32 %v3750_v60, %v1763_v61  ;;  %v2993_v37 = vpop.f32.mrb[69].mxu0 }
 0x2e5   : > { %v1766_v62 = vpop.f32.mrb[70].mxu0 }
 0x2e6   : > { %1850 = vadd.xlane.f32.xlu0 %v3753_v4  ;;  %v2994_v1 = vpop.f32.mrb[71].mxu0  ;;  %v3757_v23 = vadd.f32 %v3750_v60, %v1766_v62 }
 0x2ea   : > { %1852 = vadd.xlane.f32.xlu0 %v3757_v23 }
 0x2eb   : > { %v1771_v31 = vpop.f32.mrb[72].mxu0 }
 0x2ec   : > { %v3761_v0 = vadd.f32 %v3750_v60, %v1771_v31  ;;  %v2997_v2 = vpop.f32.mrb[73].mxu0 }
 0x2ed   : > { %v1774_v3 = vpop.f32.mrb[74].mxu0 }
 0x2ee   : > { %1854 = vadd.xlane.f32.xlu1 %v3761_v0  ;;  %v2998_v5 = vpop.f32.mrb[75].mxu0  ;;  %v3765_v6 = vadd.f32 %v3750_v60, %v1774_v3 }
 0x2f2   : > { %1856 = vadd.xlane.f32.xlu1 %v3765_v6 }
 0x2f3   : > { %v1779_v42 = vpop.f32.mrb[76].mxu0 }
 0x2f4   : > { %v3769_v9 = vadd.f32 %v3750_v60, %v1779_v42  ;;  %v3001_v8 = vpop.f32.mrb[77].mxu0 }
 0x2f5   : > { %v1782_v10 = vpop.f32.mrb[78].mxu0 }
 0x2f6   : > { %v3772_v7 = vadd.f32 %v3750_v60, %v1782_v10  ;;  %1858 = vadd.xlane.f32.xlu0 %v3769_v9  ;;  %v3002_v36 = vpop.f32.mrb[79].mxu0 }
 0x2f8   : > { %1860 = vadd.xlane.f32.xlu1 %v3772_v7 }
 0x2fb   : > { %v1787_v13 = vpop.f32.mrb[80].mxu0 }
 0x2fc   : > { %v3777_v14 = vadd.f32 %v3750_v60, %v1787_v13  ;;  %v3005_v17 = vpop.f32.mrb[81].mxu0 }
 0x2fd   : > { %v1790_v47 = vpop.f32.mrb[82].mxu0 }
 0x2fe   : > { %v3780_v18 = vadd.f32 %v3750_v60, %v1790_v47  ;;  %1862 = vadd.xlane.f32.xlu0 %v3777_v14  ;;  %v3006_v12 = vpop.f32.mrb[83].mxu0 }
 0x300   : > { %1864 = vadd.xlane.f32.xlu1 %v3780_v18 }
 0x303   : > { %v1795_v19 = vpop.f32.mrb[84].mxu0 }
 0x304   : > { %v3785_v20 = vadd.f32 %v3750_v60, %v1795_v19  ;;  %v3009_v41 = vpop.f32.mrb[85].mxu0 }
 0x305   : > { %v1798_v24 = vpop.f32.mrb[86].mxu0 }
 0x306   : > { %v3788_v25 = vadd.f32 %v3750_v60, %v1798_v24  ;;  %1866 = vadd.xlane.f32.xlu0 %v3785_v20  ;;  %v3010_v11 = vpop.f32.mrb[87].mxu0 }
 0x308   : > { %1868 = vadd.xlane.f32.xlu1 %v3788_v25 }
 0x30b   : > { %v1803_v28 = vpop.f32.mrb[88].mxu0 }
 0x30c   : > { %v3793_v16 = vadd.f32 %v3750_v60, %v1803_v28  ;;  %v3013_v29 = vpop.f32.mrb[89].mxu0 }
 0x30d   : > { %v1806_v30 = vpop.f32.mrb[90].mxu0 }
 0x30e   : > { %v3796_v63 = vadd.f32 %v3750_v60, %v1806_v30  ;;  %1870 = vadd.xlane.f32.xlu0 %v3793_v16  ;;  %v3014_v33 = vpop.f32.mrb[91].mxu0 }
 0x310   : > { %1872 = vadd.xlane.f32.xlu1 %v3796_v63 }
 0x313   : > { %v1811_v34 = vpop.f32.mrb[92].mxu0 }
 0x314   : > { %v3801_v46 = vadd.f32 %v3750_v60, %v1811_v34  ;;  %v3017_v35 = vpop.f32.mrb[93].mxu0 }
 0x315   : > { %v1814_v15 = vpop.f32.mrb[94].mxu0 }
 0x316   : > { %v3804_v22 = vadd.f32 %v3750_v60, %v1814_v15  ;;  %1874 = vadd.xlane.f32.xlu0 %v3801_v46  ;;  %v3018_v38 = vpop.f32.mrb[95].mxu0 }
 0x318   : > { %1876 = vadd.xlane.f32.xlu1 %v3804_v22 }
 0x31b   : > { %v1819_v39 = vpop.f32.mrb[96].mxu0 }
 0x31c   : > { %v3809_v40 = vadd.f32 %v3750_v60, %v1819_v39  ;;  %v3021_v43 = vpop.f32.mrb[97].mxu0 }
 0x31d   : > { %v1822_v44 = vpop.f32.mrb[98].mxu0 }
 0x31e   : > { %v3812_v51 = vadd.f32 %v3750_v60, %v1822_v44  ;;  %1878 = vadd.xlane.f32.xlu0 %v3809_v40  ;;  %v3022_v21 = vpop.f32.mrb[99].mxu0 }
 0x320   : > { %1880 = vadd.xlane.f32.xlu1 %v3812_v51 }
 0x323   : > { %v1827_v45 = vpop.f32.mrb[100].mxu0 }
 0x324   : > { %v3817_v27 = vadd.f32 %v3750_v60, %v1827_v45  ;;  %v3025_v48 = vpop.f32.mrb[101].mxu0 }
 0x325   : > { %v1830_v49 = vpop.f32.mrb[102].mxu0 }
 0x326   : > { %v3820_v50 = vadd.f32 %v3750_v60, %v1830_v49  ;;  %1882 = vadd.xlane.f32.xlu0 %v3817_v27  ;;  %v3026_v52 = vpop.f32.mrb[103].mxu0 }
 0x328   : > { %1884 = vadd.xlane.f32.xlu1 %v3820_v50 }
 0x32b   : > { %v1835_v53 = vpop.f32.mrb[104].mxu0 }
 0x32c   : > { %v3825_v54 = vadd.f32 %v3750_v60, %v1835_v53  ;;  %v3029_v56 = vpop.f32.mrb[105].mxu0 }
 0x32d   : > { %v1838_v32 = vpop.f32.mrb[106].mxu0 }
 0x32e   : > { %v3828_v26 = vadd.f32 %v3750_v60, %v1838_v32  ;;  %1886 = vadd.xlane.f32.xlu0 %v3825_v54  ;;  %v3030_v55 = vpop.f32.mrb[107].mxu0 }
 0x330   : > { %1888 = vadd.xlane.f32.xlu1 %v3828_v26 }
 0x333   : > { %v1843_v57 = vpop.f32.mrb[108].mxu0 }
 0x334   : > { %v3833_v58 = vadd.f32 %v3750_v60, %v1843_v57  ;;  %v3033_v59 = vpop.f32.mrb[109].mxu0 }
 0x335   : > { %v1846_v61 = vpop.f32.mrb[110].mxu0 }
 0x336   : > { %v3836_v37 = vadd.f32 %v3750_v60, %v1846_v61  ;;  %1890 = vadd.xlane.f32.xlu0 %v3833_v58  ;;  %v3034_v62 = vpop.f32.mrb[111].mxu0 }
 0x338   : > { %1892 = vadd.xlane.f32.xlu1 %v3836_v37 }
 0x373   : > { %v1851_v1 = vpop.xlane.xlu0 %1850 }
 0x374   : > { %v1895_v31 = vmul.f32 0.0078125, %v1851_v1 }
 0x376   : > { %v3841_v2 = vsub.f32 %v3753_v4, %v1895_v31 }
 0x377   : > { %v1853_v3 = vpop.xlane.xlu0 %1852 }
 0x378   : > { %v1896_v5 = vmul.f32 0.0078125, %v1853_v3  ;;  %v1939_v42 = vmul.f32 %v3841_v2, %v3841_v2 }
 0x37a   : > { %v3846_v8 = vsub.f32 %v3757_v23, %v1896_v5  ;;  %1961 = vadd.xlane.f32.xlu0 %v1939_v42 }
 0x37b   : > { %v1855_v60 = vpop.xlane.xlu1 %1854 }
 0x37c   : > { %v1897_v10 = vmul.f32 0.0078125, %v1855_v60  ;;  %v1940_v36 = vmul.f32 %v3846_v8, %v3846_v8 }
 0x37e   : > { %v3851_v13 = vsub.f32 %v3761_v0, %v1897_v10  ;;  %1963 = vadd.xlane.f32.xlu1 %v1940_v36 }
 0x37f   : > { %v1857_v4 = vpop.xlane.xlu1 %1856 }
 0x380   : > { %v1898_v17 = vmul.f32 0.0078125, %v1857_v4  ;;  %v1941_v47 = vmul.f32 %v3851_v13, %v3851_v13 }
 0x382   : > { %v3856_v12 = vsub.f32 %v3765_v6, %v1898_v17  ;;  %1965 = vadd.xlane.f32.xlu0 %v1941_v47 }
 0x383   : > { %v1859_v23 = vpop.xlane.xlu0 %1858 }
 0x384   : > { %v1899_v19 = vmul.f32 0.0078125, %v1859_v23  ;;  %v1942_v41 = vmul.f32 %v3856_v12, %v3856_v12 }
 0x385   : > { %v1861_v24 = vpop.xlane.xlu1 %1860 }
 0x386   : > { %v3861_v11 = vsub.f32 %v3769_v9, %v1899_v19  ;;  %v1900_v0 = vmul.f32 0.0078125, %v1861_v24  ;;  %1967 = vadd.xlane.f32.xlu1 %v1942_v41 }
 0x388   : > { %v3864_v28 = vsub.f32 %v3772_v7, %v1900_v0  ;;  %v1943_v29 = vmul.f32 %v3861_v11, %v3861_v11 }
 0x38a   : > { %1969 = vadd.xlane.f32.xlu0 %v1943_v29  ;;  %v1944_v6 = vmul.f32 %v3864_v28, %v3864_v28 }
 0x38b   : > { %v1863_v30 = vpop.xlane.xlu0 %1862 }
 0x38c   : > { %v1901_v33 = vmul.f32 0.0078125, %v1863_v30  ;;  %1971 = vadd.xlane.f32.xlu1 %v1944_v6 }
 0x38d   : > { %v1865_v34 = vpop.xlane.xlu1 %1864 }
 0x38e   : > { %v3871_v35 = vsub.f32 %v3777_v14, %v1901_v33  ;;  %v1902_v9 = vmul.f32 0.0078125, %v1865_v34 }
 0x390   : > { %v3874_v15 = vsub.f32 %v3780_v18, %v1902_v9  ;;  %v1945_v7 = vmul.f32 %v3871_v35, %v3871_v35 }
 0x392   : > { %1973 = vadd.xlane.f32.xlu0 %v1945_v7  ;;  %v1946_v38 = vmul.f32 %v3874_v15, %v3874_v15 }
 0x393   : > { %v1867_v39 = vpop.xlane.xlu0 %1866 }
 0x394   : > { %v1903_v43 = vmul.f32 0.0078125, %v1867_v39  ;;  %1975 = vadd.xlane.f32.xlu1 %v1946_v38 }
 0x395   : > { %v1869_v44 = vpop.xlane.xlu1 %1868 }
 0x396   : > { %v3881_v21 = vsub.f32 %v3785_v20, %v1903_v43  ;;  %v1904_v14 = vmul.f32 0.0078125, %v1869_v44 }
 0x398   : > { %v3884_v45 = vsub.f32 %v3788_v25, %v1904_v14  ;;  %v1947_v18 = vmul.f32 %v3881_v21, %v3881_v21 }
 0x39a   : > { %1977 = vadd.xlane.f32.xlu0 %v1947_v18  ;;  %v1948_v48 = vmul.f32 %v3884_v45, %v3884_v45 }
 0x39b   : > { %v1871_v49 = vpop.xlane.xlu0 %1870 }
 0x39c   : > { %v1905_v52 = vmul.f32 0.0078125, %v1871_v49  ;;  %1979 = vadd.xlane.f32.xlu1 %v1948_v48 }
 0x39d   : > { %v1873_v53 = vpop.xlane.xlu1 %1872 }
 0x39e   : > { %v3891_v56 = vsub.f32 %v3793_v16, %v1905_v52  ;;  %v1906_v20 = vmul.f32 0.0078125, %v1873_v53 }
 0x3a0   : > { %v3894_v32 = vsub.f32 %v3796_v63, %v1906_v20  ;;  %v1949_v25 = vmul.f32 %v3891_v56, %v3891_v56 }
 0x3a2   : > { %1981 = vadd.xlane.f32.xlu0 %v1949_v25  ;;  %v1950_v55 = vmul.f32 %v3894_v32, %v3894_v32 }
 0x3a3   : > { %v1875_v57 = vpop.xlane.xlu0 %1874 }
 0x3a4   : > { %v1907_v59 = vmul.f32 0.0078125, %v1875_v57  ;;  %1983 = vadd.xlane.f32.xlu1 %v1950_v55  ;;  %v3953_v57 = vld [vmem:[%s4096_s11] ss:$0 sm:$0xff] }
 0x3a5   : > { %v1877_v61 = vpop.xlane.xlu1 %1876 }
 0x3a6   : > { %v3901_v62 = vsub.f32 %v3801_v46, %v1907_v59  ;;  %v1908_v16 = vmul.f32 0.0078125, %v1877_v61 }
 0x3a8   : > { %v3904_v1 = vsub.f32 %v3804_v22, %v1908_v16  ;;  %v1951_v63 = vmul.f32 %v3901_v62, %v3901_v62 }
 0x3aa   : > { %1985 = vadd.xlane.f32.xlu0 %v1951_v63  ;;  %v1952_v31 = vmul.f32 %v3904_v1, %v3904_v1  ;;  %v3960_v63 = vld [vmem:[%s4097_s12] ss:$0 sm:$0xff] }
 0x3ab   : > { %v1879_v3 = vpop.xlane.xlu0 %1878 }
 0x3ac   : > { %v1909_v5 = vmul.f32 0.0078125, %v1879_v3  ;;  %1987 = vadd.xlane.f32.xlu1 %v1952_v31 }
 0x3ad   : > { %v1881_v42 = vpop.xlane.xlu1 %1880 }
 0x3ae   : > { %v3911_v60 = vsub.f32 %v3809_v40, %v1909_v5  ;;  %v1910_v46 = vmul.f32 0.0078125, %v1881_v42 }
 0x3b0   : > { %v3914_v10 = vsub.f32 %v3812_v51, %v1910_v46  ;;  %v1953_v22 = vmul.f32 %v3911_v60, %v3911_v60 }
 0x3b2   : > { %1989 = vadd.xlane.f32.xlu0 %v1953_v22  ;;  %v1954_v36 = vmul.f32 %v3914_v10, %v3914_v10 }
 0x3b3   : > { %v1883_v4 = vpop.xlane.xlu0 %1882 }
 0x3b4   : > { %v1911_v17 = vmul.f32 0.0078125, %v1883_v4  ;;  %1991 = vadd.xlane.f32.xlu1 %v1954_v36 }
 0x3b5   : > { %v1885_v47 = vpop.xlane.xlu1 %1884 }
 0x3b6   : > { %v3921_v23 = vsub.f32 %v3817_v27, %v1911_v17  ;;  %v1912_v40 = vmul.f32 0.0078125, %v1885_v47  ;;  %v3189_v17 = vld [vmem:[%s3456_s27] sm:$0xff]  }
 0x3b7   : > { %v2173_v47 = vunpack.c.l.bf16 %v3189_v17 }
 0x3b8   : > { %v3924_v19 = vsub.f32 %v3820_v50, %v1912_v40  ;;  %v1955_v51 = vmul.f32 %v3921_v23, %v3921_v23  ;;  %v2174_v40 = vunpack.c.h.bf16 %v3189_v17 }
 0x3ba   : > { %1993 = vadd.xlane.f32.xlu0 %v1955_v51  ;;  %v1956_v41 = vmul.f32 %v3924_v19, %v3924_v19 }
 0x3bb   : > { %v1887_v24 = vpop.xlane.xlu0 %1886 }
 0x3bc   : > { %v1913_v0 = vmul.f32 0.0078125, %v1887_v24  ;;  %1995 = vadd.xlane.f32.xlu1 %v1956_v41 }
 0x3bd   : > { %v1889_v29 = vpop.xlane.xlu1 %1888 }
 0x3be   : > { %v3931_v6 = vsub.f32 %v3825_v54, %v1913_v0  ;;  %v1914_v27 = vmul.f32 0.0078125, %v1889_v29 }
 0x3c0   : > { %v3934_v30 = vsub.f32 %v3828_v26, %v1914_v27  ;;  %v1957_v50 = vmul.f32 %v3931_v6, %v3931_v6 }
 0x3c2   : > { %1997 = vadd.xlane.f32.xlu0 %v1957_v50  ;;  %v1958_v33 = vmul.f32 %v3934_v30, %v3934_v30 }
 0x3c3   : > { %v1891_v34 = vpop.xlane.xlu0 %1890 }
 0x3c4   : > { %v1915_v9 = vmul.f32 0.0078125, %v1891_v34  ;;  %1999 = vadd.xlane.f32.xlu1 %v1958_v33 }
 0x3c5   : > { %v1893_v7 = vpop.xlane.xlu1 %1892 }
 0x3c6   : > { %v3941_v38 = vsub.f32 %v3833_v58, %v1915_v9  ;;  %v1916_v54 = vmul.f32 0.0078125, %v1893_v7 }
 0x3c8   : > { %v3944_v39 = vsub.f32 %v3836_v37, %v1916_v54  ;;  %v1959_v26 = vmul.f32 %v3941_v38, %v3941_v38 }
 0x3ca   : > { %2001 = vadd.xlane.f32.xlu0 %v1959_v26  ;;  %v1960_v43 = vmul.f32 %v3944_v39, %v3944_v39 }
 0x3cc   : > { %2003 = vadd.xlane.f32.xlu1 %v1960_v43 }
 0x407   : > { %v1962_v44 = vpop.xlane.xlu0 %1961 }
 0x408   : > { %v2005_v14 = vmul.f32 0.0078125, %v1962_v44 }
 0x40a   : > { %v2027_v18 = vadd.f32 1e-05, %v2005_v14  ;;  %v3190_v14 = vld [vmem:[%s3456_s27 + $0x8] sm:$0xff]  }
 0x40b   : > { %v1964_v48 = vpop.xlane.xlu1 %1963 }
 0x40c   : > { %3145 = vrsqrt.f32 %v2027_v18  ;;  %v2006_v58 = vmul.f32 0.0078125, %v1964_v48  ;;  %v2175_v18 = vunpack.c.l.bf16 %v3190_v14  ;;  %v2176_v48 = vunpack.c.h.bf16 %v3190_v14 }
 0x40e   : > { %v2028_v49 = vadd.f32 1e-05, %v2006_v58 }
 0x40f   : > { %v1966_v52 = vpop.xlane.xlu0 %1965 }
 0x410   : > { %3147 = vrsqrt.f32 %v2028_v49  ;;  %v2007_v37 = vmul.f32 0.0078125, %v1966_v52 }
 0x412   : > { %v2029_v53 = vadd.f32 1e-05, %v2007_v37 }
 0x413   : > { %v1968_v20 = vpop.xlane.xlu1 %1967 }
 0x414   : > { %3149 = vrsqrt.f32 %v2029_v53  ;;  %v2008_v25 = vmul.f32 0.0078125, %v1968_v20 }
 0x416   : > { %v3146_v55 = vpop.eup %3145  ;;  %v2030_v59 = vadd.f32 1e-05, %v2008_v25 }
 0x417   : > { %v2071_v61 = vmul.f32 %v3146_v55, %v3841_v2  ;;  %v1970_v16 = vpop.xlane.xlu0 %1969 }
 0x418   : > { %3151 = vrsqrt.f32 %v2030_v59  ;;  %v2009_v31 = vmul.f32 0.0078125, %v1970_v16 }
 0x419   : > { %v2100_v3 = vmul.f32 %v3953_v57, %v2071_v61  ;;  %v1972_v5 = vpop.xlane.xlu1 %1971 }
 0x41a   : > { %v3148_v42 = vpop.eup %3147  ;;  %v2031_v46 = vadd.f32 1e-05, %v2009_v31  ;;  %v2010_v2 = vmul.f32 0.0078125, %v1972_v5  ;;  %v3191_v31 = vld [vmem:[%s3456_s27 + $0x10] sm:$0xff]  }
 0x41b   : > { %v2129_v22 = vadd.f32 %v3960_v63, %v2100_v3  ;;  %v2072_v36 = vmul.f32 %v3148_v42, %v3846_v8  ;;  %v2177_v3 = vunpack.c.l.bf16 %v3191_v31 }
 0x41c   : > { %3153 = vrsqrt.f32 %v2031_v46  ;;  %v2032_v4 = vadd.f32 1e-05, %v2010_v2  ;;  %v2178_v46 = vunpack.c.h.bf16 %v3191_v31 }
 0x41d   : > { %2151 = vst [vmem:[%s3966_s24] sm:$0xff] %v2129_v22  ;;  %v2101_v51 = vmul.f32 %v3953_v57, %v2072_v36  ;;  %v2195_v50 = vadd.f32 %v2173_v47, %v2129_v22 }
 0x41e   : > { %v3150_v41 = vpop.eup %3149  ;;  %3155 = vrsqrt.f32 %v2032_v4 }
 0x41f   : > { %v2130_v24 = vadd.f32 %v3960_v63, %v2101_v51  ;;  %v2073_v0 = vmul.f32 %v3150_v41, %v3851_v13  ;;  %v1974_v29 = vpop.xlane.xlu0 %1973 }
 0x420   : > { %v2011_v27 = vmul.f32 0.0078125, %v1974_v29 }
 0x421   : > { %2152 = vst [vmem:[%s3966_s24 + $0x8] sm:$0xff] %v2130_v24  ;;  %v2196_v8 = vadd.f32 %v2174_v40, %v2130_v24  ;;  %v2102_v33 = vmul.f32 %v3953_v57, %v2073_v0  ;;  %v1976_v34 = vpop.xlane.xlu1 %1975 }
 0x422   : > { %v3152_v9 = vpop.eup %3151  ;;  %v2033_v7 = vadd.f32 1e-05, %v2011_v27  ;;  %v2012_v54 = vmul.f32 0.0078125, %v1976_v34  ;;  %v3192_v34 = vld [vmem:[%s3456_s27 + $0x18] sm:$0xff]  }
 0x423   : > { %v2578_v13 = vpack.c.bf16 %v2196_v8, %v2195_v50  ;;  %v2131_v26 = vadd.f32 %v3960_v63, %v2102_v33  ;;  %v2074_v43 = vmul.f32 %v3152_v9, %v3856_v12  ;;  %v2179_v9 = vunpack.c.l.bf16 %v3192_v34 }
 0x424   : > { %3157 = vrsqrt.f32 %v2033_v7  ;;  %v2034_v44 = vadd.f32 1e-05, %v2012_v54  ;;  %v2180_v7 = vunpack.c.h.bf16 %v3192_v34 }
 0x425   : > { %2579 = vst [vmem:[%s3981_s28] sm:$0xff] %v2578_v13   ;;  %2153 = vst [vmem:[%s3966_s24 + $0x10] sm:$0xff] %v2131_v26  ;;  %v2103_v58 = vmul.f32 %v3953_v57, %v2074_v43  ;;  %v2197_v25 = vadd.f32 %v2175_v18, %v2131_v26 }
 0x426   : > { %v3154_v49 = vpop.eup %3153  ;;  %3159 = vrsqrt.f32 %v2034_v44 }
 0x427   : > { %v2132_v52 = vadd.f32 %v3960_v63, %v2103_v58  ;;  %v2075_v37 = vmul.f32 %v3154_v49, %v3861_v11  ;;  %v1978_v53 = vpop.xlane.xlu0 %1977 }
 0x428   : > { %v3156_v20 = vpop.eup %3155  ;;  %v2013_v12 = vmul.f32 0.0078125, %v1978_v53 }
 0x429   : > { %2154 = vst [vmem:[%s3966_s24 + $0x18] sm:$0xff] %v2132_v52  ;;  %v2198_v55 = vadd.f32 %v2176_v48, %v2132_v52  ;;  %v2104_v59 = vmul.f32 %v3953_v57, %v2075_v37  ;;  %v2076_v61 = vmul.f32 %v3156_v20, %v3864_v28  ;;  %v1980_v16 = vpop.xlane.xlu1 %1979 }
 0x42a   : > { %v2035_v5 = vadd.f32 1e-05, %v2013_v12  ;;  %v2014_v42 = vmul.f32 0.0078125, %v1980_v16 }
 0x42b   : > { %v2583_v11 = vpack.c.bf16 %v2198_v55, %v2197_v25  ;;  %v2133_v2 = vadd.f32 %v3960_v63, %v2104_v59  ;;  %v2105_v22 = vmul.f32 %v3953_v57, %v2076_v61  ;;  %v3193_v25 = vld [vmem:[%s3456_s27 + $0x20] sm:$0xff]  }
 0x42c   : > { %3161 = vrsqrt.f32 %v2035_v5  ;;  %v2036_v36 = vadd.f32 1e-05, %v2014_v42  ;;  %v2181_v55 = vunpack.c.l.bf16 %v3193_v25  ;;  %v2182_v59 = vunpack.c.h.bf16 %v3193_v25 }
 0x42d   : > { %2630 = vst [vmem:[%s3981_s28 + $0x8] sm:$0xff] %v2583_v11   ;;  %2155 = vst [vmem:[%s3966_s24 + $0x20] sm:$0xff] %v2133_v2  ;;  %v2134_v4 = vadd.f32 %v3960_v63, %v2105_v22  ;;  %v2199_v17 = vadd.f32 %v2177_v3, %v2133_v2 }
 0x42e   : > { %v3158_v28 = vpop.eup %3157  ;;  %3163 = vrsqrt.f32 %v2036_v36 }
 0x42f   : > { %2156 = vst [vmem:[%s3966_s24 + $0x28] sm:$0xff] %v2134_v4  ;;  %v2200_v47 = vadd.f32 %v2178_v46, %v2134_v4  ;;  %v2077_v40 = vmul.f32 %v3158_v28, %v3871_v35  ;;  %v1982_v51 = vpop.xlane.xlu0 %1981 }
 0x430   : > { %v3160_v41 = vpop.eup %3159  ;;  %v2015_v24 = vmul.f32 0.0078125, %v1982_v51 }
 0x431   : > { %v2588_v0 = vpack.c.bf16 %v2200_v47, %v2199_v17  ;;  %v2106_v29 = vmul.f32 %v3953_v57, %v2077_v40  ;;  %v2078_v27 = vmul.f32 %v3160_v41, %v3874_v15  ;;  %v1984_v50 = vpop.xlane.xlu1 %1983  ;;  %v3194_v40 = vld [vmem:[%s3456_s27 + $0x28] sm:$0xff]  }
 0x432   : > { %v2037_v8 = vadd.f32 1e-05, %v2015_v24  ;;  %v2016_v33 = vmul.f32 0.0078125, %v1984_v50  ;;  %v2183_v51 = vunpack.c.l.bf16 %v3194_v40  ;;  %v2184_v41 = vunpack.c.h.bf16 %v3194_v40 }
 0x433   : > { %2631 = vst [vmem:[%s3981_s28 + $0x10] sm:$0xff] %v2588_v0   ;;  %v2135_v54 = vadd.f32 %v3960_v63, %v2106_v29  ;;  %v2107_v35 = vmul.f32 %v3953_v57, %v2078_v27 }
 0x434   : > { %3165 = vrsqrt.f32 %v2037_v8  ;;  %v2038_v13 = vadd.f32 1e-05, %v2016_v33 }
 0x435   : > { %2157 = vst [vmem:[%s3966_s24 + $0x30] sm:$0xff] %v2135_v54  ;;  %v2136_v26 = vadd.f32 %v3960_v63, %v2107_v35  ;;  %v2201_v15 = vadd.f32 %v2179_v9, %v2135_v54 }
 0x436   : > { %v3162_v43 = vpop.eup %3161  ;;  %3167 = vrsqrt.f32 %v2038_v13 }
 0x437   : > { %2158 = vst [vmem:[%s3966_s24 + $0x38] sm:$0xff] %v2136_v26  ;;  %v2202_v44 = vadd.f32 %v2180_v7, %v2136_v26  ;;  %v2079_v14 = vmul.f32 %v3162_v43, %v3881_v21  ;;  %v1986_v18 = vpop.xlane.xlu0 %1985 }
 0x438   : > { %v3164_v48 = vpop.eup %3163  ;;  %v2017_v58 = vmul.f32 0.0078125, %v1986_v18 }
 0x439   : > { %v2593_v49 = vpack.c.bf16 %v2202_v44, %v2201_v15  ;;  %v2108_v52 = vmul.f32 %v3953_v57, %v2079_v14  ;;  %v2080_v37 = vmul.f32 %v3164_v48, %v3884_v45  ;;  %v1988_v53 = vpop.xlane.xlu1 %1987  ;;  %v3195_v15 = vld [vmem:[%s3456_s27 + $0x30] sm:$0xff]  }
 0x43a   : > { %v2039_v20 = vadd.f32 1e-05, %v2017_v58  ;;  %v2018_v12 = vmul.f32 0.0078125, %v1988_v53  ;;  %v2185_v44 = vunpack.c.l.bf16 %v3195_v15  ;;  %v2186_v14 = vunpack.c.h.bf16 %v3195_v15 }
 0x43b   : > { %2632 = vst [vmem:[%s3981_s28 + $0x18] sm:$0xff] %v2593_v49   ;;  %v2137_v61 = vadd.f32 %v3960_v63, %v2108_v52  ;;  %v2109_v21 = vmul.f32 %v3953_v57, %v2080_v37 }
 0x43c   : > { %3169 = vrsqrt.f32 %v2039_v20  ;;  %v2040_v16 = vadd.f32 1e-05, %v2018_v12 }
 0x43d   : > { %2159 = vst [vmem:[%s3966_s24 + $0x40] sm:$0xff] %v2137_v61  ;;  %v2138_v31 = vadd.f32 %v3960_v63, %v2109_v21  ;;  %v2203_v45 = vadd.f32 %v2181_v55, %v2137_v61 }
 0x43e   : > { %v3166_v3 = vpop.eup %3165  ;;  %3171 = vrsqrt.f32 %v2040_v16 }
 0x43f   : > { %2160 = vst [vmem:[%s3966_s24 + $0x48] sm:$0xff] %v2138_v31  ;;  %v2204_v5 = vadd.f32 %v2182_v59, %v2138_v31  ;;  %v2081_v42 = vmul.f32 %v3166_v3, %v3891_v56  ;;  %v1990_v46 = vpop.xlane.xlu0 %1989  ;;  %v3196_v31 = vld [vmem:[%s3456_s27 + $0x38] sm:$0xff]  }
 0x440   : > { %v3168_v11 = vpop.eup %3167  ;;  %v2019_v2 = vmul.f32 0.0078125, %v1990_v46  ;;  %v2187_v3 = vunpack.c.l.bf16 %v3196_v31 }
 0x441   : > { %v2598_v22 = vpack.c.bf16 %v2204_v5, %v2203_v45  ;;  %v2110_v36 = vmul.f32 %v3953_v57, %v2081_v42  ;;  %v2082_v4 = vmul.f32 %v3168_v11, %v3894_v32  ;;  %v1992_v28 = vpop.xlane.xlu1 %1991  ;;  %v2188_v45 = vunpack.c.h.bf16 %v3196_v31 }
 0x442   : > { %v2041_v17 = vadd.f32 1e-05, %v2019_v2  ;;  %v2020_v47 = vmul.f32 0.0078125, %v1992_v28 }
 0x443   : > { %2633 = vst [vmem:[%s3981_s28 + $0x20] sm:$0xff] %v2598_v22   ;;  %v2139_v24 = vadd.f32 %v3960_v63, %v2110_v36  ;;  %v2111_v56 = vmul.f32 %v3953_v57, %v2082_v4 }
 0x444   : > { %3173 = vrsqrt.f32 %v2041_v17  ;;  %v2042_v0 = vadd.f32 1e-05, %v2020_v47 }
 0x445   : > { %2161 = vst [vmem:[%s3966_s24 + $0x50] sm:$0xff] %v2139_v24  ;;  %v2140_v29 = vadd.f32 %v3960_v63, %v2111_v56  ;;  %v2205_v32 = vadd.f32 %v2183_v51, %v2139_v24  ;;  %v3197_v56 = vld [vmem:[%s3456_s27 + $0x40] sm:$0xff]  }
 0x446   : > { %v3170_v27 = vpop.eup %3169  ;;  %3175 = vrsqrt.f32 %v2042_v0  ;;  %v2189_v0 = vunpack.c.l.bf16 %v3197_v56 }
 0x447   : > { %2162 = vst [vmem:[%s3966_s24 + $0x58] sm:$0xff] %v2140_v29  ;;  %v2206_v50 = vadd.f32 %v2184_v41, %v2140_v29  ;;  %v2083_v8 = vmul.f32 %v3170_v27, %v3901_v62  ;;  %v1994_v33 = vpop.xlane.xlu0 %1993  ;;  %v2190_v29 = vunpack.c.h.bf16 %v3197_v56 }
 0x448   : > { %v3172_v34 = vpop.eup %3171  ;;  %v2021_v9 = vmul.f32 0.0078125, %v1994_v33 }
 0x449   : > { %v2603_v7 = vpack.c.bf16 %v2206_v50, %v2205_v32  ;;  %v2112_v54 = vmul.f32 %v3953_v57, %v2083_v8  ;;  %v2084_v35 = vmul.f32 %v3172_v34, %v3904_v1  ;;  %v1996_v13 = vpop.xlane.xlu1 %1995 }
 0x44a   : > { %v2043_v26 = vadd.f32 1e-05, %v2021_v9  ;;  %v2022_v43 = vmul.f32 0.0078125, %v1996_v13  ;;  %v3198_v13 = vld [vmem:[%s3456_s27 + $0x48] sm:$0xff]  }
 0x44b   : > { %2634 = vst [vmem:[%s3981_s28 + $0x28] sm:$0xff] %v2603_v7   ;;  %v2141_v18 = vadd.f32 %v3960_v63, %v2112_v54  ;;  %v2113_v62 = vmul.f32 %v3953_v57, %v2084_v35 }
 0x44c   : > { %3177 = vrsqrt.f32 %v2043_v26  ;;  %v2044_v48 = vadd.f32 1e-05, %v2022_v43  ;;  %v2191_v26 = vunpack.c.l.bf16 %v3198_v13  ;;  %v2192_v43 = vunpack.c.h.bf16 %v3198_v13 }
 0x44d   : > { %2163 = vst [vmem:[%s3966_s24 + $0x60] sm:$0xff] %v2141_v18  ;;  %v2142_v58 = vadd.f32 %v3960_v63, %v2113_v62  ;;  %v2207_v1 = vadd.f32 %v2185_v44, %v2141_v18 }
 0x44e   : > { %v3174_v49 = vpop.eup %3173  ;;  %3179 = vrsqrt.f32 %v2044_v48 }
 0x44f   : > { %2164 = vst [vmem:[%s3966_s24 + $0x68] sm:$0xff] %v2142_v58  ;;  %v2208_v52 = vadd.f32 %v2186_v14, %v2142_v58  ;;  %v2085_v37 = vmul.f32 %v3174_v49, %v3911_v60  ;;  %v1998_v53 = vpop.xlane.xlu0 %1997 }
 0x450   : > { %v3176_v20 = vpop.eup %3175  ;;  %v2023_v12 = vmul.f32 0.0078125, %v1998_v53 }
 0x451   : > { %v2608_v25 = vpack.c.bf16 %v2208_v52, %v2207_v1  ;;  %v2114_v55 = vmul.f32 %v3953_v57, %v2085_v37  ;;  %v2086_v59 = vmul.f32 %v3176_v20, %v3914_v10  ;;  %v2000_v61 = vpop.xlane.xlu1 %1999  ;;  %v3199_v52 = vld [vmem:[%s3456_s27 + $0x50] sm:$0xff]  }
 0x452   : > { %v2045_v21 = vadd.f32 1e-05, %v2023_v12  ;;  %v2024_v16 = vmul.f32 0.0078125, %v2000_v61  ;;  %v2193_v37 = vunpack.c.l.bf16 %v3199_v52  ;;  %v2194_v53 = vunpack.c.h.bf16 %v3199_v52 }
 0x453   : > { %2635 = vst [vmem:[%s3981_s28 + $0x30] sm:$0xff] %v2608_v25   ;;  %v2143_v5 = vadd.f32 %v3960_v63, %v2114_v55  ;;  %v2115_v60 = vmul.f32 %v3953_v57, %v2086_v59 }
 0x454   : > { %3181 = vrsqrt.f32 %v2045_v21  ;;  %v2046_v42 = vadd.f32 1e-05, %v2024_v16 }
 0x455   : > { %2165 = vst [vmem:[%s3966_s24 + $0x70] sm:$0xff] %v2143_v5  ;;  %v2144_v46 = vadd.f32 %v3960_v63, %v2115_v60  ;;  %v2209_v10 = vadd.f32 %v2187_v3, %v2143_v5 }
 0x456   : > { %v3178_v11 = vpop.eup %3177  ;;  %3183 = vrsqrt.f32 %v2046_v42 }
 0x457   : > { %2166 = vst [vmem:[%s3966_s24 + $0x78] sm:$0xff] %v2144_v46  ;;  %v2210_v2 = vadd.f32 %v2188_v45, %v2144_v46  ;;  %v2087_v22 = vmul.f32 %v3178_v11, %v3921_v23  ;;  %v2002_v36 = vpop.xlane.xlu0 %2001 }
 0x458   : > { %v3180_v4 = vpop.eup %3179  ;;  %v2025_v28 = vmul.f32 0.0078125, %v2002_v36 }
 0x459   : > { %v2613_v17 = vpack.c.bf16 %v2210_v2, %v2209_v10  ;;  %v2116_v47 = vmul.f32 %v3953_v57, %v2087_v22  ;;  %v2088_v40 = vmul.f32 %v3180_v4, %v3924_v19  ;;  %v2004_v51 = vpop.xlane.xlu1 %2003 }
 0x45a   : > { %v2047_v41 = vadd.f32 1e-05, %v2025_v28  ;;  %v2026_v24 = vmul.f32 0.0078125, %v2004_v51 }
 0x45b   : > { %2636 = vst [vmem:[%s3981_s28 + $0x38] sm:$0xff] %v2613_v17   ;;  %v2145_v27 = vadd.f32 %v3960_v63, %v2116_v47  ;;  %v2117_v23 = vmul.f32 %v3953_v57, %v2088_v40 }
 0x45c   : > { %3185 = vrsqrt.f32 %v2047_v41  ;;  %v2048_v32 = vadd.f32 1e-05, %v2026_v24 }
 0x45d   : > { %2167 = vst [vmem:[%s3966_s24 + $0x80] sm:$0xff] %v2145_v27  ;;  %v2146_v50 = vadd.f32 %v3960_v63, %v2117_v23  ;;  %v2211_v8 = vadd.f32 %v2189_v0, %v2145_v27 }
 0x45e   : > { %v3182_v19 = vpop.eup %3181  ;;  %3187 = vrsqrt.f32 %v2048_v32 }
 0x45f   : > { %2168 = vst [vmem:[%s3966_s24 + $0x88] sm:$0xff] %v2146_v50  ;;  %v2212_v33 = vadd.f32 %v2190_v29, %v2146_v50  ;;  %v2089_v34 = vmul.f32 %v3182_v19, %v3931_v6 }
 0x460   : > { %v3184_v9 = vpop.eup %3183 }
 0x461   : > { %v2618_v7 = vpack.c.bf16 %v2212_v33, %v2211_v8  ;;  %v2118_v54 = vmul.f32 %v3953_v57, %v2089_v34  ;;  %v2090_v35 = vmul.f32 %v3184_v9, %v3934_v30 }
 0x463   : > { %2637 = vst [vmem:[%s3981_s28 + $0x40] sm:$0xff] %v2618_v7   ;;  %v2147_v15 = vadd.f32 %v3960_v63, %v2118_v54  ;;  %v2119_v44 = vmul.f32 %v3953_v57, %v2090_v35 }
 0x465   : > { %2169 = vst [vmem:[%s3966_s24 + $0x90] sm:$0xff] %v2147_v15  ;;  %v2148_v14 = vadd.f32 %v3960_v63, %v2119_v44  ;;  %v2213_v18 = vadd.f32 %v2191_v26, %v2147_v15 }
 0x466   : > { %v3186_v6 = vpop.eup %3185 }
 0x467   : > { %2170 = vst [vmem:[%s3966_s24 + $0x98] sm:$0xff] %v2148_v14  ;;  %v2214_v62 = vadd.f32 %v2192_v43, %v2148_v14  ;;  %v2091_v30 = vmul.f32 %v3186_v6, %v3941_v38 }
 0x468   : > { %v3188_v48 = vpop.eup %3187 }
 0x469   : > { %v2623_v58 = vpack.c.bf16 %v2214_v62, %v2213_v18  ;;  %v2120_v49 = vmul.f32 %v3953_v57, %v2091_v30  ;;  %v2092_v1 = vmul.f32 %v3188_v48, %v3944_v39 }
 0x46b   : > { %2638 = vst [vmem:[%s3981_s28 + $0x48] sm:$0xff] %v2623_v58   ;;  %v2149_v20 = vadd.f32 %v3960_v63, %v2120_v49  ;;  %v2121_v12 = vmul.f32 %v3953_v57, %v2092_v1 }
 0x46d   : > { %2171 = vst [vmem:[%s3966_s24 + $0xa0] sm:$0xff] %v2149_v20  ;;  %v2150_v25 = vadd.f32 %v3960_v63, %v2121_v12  ;;  %v2215_v55 = vadd.f32 %v2193_v37, %v2149_v20 }
 0x46f   : > { %2172 = vst [vmem:[%s3966_s24 + $0xa8] sm:$0xff] %v2150_v25  ;;  %v2216_v38 = vadd.f32 %v2194_v53, %v2150_v25 }
 0x471   : > { %v2628_v59 = vpack.c.bf16 %v2216_v38, %v2215_v55 }
 0x473   : > { %2639 = vst [vmem:[%s3981_s28 + $0x50] sm:$0xff] %v2628_v59  }
 0x474 PF: > { %s25_s29 = sadd.s32 1, %s3206_s29  }
 0x475   : > { %p22_p4 = scmp.ge.s32.totalorder %s25_s29, 4  }
 0x477   :  { %24 = sbr.rel (!%p22_p4) target bundleno = 1 (0x1), region = 120 }

// kernel: model_forward.36
= control target key start
LH: loop header
LB: loop body
LE: loop exit
PB: predicated region body
PF: predicated region fallthrough
CT: control target
= control target key end

     0   :  { %s1543_s17 = smov 0   ;;  %s1766_s0 = inlined_call_operand.vmem [shape: bf16[96,128], index: 0, kind: input, shape index: {}]   ;;  %s1767_s1 = inlined_call_operand.vmem [shape: f32[96,128], index: 1, kind: input, shape index: {}]   ;;  %s1768_s2 = inlined_call_operand.vmem [shape: bf16[128,128], index: 2, kind: input, shape index: {}]   ;;  %s1769_s3 = inlined_call_operand.vmem [shape: bf16[128,128], index: 3, kind: input, shape index: {}]   ;;  %s1770_s4 = inlined_call_operand.vmem [shape: f32[1,128], index: 4, kind: input, shape index: {}]   ;;  %s1771_s5 = inlined_call_operand.vmem [shape: bf16[128,128], index: 5, kind: input, shape index: {}]   ;;  %s1772_s6 = inlined_call_operand.vmem [shape: f32[1,128], index: 6, kind: input, shape index: {}]   ;;  %s1773_s7 = inlined_call_operand.vmem [shape: bf16[128,128], index: 7, kind: input, shape index: {}]   ;;  %s1774_s8 = inlined_call_operand.vmem [shape: f32[1,128], index: 8, kind: input, shape index: {}]   ;;  %s1775_s9 = inlined_call_operand.vmem [shape: f32[1,128], index: 9, kind: input, shape index: {}]   ;;  %s1776_s10 = inlined_call_operand.vmem [shape: f32[1,128], index: 10, kind: input, shape index: {}]   ;;  %s1777_s11 = inlined_call_operand.vmem [shape: bf16[96,128], index: 11, kind: output, shape index: {}]  }
   0x1 LB: > { %s1178_s18 = sadd.s32 4294967295, %s1479_s17   ;;  %p1182_p0 = scmp.ge.s32.totalorder %s1479_s17, 1  ;;  %s1479_s17 = sphi %s1543_s17, %s21_s17  }
   0x2   : > { %p349_p1 = scmp.lt.s32.totalorder %s1479_s17, 3 }
   0x4   : > { %p350_p2 = pnand %p1182_p0, %p349_p1 }
   0x5   : > { %v1423_v0 = vld [vmem:[%s1769_s3] sm:$0xff] (!%p350_p2)   ;;  %v1481_v1 = vmov (!%p350_p2), 0.0   ;;  %v1425_v3 = vld [vmem:[%s1769_s3 + $0x8] sm:$0xff] (!%p350_p2)   ;;  %vm1482_vm0 = vmmov (!%p350_p2), 0   ;;  %v1427_v5 = vld [vmem:[%s1769_s3 + $0x10] sm:$0xff] (!%p350_p2)   ;;  %s394_s29 = smul.u32 (!%p350_p2), 6, %s1178_s18 }
   0x6   : > { %353 = sbr.rel (%p350_p2) target bundleno = 1029 (0x405), region = 64  ;;  %1301 = vmatprep.subr.bf16.mxu0 (!%p350_p2), %v1481_v1  ;;  %1329 = vmatprep.subr.bf16.mxu1 (!%p350_p2), %v1481_v1  ;;  %v1424_v2 = vld [vmem:[%s1768_s2] sm:$0xff] (!%p350_p2)   ;;  %v1426_v4 = vld [vmem:[%s1768_s2 + $0x8] sm:$0xff] (!%p350_p2)   ;;  %v1428_v6 = vld [vmem:[%s1768_s2 + $0x10] sm:$0xff] (!%p350_p2)  }
   0x7   : > { %1302 = vmatpush3.bf16.msra.mxu0 (!%p350_p2), %v1423_v0  ;;  %1317 = vmatprep.mubr.msk.bf16.mxu0 (!%p350_p2), %vm1482_vm0, %v1481_v1  ;;  %v1429_v7 = vld [vmem:[%s1769_s3 + $0x18] sm:$0xff] (!%p350_p2)   ;;  %p395_p3 = scmp.lt.s32.totalorder (!%p350_p2), %s394_s29, 11  ;;  %v1431_v9 = vld [vmem:[%s1769_s3 + $0x20] sm:$0xff] (!%p350_p2)   ;;  %v1433_v11 = vld [vmem:[%s1769_s3 + $0x28] sm:$0xff] (!%p350_p2)  }
   0x8   : > { %1330 = vmatpush3.bf16.msra.mxu1 (!%p350_p2), %v1424_v2  ;;  %1303 = vmatprep.subr.bf16.mxu0 (!%p350_p2), %v1481_v1  ;;  %v1430_v8 = vld [vmem:[%s1768_s2 + $0x18] sm:$0xff] (!%p350_p2)   ;;  %v1432_v10 = vld [vmem:[%s1768_s2 + $0x20] sm:$0xff] (!%p350_p2)   ;;  %v1434_v12 = vld [vmem:[%s1768_s2 + $0x28] sm:$0xff] (!%p350_p2)  }
   0x9   : > { %1331 = vmatprep.subr.bf16.mxu1 (!%p350_p2), %v1481_v1  ;;  %1345 = vmatprep.mubr.msk.bf16.mxu1 (!%p350_p2), %vm1482_vm0, %v1481_v1  ;;  %v1435_v13 = vld [vmem:[%s1769_s3 + $0x30] sm:$0xff] (!%p350_p2)   ;;  %v1437_v15 = vld [vmem:[%s1769_s3 + $0x38] sm:$0xff] (!%p350_p2)   ;;  %v1442_v21 = vld [vmem:[%s1771_s5] sm:$0xff] (!%p350_p2)  }
   0xa   : > { %v1436_v14 = vld [vmem:[%s1768_s2 + $0x30] sm:$0xff] (!%p350_p2)   ;;  %v1438_v18 = vld [vmem:[%s1768_s2 + $0x38] sm:$0xff] (!%p350_p2)   ;;  %v1443_v25 = vld [vmem:[%s1771_s5 + $0x8] sm:$0xff] (!%p350_p2)  }
   0xb   : > { %1304 = vmatpush3.bf16.msra.mxu0 (!%p350_p2), %v1425_v3  ;;  %v1444_v27 = vld [vmem:[%s1771_s5 + $0x10] sm:$0xff] (!%p350_p2)   ;;  %v1445_v31 = vld [vmem:[%s1771_s5 + $0x18] sm:$0xff] (!%p350_p2)   ;;  %v1446_v33 = vld [vmem:[%s1771_s5 + $0x20] sm:$0xff] (!%p350_p2)  }
   0xc   : > { %1332 = vmatpush3.bf16.msra.mxu1 (!%p350_p2), %v1426_v4  ;;  %1305 = vmatprep.subr.bf16.mxu0 (!%p350_p2), %v1481_v1  ;;  %v1447_v34 = vld [vmem:[%s1771_s5 + $0x28] sm:$0xff] (!%p350_p2)   ;;  %v1448_v35 = vld [vmem:[%s1771_s5 + $0x30] sm:$0xff] (!%p350_p2)   ;;  %v1449_v36 = vld [vmem:[%s1771_s5 + $0x38] sm:$0xff] (!%p350_p2)  }
   0xd   : > { %1333 = vmatprep.subr.bf16.mxu1 %v1481_v1  ;;  %s1779_s29 = smov (!%p395_p3, %s394_s29), 11  ;;  %v1450_v37 = vld [vmem:[%s1773_s7] sm:$0xff]   ;;  %v1451_v38 = vld [vmem:[%s1773_s7 + $0x8] sm:$0xff]   ;;  %v1452_v39 = vld [vmem:[%s1773_s7 + $0x10] sm:$0xff]  }
   0xe   : > { %s1184_s24 = sshll.u32 %s1779_s29, 3  ;;  %s1183_s27 = sshll.u32 %s1779_s29, 2  ;;  %v1453_v40 = vld [vmem:[%s1773_s7 + $0x18] sm:$0xff]   ;;  %v1454_v41 = vld [vmem:[%s1773_s7 + $0x20] sm:$0xff]   ;;  %v1455_v42 = vld [vmem:[%s1773_s7 + $0x28] sm:$0xff]  }
   0xf   : > { %1306 = vmatpush3.bf16.msra.mxu0 %v1427_v5  ;;  %s1610_s12 = scalar_lea.vmem %s1767_s1, %s1184_s24  ;;  %s1620_s18 = scalar_lea.vmem %s1766_s0, %s1183_s27  ;;  %v1205_v45 = vld [vmem:[%s1770_s4] ss:$0 sm:$0xff] }
  0x10   : > { %1334 = vmatpush3.bf16.msra.mxu1 %v1428_v6  ;;  %1307 = vmatprep.subr.bf16.mxu0 %v1481_v1  ;;  %v419_v16 = vld [vmem:[%s1610_s12] sm:$0xff]  ;;  %v420_v17 = vld [vmem:[%s1610_s12 + $0x8] sm:$0xff]  ;;  %v421_v22 = vld [vmem:[%s1610_s12 + $0x10] sm:$0xff]  ;;  %s410_s21 = scalar_lea.vmem %s1777_s11, %s1183_s27 }
  0x11   : > { %1335 = vmatprep.subr.bf16.mxu1 %v1481_v1  ;;  %v1636_v19 = vld [vmem:[%s1620_s18] sm:$0xff]   ;;  %v441_v20 = vpack.c.bf16 %v420_v17, %v419_v16  ;;  %v422_v23 = vld [vmem:[%s1610_s12 + $0x18] sm:$0xff]  ;;  %v1653_v24 = vld [vmem:[%s1620_s18 + $0x8] sm:$0xff]  }
  0x12   : > { %v442_v26 = vpack.c.bf16 %v422_v23, %v421_v22  ;;  %v423_v28 = vld [vmem:[%s1610_s12 + $0x20] sm:$0xff]  ;;  %v424_v29 = vld [vmem:[%s1610_s12 + $0x28] sm:$0xff]  ;;  %v1671_v30 = vld [vmem:[%s1620_s18 + $0x10] sm:$0xff]  }
  0x13   : > { %1308 = vmatpush3.bf16.msra.mxu0 %v1429_v7  ;;  %v443_v32 = vpack.c.bf16 %v424_v29, %v423_v28  ;;  %v1456_v28 = vld [vmem:[%s1773_s7 + $0x30] sm:$0xff]   ;;  %v1457_v29 = vld [vmem:[%s1773_s7 + $0x38] sm:$0xff]  }
  0x14   : > { %1336 = vmatpush3.bf16.msra.mxu1 %v1430_v8  ;;  %1309 = vmatprep.subr.bf16.mxu0 %v1481_v1 }
  0x15   : > { %1337 = vmatprep.subr.bf16.mxu1 %v1481_v1 }
  0x17   : > { %1310 = vmatpush3.bf16.msra.mxu0 %v1431_v9 }
  0x18   : > { %1338 = vmatpush3.bf16.msra.mxu1 %v1432_v10  ;;  %1311 = vmatprep.subr.bf16.mxu0 %v1481_v1 }
  0x19   : > { %1339 = vmatprep.subr.bf16.mxu1 %v1481_v1 }
  0x1b   : > { %1312 = vmatpush3.bf16.msra.mxu0 %v1433_v11 }
  0x1c   : > { %1340 = vmatpush3.bf16.msra.mxu1 %v1434_v12  ;;  %1313 = vmatprep.subr.bf16.mxu0 %v1481_v1 }
  0x1d   : > { %1341 = vmatprep.subr.bf16.mxu1 %v1481_v1 }
  0x1f   : > { %1314 = vmatpush3.bf16.msra.mxu0 %v1435_v13 }
  0x20   : > { %1342 = vmatpush3.bf16.msra.mxu1 %v1436_v14  ;;  %1315 = vmatprep.subr.bf16.mxu0 %v1481_v1 }
  0x21   : > { %1343 = vmatprep.subr.bf16.mxu1 %v1481_v1 }
  0x23   : > { %1316 = vmatpush3.bf16.msra.mxu0 %v1437_v15 }
  0x24   : > { %1344 = vmatpush3.bf16.msra.mxu1 %v1438_v18  ;;  %1357 = vmatprep.subr.bf16.mxu0 %v1481_v1 }
  0x25   : > { %1385 = vmatprep.subr.bf16.mxu1 %v1481_v1 }
  0x26   : > { %1318 = vmatmul.mubr.bf16.vlgmr.msra.gmra.mrb[0].mxu0 %v441_v20 }
  0x27   : > { %1346 = vmatmul.mubr.bf16.vlgmr.msra.gmra.mrb[0].mxu1 %v1636_v19  ;;  %1321 = vmatprep.mubr.msk.bf16.mxu0 %vm1482_vm0, %v1481_v1 }
  0x28   : > { %1349 = vmatprep.mubr.msk.bf16.mxu1 %vm1482_vm0, %v1481_v1  ;;  %1358 = vmatpush3.bf16.msra.mxu0 %v1442_v21 }
  0x29   : > { %1359 = vmatprep.subr.bf16.mxu0 %v1481_v1  ;;  %1386 = vmatpush3.bf16.msra.mxu1 %v1450_v37 }
  0x2a   : > { %1387 = vmatprep.subr.bf16.mxu1 %v1481_v1 }
  0x2c   : > { %1360 = vmatpush3.bf16.msra.mxu0 %v1443_v25 }
  0x2d   : > { %1361 = vmatprep.subr.bf16.mxu0 %v1481_v1  ;;  %1388 = vmatpush3.bf16.msra.mxu1 %v1451_v38 }
  0x2e   : > { %1322 = vmatmul.mubr.bf16.gmra.mrb[4].mxu0 %v442_v26  ;;  %1389 = vmatprep.subr.bf16.mxu1 %v1481_v1 }
  0x2f   : > { %1350 = vmatmul.mubr.bf16.gmra.mrb[4].mxu1 %v1653_v24  ;;  %1325 = vmatprep.mubr.msk.bf16.mxu0 %vm1482_vm0, %v1481_v1 }
  0x30   : > { %1353 = vmatprep.mubr.msk.bf16.mxu1 %vm1482_vm0, %v1481_v1  ;;  %1362 = vmatpush3.bf16.msra.mxu0 %v1444_v27 }
  0x31   : > { %1363 = vmatprep.subr.bf16.mxu0 %v1481_v1  ;;  %1390 = vmatpush3.bf16.msra.mxu1 %v1452_v39 }
  0x32   : > { %1391 = vmatprep.subr.bf16.mxu1 %v1481_v1 }
  0x34   : > { %1364 = vmatpush3.bf16.msra.mxu0 %v1445_v31  ;;  %v1206_v31 = vld [vmem:[%s1772_s6] ss:$0 sm:$0xff] }
  0x35   : > { %1365 = vmatprep.subr.bf16.mxu0 %v1481_v1  ;;  %1392 = vmatpush3.bf16.msra.mxu1 %v1453_v40 }
  0x36   : > { %1326 = vmatmul.mubr.bf16.gmra.mrb[8].mxu0 %v443_v32  ;;  %1393 = vmatprep.subr.bf16.mxu1 %v1481_v1 }
  0x37   : > { %1354 = vmatmul.mubr.bf16.gmra.mrb[8].mxu1 %v1671_v30  ;;  %1373 = vmatprep.mubr.msk.bf16.mxu0 %vm1482_vm0, %v1481_v1 }
  0x38   : > { %1366 = vmatpush3.bf16.msra.mxu0 %v1446_v33  ;;  %1401 = vmatprep.mubr.msk.bf16.mxu1 %vm1482_vm0, %v1481_v1 }
  0x39   : > { %1367 = vmatprep.subr.bf16.mxu0 %v1481_v1  ;;  %1394 = vmatpush3.bf16.msra.mxu1 %v1454_v41 }
  0x3a   : > { %1395 = vmatprep.subr.bf16.mxu1 %v1481_v1 }
  0x3c   : > { %1368 = vmatpush3.bf16.msra.mxu0 %v1447_v34 }
  0x3d   : > { %1369 = vmatprep.subr.bf16.mxu0 %v1481_v1  ;;  %1396 = vmatpush3.bf16.msra.mxu1 %v1455_v42 }
  0x3e   : > { %1397 = vmatprep.subr.bf16.mxu1 %v1481_v1 }
  0x40   : > { %1370 = vmatpush3.bf16.msra.mxu0 %v1448_v35 }
  0x41   : > { %1371 = vmatprep.subr.bf16.mxu0 %v1481_v1  ;;  %1398 = vmatpush3.bf16.msra.mxu1 %v1456_v28 }
  0x42   : > { %1399 = vmatprep.subr.bf16.mxu1 %v1481_v1 }
  0x44   : > { %1372 = vmatpush3.bf16.msra.mxu0 %v1449_v36 }
  0x45   : > { %1400 = vmatpush3.bf16.msra.mxu1 %v1457_v29 }
  0xf9   : > { %v542_v43 = vpop.f32.mrb[0].mxu0 }
  0xfa   : > { %v665_v44 = vpop.f32.mrb[0].mxu1  ;;  %v1319_v46 = vpop.f32.mrb[1].mxu0 }
  0xfb   : > { %v666_v47 = vadd.f32 %v665_v44, %v542_v43  ;;  %v1347_v48 = vpop.f32.mrb[1].mxu1  ;;  %v545_v49 = vpop.f32.mrb[2].mxu0 }
  0xfc   : > { %v668_v50 = vpop.f32.mrb[2].mxu1  ;;  %v1320_v51 = vpop.f32.mrb[3].mxu0 }
  0xfd   : > { %v695_v52 = vadd.f32 %v1205_v45, %v666_v47  ;;  %v669_v53 = vadd.f32 %v668_v50, %v545_v49  ;;  %v1348_v54 = vpop.f32.mrb[3].mxu1 }
  0xff   : > { %v696_v55 = vadd.f32 %v1205_v45, %v669_v53  ;;  %v701_v56 = vmax.f32 %v695_v52, 0.0 }
 0x101   : > { %v702_v57 = vmax.f32 %v696_v55, 0.0  ;;  %v550_v58 = vpop.f32.mrb[4].mxu0 }
 0x102   : > { %v673_v59 = vpop.f32.mrb[4].mxu1  ;;  %v1323_v60 = vpop.f32.mrb[5].mxu0 }
 0x103   : > { %v707_v61 = vpack.c.bf16 %v702_v57, %v701_v56  ;;  %v674_v62 = vadd.f32 %v673_v59, %v550_v58  ;;  %v1351_v63 = vpop.f32.mrb[5].mxu1  ;;  %v553_v0 = vpop.f32.mrb[6].mxu0  ;;  %v1215_v59 = vld [vmem:[%s1774_s8] ss:$0 sm:$0xff] }
 0x104   : > { %v676_v2 = vpop.f32.mrb[6].mxu1  ;;  %v1324_v3 = vpop.f32.mrb[7].mxu0 }
 0x105   : > { %v697_v4 = vadd.f32 %v1205_v45, %v674_v62  ;;  %v677_v5 = vadd.f32 %v676_v2, %v553_v0  ;;  %v1352_v6 = vpop.f32.mrb[7].mxu1  ;;  %1374 = vmatmul.mubr.bf16.vlgmr.msra.gmra.mrb[12].mxu0 %v707_v61 }
 0x106   : > { %1377 = vmatprep.mubr.msk.bf16.mxu0 %vm1482_vm0, %v1481_v1 }
 0x107   : > { %v698_v7 = vadd.f32 %v1205_v45, %v677_v5  ;;  %v703_v8 = vmax.f32 %v697_v4, 0.0 }
 0x109   : > { %v704_v9 = vmax.f32 %v698_v7, 0.0  ;;  %v558_v10 = vpop.f32.mrb[8].mxu0 }
 0x10a   : > { %v681_v11 = vpop.f32.mrb[8].mxu1  ;;  %v1327_v12 = vpop.f32.mrb[9].mxu0 }
 0x10b   : > { %v682_v13 = vadd.f32 %v681_v11, %v558_v10  ;;  %v1355_v14 = vpop.f32.mrb[9].mxu1  ;;  %v561_v15 = vpop.f32.mrb[10].mxu0  ;;  %v708_v16 = vpack.c.bf16 %v704_v9, %v703_v8 }
 0x10c   : > { %v684_v17 = vpop.f32.mrb[10].mxu1  ;;  %v1328_v18 = vpop.f32.mrb[11].mxu0 }
 0x10d   : > { %v699_v20 = vadd.f32 %v1205_v45, %v682_v13  ;;  %v685_v21 = vadd.f32 %v684_v17, %v561_v15  ;;  %v1356_v22 = vpop.f32.mrb[11].mxu1  ;;  %1378 = vmatmul.mubr.bf16.gmra.mrb[16].mxu0 %v708_v16 }
 0x10e   : > { %1381 = vmatprep.mubr.msk.bf16.mxu0 %vm1482_vm0, %v1481_v1 }
 0x10f   : > { %v700_v23 = vadd.f32 %v1205_v45, %v685_v21  ;;  %v705_v25 = vmax.f32 %v699_v20, 0.0 }
 0x111   : > { %v706_v26 = vmax.f32 %v700_v23, 0.0 }
 0x113   : > { %v709_v27 = vpack.c.bf16 %v706_v26, %v705_v25 }
 0x115   : > { %1382 = vmatmul.mubr.bf16.gmra.mrb[20].mxu0 %v709_v27 }
 0x1d8   : > { %v815_v32 = vpop.f32.mrb[12].mxu0 }
 0x1d9   : > { %v816_v33 = vadd.f32 %v1206_v31, %v815_v32  ;;  %v1375_v34 = vpop.f32.mrb[13].mxu0 }
 0x1da   : > { %v818_v35 = vpop.f32.mrb[14].mxu0 }
 0x1db   : > { %v819_v36 = vadd.f32 %v1206_v31, %v818_v35  ;;  %v1376_v37 = vpop.f32.mrb[15].mxu0  ;;  %v838_v38 = vmax.f32 %v816_v33, 0.0 }
 0x1dd   : > { %v839_v39 = vmax.f32 %v819_v36, 0.0 }
 0x1df   : > { %v844_v40 = vpack.c.bf16 %v839_v39, %v838_v38 }
 0x1e0   : > { %v823_v41 = vpop.f32.mrb[16].mxu0 }
 0x1e1   : > { %v824_v42 = vadd.f32 %v1206_v31, %v823_v41  ;;  %v1379_v43 = vpop.f32.mrb[17].mxu0  ;;  %1402 = vmatmul.mubr.bf16.vlgmr.msra.gmra.mrb[12].mxu1 %v844_v40 }
 0x1e2   : > { %v826_v44 = vpop.f32.mrb[18].mxu0  ;;  %1405 = vmatprep.mubr.msk.bf16.mxu1 %vm1482_vm0, %v1481_v1 }
 0x1e3   : > { %v827_v45 = vadd.f32 %v1206_v31, %v826_v44  ;;  %v1380_v46 = vpop.f32.mrb[19].mxu0  ;;  %v840_v47 = vmax.f32 %v824_v42, 0.0 }
 0x1e5   : > { %v841_v48 = vmax.f32 %v827_v45, 0.0 }
 0x1e7   : > { %v845_v49 = vpack.c.bf16 %v841_v48, %v840_v47 }
 0x1e8   : > { %v831_v50 = vpop.f32.mrb[20].mxu0 }
 0x1e9   : > { %v832_v51 = vadd.f32 %v1206_v31, %v831_v50  ;;  %v1383_v52 = vpop.f32.mrb[21].mxu0  ;;  %1406 = vmatmul.mubr.bf16.gmra.mrb[16].mxu1 %v845_v49 }
 0x1ea   : > { %v834_v53 = vpop.f32.mrb[22].mxu0  ;;  %1409 = vmatprep.mubr.msk.bf16.mxu1 %vm1482_vm0, %v1481_v1 }
 0x1eb   : > { %v835_v54 = vadd.f32 %v1206_v31, %v834_v53  ;;  %v1384_v55 = vpop.f32.mrb[23].mxu0  ;;  %v842_v56 = vmax.f32 %v832_v51, 0.0  ;;  %v1224_v53 = vld [vmem:[%s1775_s9] ss:$0 sm:$0xff] }
 0x1ed   : > { %v843_v57 = vmax.f32 %v835_v54, 0.0 }
 0x1ef   : > { %v846_v58 = vpack.c.bf16 %v843_v57, %v842_v56 }
 0x1f1   : > { %1410 = vmatmul.mubr.bf16.gmra.mrb[20].mxu1 %v846_v58 }
 0x2b4   : > { %v952_v60 = vpop.f32.mrb[12].mxu1 }
 0x2b5   : > { %v953_v61 = vadd.f32 %v1215_v59, %v952_v60  ;;  %v1403_v62 = vpop.f32.mrb[13].mxu1 }
 0x2b6   : > { %v955_v63 = vpop.f32.mrb[14].mxu1 }
 0x2b7   : > { %975 = vadd.xlane.f32.xlu0 %v953_v61  ;;  %v1404_v0 = vpop.f32.mrb[15].mxu1  ;;  %v956_v2 = vadd.f32 %v1215_v59, %v955_v63 }
 0x2bb   : > { %977 = vadd.xlane.f32.xlu0 %v956_v2 }
 0x2bc   : > { %v960_v3 = vpop.f32.mrb[16].mxu1 }
 0x2bd   : > { %v961_v1 = vadd.f32 %v1215_v59, %v960_v3  ;;  %v1407_v4 = vpop.f32.mrb[17].mxu1  ;;  %v1068_v3 = vunpack.c.l.bf16 %v1636_v19 }
 0x2be   : > { %v963_v5 = vpop.f32.mrb[18].mxu1 }
 0x2bf   : > { %979 = vadd.xlane.f32.xlu1 %v961_v1  ;;  %v1408_v6 = vpop.f32.mrb[19].mxu1  ;;  %v964_v7 = vadd.f32 %v1215_v59, %v963_v5 }
 0x2c3   : > { %981 = vadd.xlane.f32.xlu1 %v964_v7 }
 0x2c4   : > { %v968_v8 = vpop.f32.mrb[20].mxu1 }
 0x2c5   : > { %v969_v9 = vadd.f32 %v1215_v59, %v968_v8  ;;  %v1411_v10 = vpop.f32.mrb[21].mxu1 }
 0x2c6   : > { %v971_v11 = vpop.f32.mrb[22].mxu1 }
 0x2c7   : > { %v972_v12 = vadd.f32 %v1215_v59, %v971_v11  ;;  %983 = vadd.xlane.f32.xlu0 %v969_v9  ;;  %v1412_v13 = vpop.f32.mrb[23].mxu1 }
 0x2c9   : > { %985 = vadd.xlane.f32.xlu1 %v972_v12 }
 0x344   : > { %v976_v14 = vpop.xlane.xlu0 %975 }
 0x345   : > { %v988_v15 = vmul.f32 0.0078125, %v976_v14 }
 0x347   : > { %v994_v16 = vsub.f32 %v953_v61, %v988_v15  ;;  %v1225_v61 = vld [vmem:[%s1776_s10] ss:$0 sm:$0xff]  ;;  %v1070_v15 = vunpack.c.l.bf16 %v1653_v24 }
 0x348   : > { %v978_v17 = vpop.xlane.xlu0 %977 }
 0x349   : > { %v989_v18 = vmul.f32 0.0078125, %v978_v17  ;;  %v1000_v20 = vmul.f32 %v994_v16, %v994_v16 }
 0x34b   : > { %v995_v21 = vsub.f32 %v956_v2, %v989_v18  ;;  %1006 = vadd.xlane.f32.xlu0 %v1000_v20 }
 0x34c   : > { %v980_v22 = vpop.xlane.xlu1 %979 }
 0x34d   : > { %v990_v23 = vmul.f32 0.0078125, %v980_v22  ;;  %v1001_v25 = vmul.f32 %v995_v21, %v995_v21 }
 0x34f   : > { %v996_v26 = vsub.f32 %v961_v1, %v990_v23  ;;  %1008 = vadd.xlane.f32.xlu1 %v1001_v25  ;;  %v1069_v1 = vunpack.c.h.bf16 %v1636_v19  ;;  %v1071_v19 = vunpack.c.h.bf16 %v1653_v24 }
 0x350   : > { %v982_v27 = vpop.xlane.xlu1 %981 }
 0x351   : > { %v991_v28 = vmul.f32 0.0078125, %v982_v27  ;;  %v1002_v29 = vmul.f32 %v996_v26, %v996_v26 }
 0x353   : > { %v997_v31 = vsub.f32 %v964_v7, %v991_v28  ;;  %1010 = vadd.xlane.f32.xlu0 %v1002_v29  ;;  %v1072_v28 = vunpack.c.l.bf16 %v1671_v30  ;;  %v1073_v29 = vunpack.c.h.bf16 %v1671_v30 }
 0x354   : > { %v984_v32 = vpop.xlane.xlu0 %983 }
 0x355   : > { %v992_v33 = vmul.f32 0.0078125, %v984_v32  ;;  %v1003_v34 = vmul.f32 %v997_v31, %v997_v31 }
 0x356   : > { %v986_v35 = vpop.xlane.xlu1 %985 }
 0x357   : > { %v998_v36 = vsub.f32 %v969_v9, %v992_v33  ;;  %v993_v37 = vmul.f32 0.0078125, %v986_v35  ;;  %1012 = vadd.xlane.f32.xlu1 %v1003_v34 }
 0x359   : > { %v999_v38 = vsub.f32 %v972_v12, %v993_v37  ;;  %v1004_v39 = vmul.f32 %v998_v36, %v998_v36 }
 0x35b   : > { %1014 = vadd.xlane.f32.xlu0 %v1004_v39  ;;  %v1005_v40 = vmul.f32 %v999_v38, %v999_v38 }
 0x35d   : > { %1016 = vadd.xlane.f32.xlu1 %v1005_v40 }
 0x3d8   : > { %v1007_v41 = vpop.xlane.xlu0 %1006 }
 0x3d9   : > { %v1018_v42 = vmul.f32 0.0078125, %v1007_v41 }
 0x3db   : > { %v1024_v43 = vadd.f32 1e-05, %v1018_v42 }
 0x3dc   : > { %v1009_v44 = vpop.xlane.xlu1 %1008 }
 0x3dd   : > { %1461 = vrsqrt.f32 %v1024_v43  ;;  %v1019_v45 = vmul.f32 0.0078125, %v1009_v44 }
 0x3df   : > { %v1025_v46 = vadd.f32 1e-05, %v1019_v45 }
 0x3e0   : > { %v1011_v47 = vpop.xlane.xlu0 %1010 }
 0x3e1   : > { %1463 = vrsqrt.f32 %v1025_v46  ;;  %v1020_v48 = vmul.f32 0.0078125, %v1011_v47 }
 0x3e3   : > { %v1026_v49 = vadd.f32 1e-05, %v1020_v48 }
 0x3e4   : > { %v1013_v50 = vpop.xlane.xlu1 %1012 }
 0x3e5   : > { %1465 = vrsqrt.f32 %v1026_v49  ;;  %v1021_v51 = vmul.f32 0.0078125, %v1013_v50 }
 0x3e7   : > { %v1462_v52 = vpop.eup %1461  ;;  %v1027_v54 = vadd.f32 1e-05, %v1021_v51 }
 0x3e8   : > { %v1036_v55 = vmul.f32 %v1462_v52, %v994_v16  ;;  %v1015_v56 = vpop.xlane.xlu0 %1014 }
 0x3e9   : > { %1467 = vrsqrt.f32 %v1027_v54  ;;  %v1022_v57 = vmul.f32 0.0078125, %v1015_v56 }
 0x3ea   : > { %v1049_v58 = vmul.f32 %v1224_v53, %v1036_v55  ;;  %v1017_v59 = vpop.xlane.xlu1 %1016 }
 0x3eb   : > { %v1464_v60 = vpop.eup %1463  ;;  %v1028_v62 = vadd.f32 1e-05, %v1022_v57  ;;  %v1023_v63 = vmul.f32 0.0078125, %v1017_v59 }
 0x3ec   : > { %v1037_v0 = vmul.f32 %v1464_v60, %v995_v21  ;;  %v1062_v4 = vadd.f32 %v1225_v61, %v1049_v58 }
 0x3ed   : > { %1469 = vrsqrt.f32 %v1028_v62  ;;  %v1029_v2 = vadd.f32 1e-05, %v1023_v63 }
 0x3ee   : > { %v1050_v5 = vmul.f32 %v1224_v53, %v1037_v0  ;;  %v1074_v9 = vadd.f32 %v1068_v3, %v1062_v4 }
 0x3ef   : > { %v1466_v6 = vpop.eup %1465  ;;  %1471 = vrsqrt.f32 %v1029_v2 }
 0x3f0   : > { %v1063_v7 = vadd.f32 %v1225_v61, %v1050_v5  ;;  %v1038_v8 = vmul.f32 %v1466_v6, %v996_v26 }
 0x3f2   : > { %v1075_v10 = vadd.f32 %v1069_v1, %v1063_v7  ;;  %v1051_v11 = vmul.f32 %v1224_v53, %v1038_v8 }
 0x3f3   : > { %v1468_v12 = vpop.eup %1467 }
 0x3f4   : > { %v1243_v13 = vpack.c.bf16 %v1075_v10, %v1074_v9  ;;  %v1039_v14 = vmul.f32 %v1468_v12, %v997_v31  ;;  %v1064_v16 = vadd.f32 %v1225_v61, %v1051_v11 }
 0x3f6   : > { %1244 = vst [vmem:[%s410_s21] sm:$0xff] %v1243_v13   ;;  %v1052_v17 = vmul.f32 %v1224_v53, %v1039_v14  ;;  %v1076_v23 = vadd.f32 %v1070_v15, %v1064_v16 }
 0x3f7   : > { %v1470_v18 = vpop.eup %1469 }
 0x3f8   : > { %v1065_v20 = vadd.f32 %v1225_v61, %v1052_v17  ;;  %v1040_v21 = vmul.f32 %v1470_v18, %v998_v36 }
 0x3f9   : > { %v1472_v22 = vpop.eup %1471 }
 0x3fa   : > { %v1077_v25 = vadd.f32 %v1071_v19, %v1065_v20  ;;  %v1053_v26 = vmul.f32 %v1224_v53, %v1040_v21  ;;  %v1041_v27 = vmul.f32 %v1472_v22, %v999_v38 }
 0x3fc   : > { %v1248_v31 = vpack.c.bf16 %v1077_v25, %v1076_v23  ;;  %v1066_v32 = vadd.f32 %v1225_v61, %v1053_v26  ;;  %v1054_v33 = vmul.f32 %v1224_v53, %v1041_v27 }
 0x3fe   : > { %1255 = vst [vmem:[%s410_s21 + $0x8] sm:$0xff] %v1248_v31   ;;  %v1067_v24 = vadd.f32 %v1225_v61, %v1054_v33  ;;  %v1078_v34 = vadd.f32 %v1072_v28, %v1066_v32 }
 0x400   : > { %v1079_v35 = vadd.f32 %v1073_v29, %v1067_v24 }
 0x402   : > { %v1253_v37 = vpack.c.bf16 %v1079_v35, %v1078_v34 }
 0x404   : > { %1256 = vst [vmem:[%s410_s21 + $0x10] sm:$0xff] %v1253_v37  }
 0x405 PF: > { %s21_s17 = sadd.s32 1, %s1479_s17  }
 0x406   : > { %p18_p4 = scmp.ge.s32.totalorder %s21_s17, 4  }
 0x408   :  { %20 = sbr.rel (!%p18_p4) target bundleno = 1 (0x1), region = 97 }

// kernel: model_forward.65
= control target key start
LH: loop header
LB: loop body
LE: loop exit
PB: predicated region body
PF: predicated region fallthrough
CT: control target
= control target key end

     0   :  { %s1202_s13 = smov 0   ;;  %s1390_s0 = inlined_call_operand.vmem [shape: bf16[96,128], index: 0, kind: input, shape index: {}]   ;;  %s1391_s1 = inlined_call_operand.vmem [shape: bf16[128,128], index: 1, kind: input, shape index: {}]   ;;  %s1392_s2 = inlined_call_operand.vmem [shape: f32[1,128], index: 2, kind: input, shape index: {}]   ;;  %s1393_s3 = inlined_call_operand.vmem [shape: bf16[128,128], index: 3, kind: input, shape index: {}]   ;;  %s1394_s4 = inlined_call_operand.vmem [shape: f32[1,128], index: 4, kind: input, shape index: {}]   ;;  %s1395_s5 = inlined_call_operand.vmem [shape: bf16[128,3], index: 5, kind: input, shape index: {}]   ;;  %s1396_s6 = inlined_call_operand.vmem [shape: f32[1,3], index: 6, kind: input, shape index: {}]   ;;  %s1397_s7 = inlined_call_operand.vmem [shape: f32[96,3], index: 7, kind: input, shape index: {}]   ;;  %s1398_s8 = inlined_call_operand.vmem [shape: f32[1,3], index: 8, kind: input, shape index: {}]   ;;  %s1399_s9 = inlined_call_operand.vmem [shape: f32[1,3], index: 9, kind: input, shape index: {}]   ;;  %s1400_s10 = inlined_call_operand.vmem [shape: f32[96,3], index: 10, kind: output, shape index: {}]  }
   0x1 LB: > { %s925_s14 = sadd.s32 4294967295, %s1143_s13   ;;  %p929_p0 = scmp.ge.s32.totalorder %s1143_s13, 1  ;;  %s1143_s13 = sphi %s1202_s13, %s20_s13  }
   0x2   : > { %p324_p1 = scmp.lt.s32.totalorder %s1143_s13, 3 }
   0x4   : > { %p325_p2 = pnand %p929_p0, %p324_p1 }
   0x5   : > { %v1110_v0 = vld [vmem:[%s1391_s1] sm:$0xff] (!%p325_p2)   ;;  %v1145_v1 = vmov (!%p325_p2), 0.0   ;;  %v1111_v2 = vld [vmem:[%s1391_s1 + $0x8] sm:$0xff] (!%p325_p2)   ;;  %vm1146_vm0 = vmmov (!%p325_p2), 0   ;;  %s367_s19 = smul.u32 (!%p325_p2), 6, %s925_s14  ;;  %v1112_v3 = vld [vmem:[%s1391_s1 + $0x10] sm:$0xff] (!%p325_p2)  }
   0x6   : > { %328 = sbr.rel (%p325_p2) target bundleno = 717 (0x2cd), region = 60  ;;  %1000 = vmatprep.subr.bf16.mxu0 (!%p325_p2), %v1145_v1  ;;  %1028 = vmatprep.subr.bf16.mxu1 (!%p325_p2), %v1145_v1  ;;  %v1121_v4 = vld [vmem:[%s1393_s3] sm:$0xff] (!%p325_p2)   ;;  %v1113_v5 = vld [vmem:[%s1391_s1 + $0x18] sm:$0xff] (!%p325_p2)   ;;  %v1122_v6 = vld [vmem:[%s1393_s3 + $0x8] sm:$0xff] (!%p325_p2)   ;;  %vm850_vm1 = vcmask (!%p325_p2), 23552  }
   0x7   : > { %1001 = vmatpush3.bf16.msra.mxu0 (!%p325_p2), %v1110_v0  ;;  %1016 = vmatprep.mubr.msk.bf16.mxu0 (!%p325_p2), %vm1146_vm0, %v1145_v1  ;;  %p368_p3 = scmp.lt.s32.totalorder (!%p325_p2), %s367_s19, 11  ;;  %v1114_v7 = vld [vmem:[%s1391_s1 + $0x20] sm:$0xff] (!%p325_p2)   ;;  %v1123_v8 = vld [vmem:[%s1393_s3 + $0x10] sm:$0xff] (!%p325_p2)   ;;  %v1115_v9 = vld [vmem:[%s1391_s1 + $0x28] sm:$0xff] (!%p325_p2)  }
   0x8   : > { %1002 = vmatprep.subr.bf16.mxu0 (!%p325_p2), %v1145_v1  ;;  %1044 = vmatprep.mubr.msk.bf16.mxu1 (!%p325_p2), %vm1146_vm0, %v1145_v1  ;;  %v1124_v10 = vld [vmem:[%s1393_s3 + $0x18] sm:$0xff] (!%p325_p2)   ;;  %v1116_v11 = vld [vmem:[%s1391_s1 + $0x30] sm:$0xff] (!%p325_p2)   ;;  %v1125_v12 = vld [vmem:[%s1393_s3 + $0x20] sm:$0xff] (!%p325_p2)  }
   0x9   : > { %1029 = vmatpush3.bf16.msra.mxu1 (!%p325_p2), %v1121_v4  ;;  %v1117_v13 = vld [vmem:[%s1391_s1 + $0x38] sm:$0xff] (!%p325_p2)   ;;  %v1126_v14 = vld [vmem:[%s1393_s3 + $0x28] sm:$0xff] (!%p325_p2)   ;;  %v1127_v18 = vld [vmem:[%s1393_s3 + $0x30] sm:$0xff] (!%p325_p2)  }
   0xa   : > { %1030 = vmatprep.subr.bf16.mxu1 (!%p325_p2), %v1145_v1  ;;  %v1128_v19 = vld [vmem:[%s1393_s3 + $0x38] sm:$0xff] (!%p325_p2)   ;;  %v1129_v20 = vld [vmem:[%s1395_s5] sm:$0xff] (!%p325_p2)   ;;  %v1130_v21 = vld [vmem:[%s1395_s5 + $0x8] sm:$0xff] (!%p325_p2)  }
   0xb   : > { %1003 = vmatpush3.bf16.msra.mxu0 (!%p325_p2), %v1111_v2  ;;  %v1131_v22 = vld [vmem:[%s1395_s5 + $0x10] sm:$0xff] (!%p325_p2)   ;;  %v1132_v23 = vld [vmem:[%s1395_s5 + $0x18] sm:$0xff] (!%p325_p2)   ;;  %v1133_v24 = vld [vmem:[%s1395_s5 + $0x20] sm:$0xff] (!%p325_p2)  }
   0xc   : > { %1004 = vmatprep.subr.bf16.mxu0 (!%p325_p2), %v1145_v1  ;;  %v1134_v25 = vld [vmem:[%s1395_s5 + $0x28] sm:$0xff] (!%p325_p2)   ;;  %v933_v26 = vld [vmem:[%s1392_s2] ss:$0 sm:$0xff] (!%p325_p2)  ;;  %v1135_v54 = vld [vmem:[%s1395_s5 + $0x30] sm:$0xff] (!%p325_p2)  }
   0xd   : > { %s1402_s19 = smov (!%p368_p3, %s367_s19), 11  ;;  %1031 = vmatpush3.bf16.msra.mxu1 %v1122_v6  ;;  %v1136_v55 = vld [vmem:[%s1395_s5 + $0x38] sm:$0xff]   ;;  %v945_v56 = vld [vmem:[%s1394_s4] ss:$0 sm:$0xff] }
   0xe   : > { %s930_s22 = sshll.u32 %s1402_s19, 2  ;;  %1032 = vmatprep.subr.bf16.mxu1 %v1145_v1  ;;  %s931_s17 = sshll.u32 %s1402_s19, 3 }
   0xf   : > { %s1239_s29 = scalar_lea.vmem %s1390_s0, %s930_s22  ;;  %1005 = vmatpush3.bf16.msra.mxu0 %v1112_v3  ;;  %s1356_s23 = scalar_lea.vmem %s1397_s7, %s931_s17 }
  0x10   : > { %1006 = vmatprep.subr.bf16.mxu0 %v1145_v1  ;;  %v1118_v15 = vld [vmem:[%s1239_s29] sm:$0xff]   ;;  %v1119_v16 = vld [vmem:[%s1239_s29 + $0x8] sm:$0xff]   ;;  %v1120_v17 = vld [vmem:[%s1239_s29 + $0x10] sm:$0xff]   ;;  %s1369_s30 = scalar_lea.vmem %s1400_s10, %s931_s17 }
  0x11   : > { %1033 = vmatpush3.bf16.msra.mxu1 %v1123_v8 }
  0x12   : > { %1034 = vmatprep.subr.bf16.mxu1 %v1145_v1 }
  0x13   : > { %1007 = vmatpush3.bf16.msra.mxu0 %v1113_v5 }
  0x14   : > { %1008 = vmatprep.subr.bf16.mxu0 %v1145_v1 }
  0x15   : > { %1035 = vmatpush3.bf16.msra.mxu1 %v1124_v10 }
  0x16   : > { %1036 = vmatprep.subr.bf16.mxu1 %v1145_v1 }
  0x17   : > { %1009 = vmatpush3.bf16.msra.mxu0 %v1114_v7 }
  0x18   : > { %1010 = vmatprep.subr.bf16.mxu0 %v1145_v1 }
  0x19   : > { %1037 = vmatpush3.bf16.msra.mxu1 %v1125_v12 }
  0x1a   : > { %1038 = vmatprep.subr.bf16.mxu1 %v1145_v1 }
  0x1b   : > { %1011 = vmatpush3.bf16.msra.mxu0 %v1115_v9 }
  0x1c   : > { %1012 = vmatprep.subr.bf16.mxu0 %v1145_v1 }
  0x1d   : > { %1039 = vmatpush3.bf16.msra.mxu1 %v1126_v14 }
  0x1e   : > { %1040 = vmatprep.subr.bf16.mxu1 %v1145_v1 }
  0x1f   : > { %1013 = vmatpush3.bf16.msra.mxu0 %v1116_v11 }
  0x20   : > { %1014 = vmatprep.subr.bf16.mxu0 %v1145_v1 }
  0x21   : > { %1041 = vmatpush3.bf16.msra.mxu1 %v1127_v18 }
  0x22   : > { %1042 = vmatprep.subr.bf16.mxu1 %v1145_v1 }
  0x23   : > { %1015 = vmatpush3.bf16.msra.mxu0 %v1117_v13 }
  0x24   : > { %1056 = vmatprep.subr.bf16.mxu0 %v1145_v1 }
  0x25   : > { %1043 = vmatpush3.bf16.msra.mxu1 %v1128_v19 }
  0x26   : > { %1017 = vmatmul.mubr.bf16.vlgmr.msra.gmra.mrb[0].mxu0 %v1118_v15  ;;  %1084 = vmatprep.subr.bf16.mxu1 %v1145_v1 }
  0x27   : > { %1020 = vmatprep.mubr.msk.bf16.mxu0 %vm1146_vm0, %v1145_v1  ;;  %1057 = vmatpush3.bf16.msra.mxu0 %v1129_v20 }
  0x28   : > { %1058 = vmatprep.subr.bf16.mxu0 %v1145_v1 }
  0x2b   : > { %1059 = vmatpush3.bf16.msra.mxu0 %v1130_v21 }
  0x2c   : > { %1060 = vmatprep.subr.bf16.mxu0 %v1145_v1 }
  0x2e   : > { %1021 = vmatmul.mubr.bf16.gmra.mrb[4].mxu0 %v1119_v16 }
  0x2f   : > { %1024 = vmatprep.mubr.msk.bf16.mxu0 %vm1146_vm0, %v1145_v1  ;;  %1061 = vmatpush3.bf16.msra.mxu0 %v1131_v22 }
  0x30   : > { %1062 = vmatprep.subr.bf16.mxu0 %v1145_v1 }
  0x33   : > { %1063 = vmatpush3.bf16.msra.mxu0 %v1132_v23 }
  0x34   : > { %1064 = vmatprep.subr.bf16.mxu0 %v1145_v1 }
  0x36   : > { %1025 = vmatmul.mubr.bf16.gmra.mrb[8].mxu0 %v1120_v17 }
  0x37   : > { %1072 = vmatprep.mubr.msk.bf16.mxu0 %vm1146_vm0, %v1145_v1  ;;  %1065 = vmatpush3.bf16.msra.mxu0 %v1133_v24 }
  0x38   : > { %1066 = vmatprep.subr.bf16.mxu0 %v1145_v1 }
  0x3b   : > { %1067 = vmatpush3.bf16.msra.mxu0 %v1134_v25 }
  0x3c   : > { %1068 = vmatprep.subr.bf16.mxu0 %v1145_v1 }
  0x3f   : > { %1069 = vmatpush3.bf16.msra.mxu0 %v1135_v54 }
  0x40   : > { %1070 = vmatprep.subr.bf16.mxu0 %v1145_v1 }
  0x43   : > { %1071 = vmatpush3.bf16.msra.mxu0 %v1136_v55 }
  0xf9   : > { %v515_v27 = vpop.f32.mrb[0].mxu0 }
  0xfa   : > { %v516_v28 = vadd.f32 %v933_v26, %v515_v27  ;;  %v1018_v29 = vpop.f32.mrb[1].mxu0 }
  0xfb   : > { %v518_v30 = vpop.f32.mrb[2].mxu0 }
  0xfc   : > { %v519_v31 = vadd.f32 %v933_v26, %v518_v30  ;;  %v1019_v32 = vpop.f32.mrb[3].mxu0  ;;  %v538_v33 = vmax.f32 %v516_v28, 0.0  ;;  %v964_v30 = vld [vmem:[%s1398_s8] ss:$0 sm:$0xff] }
  0xfe   : > { %v539_v34 = vmax.f32 %v519_v31, 0.0  ;;  %v813_v31 = vld [vmem:[%s1356_s23 + $0x8] sm:$0xff] }
 0x100   : > { %v544_v35 = vpack.c.bf16 %v539_v34, %v538_v33 }
 0x101   : > { %v523_v36 = vpop.f32.mrb[4].mxu0 }
 0x102   : > { %v524_v37 = vadd.f32 %v933_v26, %v523_v36  ;;  %v1022_v38 = vpop.f32.mrb[5].mxu0  ;;  %1045 = vmatmul.mubr.bf16.vlgmr.msra.gmra.mrb[0].mxu1 %v544_v35 }
 0x103   : > { %v526_v39 = vpop.f32.mrb[6].mxu0  ;;  %1048 = vmatprep.mubr.msk.bf16.mxu1 %vm1146_vm0, %v1145_v1  ;;  %1092 = vmatpush3.bf16.msra.mxu1 %v1129_v20 }
 0x104   : > { %v527_v40 = vadd.f32 %v933_v26, %v526_v39  ;;  %v1023_v41 = vpop.f32.mrb[7].mxu0  ;;  %1085 = vmatprep.subr.bf16.mxu1 %v1145_v1  ;;  %v540_v42 = vmax.f32 %v524_v37, 0.0 }
 0x106   : > { %v541_v43 = vmax.f32 %v527_v40, 0.0  ;;  %v814_v40 = vld [vmem:[%s1356_s23 + $0x10] sm:$0xff] }
 0x107   : > { %1093 = vmatpush3.bf16.msra.mxu1 %v1130_v21  ;;  %v954_v21 = vld [vmem:[%s1396_s6] ss:$0 sm:$0xff] }
 0x108   : > { %v545_v44 = vpack.c.bf16 %v541_v43, %v540_v42  ;;  %1086 = vmatprep.subr.bf16.mxu1 %v1145_v1 }
 0x109   : > { %v531_v45 = vpop.f32.mrb[8].mxu0 }
 0x10a   : > { %v532_v46 = vadd.f32 %v933_v26, %v531_v45  ;;  %v1026_v47 = vpop.f32.mrb[9].mxu0  ;;  %1049 = vmatmul.mubr.bf16.gmra.mrb[4].mxu1 %v545_v44  ;;  %v815_v45 = vld [vmem:[%s1356_s23 + $0x18] sm:$0xff] }
 0x10b   : > { %v534_v48 = vpop.f32.mrb[10].mxu0  ;;  %1052 = vmatprep.mubr.msk.bf16.mxu1 %vm1146_vm0, %v1145_v1  ;;  %1094 = vmatpush3.bf16.msra.mxu1 %v1131_v22 }
 0x10c   : > { %v535_v49 = vadd.f32 %v933_v26, %v534_v48  ;;  %v1027_v50 = vpop.f32.mrb[11].mxu0  ;;  %1087 = vmatprep.subr.bf16.mxu1 %v1145_v1  ;;  %v542_v51 = vmax.f32 %v532_v46, 0.0 }
 0x10e   : > { %v543_v52 = vmax.f32 %v535_v49, 0.0 }
 0x10f   : > { %1095 = vmatpush3.bf16.msra.mxu1 %v1132_v23 }
 0x110   : > { %v546_v53 = vpack.c.bf16 %v543_v52, %v542_v51  ;;  %1088 = vmatprep.subr.bf16.mxu1 %v1145_v1 }
 0x112   : > { %1053 = vmatmul.mubr.bf16.gmra.mrb[8].mxu1 %v546_v53 }
 0x113   : > { %1096 = vmatpush3.bf16.msra.mxu1 %v1133_v24  ;;  %1076 = vmatprep.mubr.msk.bf16.mxu1 %vm1146_vm0, %v1145_v1 }
 0x114   : > { %1089 = vmatprep.subr.bf16.mxu1 %v1145_v1 }
 0x117   : > { %1097 = vmatpush3.bf16.msra.mxu1 %v1134_v25  ;;  %v812_v25 = vld [vmem:[%s1356_s23] sm:$0xff] }
 0x118   : > { %1090 = vmatprep.subr.bf16.mxu1 %v1145_v1 }
 0x11b   : > { %1098 = vmatpush3.bf16.msra.mxu1 %v1135_v54  ;;  %v816_v54 = vld [vmem:[%s1356_s23 + $0x20] sm:$0xff] }
 0x11c   : > { %1091 = vmatprep.subr.bf16.mxu1 %v1145_v1 }
 0x11f   : > { %1099 = vmatpush3.bf16.msra.mxu1 %v1136_v55 }
 0x1d5   : > { %v652_v57 = vpop.f32.mrb[0].mxu1 }
 0x1d6   : > { %v653_v58 = vadd.f32 %v945_v56, %v652_v57  ;;  %v1046_v59 = vpop.f32.mrb[1].mxu1 }
 0x1d7   : > { %v655_v60 = vpop.f32.mrb[2].mxu1  ;;  %v817_v59 = vld [vmem:[%s1356_s23 + $0x28] sm:$0xff] }
 0x1d8   : > { %v656_v61 = vadd.f32 %v945_v56, %v655_v60  ;;  %v1047_v62 = vpop.f32.mrb[3].mxu1  ;;  %v675_v63 = vmax.f32 %v653_v58, 0.0 }
 0x1da   : > { %v676_v0 = vmax.f32 %v656_v61, 0.0 }
 0x1dc   : > { %v681_v2 = vpack.c.bf16 %v676_v0, %v675_v63 }
 0x1dd   : > { %v660_v3 = vpop.f32.mrb[4].mxu1 }
 0x1de   : > { %v661_v4 = vadd.f32 %v945_v56, %v660_v3  ;;  %v1050_v5 = vpop.f32.mrb[5].mxu1  ;;  %1073 = vmatmul.mubr.bf16.vlgmr.msra.gmra.mrb[12].mxu0 %v681_v2 }
 0x1df   : > { %v663_v6 = vpop.f32.mrb[6].mxu1 }
 0x1e0   : > { %v664_v7 = vadd.f32 %v945_v56, %v663_v6  ;;  %v1051_v8 = vpop.f32.mrb[7].mxu1  ;;  %v677_v9 = vmax.f32 %v661_v4, 0.0 }
 0x1e2   : > { %v678_v10 = vmax.f32 %v664_v7, 0.0 }
 0x1e4   : > { %v682_v11 = vpack.c.bf16 %v678_v10, %v677_v9 }
 0x1e5   : > { %v668_v12 = vpop.f32.mrb[8].mxu1 }
 0x1e6   : > { %v669_v13 = vadd.f32 %v945_v56, %v668_v12  ;;  %v1054_v14 = vpop.f32.mrb[9].mxu1  ;;  %1077 = vmatmul.mubr.bf16.vlgmr.msra.gmra.mrb[12].mxu1 %v682_v11 }
 0x1e7   : > { %v671_v15 = vpop.f32.mrb[10].mxu1  ;;  %1080 = vmatprep.mubr.msk.bf16.mxu1 %vm1146_vm0, %v1145_v1  ;;  %v963_v1 = vld [vmem:[%s1399_s9] ss:$0 sm:$0xff] }
 0x1e8   : > { %v672_v16 = vadd.f32 %v945_v56, %v671_v15  ;;  %v1055_v17 = vpop.f32.mrb[11].mxu1  ;;  %v679_v18 = vmax.f32 %v669_v13, 0.0 }
 0x1ea   : > { %v680_v19 = vmax.f32 %v672_v16, 0.0 }
 0x1ec   : > { %v683_v20 = vpack.c.bf16 %v680_v19, %v679_v18 }
 0x1ee   : > { %1081 = vmatmul.mubr.bf16.gmra.mrb[16].mxu1 %v683_v20 }
 0x2b1   : > { %v789_v22 = vpop.f32.mrb[12].mxu0 }
 0x2b2   : > { %v790_v23 = vadd.f32 %v954_v21, %v789_v22  ;;  %v1074_v24 = vpop.f32.mrb[13].mxu0 }
 0x2b3   : > { %v792_v26 = vpop.f32.mrb[14].mxu0 }
 0x2b4   : > { %v825_v27 = vmul.f32 %v963_v1, %v790_v23  ;;  %v793_v28 = vadd.f32 %v954_v21, %v792_v26  ;;  %v1075_v29 = vpop.f32.mrb[15].mxu0 }
 0x2b6   : > { %v831_v32 = vadd.f32 %v825_v27, %v812_v25  ;;  %v826_v33 = vmul.f32 %v963_v1, %v793_v28 }
 0x2b8   : > { %v844_v34 = vadd.f32 %v964_v30, %v831_v32  ;;  %v832_v35 = vadd.f32 %v826_v33, %v813_v31 }
 0x2b9   : > { %v797_v36 = vpop.f32.mrb[12].mxu1 }
 0x2ba   : > { %851 = vst.msk [vmem:[%s1369_s30] sm:$0xff] %vm850_vm1, %v844_v34  ;;  %v845_v37 = vadd.f32 %v964_v30, %v832_v35  ;;  %v798_v38 = vadd.f32 %v954_v21, %v797_v36  ;;  %v1078_v39 = vpop.f32.mrb[13].mxu1 }
 0x2bb   : > { %v800_v41 = vpop.f32.mrb[14].mxu1 }
 0x2bc   : > { %852 = vst.msk [vmem:[%s1369_s30 + $0x8] sm:$0xff] %vm850_vm1, %v845_v37  ;;  %v827_v42 = vmul.f32 %v963_v1, %v798_v38  ;;  %v801_v43 = vadd.f32 %v954_v21, %v800_v41  ;;  %v1079_v44 = vpop.f32.mrb[15].mxu1 }
 0x2be   : > { %v833_v46 = vadd.f32 %v827_v42, %v814_v40  ;;  %v828_v47 = vmul.f32 %v963_v1, %v801_v43 }
 0x2c0   : > { %v846_v48 = vadd.f32 %v964_v30, %v833_v46  ;;  %v834_v49 = vadd.f32 %v828_v47, %v815_v45 }
 0x2c1   : > { %v805_v50 = vpop.f32.mrb[16].mxu1 }
 0x2c2   : > { %853 = vst.msk [vmem:[%s1369_s30 + $0x10] sm:$0xff] %vm850_vm1, %v846_v48  ;;  %v847_v51 = vadd.f32 %v964_v30, %v834_v49  ;;  %v806_v52 = vadd.f32 %v954_v21, %v805_v50  ;;  %v1082_v53 = vpop.f32.mrb[17].mxu1 }
 0x2c3   : > { %v808_v55 = vpop.f32.mrb[18].mxu1 }
 0x2c4   : > { %854 = vst.msk [vmem:[%s1369_s30 + $0x18] sm:$0xff] %vm850_vm1, %v847_v51  ;;  %v829_v56 = vmul.f32 %v963_v1, %v806_v52  ;;  %v809_v57 = vadd.f32 %v954_v21, %v808_v55  ;;  %v1083_v58 = vpop.f32.mrb[19].mxu1 }
 0x2c6   : > { %v835_v60 = vadd.f32 %v829_v56, %v816_v54  ;;  %v830_v61 = vmul.f32 %v963_v1, %v809_v57 }
 0x2c8   : > { %v848_v62 = vadd.f32 %v964_v30, %v835_v60  ;;  %v836_v63 = vadd.f32 %v830_v61, %v817_v59 }
 0x2ca   : > { %855 = vst.msk [vmem:[%s1369_s30 + $0x20] sm:$0xff] %vm850_vm1, %v848_v62  ;;  %v849_v0 = vadd.f32 %v964_v30, %v836_v63 }
 0x2cc   : > { %856 = vst.msk [vmem:[%s1369_s30 + $0x28] sm:$0xff] %vm850_vm1, %v849_v0 }
 0x2cd PF: > { %s20_s13 = sadd.s32 1, %s1143_s13  }
 0x2ce   : > { %p17_p4 = scmp.ge.s32.totalorder %s20_s13, 4  }
 0x2d0   :  { %19 = sbr.rel (!%p17_p4) target bundleno = 1 (0x1), region = 93 }

// kernel: model_forward.63
= control target key start
LH: loop header
LB: loop body
LE: loop exit
PB: predicated region body
PF: predicated region fallthrough
CT: control target
= control target key end

     0   :  { %s4285_s0 = inlined_call_operand.vmem [shape: bf16[352,128], index: 0, kind: input, shape index: {}]   ;;  %s4286_s1 = inlined_call_operand.vmem [shape: bf16[352,128], index: 1, kind: input, shape index: {}]   ;;  %s4287_s2 = inlined_call_operand.vmem [shape: bf16[352,128], index: 2, kind: input, shape index: {}]   ;;  %s4288_s3 = inlined_call_operand.vmem [shape: bf16[128,128], index: 3, kind: input, shape index: {}]   ;;  %s4289_s4 = inlined_call_operand.vmem [shape: bf16[128,128], index: 4, kind: input, shape index: {}]   ;;  %s4290_s5 = inlined_call_operand.vmem [shape: bf16[128,128], index: 5, kind: input, shape index: {}]   ;;  %s4291_s6 = inlined_call_operand.vmem [shape: f32[1,128], index: 6, kind: input, shape index: {}]   ;;  %s4292_s7 = inlined_call_operand.vmem [shape: bf16[128,128], index: 7, kind: input, shape index: {}]   ;;  %s4293_s8 = inlined_call_operand.vmem [shape: f32[1,128], index: 8, kind: input, shape index: {}]   ;;  %s4294_s9 = inlined_call_operand.vmem [shape: bf16[128,128], index: 9, kind: input, shape index: {}]   ;;  %s4295_s10 = inlined_call_operand.vmem [shape: f32[1,128], index: 10, kind: input, shape index: {}]   ;;  %s4296_s11 = inlined_call_operand.vmem [shape: f32[1,128], index: 11, kind: input, shape index: {}]   ;;  %s4297_s12 = inlined_call_operand.vmem [shape: f32[1,128], index: 12, kind: input, shape index: {}]   ;;  %s4298_s13 = inlined_call_operand.vmem [shape: f32[352,128], index: 13, kind: output, shape index: {0}]   ;;  %s4299_s14 = inlined_call_operand.hbm [shape: bf16[352,128], index: 14, kind: output, shape index: {1}]  }
   0x1   :  { %4301 = sst [smem:[#allocation7_spill]] %s4285_s0 }
   0x2   :  { %4302 = sst [smem:[#allocation8_spill]] %s4286_s1 }
   0x3   :  { %4303 = sst [smem:[#allocation9_spill]] %s4289_s4 }
   0x4   :  { %20 = vsyncpa [#allocation3], 0 }
   0x5   :  { %22 = vsyncpa [#allocation3 + $0x1], 0  ;;  %s3396_s29 = smov 0   ;;  %s3398_s30 = smov 0  }
   0x6   :  { %s3400_s15 = smov 0   ;;  %s3402_s16 = smov 0  }
   0x7 LB: > { %4304 = sst [smem:[#allocation5_spill]] %s3310_s15  ;;  %s3417_s17 = sadd.s32 4294967295, %s3314_s16   ;;  %s3314_s16 = sphi %s3402_s16, %s4315_s16   ;;  %s3310_s15 = sphi %s3400_s15, %s4312_s15   ;;  %s3306_s30 = sphi %s3398_s30, %s4314_s30   ;;  %s3302_s29 = sphi %s3396_s29, %s4313_s29  }
   0x8   : > { %s2459_s18 = sadd.s32 4294967294, %s3314_s16   ;;  %s3421_s19 = sadd.s32 1, %s3314_s16  }
   0x9   : > { %s349_s20 = sadd.s32 1, %s3310_s15  ;;  %s346_s21 = ssub.s32 %s3314_s16, %s3421_s19 }
   0xa   : > { %p359_p0 = scmp.ne.s32.totalorder %s3310_s15, %s3306_s30  ;;  %p347_p1 = scmp.eq.s32.totalorder %s346_s21, 0 }
   0xb   : > { %p360_p2 = scmp.eq.s32.totalorder %s3417_s17, 1  ;;  %p365_p3 = scmp.ne.s32.totalorder %s3306_s30, %s3302_s29 }
   0xc   : > { %p366_p4 = scmp.eq.s32.totalorder %s2459_s18, 1  ;;  %p2462_p7 = scmp.ge.s32.totalorder %s3314_s16, 1 }
   0xd   : > { %s3432_s22 = scalar_select %p347_p1, %s3310_s15, %s349_s20  }
   0xe   : > { %p3434_p5 = por %p360_p2, %p359_p0  ;;  %p3438_p6 = por %p366_p4, %p365_p3 }
   0xf   : > { %4305 = sst [smem:[#allocation6_spill]] %s3432_s22  ;;  %p441_p8 = scmp.lt.s32.totalorder %s3314_s16, 3 }
  0x11   : > { %p442_p9 = pnand %p2462_p7, %p441_p8 }
  0x12   : > { %s4308_s4 = sld [smem:[#allocation9_spill]] (!%p442_p9)  ;;  %v3316_v1 = vmov (!%p442_p9), 0.0   ;;  %s502_s18 = smul.u32 (!%p442_p9), 22, %s3417_s17  ;;  %vm3317_vm0 = vmmov (!%p442_p9), 0   ;;  %v3123_v11 = vld [vmem:[%s4290_s5] sm:$0xff] (!%p442_p9)   ;;  %v3125_v13 = vld [vmem:[%s4290_s5 + $0x8] sm:$0xff] (!%p442_p9)  }
  0x13   : > { %445 = sbr.rel (%p442_p9) target bundleno = 1174 (0x496), region = 72  ;;  %2753 = vmatprep.subr.bf16.mxu0 (!%p442_p9), %v3316_v1  ;;  %3053 = vmatprep.subr.bf16.mxu1 (!%p442_p9), %v3316_v1  ;;  %s4309_s1 = sld [smem:[#allocation8_spill]] (!%p442_p9)  ;;  %v3124_v12 = vld [vmem:[%s4288_s3] sm:$0xff] (!%p442_p9)   ;;  %v3128_v14 = vld [vmem:[%s4288_s3 + $0x8] sm:$0xff] (!%p442_p9)   ;;  %v3129_v17 = vld [vmem:[%s4290_s5 + $0x10] sm:$0xff] (!%p442_p9)  }
  0x14   : > { %2769 = vmatprep.mubr.msk.bf16.mxu0 (!%p442_p9), %vm3317_vm0, %v3316_v1  ;;  %2793 = vmatprep.mubr.msk.bf16.mxu1 (!%p442_p9), %vm3317_vm0, %v3316_v1  ;;  %p503_p10 = scmp.lt.s32.totalorder (!%p442_p9), %s502_s18, 43  ;;  %s4310_s0 = sld [smem:[#allocation7_spill]] (!%p442_p9)  ;;  %v3132_v18 = vld [vmem:[%s4288_s3 + $0x10] sm:$0xff] (!%p442_p9)   ;;  %v3133_v19 = vld [vmem:[%s4290_s5 + $0x18] sm:$0xff] (!%p442_p9)   ;;  %v3138_v23 = vld [vmem:[%s4290_s5 + $0x20] sm:$0xff] (!%p442_p9)  }
  0x15   : > { %v3134_v20 = vld [vmem:[%s4288_s3 + $0x18] sm:$0xff] (!%p442_p9)   ;;  %v3137_v24 = vld [vmem:[%s4288_s3 + $0x20] sm:$0xff] (!%p442_p9)   ;;  %v3140_v27 = vld [vmem:[%s4290_s5 + $0x28] sm:$0xff] (!%p442_p9)   ;;  %s499_s22 = sand.u32 (!%p442_p9), 1, %s3306_s30   ;;  %s2592_s26 = smul.u32 (!%p442_p9), 1408, %s3417_s17 }
  0x16   : > { %v3139_v28 = vld [vmem:[%s4288_s3 + $0x28] sm:$0xff] (!%p442_p9)   ;;  %v3145_v29 = vld [vmem:[%s4290_s5 + $0x30] sm:$0xff] (!%p442_p9)   ;;  %v3148_v31 = vld [vmem:[%s4290_s5 + $0x38] sm:$0xff] (!%p442_p9)   ;;  %s4244_s17 = scalar_lea.sflag (!%p442_p9), [#allocation3], %s499_s22  ;;  %s3318_s21 = smov (!%p442_p9), [#allocation2]  }
  0x17   : > { %v3143_v30 = vld [vmem:[%s4288_s3 + $0x30] sm:$0xff] (!%p442_p9)   ;;  %v3144_v32 = vld [vmem:[%s4288_s3 + $0x38] sm:$0xff] (!%p442_p9)   ;;  %v3170_v37 = vld [vmem:[%s4292_s7] sm:$0xff] (!%p442_p9)  }
  0x18   : > { %v3113_v0 = vld [vmem:[%s4308_s4] sm:$0xff] (!%p442_p9)   ;;  %v3114_v2 = vld [vmem:[%s4308_s4 + $0x8] sm:$0xff] (!%p442_p9)   ;;  %v3115_v3 = vld [vmem:[%s4308_s4 + $0x10] sm:$0xff] (!%p442_p9)  }
  0x19   : > { %2754 = vmatpush3.bf16.msra.mxu0 (!%p442_p9), %v3113_v0  ;;  %3061 = vmatpush3.bf16.msra.mxu1 (!%p442_p9), %v3113_v0  ;;  %v3116_v4 = vld [vmem:[%s4308_s4 + $0x18] sm:$0xff] (!%p442_p9)   ;;  %v3117_v5 = vld [vmem:[%s4308_s4 + $0x20] sm:$0xff] (!%p442_p9)   ;;  %v3118_v6 = vld [vmem:[%s4308_s4 + $0x28] sm:$0xff] (!%p442_p9)  }
  0x1a   : > { %2755 = vmatprep.subr.bf16.mxu0 %v3316_v1  ;;  %3054 = vmatprep.subr.bf16.mxu1 %v3316_v1  ;;  %s4317_s18 = smov (!%p503_p10, %s502_s18), 43  ;;  %v3119_v7 = vld [vmem:[%s4308_s4 + $0x30] sm:$0xff]   ;;  %v3120_v8 = vld [vmem:[%s4308_s4 + $0x38] sm:$0xff]   ;;  %v3171_v39 = vld [vmem:[%s4292_s7 + $0x8] sm:$0xff]  }
  0x1b   : > { %s3467_s25 = sshll.u32 %s4317_s18, 2  ;;  %v3172_v41 = vld [vmem:[%s4292_s7 + $0x10] sm:$0xff]   ;;  %v3173_v52 = vld [vmem:[%s4292_s7 + $0x18] sm:$0xff]   ;;  %v3174_v56 = vld [vmem:[%s4292_s7 + $0x20] sm:$0xff]   ;;  %s2466_s20 = sshll.u32 %s4317_s18, 3 }
  0x1c   : > { %s3473_s28 = scalar_lea.vmem %s4309_s1, %s3467_s25  ;;  %s3514_s1 = scalar_lea.vmem %s4310_s0, %s3467_s25  ;;  %v3175_v60 = vld [vmem:[%s4292_s7 + $0x28] sm:$0xff]   ;;  %v3176_v63 = vld [vmem:[%s4292_s7 + $0x30] sm:$0xff]  }
  0x1d   : > { %2756 = vmatpush3.bf16.msra.mxu0 %v3114_v2  ;;  %3062 = vmatpush3.bf16.msra.mxu1 %v3114_v2  ;;  %v3121_v9 = vld [vmem:[%s3473_s28] sm:$0xff]   ;;  %v3122_v10 = vld [vmem:[%s3473_s28 + $0x30] sm:$0xff]   ;;  %v3126_v15 = vld [vmem:[%s3473_s28 + $0x8] sm:$0xff]   ;;  %s3608_s15 = scalar_lea.vmem %s4287_s2, %s3467_s25  ;;  %s4118_s18 = scalar_lea.vmem %s4298_s13, %s2466_s20 }
  0x1e   : > { %2757 = vmatprep.subr.bf16.mxu0 %v3316_v1  ;;  %3055 = vmatprep.subr.bf16.mxu1 %v3316_v1  ;;  %v3127_v16 = vld [vmem:[%s3473_s28 + $0x38] sm:$0xff]   ;;  %v3130_v21 = vld [vmem:[%s3473_s28 + $0x10] sm:$0xff]   ;;  %v3131_v22 = vld [vmem:[%s3473_s28 + $0x40] sm:$0xff]   ;;  %s3069_s0 = smul.u32 88, %s499_s22 }
  0x1f   : > { %v3135_v25 = vld [vmem:[%s3473_s28 + $0x18] sm:$0xff]   ;;  %v3136_v26 = vld [vmem:[%s3473_s28 + $0x48] sm:$0xff]   ;;  %v3141_v33 = vld [vmem:[%s3473_s28 + $0x20] sm:$0xff]  }
  0x20   : > { %v3142_v34 = vld [vmem:[%s3473_s28 + $0x50] sm:$0xff]   ;;  %v3146_v35 = vld [vmem:[%s3473_s28 + $0x28] sm:$0xff]   ;;  %v3147_v36 = vld [vmem:[%s3514_s1] sm:$0xff]   ;;  %s4135_s4 = scalar_lea.vmem [#allocation2], %s3069_s0  ;;  %s4237_s28 = scalar_lea.hbm %s4299_s14, %s2592_s26 }
  0x21   : > { %2758 = vmatpush3.bf16.msra.mxu0 %v3115_v3  ;;  %3063 = vmatpush3.bf16.msra.mxu1 %v3115_v3  ;;  %v572_v38 = vld [vmem:[%s3608_s15] sm:$0xff]   ;;  %v3149_v40 = vld [vmem:[%s3514_s1 + $0x8] sm:$0xff]   ;;  %v3151_v43 = vld [vmem:[%s3514_s1 + $0x10] sm:$0xff]   ;;  %s2348_s27 = sshll.u32 %s4135_s4, 4  ;;  %s4239_s27 = int_to_ptr.vmem [resolvable:$true] %s2348_s27 }
  0x22   : > { %2759 = vmatprep.subr.bf16.mxu0 %v3316_v1  ;;  %3056 = vmatprep.subr.bf16.mxu1 %v3316_v1  ;;  %v574_v42 = vld [vmem:[%s3608_s15 + $0x8] sm:$0xff]   ;;  %v576_v44 = vld [vmem:[%s3608_s15 + $0x10] sm:$0xff]   ;;  %v3153_v45 = vld [vmem:[%s3514_s1 + $0x18] sm:$0xff]   ;;  %s3252_s25 = scalar_lea.vmem %s4239_s27, 1408 }
  0x23   : > { %v578_v46 = vld [vmem:[%s3608_s15 + $0x18] sm:$0xff]   ;;  %v3155_v47 = vld [vmem:[%s3514_s1 + $0x20] sm:$0xff]   ;;  %v3157_v49 = vld [vmem:[%s3514_s1 + $0x28] sm:$0xff]   ;;  %p3253_p11 = scmp.ne.s32.totalorder %s4239_s27, %s3252_s25 }
  0x24   : > { %v580_v48 = vld [vmem:[%s3608_s15 + $0x20] sm:$0xff]   ;;  %v582_v50 = vld [vmem:[%s3608_s15 + $0x28] sm:$0xff]   ;;  %v3159_v51 = vld [vmem:[%s3514_s1 + $0x30] sm:$0xff]  }
  0x25   : > { %2760 = vmatpush3.bf16.msra.mxu0 %v3116_v4  ;;  %3064 = vmatpush3.bf16.msra.mxu1 %v3116_v4  ;;  %v584_v53 = vld [vmem:[%s3608_s15 + $0x30] sm:$0xff]   ;;  %v3161_v54 = vld [vmem:[%s3514_s1 + $0x38] sm:$0xff]   ;;  %v3163_v57 = vld [vmem:[%s3514_s1 + $0x40] sm:$0xff]   ;;  %p3254_p12 = pnand %p3253_p11, %p3434_p5 }
  0x26   : > { %2761 = vmatprep.subr.bf16.mxu0 %v3316_v1  ;;  %3057 = vmatprep.subr.bf16.mxu1 %v3316_v1  ;;  %v586_v55 = vld [vmem:[%s3608_s15 + $0x38] sm:$0xff]   ;;  %v588_v58 = vld [vmem:[%s3608_s15 + $0x40] sm:$0xff]   ;;  %v3165_v59 = vld [vmem:[%s3514_s1 + $0x48] sm:$0xff]  }
  0x27   : > { %v590_v61 = vld [vmem:[%s3608_s15 + $0x48] sm:$0xff]   ;;  %v3167_v62 = vld [vmem:[%s3514_s1 + $0x50] sm:$0xff]   ;;  %v3177_v2 = vld [vmem:[%s4292_s7 + $0x38] sm:$0xff]   ;;  %p3255_p13 = pneg %p3254_p12  ;;  %s3256_s1 = sshll.u32 %s3318_s21, 4  ;;  %s3257_s1 = int_to_ptr.vmem [resolvable:$false] %s3256_s1 }
  0x28   : > { %v592_v0 = vld [vmem:[%s3608_s15 + $0x50] sm:$0xff]   ;;  %p3259_p0 = scmp.lt.s32.totalorder %s4239_s27, %s3257_s1 }
  0x29   : > { %2762 = vmatpush3.bf16.msra.mxu0 %v3117_v5  ;;  %3065 = vmatpush3.bf16.msra.mxu1 %v3117_v5 }
  0x2a   : > { %2763 = vmatprep.subr.bf16.mxu0 %v3316_v1  ;;  %3058 = vmatprep.subr.bf16.mxu1 %v3316_v1 }
  0x2d   : > { %2764 = vmatpush3.bf16.msra.mxu0 %v3118_v6  ;;  %3066 = vmatpush3.bf16.msra.mxu1 %v3118_v6 }
  0x2e   : > { %2765 = vmatprep.subr.bf16.mxu0 %v3316_v1  ;;  %3059 = vmatprep.subr.bf16.mxu1 %v3316_v1 }
  0x31   : > { %2766 = vmatpush3.bf16.msra.mxu0 %v3119_v7  ;;  %3067 = vmatpush3.bf16.msra.mxu1 %v3119_v7 }
  0x32   : > { %2767 = vmatprep.subr.bf16.mxu0 %v3316_v1  ;;  %3060 = vmatprep.subr.bf16.mxu1 %v3316_v1 }
  0x35   : > { %2768 = vmatpush3.bf16.msra.mxu0 %v3120_v8  ;;  %3068 = vmatpush3.bf16.msra.mxu1 %v3120_v8 }
  0x36   : > { %2873 = vmatprep.subr.bf16.mxu0 %v3316_v1  ;;  %2813 = vmatprep.subr.bf16.mxu1 %v3316_v1 }
  0x38   : > { %2770 = vmatmul.mubr.bf16.vlgmr.msra.gmra.mrb[0].mxu0 %v3121_v9  ;;  %2794 = vmatmul.mubr.bf16.vlgmr.msra.gmra.mrb[0].mxu1 %v3122_v10 }
  0x39   : > { %2874 = vmatpush3.bf16.msra.mxu0 %v3123_v11  ;;  %2773 = vmatprep.mubr.msk.bf16.mxu0 %vm3317_vm0, %v3316_v1 }
  0x3a   : > { %2875 = vmatprep.subr.bf16.mxu0 %v3316_v1  ;;  %2797 = vmatprep.mubr.msk.bf16.mxu1 %vm3317_vm0, %v3316_v1 }
  0x3b   : > { %2814 = vmatpush3.bf16.msra.mxu1 %v3124_v12 }
  0x3c   : > { %2815 = vmatprep.subr.bf16.mxu1 %v3316_v1 }
  0x3d   : > { %2876 = vmatpush3.bf16.msra.mxu0 %v3125_v13 }
  0x3e   : > { %2877 = vmatprep.subr.bf16.mxu0 %v3316_v1 }
  0x3f   : > { %2816 = vmatpush3.bf16.msra.mxu1 %v3128_v14 }
  0x40   : > { %2774 = vmatmul.mubr.bf16.gmra.mrb[4].mxu0 %v3126_v15  ;;  %2798 = vmatmul.mubr.bf16.gmra.mrb[4].mxu1 %v3127_v16 }
  0x41   : > { %2878 = vmatpush3.bf16.msra.mxu0 %v3129_v17  ;;  %2777 = vmatprep.mubr.msk.bf16.mxu0 %vm3317_vm0, %v3316_v1 }
  0x42   : > { %2801 = vmatprep.mubr.msk.bf16.mxu1 %vm3317_vm0, %v3316_v1  ;;  %2817 = vmatprep.subr.bf16.mxu1 %v3316_v1 }
  0x43   : > { %2818 = vmatpush3.bf16.msra.mxu1 %v3132_v18  ;;  %2879 = vmatprep.subr.bf16.mxu0 %v3316_v1 }
  0x44   : > { %2819 = vmatprep.subr.bf16.mxu1 %v3316_v1 }
  0x45   : > { %2880 = vmatpush3.bf16.msra.mxu0 %v3133_v19  ;;  %v3178_v19 = vld [vmem:[%s4294_s9] sm:$0xff]  }
  0x46   : > { %2881 = vmatprep.subr.bf16.mxu0 %v3316_v1 }
  0x47   : > { %2820 = vmatpush3.bf16.msra.mxu1 %v3134_v20  ;;  %v3179_v20 = vld [vmem:[%s4294_s9 + $0x8] sm:$0xff]  }
  0x48   : > { %2778 = vmatmul.mubr.bf16.gmra.mrb[8].mxu0 %v3130_v21  ;;  %2802 = vmatmul.mubr.bf16.gmra.mrb[8].mxu1 %v3131_v22 }
  0x49   : > { %2781 = vmatprep.mubr.msk.bf16.mxu0 %vm3317_vm0, %v3316_v1  ;;  %2805 = vmatprep.mubr.msk.bf16.mxu1 %vm3317_vm0, %v3316_v1 }
  0x4a   : > { %2821 = vmatprep.subr.bf16.mxu1 %v3316_v1  ;;  %2882 = vmatpush3.bf16.msra.mxu0 %v3138_v23 }
  0x4b   : > { %2822 = vmatpush3.bf16.msra.mxu1 %v3137_v24  ;;  %2883 = vmatprep.subr.bf16.mxu0 %v3316_v1 }
  0x4c   : > { %2823 = vmatprep.subr.bf16.mxu1 %v3316_v1 }
  0x4e   : > { %2884 = vmatpush3.bf16.msra.mxu0 %v3140_v27 }
  0x4f   : > { %2824 = vmatpush3.bf16.msra.mxu1 %v3139_v28  ;;  %2885 = vmatprep.subr.bf16.mxu0 %v3316_v1 }
  0x50   : > { %2782 = vmatmul.mubr.bf16.gmra.mrb[12].mxu0 %v3135_v25  ;;  %2806 = vmatmul.mubr.bf16.gmra.mrb[12].mxu1 %v3136_v26  ;;  %v3180_v25 = vld [vmem:[%s4294_s9 + $0x10] sm:$0xff]  }
  0x51   : > { %2785 = vmatprep.mubr.msk.bf16.mxu0 %vm3317_vm0, %v3316_v1  ;;  %2809 = vmatprep.mubr.msk.bf16.mxu1 %vm3317_vm0, %v3316_v1 }
  0x52   : > { %2825 = vmatprep.subr.bf16.mxu1 %v3316_v1  ;;  %2886 = vmatpush3.bf16.msra.mxu0 %v3145_v29 }
  0x53   : > { %2826 = vmatpush3.bf16.msra.mxu1 %v3143_v30  ;;  %2887 = vmatprep.subr.bf16.mxu0 %v3316_v1  ;;  %v3181_v30 = vld [vmem:[%s4294_s9 + $0x18] sm:$0xff]  }
  0x54   : > { %2827 = vmatprep.subr.bf16.mxu1 %v3316_v1 }
  0x56   : > { %2888 = vmatpush3.bf16.msra.mxu0 %v3148_v31 }
  0x57   : > { %2828 = vmatpush3.bf16.msra.mxu1 %v3144_v32  ;;  %2993 = vmatprep.subr.bf16.mxu0 %v3316_v1 }
  0x58   : > { %2786 = vmatmul.mubr.bf16.gmra.mrb[16].mxu0 %v3141_v33  ;;  %2810 = vmatmul.mubr.bf16.gmra.mrb[16].mxu1 %v3142_v34 }
  0x59   : > { %2789 = vmatprep.mubr.msk.bf16.mxu0 %vm3317_vm0, %v3316_v1  ;;  %2829 = vmatprep.mubr.msk.bf16.mxu1 %vm3317_vm0, %v3316_v1 }
  0x5a   : > { %2933 = vmatprep.subr.bf16.mxu1 %v3316_v1 }
  0x60   : > { %2790 = vmatmul.mubr.bf16.gmra.mrb[20].mxu0 %v3146_v35  ;;  %2830 = vmatmul.mubr.bf16.vlgmr.msra.gmra.mrb[20].mxu1 %v3147_v36  ;;  %v3182_v35 = vld [vmem:[%s4294_s9 + $0x20] sm:$0xff]  }
  0x61   : > { %2833 = vmatprep.mubr.msk.bf16.mxu1 %vm3317_vm0, %v3316_v1  ;;  %2889 = vmatprep.mubr.msk.bf16.mxu0 %vm3317_vm0, %v3316_v1 }
  0x62   : > { %2934 = vmatpush3.bf16.msra.mxu1 %v3170_v37 }
  0x63   : > { %2935 = vmatprep.subr.bf16.mxu1 %v3316_v1 }
  0x66   : > { %2936 = vmatpush3.bf16.msra.mxu1 %v3171_v39 }
  0x67   : > { %2937 = vmatprep.subr.bf16.mxu1 %v3316_v1 }
  0x68   : > { %2834 = vmatmul.mubr.bf16.gmra.mrb[24].mxu1 %v3149_v40  ;;  %2890 = vmatmul.mubr.bf16.vlgmr.msra.gmra.mrb[24].mxu0 %v572_v38  ;;  %v3183_v40 = vld [vmem:[%s4294_s9 + $0x28] sm:$0xff]  }
  0x69   : > { %2837 = vmatprep.mubr.msk.bf16.mxu1 %vm3317_vm0, %v3316_v1  ;;  %2893 = vmatprep.mubr.msk.bf16.mxu0 %vm3317_vm0, %v3316_v1 }
  0x6a   : > { %2938 = vmatpush3.bf16.msra.mxu1 %v3172_v41  ;;  %2994 = vmatpush3.bf16.msra.mxu0 %v3178_v19 }
  0x6b   : > { %2939 = vmatprep.subr.bf16.mxu1 %v3316_v1  ;;  %2995 = vmatprep.subr.bf16.mxu0 %v3316_v1 }
  0x6e   : > { %2940 = vmatpush3.bf16.msra.mxu1 %v3173_v52  ;;  %2996 = vmatpush3.bf16.msra.mxu0 %v3179_v20 }
  0x6f   : > { %2941 = vmatprep.subr.bf16.mxu1 %v3316_v1  ;;  %2997 = vmatprep.subr.bf16.mxu0 %v3316_v1 }
  0x70   : > { %2838 = vmatmul.mubr.bf16.gmra.mrb[28].mxu1 %v3151_v43  ;;  %2894 = vmatmul.mubr.bf16.gmra.mrb[28].mxu0 %v574_v42 }
  0x71   : > { %2841 = vmatprep.mubr.msk.bf16.mxu1 %vm3317_vm0, %v3316_v1  ;;  %2897 = vmatprep.mubr.msk.bf16.mxu0 %vm3317_vm0, %v3316_v1 }
  0x72   : > { %2942 = vmatpush3.bf16.msra.mxu1 %v3174_v56  ;;  %2998 = vmatpush3.bf16.msra.mxu0 %v3180_v25 }
  0x73   : > { %2943 = vmatprep.subr.bf16.mxu1 %v3316_v1  ;;  %2999 = vmatprep.subr.bf16.mxu0 %v3316_v1 }
  0x76   : > { %2944 = vmatpush3.bf16.msra.mxu1 %v3175_v60  ;;  %3000 = vmatpush3.bf16.msra.mxu0 %v3181_v30 }
  0x77   : > { %2945 = vmatprep.subr.bf16.mxu1 %v3316_v1  ;;  %3001 = vmatprep.subr.bf16.mxu0 %v3316_v1 }
  0x78   : > { %2842 = vmatmul.mubr.bf16.gmra.mrb[32].mxu1 %v3153_v45  ;;  %2898 = vmatmul.mubr.bf16.gmra.mrb[32].mxu0 %v576_v44  ;;  %v3184_v45 = vld [vmem:[%s4294_s9 + $0x30] sm:$0xff]  }
  0x79   : > { %2845 = vmatprep.mubr.msk.bf16.mxu1 %vm3317_vm0, %v3316_v1  ;;  %2901 = vmatprep.mubr.msk.bf16.mxu0 %vm3317_vm0, %v3316_v1 }
  0x7a   : > { %2946 = vmatpush3.bf16.msra.mxu1 %v3176_v63  ;;  %3002 = vmatpush3.bf16.msra.mxu0 %v3182_v35  ;;  %v3788_v63 = vld [vmem:[%s4291_s6] ss:$0 sm:$0xff] }
  0x7b   : > { %2947 = vmatprep.subr.bf16.mxu1 %v3316_v1  ;;  %3003 = vmatprep.subr.bf16.mxu0 %v3316_v1 }
  0x7e   : > { %2948 = vmatpush3.bf16.msra.mxu1 %v3177_v2  ;;  %3004 = vmatpush3.bf16.msra.mxu0 %v3183_v40 }
  0x7f   : > { %3005 = vmatprep.subr.bf16.mxu0 %v3316_v1 }
  0x80   : > { %2846 = vmatmul.mubr.bf16.gmra.mrb[36].mxu1 %v3155_v47  ;;  %2902 = vmatmul.mubr.bf16.gmra.mrb[36].mxu0 %v578_v46 }
  0x81   : > { %2849 = vmatprep.mubr.msk.bf16.mxu1 %vm3317_vm0, %v3316_v1  ;;  %2905 = vmatprep.mubr.msk.bf16.mxu0 %vm3317_vm0, %v3316_v1 }
  0x82   : > { %3006 = vmatpush3.bf16.msra.mxu0 %v3184_v45 }
  0x83   : > { %3007 = vmatprep.subr.bf16.mxu0 %v3316_v1 }
  0x88   : > { %2850 = vmatmul.mubr.bf16.gmra.mrb[40].mxu1 %v3157_v49  ;;  %2906 = vmatmul.mubr.bf16.gmra.mrb[40].mxu0 %v580_v48 }
  0x89   : > { %2853 = vmatprep.mubr.msk.bf16.mxu1 %vm3317_vm0, %v3316_v1  ;;  %2909 = vmatprep.mubr.msk.bf16.mxu0 %vm3317_vm0, %v3316_v1 }
  0x90   : > { %2854 = vmatmul.mubr.bf16.gmra.mrb[44].mxu1 %v3159_v51  ;;  %2910 = vmatmul.mubr.bf16.gmra.mrb[44].mxu0 %v582_v50  ;;  %v3185_v50 = vld [vmem:[%s4294_s9 + $0x38] sm:$0xff]  }
  0x91   : > { %2857 = vmatprep.mubr.msk.bf16.mxu1 %vm3317_vm0, %v3316_v1  ;;  %2913 = vmatprep.mubr.msk.bf16.mxu0 %vm3317_vm0, %v3316_v1 }
  0x92   : > { %3008 = vmatpush3.bf16.msra.mxu0 %v3185_v50 }
  0x98   : > { %2858 = vmatmul.mubr.bf16.gmra.mrb[48].mxu1 %v3161_v54  ;;  %2914 = vmatmul.mubr.bf16.gmra.mrb[48].mxu0 %v584_v53 }
  0x99   : > { %2861 = vmatprep.mubr.msk.bf16.mxu1 %vm3317_vm0, %v3316_v1  ;;  %2917 = vmatprep.mubr.msk.bf16.mxu0 %vm3317_vm0, %v3316_v1 }
  0xa0   : > { %2862 = vmatmul.mubr.bf16.gmra.mrb[52].mxu1 %v3163_v57  ;;  %2918 = vmatmul.mubr.bf16.gmra.mrb[52].mxu0 %v586_v55 }
  0xa1   : > { %2865 = vmatprep.mubr.msk.bf16.mxu1 %vm3317_vm0, %v3316_v1  ;;  %2921 = vmatprep.mubr.msk.bf16.mxu0 %vm3317_vm0, %v3316_v1 }
  0xa8   : > { %2866 = vmatmul.mubr.bf16.gmra.mrb[56].mxu1 %v3165_v59  ;;  %2922 = vmatmul.mubr.bf16.gmra.mrb[56].mxu0 %v588_v58 }
  0xa9   : > { %2869 = vmatprep.mubr.msk.bf16.mxu1 %vm3317_vm0, %v3316_v1  ;;  %2925 = vmatprep.mubr.msk.bf16.mxu0 %vm3317_vm0, %v3316_v1 }
  0xb0   : > { %2870 = vmatmul.mubr.bf16.gmra.mrb[60].mxu1 %v3167_v62  ;;  %2926 = vmatmul.mubr.bf16.gmra.mrb[60].mxu0 %v590_v61 }
  0xb1   : > { %2929 = vmatprep.mubr.msk.bf16.mxu0 %vm3317_vm0, %v3316_v1  ;;  %2949 = vmatprep.mubr.msk.bf16.mxu1 %vm3317_vm0, %v3316_v1 }
  0xb8   : > { %2930 = vmatmul.mubr.bf16.gmra.mrb[64].mxu0 %v592_v0 }
  0xb9   : > { %3009 = vmatprep.mubr.msk.bf16.mxu0 %vm3317_vm0, %v3316_v1 }
 0x10b   : > { %v3708_v3 = vpop.f32.mrb[0].mxu0  ;;  %v3710_v4 = vpop.f32.mrb[0].mxu1 }
 0x10c   : > { %v2771_v5 = vpop.f32.mrb[1].mxu0  ;;  %v2795_v6 = vpop.f32.mrb[1].mxu1 }
 0x10d   : > { %v3712_v7 = vpop.f32.mrb[2].mxu0  ;;  %v3714_v8 = vpop.f32.mrb[2].mxu1 }
 0x10e   : > { %v2772_v9 = vpop.f32.mrb[3].mxu0  ;;  %v2796_v10 = vpop.f32.mrb[3].mxu1 }
 0x113   : > { %v3716_v11 = vpop.f32.mrb[4].mxu0  ;;  %v3718_v12 = vpop.f32.mrb[4].mxu1 }
 0x114   : > { %v2775_v13 = vpop.f32.mrb[5].mxu0  ;;  %v2799_v14 = vpop.f32.mrb[5].mxu1 }
 0x115   : > { %v3720_v15 = vpop.f32.mrb[6].mxu0  ;;  %v3722_v16 = vpop.f32.mrb[6].mxu1 }
 0x116   : > { %v2776_v17 = vpop.f32.mrb[7].mxu0  ;;  %v2800_v18 = vpop.f32.mrb[7].mxu1 }
 0x11b   : > { %v3731_v21 = vpop.f32.mrb[8].mxu0  ;;  %v3733_v22 = vpop.f32.mrb[8].mxu1 }
 0x11c   : > { %v2779_v23 = vpop.f32.mrb[9].mxu0  ;;  %v2803_v24 = vpop.f32.mrb[9].mxu1 }
 0x11d   : > { %v3738_v26 = vpop.f32.mrb[10].mxu0  ;;  %v3740_v27 = vpop.f32.mrb[10].mxu1 }
 0x11e   : > { %v2780_v28 = vpop.f32.mrb[11].mxu0  ;;  %v2804_v29 = vpop.f32.mrb[11].mxu1 }
 0x123   : > { %v3747_v31 = vpop.f32.mrb[12].mxu0  ;;  %v3749_v32 = vpop.f32.mrb[12].mxu1 }
 0x124   : > { %v2783_v33 = vpop.f32.mrb[13].mxu0  ;;  %v2807_v34 = vpop.f32.mrb[13].mxu1 }
 0x125   : > { %v3754_v36 = vpop.f32.mrb[14].mxu0  ;;  %v3756_v37 = vpop.f32.mrb[14].mxu1 }
 0x126   : > { %v2784_v38 = vpop.f32.mrb[15].mxu0  ;;  %v2808_v39 = vpop.f32.mrb[15].mxu1 }
 0x12b   : > { %v3763_v41 = vpop.f32.mrb[16].mxu0  ;;  %v3765_v42 = vpop.f32.mrb[16].mxu1 }
 0x12c   : > { %v2787_v43 = vpop.f32.mrb[17].mxu0  ;;  %v2811_v44 = vpop.f32.mrb[17].mxu1 }
 0x12d   : > { %v3770_v46 = vpop.f32.mrb[18].mxu0  ;;  %v3772_v47 = vpop.f32.mrb[18].mxu1 }
 0x12e   : > { %v2788_v48 = vpop.f32.mrb[19].mxu0  ;;  %v2812_v49 = vpop.f32.mrb[19].mxu1 }
 0x133   : > { %v3779_v51 = vpop.f32.mrb[20].mxu0  ;;  %v1009_v52 = vpop.f32.mrb[20].mxu1 }
 0x134   : > { %v1010_v53 = vadd.f32 %v1009_v52, %v3708_v3  ;;  %v2791_v54 = vpop.f32.mrb[21].mxu0  ;;  %v2831_v55 = vpop.f32.mrb[21].mxu1 }
 0x135   : > { %v3782_v56 = vpop.f32.mrb[22].mxu0  ;;  %v1012_v57 = vpop.f32.mrb[22].mxu1 }
 0x136   : > { %v1013_v58 = vadd.f32 %v1012_v57, %v3712_v7  ;;  %v2792_v59 = vpop.f32.mrb[23].mxu0  ;;  %v2832_v60 = vpop.f32.mrb[23].mxu1 }
 0x13b   : > { %v1017_v61 = vpop.f32.mrb[24].mxu1  ;;  %v1260_v62 = vpop.f32.mrb[24].mxu0 }
 0x13c   : > { %v1018_v0 = vadd.f32 %v1017_v61, %v3716_v11  ;;  %v1347_v2 = vadd.f32 %v1260_v62, %v1010_v53  ;;  %v2835_v3 = vpop.f32.mrb[25].mxu1  ;;  %v2891_v5 = vpop.f32.mrb[25].mxu0 }
 0x13d   : > { %v1020_v6 = vpop.f32.mrb[26].mxu1  ;;  %v1263_v9 = vpop.f32.mrb[26].mxu0 }
 0x13e   : > { %v1376_v10 = vadd.f32 %v3788_v63, %v1347_v2  ;;  %v1021_v7 = vadd.f32 %v1020_v6, %v3720_v15  ;;  %v1348_v13 = vadd.f32 %v1263_v9, %v1013_v58  ;;  %v2892_v14 = vpop.f32.mrb[27].mxu0  ;;  %v2836_v17 = vpop.f32.mrb[27].mxu1 }
 0x140   : > { %v1377_v18 = vadd.f32 %v3788_v63, %v1348_v13  ;;  %v1398_v19 = vmax.f32 %v1376_v10, 0.0 }
 0x142   : > { %v1399_v20 = vmax.f32 %v1377_v18, 0.0 }
 0x143   : > { %v1025_v23 = vpop.f32.mrb[28].mxu1  ;;  %v1268_v24 = vpop.f32.mrb[28].mxu0 }
 0x144   : > { %v1420_v25 = vpack.c.bf16 %v1399_v20, %v1398_v19  ;;  %v1026_v11 = vadd.f32 %v1025_v23, %v3731_v21  ;;  %v1349_v28 = vadd.f32 %v1268_v24, %v1018_v0  ;;  %v2839_v29 = vpop.f32.mrb[29].mxu1  ;;  %v2895_v30 = vpop.f32.mrb[29].mxu0 }
 0x145   : > { %v1028_v33 = vpop.f32.mrb[30].mxu1  ;;  %v1271_v34 = vpop.f32.mrb[30].mxu0 }
 0x146   : > { %v1378_v35 = vadd.f32 %v3788_v63, %v1349_v28  ;;  %v1029_v15 = vadd.f32 %v1028_v33, %v3738_v26  ;;  %v1350_v38 = vadd.f32 %v1271_v34, %v1021_v7  ;;  %v2896_v39 = vpop.f32.mrb[31].mxu0  ;;  %2950 = vmatmul.mubr.bf16.vlgmr.msra.gmra.mrb[64].mxu1 %v1420_v25  ;;  %v2840_v40 = vpop.f32.mrb[31].mxu1 }
 0x147   : > { %2953 = vmatprep.mubr.msk.bf16.mxu1 %vm3317_vm0, %v3316_v1 }
 0x148   : > { %v1379_v43 = vadd.f32 %v3788_v63, %v1350_v38  ;;  %v1400_v44 = vmax.f32 %v1378_v35, 0.0 }
 0x14a   : > { %v1401_v21 = vmax.f32 %v1379_v43, 0.0 }
 0x14b   : > { %v1033_v45 = vpop.f32.mrb[32].mxu1  ;;  %v1276_v48 = vpop.f32.mrb[32].mxu0 }
 0x14c   : > { %v1034_v49 = vadd.f32 %v1033_v45, %v3747_v31  ;;  %v1351_v50 = vadd.f32 %v1276_v48, %v1026_v11  ;;  %v2843_v52 = vpop.f32.mrb[33].mxu1  ;;  %v2899_v53 = vpop.f32.mrb[33].mxu0  ;;  %v1421_v54 = vpack.c.bf16 %v1401_v21, %v1400_v44 }
 0x14d   : > { %v1036_v26 = vpop.f32.mrb[34].mxu1  ;;  %v1279_v55 = vpop.f32.mrb[34].mxu0 }
 0x14e   : > { %v1380_v57 = vadd.f32 %v3788_v63, %v1351_v50  ;;  %v1037_v58 = vadd.f32 %v1036_v26, %v3754_v36  ;;  %v1352_v59 = vadd.f32 %v1279_v55, %v1029_v15  ;;  %v2900_v60 = vpop.f32.mrb[35].mxu0  ;;  %2954 = vmatmul.mubr.bf16.gmra.mrb[68].mxu1 %v1421_v54  ;;  %v2844_v61 = vpop.f32.mrb[35].mxu1 }
 0x14f   : > { %2957 = vmatprep.mubr.msk.bf16.mxu1 %vm3317_vm0, %v3316_v1 }
 0x150   : > { %v1381_v62 = vadd.f32 %v3788_v63, %v1352_v59  ;;  %v1402_v31 = vmax.f32 %v1380_v57, 0.0 }
 0x152   : > { %v1403_v0 = vmax.f32 %v1381_v62, 0.0 }
 0x153   : > { %v1041_v2 = vpop.f32.mrb[36].mxu1  ;;  %v1284_v3 = vpop.f32.mrb[36].mxu0 }
 0x154   : > { %v1042_v5 = vadd.f32 %v1041_v2, %v3763_v41  ;;  %v1353_v6 = vadd.f32 %v1284_v3, %v1034_v49  ;;  %v2847_v9 = vpop.f32.mrb[37].mxu1  ;;  %v2903_v10 = vpop.f32.mrb[37].mxu0  ;;  %v1422_v7 = vpack.c.bf16 %v1403_v0, %v1402_v31 }
 0x155   : > { %v1044_v36 = vpop.f32.mrb[38].mxu1  ;;  %v1287_v13 = vpop.f32.mrb[38].mxu0 }
 0x156   : > { %v1382_v14 = vadd.f32 %v3788_v63, %v1353_v6  ;;  %v1045_v17 = vadd.f32 %v1044_v36, %v3770_v46  ;;  %v1354_v18 = vadd.f32 %v1287_v13, %v1037_v58  ;;  %v2904_v19 = vpop.f32.mrb[39].mxu0  ;;  %2958 = vmatmul.mubr.bf16.gmra.mrb[72].mxu1 %v1422_v7  ;;  %v2848_v20 = vpop.f32.mrb[39].mxu1 }
 0x157   : > { %2961 = vmatprep.mubr.msk.bf16.mxu1 %vm3317_vm0, %v3316_v1 }
 0x158   : > { %v1383_v23 = vadd.f32 %v3788_v63, %v1354_v18  ;;  %v1404_v41 = vmax.f32 %v1382_v14, 0.0 }
 0x15a   : > { %v1405_v24 = vmax.f32 %v1383_v23, 0.0 }
 0x15b   : > { %v1049_v25 = vpop.f32.mrb[40].mxu1  ;;  %v1292_v11 = vpop.f32.mrb[40].mxu0 }
 0x15c   : > { %v1050_v28 = vadd.f32 %v1049_v25, %v3779_v51  ;;  %v1355_v29 = vadd.f32 %v1292_v11, %v1042_v5  ;;  %v2851_v30 = vpop.f32.mrb[41].mxu1  ;;  %v2907_v33 = vpop.f32.mrb[41].mxu0  ;;  %v1423_v34 = vpack.c.bf16 %v1405_v24, %v1404_v41 }
 0x15d   : > { %v1052_v46 = vpop.f32.mrb[42].mxu1  ;;  %v1295_v35 = vpop.f32.mrb[42].mxu0 }
 0x15e   : > { %v1384_v15 = vadd.f32 %v3788_v63, %v1355_v29  ;;  %v1053_v38 = vadd.f32 %v1052_v46, %v3782_v56  ;;  %v1356_v39 = vadd.f32 %v1295_v35, %v1045_v17  ;;  %v2908_v40 = vpop.f32.mrb[43].mxu0  ;;  %2962 = vmatmul.mubr.bf16.gmra.mrb[76].mxu1 %v1423_v34  ;;  %v2852_v43 = vpop.f32.mrb[43].mxu1 }
 0x15f   : > { %2965 = vmatprep.mubr.msk.bf16.mxu1 %vm3317_vm0, %v3316_v1 }
 0x160   : > { %v1385_v44 = vadd.f32 %v3788_v63, %v1356_v39  ;;  %v1406_v51 = vmax.f32 %v1384_v15, 0.0 }
 0x162   : > { %v1407_v21 = vmax.f32 %v1385_v44, 0.0 }
 0x163   : > { %v1057_v45 = vpop.f32.mrb[44].mxu1  ;;  %v1300_v48 = vpop.f32.mrb[44].mxu0 }
 0x164   : > { %v1058_v49 = vadd.f32 %v1057_v45, %v3710_v4  ;;  %v1357_v50 = vadd.f32 %v1300_v48, %v1050_v28  ;;  %v2855_v52 = vpop.f32.mrb[45].mxu1  ;;  %v2911_v53 = vpop.f32.mrb[45].mxu0  ;;  %v1424_v54 = vpack.c.bf16 %v1407_v21, %v1406_v51 }
 0x165   : > { %v1060_v56 = vpop.f32.mrb[46].mxu1  ;;  %v1303_v26 = vpop.f32.mrb[46].mxu0 }
 0x166   : > { %v1386_v55 = vadd.f32 %v3788_v63, %v1357_v50  ;;  %v1061_v57 = vadd.f32 %v1060_v56, %v3714_v8  ;;  %v1358_v58 = vadd.f32 %v1303_v26, %v1053_v38  ;;  %v2912_v59 = vpop.f32.mrb[47].mxu0  ;;  %2966 = vmatmul.mubr.bf16.gmra.mrb[80].mxu1 %v1424_v54  ;;  %v2856_v60 = vpop.f32.mrb[47].mxu1 }
 0x167   : > { %2969 = vmatprep.mubr.msk.bf16.mxu1 %vm3317_vm0, %v3316_v1 }
 0x168   : > { %v1387_v61 = vadd.f32 %v3788_v63, %v1358_v58  ;;  %v1408_v4 = vmax.f32 %v1386_v55, 0.0 }
 0x16a   : > { %v1409_v62 = vmax.f32 %v1387_v61, 0.0 }
 0x16b   : > { %v1065_v31 = vpop.f32.mrb[48].mxu1  ;;  %v1308_v0 = vpop.f32.mrb[48].mxu0 }
 0x16c   : > { %v1066_v2 = vadd.f32 %v1065_v31, %v3718_v12  ;;  %v1359_v3 = vadd.f32 %v1308_v0, %v1058_v49  ;;  %v2859_v5 = vpop.f32.mrb[49].mxu1  ;;  %v2915_v6 = vpop.f32.mrb[49].mxu0  ;;  %v1425_v9 = vpack.c.bf16 %v1409_v62, %v1408_v4 }
 0x16d   : > { %v1068_v8 = vpop.f32.mrb[50].mxu1  ;;  %v1311_v10 = vpop.f32.mrb[50].mxu0 }
 0x16e   : > { %v1388_v7 = vadd.f32 %v3788_v63, %v1359_v3  ;;  %v1069_v36 = vadd.f32 %v1068_v8, %v3722_v16  ;;  %v1360_v13 = vadd.f32 %v1311_v10, %v1061_v57  ;;  %v2916_v14 = vpop.f32.mrb[51].mxu0  ;;  %2970 = vmatmul.mubr.bf16.gmra.mrb[84].mxu1 %v1425_v9  ;;  %v2860_v17 = vpop.f32.mrb[51].mxu1 }
 0x16f   : > { %2973 = vmatprep.mubr.msk.bf16.mxu1 %vm3317_vm0, %v3316_v1 }
 0x170   : > { %v1389_v18 = vadd.f32 %v3788_v63, %v1360_v13  ;;  %v1410_v12 = vmax.f32 %v1388_v7, 0.0 }
 0x172   : > { %v1411_v19 = vmax.f32 %v1389_v18, 0.0 }
 0x173   : > { %v1073_v20 = vpop.f32.mrb[52].mxu1  ;;  %v1316_v23 = vpop.f32.mrb[52].mxu0 }
 0x174   : > { %v1074_v41 = vadd.f32 %v1073_v20, %v3733_v22  ;;  %v1361_v24 = vadd.f32 %v1316_v23, %v1066_v2  ;;  %v2863_v25 = vpop.f32.mrb[53].mxu1  ;;  %v2919_v11 = vpop.f32.mrb[53].mxu0  ;;  %v1426_v28 = vpack.c.bf16 %v1411_v19, %v1410_v12  ;;  %v3855_v23 = vld [vmem:[%s4293_s8] ss:$0 sm:$0xff] }
 0x175   : > { %v1076_v16 = vpop.f32.mrb[54].mxu1  ;;  %v1319_v29 = vpop.f32.mrb[54].mxu0 }
 0x176   : > { %v1390_v30 = vadd.f32 %v3788_v63, %v1361_v24  ;;  %v1077_v33 = vadd.f32 %v1076_v16, %v3740_v27  ;;  %v1362_v34 = vadd.f32 %v1319_v29, %v1069_v36  ;;  %v2920_v46 = vpop.f32.mrb[55].mxu0  ;;  %2974 = vmatmul.mubr.bf16.gmra.mrb[88].mxu1 %v1426_v28  ;;  %v2864_v35 = vpop.f32.mrb[55].mxu1 }
 0x177   : > { %2977 = vmatprep.mubr.msk.bf16.mxu1 %vm3317_vm0, %v3316_v1 }
 0x178   : > { %v1391_v15 = vadd.f32 %v3788_v63, %v1362_v34  ;;  %v1412_v22 = vmax.f32 %v1390_v30, 0.0 }
 0x17a   : > { %v1413_v38 = vmax.f32 %v1391_v15, 0.0 }
 0x17b   : > { %v1081_v39 = vpop.f32.mrb[56].mxu1  ;;  %v1324_v40 = vpop.f32.mrb[56].mxu0 }
 0x17c   : > { %v1082_v43 = vadd.f32 %v1081_v39, %v3749_v32  ;;  %v1363_v44 = vadd.f32 %v1324_v40, %v1074_v41  ;;  %v2867_v51 = vpop.f32.mrb[57].mxu1  ;;  %v2923_v21 = vpop.f32.mrb[57].mxu0  ;;  %v1427_v45 = vpack.c.bf16 %v1413_v38, %v1412_v22 }
 0x17d   : > { %v1084_v27 = vpop.f32.mrb[58].mxu1  ;;  %v1327_v48 = vpop.f32.mrb[58].mxu0 }
 0x17e   : > { %v1392_v49 = vadd.f32 %v3788_v63, %v1363_v44  ;;  %v1085_v50 = vadd.f32 %v1084_v27, %v3756_v37  ;;  %v1364_v52 = vadd.f32 %v1327_v48, %v1077_v33  ;;  %v2924_v53 = vpop.f32.mrb[59].mxu0  ;;  %2978 = vmatmul.mubr.bf16.gmra.mrb[92].mxu1 %v1427_v45  ;;  %v2868_v54 = vpop.f32.mrb[59].mxu1 }
 0x17f   : > { %2981 = vmatprep.mubr.msk.bf16.mxu1 %vm3317_vm0, %v3316_v1 }
 0x180   : > { %v1393_v56 = vadd.f32 %v3788_v63, %v1364_v52  ;;  %v1414_v32 = vmax.f32 %v1392_v49, 0.0 }
 0x182   : > { %v1415_v26 = vmax.f32 %v1393_v56, 0.0 }
 0x183   : > { %v1089_v55 = vpop.f32.mrb[60].mxu1  ;;  %v1332_v57 = vpop.f32.mrb[60].mxu0 }
 0x184   : > { %v1090_v58 = vadd.f32 %v1089_v55, %v3765_v42  ;;  %v1365_v59 = vadd.f32 %v1332_v57, %v1082_v43  ;;  %v2871_v60 = vpop.f32.mrb[61].mxu1  ;;  %v2927_v61 = vpop.f32.mrb[61].mxu0  ;;  %v1428_v4 = vpack.c.bf16 %v1415_v26, %v1414_v32 }
 0x185   : > { %v1092_v37 = vpop.f32.mrb[62].mxu1  ;;  %v1335_v62 = vpop.f32.mrb[62].mxu0 }
 0x186   : > { %v1394_v31 = vadd.f32 %v3788_v63, %v1365_v59  ;;  %v1093_v0 = vadd.f32 %v1092_v37, %v3772_v47  ;;  %v1366_v2 = vadd.f32 %v1335_v62, %v1085_v50  ;;  %v2928_v3 = vpop.f32.mrb[63].mxu0  ;;  %2982 = vmatmul.mubr.bf16.gmra.mrb[96].mxu1 %v1428_v4  ;;  %v2872_v5 = vpop.f32.mrb[63].mxu1 }
 0x187   : > { %2985 = vmatprep.mubr.msk.bf16.mxu1 %vm3317_vm0, %v3316_v1 }
 0x188   : > { %v1395_v6 = vadd.f32 %v3788_v63, %v1366_v2  ;;  %v1416_v42 = vmax.f32 %v1394_v31, 0.0 }
 0x18a   : > { %v1417_v9 = vmax.f32 %v1395_v6, 0.0 }
 0x18b   : > { %v1340_v8 = vpop.f32.mrb[64].mxu0 }
 0x18c   : > { %v1367_v10 = vadd.f32 %v1340_v8, %v1090_v58  ;;  %v2931_v7 = vpop.f32.mrb[65].mxu0  ;;  %v1429_v36 = vpack.c.bf16 %v1417_v9, %v1416_v42 }
 0x18d   : > { %v1343_v13 = vpop.f32.mrb[66].mxu0 }
 0x18e   : > { %v1396_v14 = vadd.f32 %v3788_v63, %v1367_v10  ;;  %v1368_v17 = vadd.f32 %v1343_v13, %v1093_v0  ;;  %v2932_v47 = vpop.f32.mrb[67].mxu0  ;;  %2986 = vmatmul.mubr.bf16.gmra.mrb[100].mxu1 %v1429_v36 }
 0x18f   : > { %2989 = vmatprep.mubr.msk.bf16.mxu1 %vm3317_vm0, %v3316_v1 }
 0x190   : > { %v1397_v18 = vadd.f32 %v3788_v63, %v1368_v17  ;;  %v1418_v12 = vmax.f32 %v1396_v14, 0.0 }
 0x192   : > { %v1419_v19 = vmax.f32 %v1397_v18, 0.0 }
 0x194   : > { %v1430_v20 = vpack.c.bf16 %v1419_v19, %v1418_v12 }
 0x196   : > { %2990 = vmatmul.mubr.bf16.gmra.mrb[104].mxu1 %v1430_v20 }
 0x219   : > { %v1536_v41 = vpop.f32.mrb[64].mxu1 }
 0x21a   : > { %v1537_v24 = vadd.f32 %v3855_v23, %v1536_v41  ;;  %v2951_v25 = vpop.f32.mrb[65].mxu1 }
 0x21b   : > { %v1539_v11 = vpop.f32.mrb[66].mxu1 }
 0x21c   : > { %v1540_v28 = vadd.f32 %v3855_v23, %v1539_v11  ;;  %v2952_v16 = vpop.f32.mrb[67].mxu1  ;;  %v1623_v29 = vmax.f32 %v1537_v24, 0.0 }
 0x21e   : > { %v1624_v30 = vmax.f32 %v1540_v28, 0.0 }
 0x220   : > { %v1645_v63 = vpack.c.bf16 %v1624_v30, %v1623_v29 }
 0x221   : > { %v1544_v33 = vpop.f32.mrb[68].mxu1 }
 0x222   : > { %v1545_v34 = vadd.f32 %v3855_v23, %v1544_v33  ;;  %v2955_v46 = vpop.f32.mrb[69].mxu1  ;;  %3010 = vmatmul.mubr.bf16.vlgmr.msra.gmra.mrb[68].mxu0 %v1645_v63 }
 0x223   : > { %v1547_v35 = vpop.f32.mrb[70].mxu1  ;;  %3013 = vmatprep.mubr.msk.bf16.mxu0 %vm3317_vm0, %v3316_v1 }
 0x224   : > { %v1548_v15 = vadd.f32 %v3855_v23, %v1547_v35  ;;  %v2956_v22 = vpop.f32.mrb[71].mxu1  ;;  %v1625_v38 = vmax.f32 %v1545_v34, 0.0 }
 0x226   : > { %v1626_v39 = vmax.f32 %v1548_v15, 0.0 }
 0x228   : > { %v1646_v40 = vpack.c.bf16 %v1626_v39, %v1625_v38 }
 0x229   : > { %v1552_v43 = vpop.f32.mrb[72].mxu1 }
 0x22a   : > { %v1553_v44 = vadd.f32 %v3855_v23, %v1552_v43  ;;  %v2959_v51 = vpop.f32.mrb[73].mxu1  ;;  %3014 = vmatmul.mubr.bf16.gmra.mrb[72].mxu0 %v1646_v40 }
 0x22b   : > { %v1555_v21 = vpop.f32.mrb[74].mxu1  ;;  %3017 = vmatprep.mubr.msk.bf16.mxu0 %vm3317_vm0, %v3316_v1 }
 0x22c   : > { %v1556_v45 = vadd.f32 %v3855_v23, %v1555_v21  ;;  %v2960_v27 = vpop.f32.mrb[75].mxu1  ;;  %v1627_v48 = vmax.f32 %v1553_v44, 0.0 }
 0x22e   : > { %v1628_v49 = vmax.f32 %v1556_v45, 0.0 }
 0x230   : > { %v1647_v50 = vpack.c.bf16 %v1628_v49, %v1627_v48 }
 0x231   : > { %v1560_v52 = vpop.f32.mrb[76].mxu1 }
 0x232   : > { %v1561_v53 = vadd.f32 %v3855_v23, %v1560_v52  ;;  %v2963_v54 = vpop.f32.mrb[77].mxu1  ;;  %3018 = vmatmul.mubr.bf16.gmra.mrb[76].mxu0 %v1647_v50 }
 0x233   : > { %v1563_v56 = vpop.f32.mrb[78].mxu1  ;;  %3021 = vmatprep.mubr.msk.bf16.mxu0 %vm3317_vm0, %v3316_v1 }
 0x234   : > { %v1564_v32 = vadd.f32 %v3855_v23, %v1563_v56  ;;  %v2964_v26 = vpop.f32.mrb[79].mxu1  ;;  %v1629_v55 = vmax.f32 %v1561_v53, 0.0 }
 0x236   : > { %v1630_v57 = vmax.f32 %v1564_v32, 0.0 }
 0x238   : > { %v1648_v58 = vpack.c.bf16 %v1630_v57, %v1629_v55 }
 0x239   : > { %v1568_v59 = vpop.f32.mrb[80].mxu1 }
 0x23a   : > { %v1569_v60 = vadd.f32 %v3855_v23, %v1568_v59  ;;  %v2967_v61 = vpop.f32.mrb[81].mxu1  ;;  %3022 = vmatmul.mubr.bf16.gmra.mrb[80].mxu0 %v1648_v58 }
 0x23b   : > { %v1571_v4 = vpop.f32.mrb[82].mxu1  ;;  %3025 = vmatprep.mubr.msk.bf16.mxu0 %vm3317_vm0, %v3316_v1 }
 0x23c   : > { %v1572_v37 = vadd.f32 %v3855_v23, %v1571_v4  ;;  %v2968_v62 = vpop.f32.mrb[83].mxu1  ;;  %v1631_v31 = vmax.f32 %v1569_v60, 0.0  ;;  %v3902_v60 = vld [vmem:[%s4295_s10] ss:$0 sm:$0xff] }
 0x23e   : > { %v1632_v0 = vmax.f32 %v1572_v37, 0.0 }
 0x240   : > { %v1649_v2 = vpack.c.bf16 %v1632_v0, %v1631_v31 }
 0x241   : > { %v1576_v3 = vpop.f32.mrb[84].mxu1 }
 0x242   : > { %v1577_v5 = vadd.f32 %v3855_v23, %v1576_v3  ;;  %v2971_v6 = vpop.f32.mrb[85].mxu1  ;;  %3026 = vmatmul.mubr.bf16.gmra.mrb[84].mxu0 %v1649_v2 }
 0x243   : > { %v1579_v42 = vpop.f32.mrb[86].mxu1  ;;  %3029 = vmatprep.mubr.msk.bf16.mxu0 %vm3317_vm0, %v3316_v1 }
 0x244   : > { %v1580_v9 = vadd.f32 %v3855_v23, %v1579_v42  ;;  %v2972_v8 = vpop.f32.mrb[87].mxu1  ;;  %v1633_v10 = vmax.f32 %v1577_v5, 0.0 }
 0x246   : > { %v1634_v7 = vmax.f32 %v1580_v9, 0.0 }
 0x248   : > { %v1650_v36 = vpack.c.bf16 %v1634_v7, %v1633_v10 }
 0x249   : > { %v1584_v13 = vpop.f32.mrb[88].mxu1 }
 0x24a   : > { %v1585_v14 = vadd.f32 %v3855_v23, %v1584_v13  ;;  %v2975_v17 = vpop.f32.mrb[89].mxu1  ;;  %3030 = vmatmul.mubr.bf16.gmra.mrb[88].mxu0 %v1650_v36 }
 0x24b   : > { %v1587_v47 = vpop.f32.mrb[90].mxu1  ;;  %3033 = vmatprep.mubr.msk.bf16.mxu0 %vm3317_vm0, %v3316_v1 }
 0x24c   : > { %v1588_v18 = vadd.f32 %v3855_v23, %v1587_v47  ;;  %v2976_v12 = vpop.f32.mrb[91].mxu1  ;;  %v1635_v19 = vmax.f32 %v1585_v14, 0.0 }
 0x24e   : > { %v1636_v20 = vmax.f32 %v1588_v18, 0.0 }
 0x250   : > { %v1651_v41 = vpack.c.bf16 %v1636_v20, %v1635_v19 }
 0x251   : > { %v1592_v24 = vpop.f32.mrb[92].mxu1 }
 0x252   : > { %v1593_v25 = vadd.f32 %v3855_v23, %v1592_v24  ;;  %v2979_v11 = vpop.f32.mrb[93].mxu1  ;;  %3034 = vmatmul.mubr.bf16.gmra.mrb[92].mxu0 %v1651_v41 }
 0x253   : > { %v1595_v28 = vpop.f32.mrb[94].mxu1  ;;  %3037 = vmatprep.mubr.msk.bf16.mxu0 %vm3317_vm0, %v3316_v1 }
 0x254   : > { %v1596_v16 = vadd.f32 %v3855_v23, %v1595_v28  ;;  %v2980_v29 = vpop.f32.mrb[95].mxu1  ;;  %v1637_v30 = vmax.f32 %v1593_v25, 0.0 }
 0x256   : > { %v1638_v63 = vmax.f32 %v1596_v16, 0.0 }
 0x258   : > { %v1652_v33 = vpack.c.bf16 %v1638_v63, %v1637_v30 }
 0x259   : > { %v1600_v34 = vpop.f32.mrb[96].mxu1 }
 0x25a   : > { %v1601_v46 = vadd.f32 %v3855_v23, %v1600_v34  ;;  %v2983_v35 = vpop.f32.mrb[97].mxu1  ;;  %3038 = vmatmul.mubr.bf16.gmra.mrb[96].mxu0 %v1652_v33 }
 0x25b   : > { %v1603_v15 = vpop.f32.mrb[98].mxu1  ;;  %3041 = vmatprep.mubr.msk.bf16.mxu0 %vm3317_vm0, %v3316_v1 }
 0x25c   : > { %v1604_v22 = vadd.f32 %v3855_v23, %v1603_v15  ;;  %v2984_v38 = vpop.f32.mrb[99].mxu1  ;;  %v1639_v39 = vmax.f32 %v1601_v46, 0.0 }
 0x25e   : > { %v1640_v40 = vmax.f32 %v1604_v22, 0.0 }
 0x260   : > { %v1653_v43 = vpack.c.bf16 %v1640_v40, %v1639_v39 }
 0x261   : > { %v1608_v44 = vpop.f32.mrb[100].mxu1 }
 0x262   : > { %v1609_v51 = vadd.f32 %v3855_v23, %v1608_v44  ;;  %v2987_v21 = vpop.f32.mrb[101].mxu1  ;;  %3042 = vmatmul.mubr.bf16.gmra.mrb[100].mxu0 %v1653_v43 }
 0x263   : > { %v1611_v45 = vpop.f32.mrb[102].mxu1  ;;  %3045 = vmatprep.mubr.msk.bf16.mxu0 %vm3317_vm0, %v3316_v1 }
 0x264   : > { %v1612_v27 = vadd.f32 %v3855_v23, %v1611_v45  ;;  %v2988_v48 = vpop.f32.mrb[103].mxu1  ;;  %v1641_v49 = vmax.f32 %v1609_v51, 0.0 }
 0x266   : > { %v1642_v50 = vmax.f32 %v1612_v27, 0.0 }
 0x268   : > { %v1654_v52 = vpack.c.bf16 %v1642_v50, %v1641_v49 }
 0x269   : > { %v1616_v53 = vpop.f32.mrb[104].mxu1 }
 0x26a   : > { %v1617_v54 = vadd.f32 %v3855_v23, %v1616_v53  ;;  %v2991_v56 = vpop.f32.mrb[105].mxu1  ;;  %3046 = vmatmul.mubr.bf16.gmra.mrb[104].mxu0 %v1654_v52 }
 0x26b   : > { %v1619_v32 = vpop.f32.mrb[106].mxu1  ;;  %3049 = vmatprep.mubr.msk.bf16.mxu0 %vm3317_vm0, %v3316_v1 }
 0x26c   : > { %v1620_v26 = vadd.f32 %v3855_v23, %v1619_v32  ;;  %v2992_v55 = vpop.f32.mrb[107].mxu1  ;;  %v1643_v57 = vmax.f32 %v1617_v54, 0.0 }
 0x26e   : > { %v1644_v58 = vmax.f32 %v1620_v26, 0.0 }
 0x270   : > { %v1655_v59 = vpack.c.bf16 %v1644_v58, %v1643_v57 }
 0x272   : > { %3050 = vmatmul.mubr.bf16.gmra.mrb[108].mxu0 %v1655_v59 }
 0x2f5   : > { %v1761_v61 = vpop.f32.mrb[68].mxu0 }
 0x2f6   : > { %v3905_v4 = vadd.f32 %v3902_v60, %v1761_v61  ;;  %v3011_v37 = vpop.f32.mrb[69].mxu0 }
 0x2f7   : > { %v1764_v62 = vpop.f32.mrb[70].mxu0 }
 0x2f8   : > { %1848 = vadd.xlane.f32.xlu0 %v3905_v4  ;;  %v3012_v1 = vpop.f32.mrb[71].mxu0  ;;  %v3909_v23 = vadd.f32 %v3902_v60, %v1764_v62 }
 0x2fc   : > { %1850 = vadd.xlane.f32.xlu0 %v3909_v23 }
 0x2fd   : > { %v1769_v31 = vpop.f32.mrb[72].mxu0 }
 0x2fe   : > { %v3913_v0 = vadd.f32 %v3902_v60, %v1769_v31  ;;  %v3015_v2 = vpop.f32.mrb[73].mxu0 }
 0x2ff   : > { %v1772_v3 = vpop.f32.mrb[74].mxu0 }
 0x300   : > { %1852 = vadd.xlane.f32.xlu1 %v3913_v0  ;;  %v3016_v5 = vpop.f32.mrb[75].mxu0  ;;  %v3917_v6 = vadd.f32 %v3902_v60, %v1772_v3 }
 0x304   : > { %1854 = vadd.xlane.f32.xlu1 %v3917_v6 }
 0x305   : > { %v1777_v42 = vpop.f32.mrb[76].mxu0 }
 0x306   : > { %v3921_v9 = vadd.f32 %v3902_v60, %v1777_v42  ;;  %v3019_v8 = vpop.f32.mrb[77].mxu0 }
 0x307   : > { %v1780_v10 = vpop.f32.mrb[78].mxu0 }
 0x308   : > { %v3924_v7 = vadd.f32 %v3902_v60, %v1780_v10  ;;  %1856 = vadd.xlane.f32.xlu0 %v3921_v9  ;;  %v3020_v36 = vpop.f32.mrb[79].mxu0 }
 0x30a   : > { %1858 = vadd.xlane.f32.xlu1 %v3924_v7 }
 0x30d   : > { %v1785_v13 = vpop.f32.mrb[80].mxu0 }
 0x30e   : > { %v3929_v14 = vadd.f32 %v3902_v60, %v1785_v13  ;;  %v3023_v17 = vpop.f32.mrb[81].mxu0 }
 0x30f   : > { %v1788_v47 = vpop.f32.mrb[82].mxu0 }
 0x310   : > { %v3932_v18 = vadd.f32 %v3902_v60, %v1788_v47  ;;  %1860 = vadd.xlane.f32.xlu0 %v3929_v14  ;;  %v3024_v12 = vpop.f32.mrb[83].mxu0 }
 0x312   : > { %1862 = vadd.xlane.f32.xlu1 %v3932_v18 }
 0x315   : > { %v1793_v19 = vpop.f32.mrb[84].mxu0 }
 0x316   : > { %v3937_v20 = vadd.f32 %v3902_v60, %v1793_v19  ;;  %v3027_v41 = vpop.f32.mrb[85].mxu0 }
 0x317   : > { %v1796_v24 = vpop.f32.mrb[86].mxu0 }
 0x318   : > { %v3940_v25 = vadd.f32 %v3902_v60, %v1796_v24  ;;  %1864 = vadd.xlane.f32.xlu0 %v3937_v20  ;;  %v3028_v11 = vpop.f32.mrb[87].mxu0 }
 0x31a   : > { %1866 = vadd.xlane.f32.xlu1 %v3940_v25 }
 0x31d   : > { %v1801_v28 = vpop.f32.mrb[88].mxu0 }
 0x31e   : > { %v3945_v16 = vadd.f32 %v3902_v60, %v1801_v28  ;;  %v3031_v29 = vpop.f32.mrb[89].mxu0 }
 0x31f   : > { %v1804_v30 = vpop.f32.mrb[90].mxu0 }
 0x320   : > { %v3948_v63 = vadd.f32 %v3902_v60, %v1804_v30  ;;  %1868 = vadd.xlane.f32.xlu0 %v3945_v16  ;;  %v3032_v33 = vpop.f32.mrb[91].mxu0 }
 0x322   : > { %1870 = vadd.xlane.f32.xlu1 %v3948_v63 }
 0x325   : > { %v1809_v34 = vpop.f32.mrb[92].mxu0 }
 0x326   : > { %v3953_v46 = vadd.f32 %v3902_v60, %v1809_v34  ;;  %v3035_v35 = vpop.f32.mrb[93].mxu0 }
 0x327   : > { %v1812_v15 = vpop.f32.mrb[94].mxu0 }
 0x328   : > { %v3956_v22 = vadd.f32 %v3902_v60, %v1812_v15  ;;  %1872 = vadd.xlane.f32.xlu0 %v3953_v46  ;;  %v3036_v38 = vpop.f32.mrb[95].mxu0 }
 0x32a   : > { %1874 = vadd.xlane.f32.xlu1 %v3956_v22 }
 0x32d   : > { %v1817_v39 = vpop.f32.mrb[96].mxu0 }
 0x32e   : > { %v3961_v40 = vadd.f32 %v3902_v60, %v1817_v39  ;;  %v3039_v43 = vpop.f32.mrb[97].mxu0 }
 0x32f   : > { %v1820_v44 = vpop.f32.mrb[98].mxu0 }
 0x330   : > { %v3964_v51 = vadd.f32 %v3902_v60, %v1820_v44  ;;  %1876 = vadd.xlane.f32.xlu0 %v3961_v40  ;;  %v3040_v21 = vpop.f32.mrb[99].mxu0 }
 0x332   : > { %1878 = vadd.xlane.f32.xlu1 %v3964_v51 }
 0x335   : > { %v1825_v45 = vpop.f32.mrb[100].mxu0 }
 0x336   : > { %v3969_v27 = vadd.f32 %v3902_v60, %v1825_v45  ;;  %v3043_v48 = vpop.f32.mrb[101].mxu0 }
 0x337   : > { %v1828_v49 = vpop.f32.mrb[102].mxu0 }
 0x338   : > { %v3972_v50 = vadd.f32 %v3902_v60, %v1828_v49  ;;  %1880 = vadd.xlane.f32.xlu0 %v3969_v27  ;;  %v3044_v52 = vpop.f32.mrb[103].mxu0 }
 0x33a   : > { %1882 = vadd.xlane.f32.xlu1 %v3972_v50 }
 0x33d   : > { %v1833_v53 = vpop.f32.mrb[104].mxu0 }
 0x33e   : > { %v3977_v54 = vadd.f32 %v3902_v60, %v1833_v53  ;;  %v3047_v56 = vpop.f32.mrb[105].mxu0 }
 0x33f   : > { %v1836_v32 = vpop.f32.mrb[106].mxu0 }
 0x340   : > { %v3980_v26 = vadd.f32 %v3902_v60, %v1836_v32  ;;  %1884 = vadd.xlane.f32.xlu0 %v3977_v54  ;;  %v3048_v55 = vpop.f32.mrb[107].mxu0 }
 0x342   : > { %1886 = vadd.xlane.f32.xlu1 %v3980_v26 }
 0x345   : > { %v1841_v57 = vpop.f32.mrb[108].mxu0 }
 0x346   : > { %v3985_v58 = vadd.f32 %v3902_v60, %v1841_v57  ;;  %v3051_v59 = vpop.f32.mrb[109].mxu0 }
 0x347   : > { %v1844_v61 = vpop.f32.mrb[110].mxu0 }
 0x348   : > { %v3988_v37 = vadd.f32 %v3902_v60, %v1844_v61  ;;  %1888 = vadd.xlane.f32.xlu0 %v3985_v58  ;;  %v3052_v62 = vpop.f32.mrb[111].mxu0 }
 0x34a   : > { %1890 = vadd.xlane.f32.xlu1 %v3988_v37 }
 0x385   : > { %v1849_v1 = vpop.xlane.xlu0 %1848 }
 0x386   : > { %v1893_v31 = vmul.f32 0.0078125, %v1849_v1 }
 0x388   : > { %v3993_v2 = vsub.f32 %v3905_v4, %v1893_v31 }
 0x389   : > { %v1851_v3 = vpop.xlane.xlu0 %1850 }
 0x38a   : > { %v1894_v5 = vmul.f32 0.0078125, %v1851_v3  ;;  %v1937_v42 = vmul.f32 %v3993_v2, %v3993_v2 }
 0x38c   : > { %v3998_v8 = vsub.f32 %v3909_v23, %v1894_v5  ;;  %1959 = vadd.xlane.f32.xlu0 %v1937_v42 }
 0x38d   : > { %v1853_v60 = vpop.xlane.xlu1 %1852 }
 0x38e   : > { %v1895_v10 = vmul.f32 0.0078125, %v1853_v60  ;;  %v1938_v36 = vmul.f32 %v3998_v8, %v3998_v8 }
 0x390   : > { %v4003_v13 = vsub.f32 %v3913_v0, %v1895_v10  ;;  %1961 = vadd.xlane.f32.xlu1 %v1938_v36 }
 0x391   : > { %v1855_v4 = vpop.xlane.xlu1 %1854 }
 0x392   : > { %v1896_v17 = vmul.f32 0.0078125, %v1855_v4  ;;  %v1939_v47 = vmul.f32 %v4003_v13, %v4003_v13 }
 0x394   : > { %v4008_v12 = vsub.f32 %v3917_v6, %v1896_v17  ;;  %1963 = vadd.xlane.f32.xlu0 %v1939_v47 }
 0x395   : > { %v1857_v23 = vpop.xlane.xlu0 %1856 }
 0x396   : > { %v1897_v19 = vmul.f32 0.0078125, %v1857_v23  ;;  %v1940_v41 = vmul.f32 %v4008_v12, %v4008_v12 }
 0x397   : > { %v1859_v24 = vpop.xlane.xlu1 %1858 }
 0x398   : > { %v4013_v11 = vsub.f32 %v3921_v9, %v1897_v19  ;;  %v1898_v0 = vmul.f32 0.0078125, %v1859_v24  ;;  %1965 = vadd.xlane.f32.xlu1 %v1940_v41 }
 0x39a   : > { %v4016_v28 = vsub.f32 %v3924_v7, %v1898_v0  ;;  %v1941_v29 = vmul.f32 %v4013_v11, %v4013_v11 }
 0x39c   : > { %1967 = vadd.xlane.f32.xlu0 %v1941_v29  ;;  %v1942_v6 = vmul.f32 %v4016_v28, %v4016_v28 }
 0x39d   : > { %v1861_v30 = vpop.xlane.xlu0 %1860 }
 0x39e   : > { %v1899_v33 = vmul.f32 0.0078125, %v1861_v30  ;;  %1969 = vadd.xlane.f32.xlu1 %v1942_v6 }
 0x39f   : > { %v1863_v34 = vpop.xlane.xlu1 %1862 }
 0x3a0   : > { %v4023_v35 = vsub.f32 %v3929_v14, %v1899_v33  ;;  %v1900_v9 = vmul.f32 0.0078125, %v1863_v34 }
 0x3a2   : > { %v4026_v15 = vsub.f32 %v3932_v18, %v1900_v9  ;;  %v1943_v7 = vmul.f32 %v4023_v35, %v4023_v35 }
 0x3a4   : > { %1971 = vadd.xlane.f32.xlu0 %v1943_v7  ;;  %v1944_v38 = vmul.f32 %v4026_v15, %v4026_v15 }
 0x3a5   : > { %v1865_v39 = vpop.xlane.xlu0 %1864 }
 0x3a6   : > { %v1901_v43 = vmul.f32 0.0078125, %v1865_v39  ;;  %1973 = vadd.xlane.f32.xlu1 %v1944_v38 }
 0x3a7   : > { %v1867_v44 = vpop.xlane.xlu1 %1866 }
 0x3a8   : > { %v4033_v21 = vsub.f32 %v3937_v20, %v1901_v43  ;;  %v1902_v14 = vmul.f32 0.0078125, %v1867_v44 }
 0x3aa   : > { %v4036_v45 = vsub.f32 %v3940_v25, %v1902_v14  ;;  %v1945_v18 = vmul.f32 %v4033_v21, %v4033_v21 }
 0x3ac   : > { %1975 = vadd.xlane.f32.xlu0 %v1945_v18  ;;  %v1946_v48 = vmul.f32 %v4036_v45, %v4036_v45 }
 0x3ad   : > { %v1869_v49 = vpop.xlane.xlu0 %1868 }
 0x3ae   : > { %v1903_v52 = vmul.f32 0.0078125, %v1869_v49  ;;  %1977 = vadd.xlane.f32.xlu1 %v1946_v48 }
 0x3af   : > { %v1871_v53 = vpop.xlane.xlu1 %1870 }
 0x3b0   : > { %v4043_v56 = vsub.f32 %v3945_v16, %v1903_v52  ;;  %v1904_v20 = vmul.f32 0.0078125, %v1871_v53 }
 0x3b2   : > { %v4046_v32 = vsub.f32 %v3948_v63, %v1904_v20  ;;  %v1947_v25 = vmul.f32 %v4043_v56, %v4043_v56 }
 0x3b4   : > { %1979 = vadd.xlane.f32.xlu0 %v1947_v25  ;;  %v1948_v55 = vmul.f32 %v4046_v32, %v4046_v32 }
 0x3b5   : > { %v1873_v57 = vpop.xlane.xlu0 %1872 }
 0x3b6   : > { %v1905_v59 = vmul.f32 0.0078125, %v1873_v57  ;;  %1981 = vadd.xlane.f32.xlu1 %v1948_v55  ;;  %v4105_v57 = vld [vmem:[%s4296_s11] ss:$0 sm:$0xff] }
 0x3b7   : > { %v1875_v61 = vpop.xlane.xlu1 %1874 }
 0x3b8   : > { %v4053_v62 = vsub.f32 %v3953_v46, %v1905_v59  ;;  %v1906_v16 = vmul.f32 0.0078125, %v1875_v61 }
 0x3ba   : > { %v4056_v1 = vsub.f32 %v3956_v22, %v1906_v16  ;;  %v1949_v63 = vmul.f32 %v4053_v62, %v4053_v62 }
 0x3bc   : > { %1983 = vadd.xlane.f32.xlu0 %v1949_v63  ;;  %v1950_v31 = vmul.f32 %v4056_v1, %v4056_v1  ;;  %v4112_v63 = vld [vmem:[%s4297_s12] ss:$0 sm:$0xff] }
 0x3bd   : > { %v1877_v3 = vpop.xlane.xlu0 %1876 }
 0x3be   : > { %v1907_v5 = vmul.f32 0.0078125, %v1877_v3  ;;  %1985 = vadd.xlane.f32.xlu1 %v1950_v31 }
 0x3bf   : > { %v1879_v42 = vpop.xlane.xlu1 %1878 }
 0x3c0   : > { %v4063_v60 = vsub.f32 %v3961_v40, %v1907_v5  ;;  %v1908_v46 = vmul.f32 0.0078125, %v1879_v42 }
 0x3c2   : > { %v4066_v10 = vsub.f32 %v3964_v51, %v1908_v46  ;;  %v1951_v22 = vmul.f32 %v4063_v60, %v4063_v60 }
 0x3c4   : > { %1987 = vadd.xlane.f32.xlu0 %v1951_v22  ;;  %v1952_v36 = vmul.f32 %v4066_v10, %v4066_v10 }
 0x3c5   : > { %v1881_v4 = vpop.xlane.xlu0 %1880 }
 0x3c6   : > { %v1909_v17 = vmul.f32 0.0078125, %v1881_v4  ;;  %1989 = vadd.xlane.f32.xlu1 %v1952_v36 }
 0x3c7   : > { %v1883_v47 = vpop.xlane.xlu1 %1882 }
 0x3c8   : > { %v4073_v23 = vsub.f32 %v3969_v27, %v1909_v17  ;;  %v1910_v40 = vmul.f32 0.0078125, %v1883_v47  ;;  %v3241_v17 = vld [vmem:[%s3608_s15] sm:$0xff]  }
 0x3c9   : > { %v2171_v47 = vunpack.c.l.bf16 %v3241_v17 }
 0x3ca   : > { %v4076_v19 = vsub.f32 %v3972_v50, %v1910_v40  ;;  %v1953_v51 = vmul.f32 %v4073_v23, %v4073_v23  ;;  %v2172_v40 = vunpack.c.h.bf16 %v3241_v17 }
 0x3cc   : > { %1991 = vadd.xlane.f32.xlu0 %v1953_v51  ;;  %v1954_v41 = vmul.f32 %v4076_v19, %v4076_v19 }
 0x3cd   : > { %v1885_v24 = vpop.xlane.xlu0 %1884 }
 0x3ce   : > { %v1911_v0 = vmul.f32 0.0078125, %v1885_v24  ;;  %1993 = vadd.xlane.f32.xlu1 %v1954_v41 }
 0x3cf   : > { %v1887_v29 = vpop.xlane.xlu1 %1886 }
 0x3d0   : > { %v4083_v6 = vsub.f32 %v3977_v54, %v1911_v0  ;;  %v1912_v27 = vmul.f32 0.0078125, %v1887_v29 }
 0x3d2   : > { %v4086_v30 = vsub.f32 %v3980_v26, %v1912_v27  ;;  %v1955_v50 = vmul.f32 %v4083_v6, %v4083_v6 }
 0x3d4   : > { %1995 = vadd.xlane.f32.xlu0 %v1955_v50  ;;  %v1956_v33 = vmul.f32 %v4086_v30, %v4086_v30 }
 0x3d5   : > { %v1889_v34 = vpop.xlane.xlu0 %1888 }
 0x3d6   : > { %v1913_v9 = vmul.f32 0.0078125, %v1889_v34  ;;  %1997 = vadd.xlane.f32.xlu1 %v1956_v33 }
 0x3d7   : > { %v1891_v7 = vpop.xlane.xlu1 %1890 }
 0x3d8   : > { %v4093_v38 = vsub.f32 %v3985_v58, %v1913_v9  ;;  %v1914_v54 = vmul.f32 0.0078125, %v1891_v7 }
 0x3da   : > { %v4096_v39 = vsub.f32 %v3988_v37, %v1914_v54  ;;  %v1957_v26 = vmul.f32 %v4093_v38, %v4093_v38 }
 0x3dc   : > { %1999 = vadd.xlane.f32.xlu0 %v1957_v26  ;;  %v1958_v43 = vmul.f32 %v4096_v39, %v4096_v39 }
 0x3de   : > { %2001 = vadd.xlane.f32.xlu1 %v1958_v43 }
 0x419   : > { %v1960_v44 = vpop.xlane.xlu0 %1959 }
 0x41a   : > { %v2003_v14 = vmul.f32 0.0078125, %v1960_v44 }
 0x41c   : > { %v2025_v18 = vadd.f32 1e-05, %v2003_v14  ;;  %v3242_v14 = vld [vmem:[%s3608_s15 + $0x8] sm:$0xff]  }
 0x41d   : > { %v1962_v48 = vpop.xlane.xlu1 %1961 }
 0x41e   : > { %3197 = vrsqrt.f32 %v2025_v18  ;;  %v2004_v58 = vmul.f32 0.0078125, %v1962_v48  ;;  %v2173_v18 = vunpack.c.l.bf16 %v3242_v14  ;;  %v2174_v48 = vunpack.c.h.bf16 %v3242_v14 }
 0x420   : > { %v2026_v49 = vadd.f32 1e-05, %v2004_v58 }
 0x421   : > { %v1964_v52 = vpop.xlane.xlu0 %1963 }
 0x422   : > { %3199 = vrsqrt.f32 %v2026_v49  ;;  %v2005_v37 = vmul.f32 0.0078125, %v1964_v52 }
 0x424   : > { %v2027_v53 = vadd.f32 1e-05, %v2005_v37 }
 0x425   : > { %v1966_v20 = vpop.xlane.xlu1 %1965 }
 0x426   : > { %3201 = vrsqrt.f32 %v2027_v53  ;;  %v2006_v25 = vmul.f32 0.0078125, %v1966_v20 }
 0x428   : > { %v3198_v55 = vpop.eup %3197  ;;  %v2028_v59 = vadd.f32 1e-05, %v2006_v25 }
 0x429   : > { %v2069_v61 = vmul.f32 %v3198_v55, %v3993_v2  ;;  %v1968_v16 = vpop.xlane.xlu0 %1967 }
 0x42a   : > { %3203 = vrsqrt.f32 %v2028_v59  ;;  %v2007_v31 = vmul.f32 0.0078125, %v1968_v16 }
 0x42b   : > { %v2098_v3 = vmul.f32 %v4105_v57, %v2069_v61  ;;  %v1970_v5 = vpop.xlane.xlu1 %1969 }
 0x42c   : > { %v3200_v42 = vpop.eup %3199  ;;  %v2029_v2 = vadd.f32 1e-05, %v2007_v31  ;;  %v2008_v46 = vmul.f32 0.0078125, %v1970_v5  ;;  %v3243_v31 = vld [vmem:[%s3608_s15 + $0x10] sm:$0xff]  }
 0x42d   : > { %v2127_v22 = vadd.f32 %v4112_v63, %v2098_v3  ;;  %v2070_v36 = vmul.f32 %v3200_v42, %v3998_v8  ;;  %v2175_v3 = vunpack.c.l.bf16 %v3243_v31 }
 0x42e   : > { %3205 = vrsqrt.f32 %v2029_v2  ;;  %v2030_v4 = vadd.f32 1e-05, %v2008_v46  ;;  %v2176_v2 = vunpack.c.h.bf16 %v3243_v31 }
 0x42f   : > { %2149 = vst [vmem:[%s4118_s18] sm:$0xff] %v2127_v22  ;;  %v2099_v51 = vmul.f32 %v4105_v57, %v2070_v36  ;;  %v2193_v27 = vadd.f32 %v2171_v47, %v2127_v22 }
 0x430   : > { %v3202_v41 = vpop.eup %3201  ;;  %3207 = vrsqrt.f32 %v2030_v4 }
 0x431   : > { %v2128_v24 = vadd.f32 %v4112_v63, %v2099_v51  ;;  %v2071_v0 = vmul.f32 %v3202_v41, %v4003_v13  ;;  %v1972_v29 = vpop.xlane.xlu0 %1971 }
 0x432   : > { %v2009_v8 = vmul.f32 0.0078125, %v1972_v29 }
 0x433   : > { %2150 = vst [vmem:[%s4118_s18 + $0x8] sm:$0xff] %v2128_v24  ;;  %v2194_v50 = vadd.f32 %v2172_v40, %v2128_v24  ;;  %v2100_v33 = vmul.f32 %v4105_v57, %v2071_v0  ;;  %v1974_v34 = vpop.xlane.xlu1 %1973 }
 0x434   : > { %v3204_v9 = vpop.eup %3203  ;;  %v2031_v7 = vadd.f32 1e-05, %v2009_v8  ;;  %v2010_v54 = vmul.f32 0.0078125, %v1974_v34  ;;  %v3244_v34 = vld [vmem:[%s3608_s15 + $0x18] sm:$0xff]  }
 0x435   : > { %v2596_v26 = vpack.c.bf16 %v2194_v50, %v2193_v27  ;;  %v2129_v43 = vadd.f32 %v4112_v63, %v2100_v33  ;;  %v2072_v44 = vmul.f32 %v3204_v9, %v4008_v12  ;;  %v2177_v9 = vunpack.c.l.bf16 %v3244_v34 }
 0x436   : > { %3209 = vrsqrt.f32 %v2031_v7  ;;  %v2032_v13 = vadd.f32 1e-05, %v2010_v54  ;;  %v2178_v7 = vunpack.c.h.bf16 %v3244_v34 }
 0x437   : > { %2597 = vst [vmem:[%s4135_s4] sm:$0xff] %v2596_v26   ;;  %2151 = vst [vmem:[%s4118_s18 + $0x10] sm:$0xff] %v2129_v43  ;;  %v2101_v58 = vmul.f32 %v4105_v57, %v2072_v44  ;;  %v2195_v25 = vadd.f32 %v2173_v18, %v2129_v43 }
 0x438   : > { %v3206_v49 = vpop.eup %3205  ;;  %3211 = vrsqrt.f32 %v2032_v13 }
 0x439   : > { %v2130_v52 = vadd.f32 %v4112_v63, %v2101_v58  ;;  %v2073_v12 = vmul.f32 %v3206_v49, %v4013_v11  ;;  %v1976_v37 = vpop.xlane.xlu0 %1975 }
 0x43a   : > { %v3208_v53 = vpop.eup %3207  ;;  %v2011_v20 = vmul.f32 0.0078125, %v1976_v37 }
 0x43b   : > { %2152 = vst [vmem:[%s4118_s18 + $0x18] sm:$0xff] %v2130_v52  ;;  %v2196_v55 = vadd.f32 %v2174_v48, %v2130_v52  ;;  %v2102_v59 = vmul.f32 %v4105_v57, %v2073_v12  ;;  %v2074_v61 = vmul.f32 %v3208_v53, %v4016_v28  ;;  %v1978_v16 = vpop.xlane.xlu1 %1977 }
 0x43c   : > { %v2033_v5 = vadd.f32 1e-05, %v2011_v20  ;;  %v2012_v42 = vmul.f32 0.0078125, %v1978_v16 }
 0x43d   : > { %v2601_v11 = vpack.c.bf16 %v2196_v55, %v2195_v25  ;;  %v2131_v46 = vadd.f32 %v4112_v63, %v2102_v59  ;;  %v2103_v22 = vmul.f32 %v4105_v57, %v2074_v61  ;;  %v3245_v25 = vld [vmem:[%s3608_s15 + $0x20] sm:$0xff]  }
 0x43e   : > { %3213 = vrsqrt.f32 %v2033_v5  ;;  %v2034_v36 = vadd.f32 1e-05, %v2012_v42  ;;  %v2179_v55 = vunpack.c.l.bf16 %v3245_v25  ;;  %v2180_v59 = vunpack.c.h.bf16 %v3245_v25 }
 0x43f   : > { %2648 = vst [vmem:[%s4135_s4 + $0x8] sm:$0xff] %v2601_v11   ;;  %2153 = vst [vmem:[%s4118_s18 + $0x20] sm:$0xff] %v2131_v46  ;;  %v2132_v4 = vadd.f32 %v4112_v63, %v2103_v22  ;;  %v2197_v17 = vadd.f32 %v2175_v3, %v2131_v46 }
 0x440   : > { %v3210_v28 = vpop.eup %3209  ;;  %3215 = vrsqrt.f32 %v2034_v36 }
 0x441   : > { %2154 = vst [vmem:[%s4118_s18 + $0x28] sm:$0xff] %v2132_v4  ;;  %v2198_v47 = vadd.f32 %v2176_v2, %v2132_v4  ;;  %v2075_v40 = vmul.f32 %v3210_v28, %v4023_v35  ;;  %v1980_v51 = vpop.xlane.xlu0 %1979 }
 0x442   : > { %v3212_v41 = vpop.eup %3211  ;;  %v2013_v24 = vmul.f32 0.0078125, %v1980_v51 }
 0x443   : > { %v2606_v0 = vpack.c.bf16 %v2198_v47, %v2197_v17  ;;  %v2104_v29 = vmul.f32 %v4105_v57, %v2075_v40  ;;  %v2076_v8 = vmul.f32 %v3212_v41, %v4026_v15  ;;  %v1982_v27 = vpop.xlane.xlu1 %1981  ;;  %v3246_v40 = vld [vmem:[%s3608_s15 + $0x28] sm:$0xff]  }
 0x444   : > { %v2035_v50 = vadd.f32 1e-05, %v2013_v24  ;;  %v2014_v33 = vmul.f32 0.0078125, %v1982_v27  ;;  %v2181_v51 = vunpack.c.l.bf16 %v3246_v40  ;;  %v2182_v41 = vunpack.c.h.bf16 %v3246_v40 }
 0x445   : > { %2649 = vst [vmem:[%s4135_s4 + $0x10] sm:$0xff] %v2606_v0   ;;  %v2133_v54 = vadd.f32 %v4112_v63, %v2104_v29  ;;  %v2105_v35 = vmul.f32 %v4105_v57, %v2076_v8 }
 0x446   : > { %3217 = vrsqrt.f32 %v2035_v50  ;;  %v2036_v26 = vadd.f32 1e-05, %v2014_v33 }
 0x447   : > { %2155 = vst [vmem:[%s4118_s18 + $0x30] sm:$0xff] %v2133_v54  ;;  %v2134_v43 = vadd.f32 %v4112_v63, %v2105_v35  ;;  %v2199_v15 = vadd.f32 %v2177_v9, %v2133_v54 }
 0x448   : > { %v3214_v44 = vpop.eup %3213  ;;  %3219 = vrsqrt.f32 %v2036_v26 }
 0x449   : > { %2156 = vst [vmem:[%s4118_s18 + $0x38] sm:$0xff] %v2134_v43  ;;  %v2200_v13 = vadd.f32 %v2178_v7, %v2134_v43  ;;  %v2077_v14 = vmul.f32 %v3214_v44, %v4033_v21  ;;  %v1984_v18 = vpop.xlane.xlu0 %1983 }
 0x44a   : > { %v3216_v48 = vpop.eup %3215  ;;  %v2015_v58 = vmul.f32 0.0078125, %v1984_v18 }
 0x44b   : > { %v2611_v49 = vpack.c.bf16 %v2200_v13, %v2199_v15  ;;  %v2106_v52 = vmul.f32 %v4105_v57, %v2077_v14  ;;  %v2078_v12 = vmul.f32 %v3216_v48, %v4036_v45  ;;  %v1986_v37 = vpop.xlane.xlu1 %1985  ;;  %v3247_v15 = vld [vmem:[%s3608_s15 + $0x30] sm:$0xff]  }
 0x44c   : > { %v2037_v53 = vadd.f32 1e-05, %v2015_v58  ;;  %v2016_v20 = vmul.f32 0.0078125, %v1986_v37  ;;  %v2183_v13 = vunpack.c.l.bf16 %v3247_v15  ;;  %v2184_v14 = vunpack.c.h.bf16 %v3247_v15 }
 0x44d   : > { %2650 = vst [vmem:[%s4135_s4 + $0x18] sm:$0xff] %v2611_v49   ;;  %v2135_v61 = vadd.f32 %v4112_v63, %v2106_v52  ;;  %v2107_v21 = vmul.f32 %v4105_v57, %v2078_v12 }
 0x44e   : > { %3221 = vrsqrt.f32 %v2037_v53  ;;  %v2038_v16 = vadd.f32 1e-05, %v2016_v20 }
 0x44f   : > { %2157 = vst [vmem:[%s4118_s18 + $0x40] sm:$0xff] %v2135_v61  ;;  %v2136_v31 = vadd.f32 %v4112_v63, %v2107_v21  ;;  %v2201_v45 = vadd.f32 %v2179_v55, %v2135_v61 }
 0x450   : > { %v3218_v3 = vpop.eup %3217  ;;  %3223 = vrsqrt.f32 %v2038_v16 }
 0x451   : > { %2158 = vst [vmem:[%s4118_s18 + $0x48] sm:$0xff] %v2136_v31  ;;  %v2202_v5 = vadd.f32 %v2180_v59, %v2136_v31  ;;  %v2079_v42 = vmul.f32 %v3218_v3, %v4043_v56  ;;  %v1988_v2 = vpop.xlane.xlu0 %1987  ;;  %v3248_v31 = vld [vmem:[%s3608_s15 + $0x38] sm:$0xff]  }
 0x452   : > { %v3220_v11 = vpop.eup %3219  ;;  %v2017_v46 = vmul.f32 0.0078125, %v1988_v2  ;;  %v2185_v3 = vunpack.c.l.bf16 %v3248_v31 }
 0x453   : > { %v2616_v22 = vpack.c.bf16 %v2202_v5, %v2201_v45  ;;  %v2108_v36 = vmul.f32 %v4105_v57, %v2079_v42  ;;  %v2080_v4 = vmul.f32 %v3220_v11, %v4046_v32  ;;  %v1990_v28 = vpop.xlane.xlu1 %1989  ;;  %v2186_v45 = vunpack.c.h.bf16 %v3248_v31 }
 0x454   : > { %v2039_v17 = vadd.f32 1e-05, %v2017_v46  ;;  %v2018_v47 = vmul.f32 0.0078125, %v1990_v28 }
 0x455   : > { %2651 = vst [vmem:[%s4135_s4 + $0x20] sm:$0xff] %v2616_v22   ;;  %v2137_v24 = vadd.f32 %v4112_v63, %v2108_v36  ;;  %v2109_v56 = vmul.f32 %v4105_v57, %v2080_v4 }
 0x456   : > { %3225 = vrsqrt.f32 %v2039_v17  ;;  %v2040_v0 = vadd.f32 1e-05, %v2018_v47 }
 0x457   : > { %2159 = vst [vmem:[%s4118_s18 + $0x50] sm:$0xff] %v2137_v24  ;;  %v2138_v29 = vadd.f32 %v4112_v63, %v2109_v56  ;;  %v2203_v32 = vadd.f32 %v2181_v51, %v2137_v24  ;;  %v3249_v56 = vld [vmem:[%s3608_s15 + $0x40] sm:$0xff]  }
 0x458   : > { %v3222_v8 = vpop.eup %3221  ;;  %3227 = vrsqrt.f32 %v2040_v0  ;;  %v2187_v0 = vunpack.c.l.bf16 %v3249_v56 }
 0x459   : > { %2160 = vst [vmem:[%s4118_s18 + $0x58] sm:$0xff] %v2138_v29  ;;  %v2204_v27 = vadd.f32 %v2182_v41, %v2138_v29  ;;  %v2081_v50 = vmul.f32 %v3222_v8, %v4053_v62  ;;  %v1992_v33 = vpop.xlane.xlu0 %1991  ;;  %v2188_v29 = vunpack.c.h.bf16 %v3249_v56 }
 0x45a   : > { %v3224_v34 = vpop.eup %3223  ;;  %v2019_v9 = vmul.f32 0.0078125, %v1992_v33 }
 0x45b   : > { %v2621_v7 = vpack.c.bf16 %v2204_v27, %v2203_v32  ;;  %v2110_v54 = vmul.f32 %v4105_v57, %v2081_v50  ;;  %v2082_v35 = vmul.f32 %v3224_v34, %v4056_v1  ;;  %v1994_v26 = vpop.xlane.xlu1 %1993 }
 0x45c   : > { %v2041_v43 = vadd.f32 1e-05, %v2019_v9  ;;  %v2020_v44 = vmul.f32 0.0078125, %v1994_v26  ;;  %v3250_v26 = vld [vmem:[%s3608_s15 + $0x48] sm:$0xff]  }
 0x45d   : > { %2652 = vst [vmem:[%s4135_s4 + $0x28] sm:$0xff] %v2621_v7   ;;  %v2139_v18 = vadd.f32 %v4112_v63, %v2110_v54  ;;  %v2111_v62 = vmul.f32 %v4105_v57, %v2082_v35 }
 0x45e   : > { %3229 = vrsqrt.f32 %v2041_v43  ;;  %v2042_v48 = vadd.f32 1e-05, %v2020_v44  ;;  %v2189_v43 = vunpack.c.l.bf16 %v3250_v26  ;;  %v2190_v44 = vunpack.c.h.bf16 %v3250_v26 }
 0x45f   : > { %2161 = vst [vmem:[%s4118_s18 + $0x60] sm:$0xff] %v2139_v18  ;;  %v2140_v58 = vadd.f32 %v4112_v63, %v2111_v62  ;;  %v2205_v1 = vadd.f32 %v2183_v13, %v2139_v18 }
 0x460   : > { %v3226_v49 = vpop.eup %3225  ;;  %3231 = vrsqrt.f32 %v2042_v48 }
 0x461   : > { %2162 = vst [vmem:[%s4118_s18 + $0x68] sm:$0xff] %v2140_v58  ;;  %v2206_v52 = vadd.f32 %v2184_v14, %v2140_v58  ;;  %v2083_v12 = vmul.f32 %v3226_v49, %v4063_v60  ;;  %v1996_v37 = vpop.xlane.xlu0 %1995 }
 0x462   : > { %v3228_v53 = vpop.eup %3227  ;;  %v2021_v20 = vmul.f32 0.0078125, %v1996_v37 }
 0x463   : > { %v2626_v25 = vpack.c.bf16 %v2206_v52, %v2205_v1  ;;  %v2112_v55 = vmul.f32 %v4105_v57, %v2083_v12  ;;  %v2084_v59 = vmul.f32 %v3228_v53, %v4066_v10  ;;  %v1998_v61 = vpop.xlane.xlu1 %1997  ;;  %v3251_v52 = vld [vmem:[%s3608_s15 + $0x50] sm:$0xff]  }
 0x464   : > { %v2043_v21 = vadd.f32 1e-05, %v2021_v20  ;;  %v2022_v16 = vmul.f32 0.0078125, %v1998_v61  ;;  %v2191_v12 = vunpack.c.l.bf16 %v3251_v52  ;;  %v2192_v37 = vunpack.c.h.bf16 %v3251_v52 }
 0x465   : > { %2653 = vst [vmem:[%s4135_s4 + $0x30] sm:$0xff] %v2626_v25   ;;  %v2141_v5 = vadd.f32 %v4112_v63, %v2112_v55  ;;  %v2113_v60 = vmul.f32 %v4105_v57, %v2084_v59 }
 0x466   : > { %3233 = vrsqrt.f32 %v2043_v21  ;;  %v2044_v42 = vadd.f32 1e-05, %v2022_v16 }
 0x467   : > { %2163 = vst [vmem:[%s4118_s18 + $0x70] sm:$0xff] %v2141_v5  ;;  %v2142_v2 = vadd.f32 %v4112_v63, %v2113_v60  ;;  %v2207_v10 = vadd.f32 %v2185_v3, %v2141_v5 }
 0x468   : > { %v3230_v11 = vpop.eup %3229  ;;  %3235 = vrsqrt.f32 %v2044_v42 }
 0x469   : > { %2164 = vst [vmem:[%s4118_s18 + $0x78] sm:$0xff] %v2142_v2  ;;  %v2208_v46 = vadd.f32 %v2186_v45, %v2142_v2  ;;  %v2085_v22 = vmul.f32 %v3230_v11, %v4073_v23  ;;  %v2000_v36 = vpop.xlane.xlu0 %1999 }
 0x46a   : > { %v3232_v4 = vpop.eup %3231  ;;  %v2023_v28 = vmul.f32 0.0078125, %v2000_v36 }
 0x46b   : > { %v2631_v17 = vpack.c.bf16 %v2208_v46, %v2207_v10  ;;  %v2114_v47 = vmul.f32 %v4105_v57, %v2085_v22  ;;  %v2086_v40 = vmul.f32 %v3232_v4, %v4076_v19  ;;  %v2002_v51 = vpop.xlane.xlu1 %2001 }
 0x46c   : > { %v2045_v41 = vadd.f32 1e-05, %v2023_v28  ;;  %v2024_v24 = vmul.f32 0.0078125, %v2002_v51 }
 0x46d   : > { %2654 = vst [vmem:[%s4135_s4 + $0x38] sm:$0xff] %v2631_v17   ;;  %v2143_v8 = vadd.f32 %v4112_v63, %v2114_v47  ;;  %v2115_v23 = vmul.f32 %v4105_v57, %v2086_v40 }
 0x46e   : > { %3237 = vrsqrt.f32 %v2045_v41  ;;  %v2046_v32 = vadd.f32 1e-05, %v2024_v24 }
 0x46f   : > { %2165 = vst [vmem:[%s4118_s18 + $0x80] sm:$0xff] %v2143_v8  ;;  %v2144_v27 = vadd.f32 %v4112_v63, %v2115_v23  ;;  %v2209_v50 = vadd.f32 %v2187_v0, %v2143_v8 }
 0x470   : > { %v3234_v19 = vpop.eup %3233  ;;  %3239 = vrsqrt.f32 %v2046_v32 }
 0x471   : > { %2166 = vst [vmem:[%s4118_s18 + $0x88] sm:$0xff] %v2144_v27  ;;  %v2210_v33 = vadd.f32 %v2188_v29, %v2144_v27  ;;  %v2087_v34 = vmul.f32 %v3234_v19, %v4083_v6 }
 0x472   : > { %v3236_v9 = vpop.eup %3235 }
 0x473   : > { %v2636_v7 = vpack.c.bf16 %v2210_v33, %v2209_v50  ;;  %v2116_v54 = vmul.f32 %v4105_v57, %v2087_v34  ;;  %v2088_v35 = vmul.f32 %v3236_v9, %v4086_v30 }
 0x475   : > { %2655 = vst [vmem:[%s4135_s4 + $0x40] sm:$0xff] %v2636_v7   ;;  %v2145_v15 = vadd.f32 %v4112_v63, %v2116_v54  ;;  %v2117_v13 = vmul.f32 %v4105_v57, %v2088_v35 }
 0x477   : > { %2167 = vst [vmem:[%s4118_s18 + $0x90] sm:$0xff] %v2145_v15  ;;  %v2146_v14 = vadd.f32 %v4112_v63, %v2117_v13  ;;  %v2211_v18 = vadd.f32 %v2189_v43, %v2145_v15 }
 0x478   : > { %v3238_v6 = vpop.eup %3237 }
 0x479   : > { %2168 = vst [vmem:[%s4118_s18 + $0x98] sm:$0xff] %v2146_v14  ;;  %v2212_v30 = vadd.f32 %v2190_v44, %v2146_v14  ;;  %v2089_v62 = vmul.f32 %v3238_v6, %v4093_v38 }
 0x47a   : > { %v3240_v48 = vpop.eup %3239 }
 0x47b   : > { %v2641_v58 = vpack.c.bf16 %v2212_v30, %v2211_v18  ;;  %v2118_v49 = vmul.f32 %v4105_v57, %v2089_v62  ;;  %v2090_v1 = vmul.f32 %v3240_v48, %v4096_v39 }
 0x47d   : > { %2656 = vst [vmem:[%s4135_s4 + $0x48] sm:$0xff] %v2641_v58   ;;  %v2147_v53 = vadd.f32 %v4112_v63, %v2118_v49  ;;  %v2119_v20 = vmul.f32 %v4105_v57, %v2090_v1 }
 0x47f   : > { %2169 = vst [vmem:[%s4118_s18 + $0xa0] sm:$0xff] %v2147_v53  ;;  %v2148_v38 = vadd.f32 %v4112_v63, %v2119_v20  ;;  %v2213_v25 = vadd.f32 %v2191_v12, %v2147_v53 }
 0x481   : > { %2170 = vst [vmem:[%s4118_s18 + $0xa8] sm:$0xff] %v2148_v38  ;;  %v2214_v55 = vadd.f32 %v2192_v37, %v2148_v38  ;;  %s3258_s18 = scalar_lea.vmem %s3257_s1, 2816 }
 0x482   : > { %p3260_p1 = scmp.lt.s32.totalorder %s3258_s18, %s3252_s25 }
 0x483   : > { %v2646_v39 = vpack.c.bf16 %v2214_v55, %v2213_v25 }
 0x484   : > { %p3261_p2 = por %p3260_p1, %p3259_p0 }
 0x485   : > { %2657 = vst [vmem:[%s4135_s4 + $0x50] sm:$0xff] %v2646_v39  }
 0x486   : > { %p3262_p3 = pnand %p3261_p2, %p3255_p13 }
 0x488   : > { %3265 = shalt.err (!%p3262_p3)
}
 0x489   : > { %s3266_s22 = scalar_lea.hbm %s4237_s28, 1408  ;;  %s3270_s26 = scalar_lea.hbm %s4299_s14, 2816 }
 0x48a   : > { %p3267_p4 = scmp.ne.s32.totalorder %s4237_s28, %s3266_s22  ;;  %p3271_p9 = scmp.lt.u32.totalorder %s4237_s28, %s4299_s14 }
 0x48b   : > { %p3272_p10 = scmp.lt.u32.totalorder %s3270_s26, %s3266_s22  ;;  %p3274_p12 = scmp.lt.u32.totalorder %s3266_s22, %s4237_s28 }
 0x48c   : > { %p3268_p7 = pnand %p3267_p4, %p3434_p5 }
 0x48d   : > { %p3273_p11 = por %p3272_p10, %p3271_p9 }
 0x48e   : > { %p3269_p8 = pneg %p3268_p7 }
 0x48f   : > { %p3275_p13 = por %p3274_p12, %p3273_p11 }
 0x491   : > { %p3276_p0 = pnand %p3275_p13, %p3269_p8 }
 0x493   : > { %3279 = shalt.err (!%p3276_p0)
}
 0x494   : > { %s3319_s25 = smov 64   ;;  %s3320_s21 = smov 4  }
 0x495   : > { %3070 = dma.vmem_to_hbm [thread:$0]  (%p3434_p5), %s4239_s27, 1408, %s4237_s28, %s4244_s17, %s3319_s25, %s3319_s25, %s3320_s21  }
 0x496 PF: > { %p3076_p1 = scmp.ge.s32.totalorder %s3314_s16, 2  ;;  %s2371_s1 = sand.u32 1, %s3302_s29  }
 0x497   : > { %s2372_s18 = scalar_lea.sflag [#allocation3], %s2371_s1 }
 0x498   : > { %p3073_p2 = pnand %p3076_p1, %p3438_p6 }
 0x49a   : > { %3297 = dma.done.wait (!%p3073_p2), %s2372_s18, 1408  }
 0x49b   : > { %3299 = vsyncadd (!%p3073_p2), %s2372_s18, 4294965888  ;;  %s4311_s22 = sld [smem:[#allocation5_spill]]  ;;  %s4312_s15 = sld [smem:[#allocation6_spill]] }
 0x49c   : > { %p25_p3 = scmp.ge.s32.totalorder %s3421_s19, 4   ;;  %s4313_s29 = smov %s3306_s30 }
 0x49d   : > { %s4315_s16 = smov %s3421_s19 }
 0x49e   :  { %27 = sbr.rel (!%p25_p3) target bundleno = 7 (0x7), region = 125 }
 0x4a1   : > { %s4314_s30 = smov %s4311_s22 }
 0x4a5   :  { %2377 = vsyncpa [#allocation3], 1 }
 0x4a6   :  { %2379 = vsyncpa [#allocation3 + $0x1], 1 }

</bundles_post_ra>
